<compile_context>
chip_gen: v6e
topology: v6e:2x2x1
jax: 0.10.0
libtpu: 0.0.40
codegen_flags: <defaults>
</compile_context>

<pallas_src>
import functools
import math

import jax
import jax.numpy as jnp
import numpy as np
from jax import lax
from jax.experimental import pallas as pl
from jax.experimental.pallas import tpu as pltpu


def _mobilenet_block_kernel(x_ref, wdw_ref, wpw_ref, o_ref, xp_ref,
                            *, stride, eps, Ho, Wo):
    """Whole block on one grid point (the full BN reduction domain must be resident)."""
    N, H, W, Cin = x_ref.shape
    Cout = wpw_ref.shape[1]

    # --- padding = 1, done once into a VMEM scratch (no wrapper HBM pad pass).
    xp_ref[...] = jnp.zeros_like(xp_ref)
    xp_ref[:, 1:H + 1, 1:W + 1, :] = x_ref[...]

    # --- depthwise 3x3 conv (groups == Cin): 9 shifted FMAs on the VPU.
    # Taps are read straight from the scratch ref (static windows), no value slices.
    wdw = wdw_ref[...]                                  # (3, 3, Cin), loaded once
    acc = None
    for dy in range(3):
        for dx in range(3):
            if stride == 1:
                tap = xp_ref[:, dy:dy + Ho, dx:dx + Wo, :]
            else:
                tap = xp_ref[:, pl.ds(dy, Ho, stride), pl.ds(dx, Wo, stride), :]
            term = tap * wdw[dy, dx, :]
            acc = term if acc is None else acc + term   # (N, Ho, Wo, Cin) f32

    # --- BatchNorm2d #1 (training-mode biased batch stats, gamma=1, beta=0) + ReLU.
    # Single-pass stats: sum and sum-of-squares together, var = E[x^2] - E[x]^2 (f32).
    rows = N * Ho * Wo
    inv_n = 1.0 / rows
    flat1 = acc.reshape(rows, Cin)                      # minor dim unchanged -> layout no-op
    s1 = jnp.sum(flat1, axis=0, keepdims=True)
    q1 = jnp.sum(flat1 * flat1, axis=0, keepdims=True)
    m1 = s1 * inv_n
    v1 = q1 * inv_n - m1 * m1
    y = jnp.maximum((flat1 - m1) * lax.rsqrt(v1 + eps), 0.0)

    # --- pointwise 1x1 conv == channel matmul on the MXU (f32; see header note re bf16).
    z = jnp.dot(y, wpw_ref[...], preferred_element_type=jnp.float32)    # (rows, Cout)

    # --- BatchNorm2d #2 + ReLU (same fused single-pass stats).
    s2 = jnp.sum(z, axis=0, keepdims=True)
    q2 = jnp.sum(z * z, axis=0, keepdims=True)
    m2 = s2 * inv_n
    v2 = q2 * inv_n - m2 * m2
    z = jnp.maximum((z - m2) * lax.rsqrt(v2 + eps), 0.0)

    # --- lane-dense packed store: output block is (N, Ho, Wo*Cout), i.e. the last dim is a
    # large multiple of Cout, so the output VMEM buffer is dense and the HBM DMA contiguous.
    zr = z.reshape(N, Ho, Wo, Cout)                     # minor dim unchanged -> layout no-op
    for ox in range(Wo):                                # static lane-offset stores
        o_ref[:, :, ox * Cout:(ox + 1) * Cout] = zr[:, :, ox, :]


def mobilenetv1_block(x_nchw, w_dw, w_pw, stride=1, eps=1e-5):
    """x_nchw: (N, Cin, H, W); w_dw: (Cin, 1, 3, 3); w_pw: (Cout, Cin, 1, 1)."""
    N, Cin, H, W = x_nchw.shape
    Cout = w_pw.shape[0]
    Ho = (H + 2 - 3) // stride + 1
    Wo = (W + 2 - 3) // stride + 1

    # Single layout pass NCHW -> NHWC (channels onto lanes). Padding happens in-kernel,
    # so the previous wrapper-side jnp.pad HBM round trip is gone. An NHWC-native pipeline
    # could skip this transpose (and the output one) entirely.
    x = jnp.transpose(x_nchw, (0, 2, 3, 1)).astype(jnp.float32)               # (N, H, W, Cin)
    wdw = jnp.transpose(w_dw[:, 0, :, :], (1, 2, 0)).astype(jnp.float32)      # (3, 3, Cin)
    wpw = jnp.transpose(w_pw[:, :, 0, 0], (1, 0)).astype(jnp.float32)         # (Cin, Cout)

    # TODO(synk): for large (real MobileNet) shapes this single-grid-point design must be
    # tiled over N/H with BlockSpecs and a two-pass BN-stat reduction (mandatory on v7x's
    # 64 MiB VMEM, beneficial on v5e/v6e); the toy test shapes fit comfortably in VMEM.
    kernel = functools.partial(_mobilenet_block_kernel,
                               stride=stride, eps=eps, Ho=Ho, Wo=Wo)
    out_packed = pl.pallas_call(
        kernel,
        out_shape=jax.ShapeDtypeStruct((N, Ho, Wo * Cout), jnp.float32),
        scratch_shapes=[pltpu.VMEM((N, H + 2, W + 2, Cin), jnp.float32)],
    )(x, wdw, wpw)

    # (N, Ho, Wo*Cout) -> (N, Ho, Wo, Cout) is a free reshape; one transpose back to NCHW.
    return jnp.transpose(out_packed.reshape(N, Ho, Wo, Cout), (0, 3, 1, 2))


def _reference(x_nchw, w_dw, w_pw, stride=1, eps=1e-5):
    """Pure-JAX reference of the PyTorch forward (training-mode BN, two-pass variance)."""
    x = jnp.transpose(x_nchw, (0, 2, 3, 1)).astype(jnp.float32)
    Cin = x.shape[-1]
    dw_hwio = jnp.transpose(w_dw, (2, 3, 1, 0)).astype(jnp.float32)           # (3,3,1,Cin)
    y = lax.conv_general_dilated(
        x, dw_hwio, (stride, stride), ((1, 1), (1, 1)),
        dimension_numbers=("NHWC", "HWIO", "NHWC"), feature_group_count=Cin)
    m = jnp.mean(y, axis=(0, 1, 2), keepdims=True)
    v = jnp.mean((y - m) ** 2, axis=(0, 1, 2), keepdims=True)
    y = jnp.maximum((y - m) * lax.rsqrt(v + eps), 0.0)
    pw = jnp.transpose(w_pw[:, :, 0, 0], (1, 0)).astype(jnp.float32)
    z = jnp.einsum("nhwc,co->nhwo", y, pw)
    m = jnp.mean(z, axis=(0, 1, 2), keepdims=True)
    v = jnp.mean((z - m) ** 2, axis=(0, 1, 2), keepdims=True)
    z = jnp.maximum((z - m) * lax.rsqrt(v + eps), 0.0)
    return jnp.transpose(z, (0, 3, 1, 2))


if __name__ == "__main__":
    N, Cin, Cout, H, W, stride = 2, 8, 16, 16, 16, 1

    key = jax.random.PRNGKey(0)
    kx, kdw, kpw = jax.random.split(key, 3)

    x = jax.random.normal(kx, (N, Cin, H, W), jnp.float32)

    # weights_init(): Conv2d weights ~ N(0, sqrt(2 / (k*k*out_channels))), no bias.
    std_dw = math.sqrt(2.0 / (3 * 3 * Cin))    # conv1: out_channels == inp
    std_pw = math.sqrt(2.0 / (1 * 1 * Cout))   # conv2: 1x1, out_channels == oup
    w_dw = jax.random.normal(kdw, (Cin, 1, 3, 3), jnp.float32) * std_dw
    w_pw = jax.random.normal(kpw, (Cout, Cin, 1, 1), jnp.float32) * std_pw

    out = mobilenetv1_block(x, w_dw, w_pw, stride=stride)
    out = jax.block_until_ready(out)

    ref = jax.block_until_ready(_reference(x, w_dw, w_pw, stride=stride))
    assert out.shape == (N, Cout, H, W)
    assert np.allclose(np.asarray(out), np.asarray(ref), rtol=1e-4, atol=1e-4)

    print("KERNEL_OK")
</pallas_src>

<mosaic_0001>
module attributes {stable_mosaic.version = 11 : i64} {
  func.func @_mobilenet_block_kernel(%arg0: memref<2x16x16x8xf32, #tpu.memory_space<vmem>>, %arg1: memref<3x3x8xf32, #tpu.memory_space<vmem>>, %arg2: memref<8x16xf32, #tpu.memory_space<vmem>>, %arg3: memref<2x16x256xf32, #tpu.memory_space<vmem>>, %arg4: memref<2x18x18x8xf32, #tpu.memory_space<vmem>>) attributes {dimension_semantics = [], scalar_prefetch = 0 : i64, scratch_operands = 1 : i64, tpu.core_type = #tpu.core_type<tc>} {
    %cst = arith.constant 0.000000e+00 : f32
    %0 = vector.broadcast %cst : f32 to vector<2x18x18x8xf32>
    %c0 = arith.constant 0 : index
    %c0_0 = arith.constant 0 : index
    %c0_1 = arith.constant 0 : index
    %c0_2 = arith.constant 0 : index
    %1 = vector.load %arg4[%c0, %c0_0, %c0_1, %c0_2] : memref<2x18x18x8xf32, #tpu.memory_space<vmem>>, vector<2x18x18x8xf32>
    tpu.vector_store %arg4[%c0, %c0_0, %c0_1, %c0_2], %0 {strides = array<i32>} : memref<2x18x18x8xf32, #tpu.memory_space<vmem>>, vector<2x18x18x8xf32>,
    %c0_3 = arith.constant 0 : index
    %c0_4 = arith.constant 0 : index
    %c0_5 = arith.constant 0 : index
    %c0_6 = arith.constant 0 : index
    %2 = vector.load %arg0[%c0_3, %c0_4, %c0_5, %c0_6] : memref<2x16x16x8xf32, #tpu.memory_space<vmem>>, vector<2x16x16x8xf32>
    %c0_7 = arith.constant 0 : index
    %c1 = arith.constant 1 : index
    %c1_8 = arith.constant 1 : index
    %c0_9 = arith.constant 0 : index
    %3 = vector.load %arg4[%c0_7, %c1, %c1_8, %c0_9] : memref<2x18x18x8xf32, #tpu.memory_space<vmem>>, vector<2x16x16x8xf32>
    tpu.vector_store %arg4[%c0_7, %c1, %c1_8, %c0_9], %2 {strides = array<i32>} : memref<2x18x18x8xf32, #tpu.memory_space<vmem>>, vector<2x16x16x8xf32>,
    %c0_10 = arith.constant 0 : index
    %c0_11 = arith.constant 0 : index
    %c0_12 = arith.constant 0 : index
    %4 = vector.load %arg1[%c0_10, %c0_11, %c0_12] : memref<3x3x8xf32, #tpu.memory_space<vmem>>, vector<3x3x8xf32>
    %c0_13 = arith.constant 0 : index
    %c0_14 = arith.constant 0 : index
    %c0_15 = arith.constant 0 : index
    %c0_16 = arith.constant 0 : index
    %5 = vector.load %arg4[%c0_13, %c0_14, %c0_15, %c0_16] : memref<2x18x18x8xf32, #tpu.memory_space<vmem>>, vector<2x16x16x8xf32>
    %6 = vector.extract_strided_slice %4 {offsets = [0, 0, 0], sizes = [1, 1, 8], strides = [1, 1, 1]} : vector<3x3x8xf32> to vector<1x1x8xf32>
    %7 = vector.shape_cast %6 : vector<1x1x8xf32> to vector<8xf32>
    %8 = vector.shape_cast %7 : vector<8xf32> to vector<1x1x1x8xf32>
    %9 = vector.broadcast %8 : vector<1x1x1x8xf32> to vector<2x16x16x8xf32>
    %10 = arith.mulf %5, %9 : vector<2x16x16x8xf32>
    %c0_17 = arith.constant 0 : index
    %c0_18 = arith.constant 0 : index
    %c1_19 = arith.constant 1 : index
    %c0_20 = arith.constant 0 : index
    %11 = vector.load %arg4[%c0_17, %c0_18, %c1_19, %c0_20] : memref<2x18x18x8xf32, #tpu.memory_space<vmem>>, vector<2x16x16x8xf32>
    %12 = vector.extract_strided_slice %4 {offsets = [0, 1, 0], sizes = [1, 1, 8], strides = [1, 1, 1]} : vector<3x3x8xf32> to vector<1x1x8xf32>
    %13 = vector.shape_cast %12 : vector<1x1x8xf32> to vector<8xf32>
    %14 = vector.shape_cast %13 : vector<8xf32> to vector<1x1x1x8xf32>
    %15 = vector.broadcast %14 : vector<1x1x1x8xf32> to vector<2x16x16x8xf32>
    %16 = arith.mulf %11, %15 : vector<2x16x16x8xf32>
    %17 = arith.addf %10, %16 : vector<2x16x16x8xf32>
    %c0_21 = arith.constant 0 : index
    %c0_22 = arith.constant 0 : index
    %c2 = arith.constant 2 : index
    %c0_23 = arith.constant 0 : index
    %18 = vector.load %arg4[%c0_21, %c0_22, %c2, %c0_23] : memref<2x18x18x8xf32, #tpu.memory_space<vmem>>, vector<2x16x16x8xf32>
    %19 = vector.extract_strided_slice %4 {offsets = [0, 2, 0], sizes = [1, 1, 8], strides = [1, 1, 1]} : vector<3x3x8xf32> to vector<1x1x8xf32>
    %20 = vector.shape_cast %19 : vector<1x1x8xf32> to vector<8xf32>
    %21 = vector.shape_cast %20 : vector<8xf32> to vector<1x1x1x8xf32>
    %22 = vector.broadcast %21 : vector<1x1x1x8xf32> to vector<2x16x16x8xf32>
    %23 = arith.mulf %18, %22 : vector<2x16x16x8xf32>
    %24 = arith.addf %17, %23 : vector<2x16x16x8xf32>
    %c0_24 = arith.constant 0 : index
    %c1_25 = arith.constant 1 : index
    %c0_26 = arith.constant 0 : index
    %c0_27 = arith.constant 0 : index
    %25 = vector.load %arg4[%c0_24, %c1_25, %c0_26, %c0_27] : memref<2x18x18x8xf32, #tpu.memory_space<vmem>>, vector<2x16x16x8xf32>
    %26 = vector.extract_strided_slice %4 {offsets = [1, 0, 0], sizes = [1, 1, 8], strides = [1, 1, 1]} : vector<3x3x8xf32> to vector<1x1x8xf32>
    %27 = vector.shape_cast %26 : vector<1x1x8xf32> to vector<8xf32>
    %28 = vector.shape_cast %27 : vector<8xf32> to vector<1x1x1x8xf32>
    %29 = vector.broadcast %28 : vector<1x1x1x8xf32> to vector<2x16x16x8xf32>
    %30 = arith.mulf %25, %29 : vector<2x16x16x8xf32>
    %31 = arith.addf %24, %30 : vector<2x16x16x8xf32>
    %c0_28 = arith.constant 0 : index
    %c1_29 = arith.constant 1 : index
    %c1_30 = arith.constant 1 : index
    %c0_31 = arith.constant 0 : index
    %32 = vector.load %arg4[%c0_28, %c1_29, %c1_30, %c0_31] : memref<2x18x18x8xf32, #tpu.memory_space<vmem>>, vector<2x16x16x8xf32>
    %33 = vector.extract_strided_slice %4 {offsets = [1, 1, 0], sizes = [1, 1, 8], strides = [1, 1, 1]} : vector<3x3x8xf32> to vector<1x1x8xf32>
    %34 = vector.shape_cast %33 : vector<1x1x8xf32> to vector<8xf32>
    %35 = vector.shape_cast %34 : vector<8xf32> to vector<1x1x1x8xf32>
    %36 = vector.broadcast %35 : vector<1x1x1x8xf32> to vector<2x16x16x8xf32>
    %37 = arith.mulf %32, %36 : vector<2x16x16x8xf32>
    %38 = arith.addf %31, %37 : vector<2x16x16x8xf32>
    %c0_32 = arith.constant 0 : index
    %c1_33 = arith.constant 1 : index
    %c2_34 = arith.constant 2 : index
    %c0_35 = arith.constant 0 : index
    %39 = vector.load %arg4[%c0_32, %c1_33, %c2_34, %c0_35] : memref<2x18x18x8xf32, #tpu.memory_space<vmem>>, vector<2x16x16x8xf32>
    %40 = vector.extract_strided_slice %4 {offsets = [1, 2, 0], sizes = [1, 1, 8], strides = [1, 1, 1]} : vector<3x3x8xf32> to vector<1x1x8xf32>
    %41 = vector.shape_cast %40 : vector<1x1x8xf32> to vector<8xf32>
    %42 = vector.shape_cast %41 : vector<8xf32> to vector<1x1x1x8xf32>
    %43 = vector.broadcast %42 : vector<1x1x1x8xf32> to vector<2x16x16x8xf32>
    %44 = arith.mulf %39, %43 : vector<2x16x16x8xf32>
    %45 = arith.addf %38, %44 : vector<2x16x16x8xf32>
    %c0_36 = arith.constant 0 : index
    %c2_37 = arith.constant 2 : index
    %c0_38 = arith.constant 0 : index
    %c0_39 = arith.constant 0 : index
    %46 = vector.load %arg4[%c0_36, %c2_37, %c0_38, %c0_39] : memref<2x18x18x8xf32, #tpu.memory_space<vmem>>, vector<2x16x16x8xf32>
    %47 = vector.extract_strided_slice %4 {offsets = [2, 0, 0], sizes = [1, 1, 8], strides = [1, 1, 1]} : vector<3x3x8xf32> to vector<1x1x8xf32>
    %48 = vector.shape_cast %47 : vector<1x1x8xf32> to vector<8xf32>
    %49 = vector.shape_cast %48 : vector<8xf32> to vector<1x1x1x8xf32>
    %50 = vector.broadcast %49 : vector<1x1x1x8xf32> to vector<2x16x16x8xf32>
    %51 = arith.mulf %46, %50 : vector<2x16x16x8xf32>
    %52 = arith.addf %45, %51 : vector<2x16x16x8xf32>
    %c0_40 = arith.constant 0 : index
    %c2_41 = arith.constant 2 : index
    %c1_42 = arith.constant 1 : index
    %c0_43 = arith.constant 0 : index
    %53 = vector.load %arg4[%c0_40, %c2_41, %c1_42, %c0_43] : memref<2x18x18x8xf32, #tpu.memory_space<vmem>>, vector<2x16x16x8xf32>
    %54 = vector.extract_strided_slice %4 {offsets = [2, 1, 0], sizes = [1, 1, 8], strides = [1, 1, 1]} : vector<3x3x8xf32> to vector<1x1x8xf32>
    %55 = vector.shape_cast %54 : vector<1x1x8xf32> to vector<8xf32>
    %56 = vector.shape_cast %55 : vector<8xf32> to vector<1x1x1x8xf32>
    %57 = vector.broadcast %56 : vector<1x1x1x8xf32> to vector<2x16x16x8xf32>
    %58 = arith.mulf %53, %57 : vector<2x16x16x8xf32>
    %59 = arith.addf %52, %58 : vector<2x16x16x8xf32>
    %c0_44 = arith.constant 0 : index
    %c2_45 = arith.constant 2 : index
    %c2_46 = arith.constant 2 : index
    %c0_47 = arith.constant 0 : index
    %60 = vector.load %arg4[%c0_44, %c2_45, %c2_46, %c0_47] : memref<2x18x18x8xf32, #tpu.memory_space<vmem>>, vector<2x16x16x8xf32>
    %61 = vector.extract_strided_slice %4 {offsets = [2, 2, 0], sizes = [1, 1, 8], strides = [1, 1, 1]} : vector<3x3x8xf32> to vector<1x1x8xf32>
    %62 = vector.shape_cast %61 : vector<1x1x8xf32> to vector<8xf32>
    %63 = vector.shape_cast %62 : vector<8xf32> to vector<1x1x1x8xf32>
    %64 = vector.broadcast %63 : vector<1x1x1x8xf32> to vector<2x16x16x8xf32>
    %65 = arith.mulf %60, %64 : vector<2x16x16x8xf32>
    %66 = arith.addf %59, %65 : vector<2x16x16x8xf32>
    %67 = vector.shape_cast %66 : vector<2x16x16x8xf32> to vector<512x8xf32>
    %cst_48 = arith.constant dense<0.000000e+00> : vector<8xf32>
    %68 = vector.multi_reduction <add>, %67, %cst_48 [0] : vector<512x8xf32> to vector<8xf32>
    %69 = vector.shape_cast %68 : vector<8xf32> to vector<1x8xf32>
    %70 = arith.mulf %67, %67 : vector<512x8xf32>
    %cst_49 = arith.constant dense<0.000000e+00> : vector<8xf32>
    %71 = vector.multi_reduction <add>, %70, %cst_49 [0] : vector<512x8xf32> to vector<8xf32>
    %72 = vector.shape_cast %71 : vector<8xf32> to vector<1x8xf32>
    %cst_50 = arith.constant 0.001953125 : f32
    %73 = vector.broadcast %cst_50 : f32 to vector<1x8xf32>
    %74 = arith.mulf %69, %73 : vector<1x8xf32>
    %cst_51 = arith.constant 0.001953125 : f32
    %75 = vector.broadcast %cst_51 : f32 to vector<1x8xf32>
    %76 = arith.mulf %72, %75 : vector<1x8xf32>
    %77 = arith.mulf %74, %74 : vector<1x8xf32>
    %78 = arith.subf %76, %77 : vector<1x8xf32>
    %79 = vector.broadcast %74 : vector<1x8xf32> to vector<512x8xf32>
    %80 = arith.subf %67, %79 : vector<512x8xf32>
    %cst_52 = arith.constant 9.99999974E-6 : f32
    %81 = vector.broadcast %cst_52 : f32 to vector<1x8xf32>
    %82 = arith.addf %78, %81 : vector<1x8xf32>
    %83 = math.rsqrt %82 : vector<1x8xf32>
    %84 = vector.broadcast %83 : vector<1x8xf32> to vector<512x8xf32>
    %85 = arith.mulf %80, %84 : vector<512x8xf32>
    %cst_53 = arith.constant 0.000000e+00 : f32
    %86 = vector.broadcast %cst_53 : f32 to vector<512x8xf32>
    %87 = arith.maximumf %85, %86 : vector<512x8xf32>
    %c0_54 = arith.constant 0 : index
    %c0_55 = arith.constant 0 : index
    %88 = vector.load %arg2[%c0_54, %c0_55] : memref<8x16xf32, #tpu.memory_space<vmem>>, vector<8x16xf32>
    %cst_56 = arith.constant dense<0.000000e+00> : vector<512x16xf32>
    %89 = tpu.matmul %87, %88, %cst_56 {dimension_numbers = #tpu.dot_dimension_numbers<[1], [0], [0], [1], [0, 0, 1, 1], [], []>} : vector<512x8xf32>, vector<8x16xf32>, vector<512x16xf32> -> vector<512x16xf32>
    %cst_57 = arith.constant dense<0.000000e+00> : vector<16xf32>
    %90 = vector.multi_reduction <add>, %89, %cst_57 [0] : vector<512x16xf32> to vector<16xf32>
    %91 = vector.shape_cast %90 : vector<16xf32> to vector<1x16xf32>
    %92 = arith.mulf %89, %89 : vector<512x16xf32>
    %cst_58 = arith.constant dense<0.000000e+00> : vector<16xf32>
    %93 = vector.multi_reduction <add>, %92, %cst_58 [0] : vector<512x16xf32> to vector<16xf32>
    %94 = vector.shape_cast %93 : vector<16xf32> to vector<1x16xf32>
    %cst_59 = arith.constant 0.001953125 : f32
    %95 = vector.broadcast %cst_59 : f32 to vector<1x16xf32>
    %96 = arith.mulf %91, %95 : vector<1x16xf32>
    %cst_60 = arith.constant 0.001953125 : f32
    %97 = vector.broadcast %cst_60 : f32 to vector<1x16xf32>
    %98 = arith.mulf %94, %97 : vector<1x16xf32>
    %99 = arith.mulf %96, %96 : vector<1x16xf32>
    %100 = arith.subf %98, %99 : vector<1x16xf32>
    %101 = vector.broadcast %96 : vector<1x16xf32> to vector<512x16xf32>
    %102 = arith.subf %89, %101 : vector<512x16xf32>
    %cst_61 = arith.constant 9.99999974E-6 : f32
    %103 = vector.broadcast %cst_61 : f32 to vector<1x16xf32>
    %104 = arith.addf %100, %103 : vector<1x16xf32>
    %105 = math.rsqrt %104 : vector<1x16xf32>
    %106 = vector.broadcast %105 : vector<1x16xf32> to vector<512x16xf32>
    %107 = arith.mulf %102, %106 : vector<512x16xf32>
    %cst_62 = arith.constant 0.000000e+00 : f32
    %108 = vector.broadcast %cst_62 : f32 to vector<512x16xf32>
    %109 = arith.maximumf %107, %108 : vector<512x16xf32>
    %110 = vector.shape_cast %109 : vector<512x16xf32> to vector<2x16x16x16xf32>
    %111 = vector.extract_strided_slice %110 {offsets = [0, 0, 0, 0], sizes = [2, 16, 1, 16], strides = [1, 1, 1, 1]} : vector<2x16x16x16xf32> to vector<2x16x1x16xf32>
    %112 = vector.shape_cast %111 : vector<2x16x1x16xf32> to vector<2x16x16xf32>
    %c0_63 = arith.constant 0 : index
    %c0_64 = arith.constant 0 : index
    %c0_65 = arith.constant 0 : index
    %113 = vector.load %arg3[%c0_63, %c0_64, %c0_65] : memref<2x16x256xf32, #tpu.memory_space<vmem>>, vector<2x16x16xf32>
    tpu.vector_store %arg3[%c0_63, %c0_64, %c0_65], %112 {strides = array<i32>} : memref<2x16x256xf32, #tpu.memory_space<vmem>>, vector<2x16x16xf32>,
    %114 = vector.extract_strided_slice %110 {offsets = [0, 0, 1, 0], sizes = [2, 16, 1, 16], strides = [1, 1, 1, 1]} : vector<2x16x16x16xf32> to vector<2x16x1x16xf32>
    %115 = vector.shape_cast %114 : vector<2x16x1x16xf32> to vector<2x16x16xf32>
    %c0_66 = arith.constant 0 : index
    %c0_67 = arith.constant 0 : index
    %c16 = arith.constant 16 : index
    %116 = vector.load %arg3[%c0_66, %c0_67, %c16] : memref<2x16x256xf32, #tpu.memory_space<vmem>>, vector<2x16x16xf32>
    tpu.vector_store %arg3[%c0_66, %c0_67, %c16], %115 {strides = array<i32>} : memref<2x16x256xf32, #tpu.memory_space<vmem>>, vector<2x16x16xf32>,
    %117 = vector.extract_strided_slice %110 {offsets = [0, 0, 2, 0], sizes = [2, 16, 1, 16], strides = [1, 1, 1, 1]} : vector<2x16x16x16xf32> to vector<2x16x1x16xf32>
    %118 = vector.shape_cast %117 : vector<2x16x1x16xf32> to vector<2x16x16xf32>
    %c0_68 = arith.constant 0 : index
    %c0_69 = arith.constant 0 : index
    %c32 = arith.constant 32 : index
    %119 = vector.load %arg3[%c0_68, %c0_69, %c32] : memref<2x16x256xf32, #tpu.memory_space<vmem>>, vector<2x16x16xf32>
    tpu.vector_store %arg3[%c0_68, %c0_69, %c32], %118 {strides = array<i32>} : memref<2x16x256xf32, #tpu.memory_space<vmem>>, vector<2x16x16xf32>,
    %120 = vector.extract_strided_slice %110 {offsets = [0, 0, 3, 0], sizes = [2, 16, 1, 16], strides = [1, 1, 1, 1]} : vector<2x16x16x16xf32> to vector<2x16x1x16xf32>
    %121 = vector.shape_cast %120 : vector<2x16x1x16xf32> to vector<2x16x16xf32>
    %c0_70 = arith.constant 0 : index
    %c0_71 = arith.constant 0 : index
    %c48 = arith.constant 48 : index
    %122 = vector.load %arg3[%c0_70, %c0_71, %c48] : memref<2x16x256xf32, #tpu.memory_space<vmem>>, vector<2x16x16xf32>
    tpu.vector_store %arg3[%c0_70, %c0_71, %c48], %121 {strides = array<i32>} : memref<2x16x256xf32, #tpu.memory_space<vmem>>, vector<2x16x16xf32>,
    %123 = vector.extract_strided_slice %110 {offsets = [0, 0, 4, 0], sizes = [2, 16, 1, 16], strides = [1, 1, 1, 1]} : vector<2x16x16x16xf32> to vector<2x16x1x16xf32>
    %124 = vector.shape_cast %123 : vector<2x16x1x16xf32> to vector<2x16x16xf32>
    %c0_72 = arith.constant 0 : index
    %c0_73 = arith.constant 0 : index
    %c64 = arith.constant 64 : index
    %125 = vector.load %arg3[%c0_72, %c0_73, %c64] : memref<2x16x256xf32, #tpu.memory_space<vmem>>, vector<2x16x16xf32>
    tpu.vector_store %arg3[%c0_72, %c0_73, %c64], %124 {strides = array<i32>} : memref<2x16x256xf32, #tpu.memory_space<vmem>>, vector<2x16x16xf32>,
    %126 = vector.extract_strided_slice %110 {offsets = [0, 0, 5, 0], sizes = [2, 16, 1, 16], strides = [1, 1, 1, 1]} : vector<2x16x16x16xf32> to vector<2x16x1x16xf32>
    %127 = vector.shape_cast %126 : vector<2x16x1x16xf32> to vector<2x16x16xf32>
    %c0_74 = arith.constant 0 : index
    %c0_75 = arith.constant 0 : index
    %c80 = arith.constant 80 : index
    %128 = vector.load %arg3[%c0_74, %c0_75, %c80] : memref<2x16x256xf32, #tpu.memory_space<vmem>>, vector<2x16x16xf32>
    tpu.vector_store %arg3[%c0_74, %c0_75, %c80], %127 {strides = array<i32>} : memref<2x16x256xf32, #tpu.memory_space<vmem>>, vector<2x16x16xf32>,
    %129 = vector.extract_strided_slice %110 {offsets = [0, 0, 6, 0], sizes = [2, 16, 1, 16], strides = [1, 1, 1, 1]} : vector<2x16x16x16xf32> to vector<2x16x1x16xf32>
    %130 = vector.shape_cast %129 : vector<2x16x1x16xf32> to vector<2x16x16xf32>
    %c0_76 = arith.constant 0 : index
    %c0_77 = arith.constant 0 : index
    %c96 = arith.constant 96 : index
    %131 = vector.load %arg3[%c0_76, %c0_77, %c96] : memref<2x16x256xf32, #tpu.memory_space<vmem>>, vector<2x16x16xf32>
    tpu.vector_store %arg3[%c0_76, %c0_77, %c96], %130 {strides = array<i32>} : memref<2x16x256xf32, #tpu.memory_space<vmem>>, vector<2x16x16xf32>,
    %132 = vector.extract_strided_slice %110 {offsets = [0, 0, 7, 0], sizes = [2, 16, 1, 16], strides = [1, 1, 1, 1]} : vector<2x16x16x16xf32> to vector<2x16x1x16xf32>
    %133 = vector.shape_cast %132 : vector<2x16x1x16xf32> to vector<2x16x16xf32>
    %c0_78 = arith.constant 0 : index
    %c0_79 = arith.constant 0 : index
    %c112 = arith.constant 112 : index
    %134 = vector.load %arg3[%c0_78, %c0_79, %c112] : memref<2x16x256xf32, #tpu.memory_space<vmem>>, vector<2x16x16xf32>
    tpu.vector_store %arg3[%c0_78, %c0_79, %c112], %133 {strides = array<i32>} : memref<2x16x256xf32, #tpu.memory_space<vmem>>, vector<2x16x16xf32>,
    %135 = vector.extract_strided_slice %110 {offsets = [0, 0, 8, 0], sizes = [2, 16, 1, 16], strides = [1, 1, 1, 1]} : vector<2x16x16x16xf32> to vector<2x16x1x16xf32>
    %136 = vector.shape_cast %135 : vector<2x16x1x16xf32> to vector<2x16x16xf32>
    %c0_80 = arith.constant 0 : index
    %c0_81 = arith.constant 0 : index
    %c128 = arith.constant 128 : index
    %137 = vector.load %arg3[%c0_80, %c0_81, %c128] : memref<2x16x256xf32, #tpu.memory_space<vmem>>, vector<2x16x16xf32>
    tpu.vector_store %arg3[%c0_80, %c0_81, %c128], %136 {strides = array<i32>} : memref<2x16x256xf32, #tpu.memory_space<vmem>>, vector<2x16x16xf32>,
    %138 = vector.extract_strided_slice %110 {offsets = [0, 0, 9, 0], sizes = [2, 16, 1, 16], strides = [1, 1, 1, 1]} : vector<2x16x16x16xf32> to vector<2x16x1x16xf32>
    %139 = vector.shape_cast %138 : vector<2x16x1x16xf32> to vector<2x16x16xf32>
    %c0_82 = arith.constant 0 : index
    %c0_83 = arith.constant 0 : index
    %c144 = arith.constant 144 : index
    %140 = vector.load %arg3[%c0_82, %c0_83, %c144] : memref<2x16x256xf32, #tpu.memory_space<vmem>>, vector<2x16x16xf32>
    tpu.vector_store %arg3[%c0_82, %c0_83, %c144], %139 {strides = array<i32>} : memref<2x16x256xf32, #tpu.memory_space<vmem>>, vector<2x16x16xf32>,
    %141 = vector.extract_strided_slice %110 {offsets = [0, 0, 10, 0], sizes = [2, 16, 1, 16], strides = [1, 1, 1, 1]} : vector<2x16x16x16xf32> to vector<2x16x1x16xf32>
    %142 = vector.shape_cast %141 : vector<2x16x1x16xf32> to vector<2x16x16xf32>
    %c0_84 = arith.constant 0 : index
    %c0_85 = arith.constant 0 : index
    %c160 = arith.constant 160 : index
    %143 = vector.load %arg3[%c0_84, %c0_85, %c160] : memref<2x16x256xf32, #tpu.memory_space<vmem>>, vector<2x16x16xf32>
    tpu.vector_store %arg3[%c0_84, %c0_85, %c160], %142 {strides = array<i32>} : memref<2x16x256xf32, #tpu.memory_space<vmem>>, vector<2x16x16xf32>,
    %144 = vector.extract_strided_slice %110 {offsets = [0, 0, 11, 0], sizes = [2, 16, 1, 16], strides = [1, 1, 1, 1]} : vector<2x16x16x16xf32> to vector<2x16x1x16xf32>
    %145 = vector.shape_cast %144 : vector<2x16x1x16xf32> to vector<2x16x16xf32>
    %c0_86 = arith.constant 0 : index
    %c0_87 = arith.constant 0 : index
    %c176 = arith.constant 176 : index
    %146 = vector.load %arg3[%c0_86, %c0_87, %c176] : memref<2x16x256xf32, #tpu.memory_space<vmem>>, vector<2x16x16xf32>
    tpu.vector_store %arg3[%c0_86, %c0_87, %c176], %145 {strides = array<i32>} : memref<2x16x256xf32, #tpu.memory_space<vmem>>, vector<2x16x16xf32>,
    %147 = vector.extract_strided_slice %110 {offsets = [0, 0, 12, 0], sizes = [2, 16, 1, 16], strides = [1, 1, 1, 1]} : vector<2x16x16x16xf32> to vector<2x16x1x16xf32>
    %148 = vector.shape_cast %147 : vector<2x16x1x16xf32> to vector<2x16x16xf32>
    %c0_88 = arith.constant 0 : index
    %c0_89 = arith.constant 0 : index
    %c192 = arith.constant 192 : index
    %149 = vector.load %arg3[%c0_88, %c0_89, %c192] : memref<2x16x256xf32, #tpu.memory_space<vmem>>, vector<2x16x16xf32>
    tpu.vector_store %arg3[%c0_88, %c0_89, %c192], %148 {strides = array<i32>} : memref<2x16x256xf32, #tpu.memory_space<vmem>>, vector<2x16x16xf32>,
    %150 = vector.extract_strided_slice %110 {offsets = [0, 0, 13, 0], sizes = [2, 16, 1, 16], strides = [1, 1, 1, 1]} : vector<2x16x16x16xf32> to vector<2x16x1x16xf32>
    %151 = vector.shape_cast %150 : vector<2x16x1x16xf32> to vector<2x16x16xf32>
    %c0_90 = arith.constant 0 : index
    %c0_91 = arith.constant 0 : index
    %c208 = arith.constant 208 : index
    %152 = vector.load %arg3[%c0_90, %c0_91, %c208] : memref<2x16x256xf32, #tpu.memory_space<vmem>>, vector<2x16x16xf32>
    tpu.vector_store %arg3[%c0_90, %c0_91, %c208], %151 {strides = array<i32>} : memref<2x16x256xf32, #tpu.memory_space<vmem>>, vector<2x16x16xf32>,
    %153 = vector.extract_strided_slice %110 {offsets = [0, 0, 14, 0], sizes = [2, 16, 1, 16], strides = [1, 1, 1, 1]} : vector<2x16x16x16xf32> to vector<2x16x1x16xf32>
    %154 = vector.shape_cast %153 : vector<2x16x1x16xf32> to vector<2x16x16xf32>
    %c0_92 = arith.constant 0 : index
    %c0_93 = arith.constant 0 : index
    %c224 = arith.constant 224 : index
    %155 = vector.load %arg3[%c0_92, %c0_93, %c224] : memref<2x16x256xf32, #tpu.memory_space<vmem>>, vector<2x16x16xf32>
    tpu.vector_store %arg3[%c0_92, %c0_93, %c224], %154 {strides = array<i32>} : memref<2x16x256xf32, #tpu.memory_space<vmem>>, vector<2x16x16xf32>,
    %156 = vector.extract_strided_slice %110 {offsets = [0, 0, 15, 0], sizes = [2, 16, 1, 16], strides = [1, 1, 1, 1]} : vector<2x16x16x16xf32> to vector<2x16x1x16xf32>
    %157 = vector.shape_cast %156 : vector<2x16x1x16xf32> to vector<2x16x16xf32>
    %c0_94 = arith.constant 0 : index
    %c0_95 = arith.constant 0 : index
    %c240 = arith.constant 240 : index
    %158 = vector.load %arg3[%c0_94, %c0_95, %c240] : memref<2x16x256xf32, #tpu.memory_space<vmem>>, vector<2x16x16xf32>
    tpu.vector_store %arg3[%c0_94, %c0_95, %c240], %157 {strides = array<i32>} : memref<2x16x256xf32, #tpu.memory_space<vmem>>, vector<2x16x16xf32>,
    return
  }
}

</mosaic_0001>

<bundles_post_ra>
// kernel: tpu_custom_call.1
= control target key start
LH: loop header
LB: loop body
LE: loop exit
PB: predicated region body
PF: predicated region fallthrough
CT: control target
= control target key end

     0   :  { %vm15_vm0 = vcmask 64512   ;;  %vm18_vm1 = vcmask 58368   ;;  %v5088_v3 = vmov 0.0   ;;  %s10876_s0 = inlined_call_operand.vmem [shape: f32[2,16,16,8], index: 0, kind: input, shape index: {}]   ;;  %s10877_s1 = inlined_call_operand.vmem [shape: f32[3,3,8], index: 1, kind: input, shape index: {}]   ;;  %s10878_s2 = inlined_call_operand.vmem [shape: f32[8,16], index: 2, kind: input, shape index: {}]   ;;  %s10879_s3 = inlined_call_operand.hbm [shape: f32[2,16,256], index: 3, kind: output, shape index: {}]  }
   0x1   :  { %v5121_v0 = vld [vmem:[%s10878_s2] sm:$0xff]  ;;  %v5131_v2 = vld [vmem:[%s10876_s0 + $0x8] sm:$0xff]  ;;  %16 = vst.msk [vmem:[#allocation2] sm:$0xff] %vm15_vm0, %v5088_v3  ;;  %17 = vst.msk [vmem:[#allocation2 + $0x8] sm:$0xff] %vm15_vm0, %v5088_v3 }
   0x2   :  { %v5126_v1 = vld [vmem:[%s10876_s0] sm:$0xff]  ;;  %4952 = vmatprep.subr.mxu0 %v5121_v0  ;;  %19 = vst.msk [vmem:[#allocation2 + $0x10] sm:$0x3] %vm18_vm1, %v5088_v3  ;;  %22 = vst.msk [vmem:[#allocation2 + $0x28] sm:$0x3] %vm18_vm1, %v5088_v3  ;;  %v127_v4 = vld [vmem:[%s10876_s0 + $0x10] sm:$0xff]  ;;  %5050 = vmatprep.subr.mxu1 %v5121_v0 }
   0x3   :  { %20 = vst.msk [vmem:[#allocation2 + $0x18] sm:$0xff] %vm15_vm0, %v5088_v3  ;;  %21 = vst.msk [vmem:[#allocation2 + $0x20] sm:$0xff] %vm15_vm0, %v5088_v3  ;;  %v128_v5 = vld [vmem:[%s10876_s0 + $0x18] sm:$0xff]  ;;  %v129_v6 = vld [vmem:[%s10876_s0 + $0x20] sm:$0xff]  ;;  %4953 = vmatpush3.msra.mxu0 %v5121_v0  ;;  %5051 = vmatpush3.msra.mxu1 %v5121_v0 }
   0x4   :  { %23 = vst.msk [vmem:[#allocation2 + $0x30] sm:$0xff] %vm15_vm0, %v5088_v3  ;;  %24 = vst.msk [vmem:[#allocation2 + $0x38] sm:$0xff] %vm15_vm0, %v5088_v3  ;;  %v130_v7 = vld [vmem:[%s10876_s0 + $0x28] sm:$0xff]  ;;  %v131_v8 = vld [vmem:[%s10876_s0 + $0x30] sm:$0xff] }
   0x5   :  { %25 = vst.msk [vmem:[#allocation2 + $0x40] sm:$0x3] %vm18_vm1, %v5088_v3  ;;  %28 = vst.msk [vmem:[#allocation2 + $0x58] sm:$0x3] %vm18_vm1, %v5088_v3  ;;  %v132_v9 = vld [vmem:[%s10876_s0 + $0x38] sm:$0xff]  ;;  %v133_v10 = vld [vmem:[%s10876_s0 + $0x40] sm:$0xff] }
   0x6   :  { %26 = vst.msk [vmem:[#allocation2 + $0x48] sm:$0xff] %vm15_vm0, %v5088_v3  ;;  %27 = vst.msk [vmem:[#allocation2 + $0x50] sm:$0xff] %vm15_vm0, %v5088_v3  ;;  %v134_v11 = vld [vmem:[%s10876_s0 + $0x48] sm:$0xff]  ;;  %v135_v12 = vld [vmem:[%s10876_s0 + $0x50] sm:$0xff] }
   0x7   :  { %29 = vst.msk [vmem:[#allocation2 + $0x60] sm:$0xff] %vm15_vm0, %v5088_v3  ;;  %30 = vst.msk [vmem:[#allocation2 + $0x68] sm:$0xff] %vm15_vm0, %v5088_v3  ;;  %v136_v13 = vld [vmem:[%s10876_s0 + $0x58] sm:$0xff]  ;;  %v137_v14 = vld [vmem:[%s10876_s0 + $0x60] sm:$0xff] }
   0x8   :  { %31 = vst.msk [vmem:[#allocation2 + $0x70] sm:$0x3] %vm18_vm1, %v5088_v3  ;;  %34 = vst.msk [vmem:[#allocation2 + $0x88] sm:$0x3] %vm18_vm1, %v5088_v3  ;;  %v138_v15 = vld [vmem:[%s10876_s0 + $0x68] sm:$0xff]  ;;  %v139_v16 = vld [vmem:[%s10876_s0 + $0x70] sm:$0xff] }
   0x9   :  { %32 = vst.msk [vmem:[#allocation2 + $0x78] sm:$0xff] %vm15_vm0, %v5088_v3  ;;  %33 = vst.msk [vmem:[#allocation2 + $0x80] sm:$0xff] %vm15_vm0, %v5088_v3  ;;  %v140_v17 = vld [vmem:[%s10876_s0 + $0x78] sm:$0xff]  ;;  %v141_v18 = vld [vmem:[%s10876_s0 + $0x80] sm:$0xff] }
   0xa   :  { %35 = vst.msk [vmem:[#allocation2 + $0x90] sm:$0xff] %vm15_vm0, %v5088_v3  ;;  %36 = vst.msk [vmem:[#allocation2 + $0x98] sm:$0xff] %vm15_vm0, %v5088_v3  ;;  %v142_v19 = vld [vmem:[%s10876_s0 + $0x88] sm:$0xff]  ;;  %v143_v20 = vld [vmem:[%s10876_s0 + $0x90] sm:$0xff] }
   0xb   :  { %37 = vst.msk [vmem:[#allocation2 + $0xa0] sm:$0x3] %vm18_vm1, %v5088_v3  ;;  %40 = vst.msk [vmem:[#allocation2 + $0xb8] sm:$0x3] %vm18_vm1, %v5088_v3  ;;  %v144_v21 = vld [vmem:[%s10876_s0 + $0x98] sm:$0xff]  ;;  %v145_v22 = vld [vmem:[%s10876_s0 + $0xa0] sm:$0xff] }
   0xc   :  { %38 = vst.msk [vmem:[#allocation2 + $0xa8] sm:$0xff] %vm15_vm0, %v5088_v3  ;;  %39 = vst.msk [vmem:[#allocation2 + $0xb0] sm:$0xff] %vm15_vm0, %v5088_v3  ;;  %v146_v23 = vld [vmem:[%s10876_s0 + $0xa8] sm:$0xff]  ;;  %v147_v24 = vld [vmem:[%s10876_s0 + $0xb0] sm:$0xff] }
   0xd   :  { %41 = vst.msk [vmem:[#allocation2 + $0xc0] sm:$0xff] %vm15_vm0, %v5088_v3  ;;  %42 = vst.msk [vmem:[#allocation2 + $0xc8] sm:$0xff] %vm15_vm0, %v5088_v3  ;;  %v148_v25 = vld [vmem:[%s10876_s0 + $0xb8] sm:$0xff]  ;;  %v149_v26 = vld [vmem:[%s10876_s0 + $0xc0] sm:$0xff] }
   0xe   :  { %43 = vst.msk [vmem:[#allocation2 + $0xd0] sm:$0x3] %vm18_vm1, %v5088_v3  ;;  %46 = vst.msk [vmem:[#allocation2 + $0xe8] sm:$0x3] %vm18_vm1, %v5088_v3  ;;  %v150_v27 = vld [vmem:[%s10876_s0 + $0xc8] sm:$0xff]  ;;  %v151_v28 = vld [vmem:[%s10876_s0 + $0xd0] sm:$0xff] }
   0xf   :  { %44 = vst.msk [vmem:[#allocation2 + $0xd8] sm:$0xff] %vm15_vm0, %v5088_v3  ;;  %45 = vst.msk [vmem:[#allocation2 + $0xe0] sm:$0xff] %vm15_vm0, %v5088_v3  ;;  %v152_v29 = vld [vmem:[%s10876_s0 + $0xd8] sm:$0xff]  ;;  %v153_v30 = vld [vmem:[%s10876_s0 + $0xe0] sm:$0xff] }
  0x10   :  { %47 = vst.msk [vmem:[#allocation2 + $0xf0] sm:$0xff] %vm15_vm0, %v5088_v3  ;;  %48 = vst.msk [vmem:[#allocation2 + $0xf8] sm:$0xff] %vm15_vm0, %v5088_v3  ;;  %v154_v31 = vld [vmem:[%s10876_s0 + $0xe8] sm:$0xff]  ;;  %v155_v32 = vld [vmem:[%s10876_s0 + $0xf0] sm:$0xff] }
  0x11   :  { %49 = vst.msk [vmem:[#allocation2 + $0x100] sm:$0x3] %vm18_vm1, %v5088_v3  ;;  %52 = vst.msk [vmem:[#allocation2 + $0x118] sm:$0x3] %vm18_vm1, %v5088_v3  ;;  %v156_v33 = vld [vmem:[%s10876_s0 + $0xf8] sm:$0xff]  ;;  %v157_v34 = vld [vmem:[%s10876_s0 + $0x100] sm:$0xff] }
  0x12   :  { %50 = vst.msk [vmem:[#allocation2 + $0x108] sm:$0xff] %vm15_vm0, %v5088_v3  ;;  %51 = vst.msk [vmem:[#allocation2 + $0x110] sm:$0xff] %vm15_vm0, %v5088_v3  ;;  %v158_v35 = vld [vmem:[%s10876_s0 + $0x108] sm:$0xff]  ;;  %v159_v36 = vld [vmem:[%s10876_s0 + $0x110] sm:$0xff] }
  0x13   :  { %53 = vst.msk [vmem:[#allocation2 + $0x120] sm:$0xff] %vm15_vm0, %v5088_v3  ;;  %54 = vst.msk [vmem:[#allocation2 + $0x128] sm:$0xff] %vm15_vm0, %v5088_v3  ;;  %v160_v37 = vld [vmem:[%s10876_s0 + $0x118] sm:$0xff]  ;;  %v161_v38 = vld [vmem:[%s10876_s0 + $0x120] sm:$0xff] }
  0x14   :  { %55 = vst.msk [vmem:[#allocation2 + $0x130] sm:$0x3] %vm18_vm1, %v5088_v3  ;;  %58 = vst.msk [vmem:[#allocation2 + $0x148] sm:$0x3] %vm18_vm1, %v5088_v3  ;;  %v162_v39 = vld [vmem:[%s10876_s0 + $0x128] sm:$0xff]  ;;  %v163_v40 = vld [vmem:[%s10876_s0 + $0x130] sm:$0xff] }
  0x15   :  { %56 = vst.msk [vmem:[#allocation2 + $0x138] sm:$0xff] %vm15_vm0, %v5088_v3  ;;  %57 = vst.msk [vmem:[#allocation2 + $0x140] sm:$0xff] %vm15_vm0, %v5088_v3  ;;  %v164_v41 = vld [vmem:[%s10876_s0 + $0x138] sm:$0xff]  ;;  %v165_v42 = vld [vmem:[%s10876_s0 + $0x140] sm:$0xff] }
  0x16   :  { %59 = vst.msk [vmem:[#allocation2 + $0x150] sm:$0xff] %vm15_vm0, %v5088_v3  ;;  %60 = vst.msk [vmem:[#allocation2 + $0x158] sm:$0xff] %vm15_vm0, %v5088_v3  ;;  %v166_v43 = vld [vmem:[%s10876_s0 + $0x148] sm:$0xff]  ;;  %v167_v44 = vld [vmem:[%s10876_s0 + $0x150] sm:$0xff] }
  0x17   :  { %61 = vst.msk [vmem:[#allocation2 + $0x160] sm:$0x3] %vm18_vm1, %v5088_v3  ;;  %64 = vst.msk [vmem:[#allocation2 + $0x178] sm:$0x3] %vm18_vm1, %v5088_v3  ;;  %v168_v45 = vld [vmem:[%s10876_s0 + $0x158] sm:$0xff]  ;;  %v169_v46 = vld [vmem:[%s10876_s0 + $0x160] sm:$0xff] }
  0x18   :  { %62 = vst.msk [vmem:[#allocation2 + $0x168] sm:$0xff] %vm15_vm0, %v5088_v3  ;;  %63 = vst.msk [vmem:[#allocation2 + $0x170] sm:$0xff] %vm15_vm0, %v5088_v3  ;;  %v170_v47 = vld [vmem:[%s10876_s0 + $0x168] sm:$0xff]  ;;  %v171_v48 = vld [vmem:[%s10876_s0 + $0x170] sm:$0xff] }
  0x19   :  { %65 = vst.msk [vmem:[#allocation2 + $0x180] sm:$0xff] %vm15_vm0, %v5088_v3  ;;  %66 = vst.msk [vmem:[#allocation2 + $0x188] sm:$0xff] %vm15_vm0, %v5088_v3  ;;  %v172_v49 = vld [vmem:[%s10876_s0 + $0x178] sm:$0xff]  ;;  %v173_v50 = vld [vmem:[%s10876_s0 + $0x180] sm:$0xff] }
  0x1a   :  { %67 = vst.msk [vmem:[#allocation2 + $0x190] sm:$0x3] %vm18_vm1, %v5088_v3  ;;  %70 = vst.msk [vmem:[#allocation2 + $0x1a8] sm:$0x3] %vm18_vm1, %v5088_v3  ;;  %v174_v51 = vld [vmem:[%s10876_s0 + $0x188] sm:$0xff]  ;;  %v175_v52 = vld [vmem:[%s10876_s0 + $0x190] sm:$0xff] }
  0x1b   :  { %68 = vst.msk [vmem:[#allocation2 + $0x198] sm:$0xff] %vm15_vm0, %v5088_v3  ;;  %69 = vst.msk [vmem:[#allocation2 + $0x1a0] sm:$0xff] %vm15_vm0, %v5088_v3  ;;  %v176_v53 = vld [vmem:[%s10876_s0 + $0x198] sm:$0xff]  ;;  %v177_v54 = vld [vmem:[%s10876_s0 + $0x1a0] sm:$0xff] }
  0x1c   :  { %71 = vst.msk [vmem:[#allocation2 + $0x1b0] sm:$0xff] %vm15_vm0, %v5088_v3  ;;  %72 = vst.msk [vmem:[#allocation2 + $0x1b8] sm:$0xff] %vm15_vm0, %v5088_v3  ;;  %v178_v55 = vld [vmem:[%s10876_s0 + $0x1a8] sm:$0xff]  ;;  %v179_v56 = vld [vmem:[%s10876_s0 + $0x1b0] sm:$0xff] }
  0x1d   :  { %73 = vst.msk [vmem:[#allocation2 + $0x1c0] sm:$0x3] %vm18_vm1, %v5088_v3  ;;  %76 = vst.msk [vmem:[#allocation2 + $0x1d8] sm:$0x3] %vm18_vm1, %v5088_v3  ;;  %v180_v57 = vld [vmem:[%s10876_s0 + $0x1b8] sm:$0xff]  ;;  %v181_v58 = vld [vmem:[%s10876_s0 + $0x1c0] sm:$0xff] }
  0x1e   :  { %74 = vst.msk [vmem:[#allocation2 + $0x1c8] sm:$0xff] %vm15_vm0, %v5088_v3  ;;  %75 = vst.msk [vmem:[#allocation2 + $0x1d0] sm:$0xff] %vm15_vm0, %v5088_v3  ;;  %v182_v59 = vld [vmem:[%s10876_s0 + $0x1c8] sm:$0xff]  ;;  %v183_v60 = vld [vmem:[%s10876_s0 + $0x1d0] sm:$0xff] }
  0x1f   :  { %77 = vst.msk [vmem:[#allocation2 + $0x1e0] sm:$0xff] %vm15_vm0, %v5088_v3  ;;  %78 = vst.msk [vmem:[#allocation2 + $0x1e8] sm:$0xff] %vm15_vm0, %v5088_v3  ;;  %v184_v61 = vld [vmem:[%s10876_s0 + $0x1d8] sm:$0xff]  ;;  %v185_v62 = vld [vmem:[%s10876_s0 + $0x1e0] sm:$0xff] }
  0x20   :  { %79 = vst.msk [vmem:[#allocation2 + $0x1f0] sm:$0x3] %vm18_vm1, %v5088_v3  ;;  %82 = vst.msk [vmem:[#allocation2 + $0x208] sm:$0x3] %vm18_vm1, %v5088_v3  ;;  %v186_v63 = vld [vmem:[%s10876_s0 + $0x1e8] sm:$0xff]  ;;  %v187_v0 = vld [vmem:[%s10876_s0 + $0x1f0] sm:$0xff] }
  0x21   :  { %80 = vst.msk [vmem:[#allocation2 + $0x1f8] sm:$0xff] %vm15_vm0, %v5088_v3  ;;  %81 = vst.msk [vmem:[#allocation2 + $0x200] sm:$0xff] %vm15_vm0, %v5088_v3 }
  0x22   :  { %83 = vst.msk [vmem:[#allocation2 + $0x210] sm:$0xff] %vm15_vm0, %v5088_v3  ;;  %84 = vst.msk [vmem:[#allocation2 + $0x218] sm:$0xff] %vm15_vm0, %v5088_v3 }
  0x23   :  { %85 = vst.msk [vmem:[#allocation2 + $0x220] sm:$0x3] %vm18_vm1, %v5088_v3  ;;  %88 = vst.msk [vmem:[#allocation2 + $0x238] sm:$0x3] %vm18_vm1, %v5088_v3 }
  0x24   :  { %86 = vst.msk [vmem:[#allocation2 + $0x228] sm:$0xff] %vm15_vm0, %v5088_v3  ;;  %87 = vst.msk [vmem:[#allocation2 + $0x230] sm:$0xff] %vm15_vm0, %v5088_v3 }
  0x25   :  { %89 = vst.msk [vmem:[#allocation2 + $0x240] sm:$0xff] %vm15_vm0, %v5088_v3  ;;  %90 = vst.msk [vmem:[#allocation2 + $0x248] sm:$0xff] %vm15_vm0, %v5088_v3 }
  0x26   :  { %91 = vst.msk [vmem:[#allocation2 + $0x250] sm:$0x3] %vm18_vm1, %v5088_v3  ;;  %94 = vst.msk [vmem:[#allocation2 + $0x268] sm:$0x3] %vm18_vm1, %v5088_v3 }
  0x27   :  { %92 = vst.msk [vmem:[#allocation2 + $0x258] sm:$0xff] %vm15_vm0, %v5088_v3  ;;  %93 = vst.msk [vmem:[#allocation2 + $0x260] sm:$0xff] %vm15_vm0, %v5088_v3 }
  0x28   :  { %95 = vst.msk [vmem:[#allocation2 + $0x270] sm:$0xff] %vm15_vm0, %v5088_v3  ;;  %96 = vst.msk [vmem:[#allocation2 + $0x278] sm:$0xff] %vm15_vm0, %v5088_v3 }
  0x29   :  { %97 = vst.msk [vmem:[#allocation2 + $0x280] sm:$0x3] %vm18_vm1, %v5088_v3  ;;  %100 = vst.msk [vmem:[#allocation2 + $0x298] sm:$0x3] %vm18_vm1, %v5088_v3 }
  0x2a   :  { %98 = vst.msk [vmem:[#allocation2 + $0x288] sm:$0xff] %vm15_vm0, %v5088_v3  ;;  %99 = vst.msk [vmem:[#allocation2 + $0x290] sm:$0xff] %vm15_vm0, %v5088_v3 }
  0x2b   :  { %101 = vst.msk [vmem:[#allocation2 + $0x2a0] sm:$0xff] %vm15_vm0, %v5088_v3  ;;  %102 = vst.msk [vmem:[#allocation2 + $0x2a8] sm:$0xff] %vm15_vm0, %v5088_v3 }
  0x2c   :  { %103 = vst.msk [vmem:[#allocation2 + $0x2b0] sm:$0x3] %vm18_vm1, %v5088_v3  ;;  %106 = vst.msk [vmem:[#allocation2 + $0x2c8] sm:$0x3] %vm18_vm1, %v5088_v3 }
  0x2d   :  { %104 = vst.msk [vmem:[#allocation2 + $0x2b8] sm:$0xff] %vm15_vm0, %v5088_v3  ;;  %105 = vst.msk [vmem:[#allocation2 + $0x2c0] sm:$0xff] %vm15_vm0, %v5088_v3 }
  0x2e   :  { %107 = vst.msk [vmem:[#allocation2 + $0x2d0] sm:$0xff] %vm15_vm0, %v5088_v3  ;;  %108 = vst.msk [vmem:[#allocation2 + $0x2d8] sm:$0xff] %vm15_vm0, %v5088_v3 }
  0x2f   :  { %109 = vst.msk [vmem:[#allocation2 + $0x2e0] sm:$0x3] %vm18_vm1, %v5088_v3  ;;  %112 = vst.msk [vmem:[#allocation2 + $0x2f8] sm:$0x3] %vm18_vm1, %v5088_v3 }
  0x30   :  { %110 = vst.msk [vmem:[#allocation2 + $0x2e8] sm:$0xff] %vm15_vm0, %v5088_v3  ;;  %111 = vst.msk [vmem:[#allocation2 + $0x2f0] sm:$0xff] %vm15_vm0, %v5088_v3 }
  0x31   :  { %113 = vst.msk [vmem:[#allocation2 + $0x300] sm:$0xff] %vm15_vm0, %v5088_v3  ;;  %114 = vst.msk [vmem:[#allocation2 + $0x308] sm:$0xff] %vm15_vm0, %v5088_v3 }
  0x32   :  { %115 = vst.msk [vmem:[#allocation2 + $0x310] sm:$0x3] %vm18_vm1, %v5088_v3  ;;  %118 = vst.msk [vmem:[#allocation2 + $0x328] sm:$0x3] %vm18_vm1, %v5088_v3 }
  0x33   :  { %116 = vst.msk [vmem:[#allocation2 + $0x318] sm:$0xff] %vm15_vm0, %v5088_v3  ;;  %117 = vst.msk [vmem:[#allocation2 + $0x320] sm:$0xff] %vm15_vm0, %v5088_v3 }
  0x34   :  { %119 = vst.msk [vmem:[#allocation2 + $0x330] sm:$0xff] %vm15_vm0, %v5088_v3  ;;  %120 = vst.msk [vmem:[#allocation2 + $0x338] sm:$0xff] %vm15_vm0, %v5088_v3 }
  0x35   :  { %121 = vst.msk [vmem:[#allocation2 + $0x340] sm:$0x3] %vm18_vm1, %v5088_v3  ;;  %124 = vst.msk [vmem:[#allocation2 + $0x358] sm:$0x3] %vm18_vm1, %v5088_v3 }
  0x36   :  { %122 = vst.msk [vmem:[#allocation2 + $0x348] sm:$0xff] %vm15_vm0, %v5088_v3  ;;  %123 = vst.msk [vmem:[#allocation2 + $0x350] sm:$0xff] %vm15_vm0, %v5088_v3 }
  0x37   :  { %190 = vst.msk [vmem:[#allocation2 + $0x19] sm:$0xff] %vm15_vm0, %v5126_v1  ;;  %191 = vst.msk [vmem:[#allocation2 + $0x21] sm:$0xff] %vm15_vm0, %v5131_v2  ;;  %v188_v1 = vld [vmem:[%s10876_s0 + $0x1f8] sm:$0xff]  ;;  %v321_v2 = vlaneseq }
  0x38   :  { %192 = vst.msk [vmem:[#allocation2 + $0x31] sm:$0xff] %vm15_vm0, %v127_v4  ;;  %193 = vst.msk [vmem:[#allocation2 + $0x39] sm:$0xff] %vm15_vm0, %v128_v5  ;;  %v5610_v4 = vld [vmem:[%s10877_s1] sm:$0x7] }
  0x39   :  { %194 = vst.msk [vmem:[#allocation2 + $0x49] sm:$0xff] %vm15_vm0, %v129_v6  ;;  %195 = vst.msk [vmem:[#allocation2 + $0x51] sm:$0xff] %vm15_vm0, %v130_v7  ;;  %v5605_v3 = vshrl.u32 %v321_v2, 7  ;;  %v290_v6 = vld [vmem:[#allocation2 + $0x1b8] sm:$0xff] }
  0x3a   :  { %196 = vst.msk [vmem:[#allocation2 + $0x61] sm:$0xff] %vm15_vm0, %v131_v8  ;;  %197 = vst.msk [vmem:[#allocation2 + $0x69] sm:$0xff] %vm15_vm0, %v132_v9 }
  0x3b   :  { %198 = vst.msk [vmem:[#allocation2 + $0x79] sm:$0xff] %vm15_vm0, %v133_v10  ;;  %199 = vst.msk [vmem:[#allocation2 + $0x81] sm:$0xff] %vm15_vm0, %v134_v11  ;;  %v5613_v5 = vsub.s32 0, %v5605_v3 }
  0x3c   :  { %200 = vst.msk [vmem:[#allocation2 + $0x91] sm:$0xff] %vm15_vm0, %v135_v12  ;;  %201 = vst.msk [vmem:[#allocation2 + $0x99] sm:$0xff] %vm15_vm0, %v136_v13  ;;  %v5616_v13 = vsub.s32 1, %v5605_v3 }
  0x3d   :  { %202 = vst.msk [vmem:[#allocation2 + $0xa9] sm:$0xff] %vm15_vm0, %v137_v14  ;;  %203 = vst.msk [vmem:[#allocation2 + $0xb1] sm:$0xff] %vm15_vm0, %v138_v15 }
  0x3e   :  { %204 = vst.msk [vmem:[#allocation2 + $0xc1] sm:$0xff] %vm15_vm0, %v139_v16  ;;  %205 = vst.msk [vmem:[#allocation2 + $0xc9] sm:$0xff] %vm15_vm0, %v140_v17 }
  0x3f   :  { %206 = vst.msk [vmem:[#allocation2 + $0xd9] sm:$0xff] %vm15_vm0, %v141_v18  ;;  %207 = vst.msk [vmem:[#allocation2 + $0xe1] sm:$0xff] %vm15_vm0, %v142_v19 }
  0x40   :  { %208 = vst.msk [vmem:[#allocation2 + $0xf1] sm:$0xff] %vm15_vm0, %v143_v20  ;;  %209 = vst.msk [vmem:[#allocation2 + $0xf9] sm:$0xff] %vm15_vm0, %v144_v21 }
  0x41   :  { %210 = vst.msk [vmem:[#allocation2 + $0x109] sm:$0xff] %vm15_vm0, %v145_v22  ;;  %211 = vst.msk [vmem:[#allocation2 + $0x111] sm:$0xff] %vm15_vm0, %v146_v23  ;;  %v5620_v22 = vrot.slane %v5610_v4, %v5613_v5 }
  0x42   :  { %212 = vst.msk [vmem:[#allocation2 + $0x121] sm:$0xff] %vm15_vm0, %v147_v24  ;;  %213 = vst.msk [vmem:[#allocation2 + $0x129] sm:$0xff] %vm15_vm0, %v148_v25 }
  0x43   :  { %214 = vst.msk [vmem:[#allocation2 + $0x139] sm:$0xff] %vm15_vm0, %v149_v26  ;;  %215 = vst.msk [vmem:[#allocation2 + $0x141] sm:$0xff] %vm15_vm0, %v150_v27 }
  0x44   :  { %216 = vst.msk [vmem:[#allocation2 + $0x151] sm:$0xff] %vm15_vm0, %v151_v28  ;;  %217 = vst.msk [vmem:[#allocation2 + $0x159] sm:$0xff] %vm15_vm0, %v152_v29 }
  0x45   :  { %218 = vst.msk [vmem:[#allocation2 + $0x169] sm:$0xff] %vm15_vm0, %v153_v30  ;;  %219 = vst.msk [vmem:[#allocation2 + $0x171] sm:$0xff] %vm15_vm0, %v154_v31  ;;  %v5623_v31 = vmul.f32 %v5620_v22, %v290_v6 }
  0x46   :  { %220 = vst.msk [vmem:[#allocation2 + $0x181] sm:$0xff] %vm15_vm0, %v155_v32  ;;  %221 = vst.msk [vmem:[#allocation2 + $0x189] sm:$0xff] %vm15_vm0, %v156_v33 }
  0x47   :  { %222 = vst.msk [vmem:[#allocation2 + $0x1c9] sm:$0xff] %vm15_vm0, %v157_v34  ;;  %223 = vst.msk [vmem:[#allocation2 + $0x1d1] sm:$0xff] %vm15_vm0, %v158_v35  ;;  %v5633_v34 = vrot.slane %v5610_v4, %v5616_v13 }
  0x48   :  { %224 = vst.msk [vmem:[#allocation2 + $0x1e1] sm:$0xff] %vm15_vm0, %v159_v36  ;;  %225 = vst.msk [vmem:[#allocation2 + $0x1e9] sm:$0xff] %vm15_vm0, %v160_v37 }
  0x49   :  { %226 = vst.msk [vmem:[#allocation2 + $0x1f9] sm:$0xff] %vm15_vm0, %v161_v38  ;;  %227 = vst.msk [vmem:[#allocation2 + $0x201] sm:$0xff] %vm15_vm0, %v162_v39 }
  0x4a   :  { %228 = vst.msk [vmem:[#allocation2 + $0x211] sm:$0xff] %vm15_vm0, %v163_v40  ;;  %229 = vst.msk [vmem:[#allocation2 + $0x219] sm:$0xff] %vm15_vm0, %v164_v41 }
  0x4b   :  { %230 = vst.msk [vmem:[#allocation2 + $0x229] sm:$0xff] %vm15_vm0, %v165_v42  ;;  %231 = vst.msk [vmem:[#allocation2 + $0x231] sm:$0xff] %vm15_vm0, %v166_v43 }
  0x4c   :  { %232 = vst.msk [vmem:[#allocation2 + $0x241] sm:$0xff] %vm15_vm0, %v167_v44  ;;  %233 = vst.msk [vmem:[#allocation2 + $0x249] sm:$0xff] %vm15_vm0, %v168_v45 }
  0x4d   :  { %234 = vst.msk [vmem:[#allocation2 + $0x259] sm:$0xff] %vm15_vm0, %v169_v46  ;;  %235 = vst.msk [vmem:[#allocation2 + $0x261] sm:$0xff] %vm15_vm0, %v170_v47 }
  0x4e   :  { %236 = vst.msk [vmem:[#allocation2 + $0x271] sm:$0xff] %vm15_vm0, %v171_v48  ;;  %237 = vst.msk [vmem:[#allocation2 + $0x279] sm:$0xff] %vm15_vm0, %v172_v49  ;;  %v291_v7 = vld [vmem:[#allocation2 + $0x1c8] sm:$0xff]  ;;  %v292_v8 = vld [vmem:[#allocation2 + $0x1d0] sm:$0xff] }
  0x4f   :  { %238 = vst.msk [vmem:[#allocation2 + $0x289] sm:$0xff] %vm15_vm0, %v173_v50  ;;  %239 = vst.msk [vmem:[#allocation2 + $0x291] sm:$0xff] %vm15_vm0, %v174_v51  ;;  %v293_v9 = vld [vmem:[#allocation2 + $0x1e0] sm:$0xff]  ;;  %v294_v10 = vld [vmem:[#allocation2 + $0x1e8] sm:$0xff]  ;;  %v5626_v32 = vmul.f32 %v5620_v22, %v291_v7  ;;  %v5629_v33 = vmul.f32 %v5620_v22, %v292_v8 }
  0x50   :  { %240 = vst.msk [vmem:[#allocation2 + $0x2a1] sm:$0xff] %vm15_vm0, %v175_v52  ;;  %241 = vst.msk [vmem:[#allocation2 + $0x2a9] sm:$0xff] %vm15_vm0, %v176_v53  ;;  %v295_v11 = vld [vmem:[#allocation2 + $0x1f8] sm:$0xff]  ;;  %v296_v12 = vld [vmem:[#allocation2 + $0x200] sm:$0xff]  ;;  %v5636_v39 = vmul.f32 %v5620_v22, %v293_v9  ;;  %v5639_v40 = vmul.f32 %v5620_v22, %v294_v10 }
  0x51   :  { %242 = vst.msk [vmem:[#allocation2 + $0x2b9] sm:$0xff] %vm15_vm0, %v177_v54  ;;  %243 = vst.msk [vmem:[#allocation2 + $0x2c1] sm:$0xff] %vm15_vm0, %v178_v55  ;;  %v297_v14 = vld [vmem:[#allocation2 + $0x210] sm:$0xff]  ;;  %v298_v15 = vld [vmem:[#allocation2 + $0x218] sm:$0xff]  ;;  %v5642_v41 = vmul.f32 %v5620_v22, %v295_v11  ;;  %v5645_v42 = vmul.f32 %v5620_v22, %v296_v12 }
  0x52   :  { %244 = vst.msk [vmem:[#allocation2 + $0x2d1] sm:$0xff] %vm15_vm0, %v179_v56  ;;  %245 = vst.msk [vmem:[#allocation2 + $0x2d9] sm:$0xff] %vm15_vm0, %v180_v57  ;;  %v299_v16 = vld [vmem:[#allocation2 + $0x228] sm:$0xff]  ;;  %v300_v17 = vld [vmem:[#allocation2 + $0x230] sm:$0xff]  ;;  %v5648_v47 = vmul.f32 %v5620_v22, %v297_v14  ;;  %v5651_v48 = vmul.f32 %v5620_v22, %v298_v15 }
  0x53   :  { %246 = vst.msk [vmem:[#allocation2 + $0x2e9] sm:$0xff] %vm15_vm0, %v181_v58  ;;  %247 = vst.msk [vmem:[#allocation2 + $0x2f1] sm:$0xff] %vm15_vm0, %v182_v59  ;;  %v301_v18 = vld [vmem:[#allocation2 + $0x240] sm:$0xff]  ;;  %v302_v19 = vld [vmem:[#allocation2 + $0x248] sm:$0xff]  ;;  %v5654_v49 = vmul.f32 %v5620_v22, %v299_v16  ;;  %v5657_v50 = vmul.f32 %v5620_v22, %v300_v17 }
  0x54   :  { %248 = vst.msk [vmem:[#allocation2 + $0x301] sm:$0xff] %vm15_vm0, %v183_v60  ;;  %249 = vst.msk [vmem:[#allocation2 + $0x309] sm:$0xff] %vm15_vm0, %v184_v61  ;;  %v303_v20 = vld [vmem:[#allocation2 + $0x258] sm:$0xff]  ;;  %v304_v21 = vld [vmem:[#allocation2 + $0x260] sm:$0xff]  ;;  %v5660_v51 = vmul.f32 %v5620_v22, %v301_v18  ;;  %v5663_v52 = vmul.f32 %v5620_v22, %v302_v19 }
  0x55   :  { %250 = vst.msk [vmem:[#allocation2 + $0x319] sm:$0xff] %vm15_vm0, %v185_v62  ;;  %251 = vst.msk [vmem:[#allocation2 + $0x321] sm:$0xff] %vm15_vm0, %v186_v63  ;;  %v305_v23 = vld [vmem:[#allocation2 + $0x270] sm:$0xff]  ;;  %v306_v24 = vld [vmem:[#allocation2 + $0x278] sm:$0xff]  ;;  %v5666_v53 = vmul.f32 %v5620_v22, %v303_v20  ;;  %v5669_v54 = vmul.f32 %v5620_v22, %v304_v21 }
  0x56   :  { %252 = vst.msk [vmem:[#allocation2 + $0x331] sm:$0xff] %vm15_vm0, %v187_v0  ;;  %253 = vst.msk [vmem:[#allocation2 + $0x339] sm:$0xff] %vm15_vm0, %v188_v1  ;;  %v307_v25 = vld [vmem:[#allocation2 + $0x288] sm:$0xff]  ;;  %v308_v26 = vld [vmem:[#allocation2 + $0x290] sm:$0xff]  ;;  %v5672_v59 = vmul.f32 %v5620_v22, %v305_v23  ;;  %v5675_v60 = vmul.f32 %v5620_v22, %v306_v24 }
  0x57   :  { %11084 = vst [vmem:[#allocation6_spill] sm:$0xff] %v5605_v3  ;;  %11085 = vst [vmem:[#allocation7_spill] sm:$0xff] %v5610_v4  ;;  %v309_v27 = vld [vmem:[#allocation2 + $0x2a0] sm:$0xff]  ;;  %v310_v28 = vld [vmem:[#allocation2 + $0x2a8] sm:$0xff]  ;;  %v5678_v61 = vmul.f32 %v5620_v22, %v307_v25  ;;  %v5681_v62 = vmul.f32 %v5620_v22, %v308_v26 }
  0x58   :  { %11086 = vst [vmem:[#allocation8_spill] sm:$0xff] %v5613_v5  ;;  %11087 = vst [vmem:[#allocation9_spill] sm:$0xff] %v5616_v13  ;;  %v311_v29 = vld [vmem:[#allocation2 + $0x2b8] sm:$0xff]  ;;  %v312_v30 = vld [vmem:[#allocation2 + $0x2c0] sm:$0xff]  ;;  %v5684_v2 = vmul.f32 %v5620_v22, %v309_v27  ;;  %v5687_v6 = vmul.f32 %v5620_v22, %v310_v28 }
  0x59   :  { %11088 = vst [vmem:[#allocation10_spill] sm:$0xff] %v5620_v22  ;;  %11089 = vst [vmem:[#allocation11_spill] sm:$0xff] %v5633_v34  ;;  %v313_v35 = vld [vmem:[#allocation2 + $0x2d0] sm:$0xff]  ;;  %v314_v36 = vld [vmem:[#allocation2 + $0x2d8] sm:$0xff]  ;;  %v5690_v7 = vmul.f32 %v5620_v22, %v311_v29  ;;  %v5693_v8 = vmul.f32 %v5620_v22, %v312_v30 }
  0x5a   :  { %v315_v37 = vld [vmem:[#allocation2 + $0x2e8] sm:$0xff]  ;;  %v316_v38 = vld [vmem:[#allocation2 + $0x2f0] sm:$0xff]  ;;  %v422_v55 = vld [vmem:[#allocation2 + $0x1b9] sm:$0xff]  ;;  %v5696_v12 = vmul.f32 %v5620_v22, %v313_v35  ;;  %v5699_v14 = vmul.f32 %v5620_v22, %v314_v36 }
  0x5b   :  { %v317_v43 = vld [vmem:[#allocation2 + $0x300] sm:$0xff]  ;;  %v318_v44 = vld [vmem:[#allocation2 + $0x308] sm:$0xff]  ;;  %v424_v57 = vld [vmem:[#allocation2 + $0x1d1] sm:$0xff]  ;;  %11090 = vst [vmem:[#allocation12_spill] sm:$0xff] %v5693_v8  ;;  %v5702_v15 = vmul.f32 %v5620_v22, %v315_v37  ;;  %v5705_v16 = vmul.f32 %v5620_v22, %v316_v38  ;;  %v490_v35 = vmul.f32 %v5633_v34, %v422_v55 }
  0x5c   :  { %v319_v45 = vld [vmem:[#allocation2 + $0x318] sm:$0xff]  ;;  %v320_v46 = vld [vmem:[#allocation2 + $0x320] sm:$0xff]  ;;  %v423_v56 = vld [vmem:[#allocation2 + $0x1c9] sm:$0xff]  ;;  %11091 = vst [vmem:[#allocation13_spill] sm:$0xff] %v5696_v12  ;;  %v5708_v20 = vmul.f32 %v5620_v22, %v317_v43  ;;  %v5711_v21 = vmul.f32 %v5620_v22, %v318_v44  ;;  %v492_v37 = vmul.f32 %v5633_v34, %v424_v57 }
  0x5d   :  { %v425_v58 = vld [vmem:[#allocation2 + $0x1e1] sm:$0xff]  ;;  %v426_v63 = vld [vmem:[#allocation2 + $0x1e9] sm:$0xff]  ;;  %v427_v0 = vld [vmem:[#allocation2 + $0x1f9] sm:$0xff]  ;;  %11092 = vst [vmem:[#allocation14_spill] sm:$0xff] %v5699_v14  ;;  %v5714_v23 = vmul.f32 %v5620_v22, %v319_v45  ;;  %v5717_v24 = vmul.f32 %v5620_v22, %v320_v46  ;;  %v491_v36 = vmul.f32 %v5633_v34, %v423_v56 }
  0x5e   :  { %v428_v1 = vld [vmem:[#allocation2 + $0x201] sm:$0xff]  ;;  %v429_v9 = vld [vmem:[#allocation2 + $0x211] sm:$0xff]  ;;  %v430_v10 = vld [vmem:[#allocation2 + $0x219] sm:$0xff]  ;;  %11093 = vst [vmem:[#allocation15_spill] sm:$0xff] %v5702_v15  ;;  %v493_v38 = vmul.f32 %v5633_v34, %v425_v58  ;;  %v494_v46 = vmul.f32 %v5633_v34, %v426_v63  ;;  %v495_v22 = vmul.f32 %v5633_v34, %v427_v0 }
  0x5f   :  { %v431_v11 = vld [vmem:[#allocation2 + $0x229] sm:$0xff]  ;;  %11094 = vst [vmem:[#allocation16_spill] sm:$0xff] %v5705_v16  ;;  %v432_v17 = vld [vmem:[#allocation2 + $0x231] sm:$0xff]  ;;  %v433_v18 = vld [vmem:[#allocation2 + $0x241] sm:$0xff]  ;;  %v496_v13 = vmul.f32 %v5633_v34, %v428_v1  ;;  %v497_v5 = vmul.f32 %v5633_v34, %v429_v9  ;;  %v498_v56 = vmul.f32 %v5633_v34, %v430_v10 }
  0x60   :  { %v434_v19 = vld [vmem:[#allocation2 + $0x249] sm:$0xff]  ;;  %11095 = vst [vmem:[#allocation17_spill] sm:$0xff] %v5708_v20  ;;  %11096 = vst [vmem:[#allocation18_spill] sm:$0xff] %v5711_v21  ;;  %v435_v25 = vld [vmem:[#allocation2 + $0x259] sm:$0xff]  ;;  %v499_v57 = vmul.f32 %v5633_v34, %v431_v11  ;;  %v500_v58 = vmul.f32 %v5633_v34, %v432_v17 }
  0x61   :  { %11097 = vst [vmem:[#allocation19_spill] sm:$0xff] %v5714_v23  ;;  %11098 = vst [vmem:[#allocation20_spill] sm:$0xff] %v5717_v24  ;;  %v436_v26 = vld [vmem:[#allocation2 + $0x261] sm:$0xff]  ;;  %v437_v27 = vld [vmem:[#allocation2 + $0x271] sm:$0xff]  ;;  %v501_v24 = vmul.f32 %v5633_v34, %v433_v18  ;;  %v502_v0 = vmul.f32 %v5633_v34, %v434_v19  ;;  %v503_v1 = vmul.f32 %v5633_v34, %v435_v25 }
  0x62   :  { %v438_v28 = vld [vmem:[#allocation2 + $0x279] sm:$0xff]  ;;  %v439_v29 = vld [vmem:[#allocation2 + $0x289] sm:$0xff]  ;;  %v440_v30 = vld [vmem:[#allocation2 + $0x291] sm:$0xff]  ;;  %v504_v9 = vmul.f32 %v5633_v34, %v436_v26  ;;  %v505_v20 = vmul.f32 %v5633_v34, %v437_v27 }
  0x63   :  { %v441_v43 = vld [vmem:[#allocation2 + $0x2a1] sm:$0xff]  ;;  %v442_v44 = vld [vmem:[#allocation2 + $0x2a9] sm:$0xff]  ;;  %v443_v45 = vld [vmem:[#allocation2 + $0x2b9] sm:$0xff]  ;;  %v506_v11 = vmul.f32 %v5633_v34, %v438_v28  ;;  %v507_v17 = vmul.f32 %v5633_v34, %v439_v29  ;;  %v508_v18 = vmul.f32 %v5633_v34, %v440_v30 }
  0x64   :  { %v444_v4 = vld [vmem:[#allocation2 + $0x2c1] sm:$0xff]  ;;  %v445_v3 = vld [vmem:[#allocation2 + $0x2d1] sm:$0xff]  ;;  %v446_v55 = vld [vmem:[#allocation2 + $0x2d9] sm:$0xff]  ;;  %v509_v14 = vmul.f32 %v5633_v34, %v441_v43  ;;  %v510_v12 = vmul.f32 %v5633_v34, %v442_v44  ;;  %v511_v19 = vmul.f32 %v5633_v34, %v443_v45  ;;  %v5751_v45 = vadd.f32 %v490_v35, %v5623_v31 }
  0x65   :  { %v447_v23 = vld [vmem:[#allocation2 + $0x2e9] sm:$0xff]  ;;  %v448_v21 = vld [vmem:[#allocation2 + $0x2f1] sm:$0xff]  ;;  %v449_v63 = vld [vmem:[#allocation2 + $0x301] sm:$0xff]  ;;  %v512_v25 = vmul.f32 %v5633_v34, %v444_v4  ;;  %v513_v26 = vmul.f32 %v5633_v34, %v445_v3  ;;  %v514_v27 = vmul.f32 %v5633_v34, %v446_v55  ;;  %v5754_v4 = vadd.f32 %v491_v36, %v5626_v32 }
  0x66   :  { %v450_v16 = vld [vmem:[#allocation2 + $0x309] sm:$0xff]  ;;  %v451_v15 = vld [vmem:[#allocation2 + $0x319] sm:$0xff]  ;;  %v452_v10 = vld [vmem:[#allocation2 + $0x321] sm:$0xff]  ;;  %v515_v8 = vmul.f32 %v5633_v34, %v447_v23  ;;  %v516_v28 = vmul.f32 %v5633_v34, %v448_v21  ;;  %v517_v29 = vmul.f32 %v5633_v34, %v449_v63  ;;  %v5757_v3 = vadd.f32 %v492_v37, %v5629_v33 }
  0x67   :  { %v518_v30 = vmul.f32 %v5633_v34, %v450_v16  ;;  %v519_v43 = vmul.f32 %v5633_v34, %v451_v15  ;;  %v520_v44 = vmul.f32 %v5633_v34, %v452_v10  ;;  %v5760_v23 = vadd.f32 %v493_v38, %v5636_v39  ;;  %v258_v55 = vld [vmem:[#allocation2 + $0x8] sm:$0xff]  ;;  %v264_v10 = vld [vmem:[#allocation2 + $0x50] sm:$0xff] }
  0x68   :  { %v5763_v21 = vadd.f32 %v494_v46, %v5639_v40  ;;  %v5766_v16 = vadd.f32 %v495_v22, %v5642_v41  ;;  %v5769_v15 = vadd.f32 %v496_v13, %v5645_v42  ;;  %v5772_v31 = vadd.f32 %v497_v5, %v5648_v47  ;;  %v11113_v35 = vld [vmem:[#allocation19_spill] sm:$0xff]  ;;  %v11115_v37 = vld [vmem:[#allocation20_spill] sm:$0xff]  ;;  %v257_v46 = vld [vmem:[#allocation2] sm:$0xff] }
  0x69   :  { %v5775_v32 = vadd.f32 %v498_v56, %v5651_v48  ;;  %v5778_v33 = vadd.f32 %v499_v57, %v5654_v49  ;;  %v5781_v39 = vadd.f32 %v500_v58, %v5657_v50  ;;  %v5784_v40 = vadd.f32 %v501_v24, %v5660_v51  ;;  %v259_v56 = vld [vmem:[#allocation2 + $0x18] sm:$0xff]  ;;  %v260_v57 = vld [vmem:[#allocation2 + $0x20] sm:$0xff] }
  0x6a   :  { %v5787_v22 = vadd.f32 %v502_v0, %v5663_v52  ;;  %v5790_v13 = vadd.f32 %v503_v1, %v5666_v53  ;;  %v5793_v5 = vadd.f32 %v504_v9, %v5669_v54  ;;  %v5796_v41 = vadd.f32 %v505_v20, %v5672_v59  ;;  %v11099_v52 = vld [vmem:[#allocation12_spill] sm:$0xff]  ;;  %v11101_v54 = vld [vmem:[#allocation13_spill] sm:$0xff]  ;;  %v11117_v58 = vld [vmem:[#allocation6_spill] sm:$0xff] }
  0x6b   :  { %v5799_v42 = vadd.f32 %v506_v11, %v5675_v60  ;;  %v5802_v47 = vadd.f32 %v507_v17, %v5678_v61  ;;  %v5805_v48 = vadd.f32 %v508_v18, %v5681_v62  ;;  %v5808_v49 = vadd.f32 %v509_v14, %v5684_v2  ;;  %v11103_v60 = vld [vmem:[#allocation14_spill] sm:$0xff]  ;;  %v11105_v62 = vld [vmem:[#allocation15_spill] sm:$0xff]  ;;  %v11107_v2 = vld [vmem:[#allocation16_spill] sm:$0xff] }
  0x6c   :  { %v5811_v50 = vadd.f32 %v510_v12, %v5687_v6  ;;  %v5814_v51 = vadd.f32 %v511_v19, %v5690_v7  ;;  %v5817_v53 = vadd.f32 %v512_v25, %v11099_v52  ;;  %v5820_v59 = vadd.f32 %v513_v26, %v11101_v54  ;;  %v11109_v6 = vld [vmem:[#allocation17_spill] sm:$0xff]  ;;  %v11111_v7 = vld [vmem:[#allocation18_spill] sm:$0xff]  ;;  %v261_v0 = vld [vmem:[#allocation2 + $0x30] sm:$0xff] }
  0x6d   :  { %v5823_v61 = vadd.f32 %v514_v27, %v11103_v60  ;;  %v5826_v20 = vadd.f32 %v515_v8, %v11105_v62  ;;  %v5829_v14 = vadd.f32 %v516_v28, %v11107_v2  ;;  %v5832_v12 = vadd.f32 %v517_v29, %v11109_v6  ;;  %v255_v8 = vld [vmem:[%s10877_s1 + $0x4] sm:$0x7]  ;;  %v262_v1 = vld [vmem:[#allocation2 + $0x38] sm:$0xff]  ;;  %v263_v9 = vld [vmem:[#allocation2 + $0x48] sm:$0xff] }
  0x6e   :  { %11100 = vst [vmem:[#allocation12_spill] sm:$0xff] %v5817_v53  ;;  %11102 = vst [vmem:[#allocation13_spill] sm:$0xff] %v5820_v59  ;;  %v5835_v24 = vadd.f32 %v518_v30, %v11111_v7  ;;  %v5838_v36 = vadd.f32 %v519_v43, %v11113_v35  ;;  %v5841_v38 = vadd.f32 %v520_v44, %v11115_v37  ;;  %v5847_v63 = vsub.s32 2, %v11117_v58  ;;  %v265_v11 = vld [vmem:[#allocation2 + $0x60] sm:$0xff]  ;;  %v266_v17 = vld [vmem:[#allocation2 + $0x68] sm:$0xff] }
  0x6f   :  { %11104 = vst [vmem:[#allocation14_spill] sm:$0xff] %v5823_v61  ;;  %11106 = vst [vmem:[#allocation15_spill] sm:$0xff] %v5826_v20  ;;  %v267_v18 = vld [vmem:[#allocation2 + $0x78] sm:$0xff]  ;;  %v268_v19 = vld [vmem:[#allocation2 + $0x80] sm:$0xff] }
  0x70   :  { %11108 = vst [vmem:[#allocation16_spill] sm:$0xff] %v5829_v14  ;;  %11110 = vst [vmem:[#allocation17_spill] sm:$0xff] %v5832_v12  ;;  %v269_v25 = vld [vmem:[#allocation2 + $0x90] sm:$0xff]  ;;  %v270_v26 = vld [vmem:[#allocation2 + $0x98] sm:$0xff] }
  0x71   :  { %11112 = vst [vmem:[#allocation18_spill] sm:$0xff] %v5835_v24  ;;  %11114 = vst [vmem:[#allocation19_spill] sm:$0xff] %v5838_v36  ;;  %v271_v27 = vld [vmem:[#allocation2 + $0xa8] sm:$0xff]  ;;  %v272_v28 = vld [vmem:[#allocation2 + $0xb0] sm:$0xff] }
  0x72   :  { %11116 = vst [vmem:[#allocation20_spill] sm:$0xff] %v5841_v38  ;;  %11118 = vst [vmem:[#allocation6_spill] sm:$0xff] %v5847_v63  ;;  %v273_v29 = vld [vmem:[#allocation2 + $0xc0] sm:$0xff]  ;;  %v274_v30 = vld [vmem:[#allocation2 + $0xc8] sm:$0xff] }
  0x73   :  { %v275_v43 = vld [vmem:[#allocation2 + $0xd8] sm:$0xff]  ;;  %v11119_v44 = vld [vmem:[#allocation7_spill] sm:$0xff]  ;;  %v11120_v54 = vld [vmem:[#allocation8_spill] sm:$0xff] }
  0x74   :  { %v5851_v52 = vrot.slane %v11119_v44, %v5847_v63  ;;  %v5854_v60 = vrot.slane %v255_v8, %v11120_v54  ;;  %v11122_v62 = vld [vmem:[#allocation9_spill] sm:$0xff]  ;;  %v276_v6 = vld [vmem:[#allocation2 + $0xe0] sm:$0xff]  ;;  %v277_v7 = vld [vmem:[#allocation2 + $0xf0] sm:$0xff] }
  0x75   :  { %v5857_v2 = vrot.slane %v255_v8, %v11122_v62  ;;  %v278_v35 = vld [vmem:[#allocation2 + $0xf8] sm:$0xff]  ;;  %v279_v37 = vld [vmem:[#allocation2 + $0x108] sm:$0xff]  ;;  %v11124_v58 = vld [vmem:[#allocation10_spill] sm:$0xff] }
  0x76   :  { %11121 = vst [vmem:[#allocation7_spill] sm:$0xff] %v5854_v60  ;;  %v5860_v38 = vmul.f32 %v11124_v58, %v257_v46  ;;  %v5863_v36 = vmul.f32 %v11124_v58, %v258_v55  ;;  %v5866_v24 = vmul.f32 %v11124_v58, %v259_v56  ;;  %v5869_v44 = vmul.f32 %v11124_v58, %v260_v57  ;;  %v280_v54 = vld [vmem:[#allocation2 + $0x110] sm:$0xff]  ;;  %v281_v60 = vld [vmem:[#allocation2 + $0x120] sm:$0xff]  ;;  %v282_v62 = vld [vmem:[#allocation2 + $0x128] sm:$0xff] }
  0x77   :  { %11123 = vst [vmem:[#allocation21_spill] sm:$0xff] %v5857_v2  ;;  %v283_v2 = vld [vmem:[#allocation2 + $0x138] sm:$0xff]  ;;  %v5872_v12 = vmul.f32 %v11124_v58, %v261_v0  ;;  %v5875_v14 = vmul.f32 %v11124_v58, %v262_v1  ;;  %v5878_v46 = vmul.f32 %v11124_v58, %v263_v9  ;;  %v5881_v55 = vmul.f32 %v11124_v58, %v264_v10  ;;  %v284_v56 = vld [vmem:[#allocation2 + $0x140] sm:$0xff]  ;;  %v288_v9 = vld [vmem:[#allocation2 + $0x170] sm:$0xff] }
  0x78   :  { %11125 = vst [vmem:[#allocation10_spill] sm:$0xff] %v5860_v38  ;;  %11126 = vst [vmem:[#allocation22_spill] sm:$0xff] %v5863_v36  ;;  %v286_v57 = vld [vmem:[#allocation2 + $0x158] sm:$0xff]  ;;  %v5884_v36 = vmul.f32 %v11124_v58, %v265_v11  ;;  %v5887_v38 = vmul.f32 %v11124_v58, %v266_v17  ;;  %v5890_v0 = vmul.f32 %v11124_v58, %v267_v18  ;;  %v390_v17 = vld [vmem:[#allocation2 + $0x9] sm:$0xff] }
  0x79   :  { %11127 = vst [vmem:[#allocation23_spill] sm:$0xff] %v5866_v24  ;;  %11128 = vst [vmem:[#allocation24_spill] sm:$0xff] %v5869_v44  ;;  %v285_v24 = vld [vmem:[#allocation2 + $0x150] sm:$0xff]  ;;  %v287_v44 = vld [vmem:[#allocation2 + $0x168] sm:$0xff]  ;;  %v5893_v1 = vmul.f32 %v11124_v58, %v268_v19  ;;  %v5896_v10 = vmul.f32 %v11124_v58, %v269_v25  ;;  %v5902_v11 = vmul.f32 %v11124_v58, %v271_v27 }
  0x7a   :  { %11129 = vst [vmem:[#allocation25_spill] sm:$0xff] %v5872_v12  ;;  %11130 = vst [vmem:[#allocation26_spill] sm:$0xff] %v5875_v14  ;;  %v5908_v18 = vmul.f32 %v11124_v58, %v272_v28  ;;  %v5911_v19 = vmul.f32 %v11124_v58, %v273_v29  ;;  %v5914_v25 = vmul.f32 %v11124_v58, %v274_v30  ;;  %v619_v27 = vld [vmem:[#allocation2 + $0x1ca] sm:$0xff]  ;;  %v647_v20 = vld [vmem:[#allocation2 + $0x31a] sm:$0xff] }
  0x7b   :  { %11131 = vst [vmem:[#allocation27_spill] sm:$0xff] %v5878_v46  ;;  %11132 = vst [vmem:[#allocation28_spill] sm:$0xff] %v5881_v55  ;;  %v289_v46 = vld [vmem:[#allocation2 + $0x1b0] sm:$0xff]  ;;  %v5899_v55 = vmul.f32 %v11124_v58, %v270_v26  ;;  %v5917_v26 = vmul.f32 %v11124_v58, %v275_v43  ;;  %v5926_v28 = vmul.f32 %v11124_v58, %v278_v35  ;;  %v624_v43 = vld [vmem:[#allocation2 + $0x202] sm:$0xff] }
  0x7c   :  { %11133 = vst [vmem:[#allocation29_spill] sm:$0xff] %v5884_v36  ;;  %11134 = vst [vmem:[#allocation30_spill] sm:$0xff] %v5887_v38  ;;  %v389_v36 = vld [vmem:[#allocation2 + $0x1] sm:$0xff]  ;;  %v5905_v38 = vrot.slane %v255_v8, %v5847_v63  ;;  %v5923_v8 = vmul.f32 %v11124_v58, %v277_v7  ;;  %v5929_v29 = vmul.f32 %v11124_v58, %v279_v37  ;;  %v622_v30 = vld [vmem:[#allocation2 + $0x1ea] sm:$0xff] }
  0x7d   :  { %11135 = vst [vmem:[#allocation31_spill] sm:$0xff] %v5890_v0  ;;  %11136 = vst [vmem:[#allocation32_spill] sm:$0xff] %v5893_v1  ;;  %v5920_v1 = vmul.f32 %v11124_v58, %v276_v6  ;;  %v623_v63 = vld [vmem:[#allocation2 + $0x1fa] sm:$0xff]  ;;  %v5938_v6 = vmul.f32 %v11124_v58, %v282_v62  ;;  %v5941_v7 = vmul.f32 %v11124_v58, %v283_v2  ;;  %v625_v35 = vld [vmem:[#allocation2 + $0x212] sm:$0xff] }
  0x7e   :  { %11137 = vst [vmem:[#allocation33_spill] sm:$0xff] %v5896_v10  ;;  %11138 = vst [vmem:[#allocation34_spill] sm:$0xff] %v5899_v55  ;;  %v618_v55 = vld [vmem:[#allocation2 + $0x1ba] sm:$0xff]  ;;  %v621_v10 = vld [vmem:[#allocation2 + $0x1e2] sm:$0xff]  ;;  %v5944_v37 = vmul.f32 %v11124_v58, %v284_v56  ;;  %v5956_v2 = vmul.f32 %v11124_v58, %v288_v9  ;;  %v5962_v56 = vmul.f32 %v5633_v34, %v389_v36 }
  0x7f   :  { %11139 = vst [vmem:[#allocation35_spill] sm:$0xff] %v5902_v11  ;;  %11140 = vst [vmem:[#allocation36_spill] sm:$0xff] %v5905_v38  ;;  %v620_v11 = vld [vmem:[#allocation2 + $0x1d2] sm:$0xff]  ;;  %v5932_v38 = vmul.f32 %v11124_v58, %v280_v54  ;;  %v5950_v54 = vmul.f32 %v11124_v58, %v286_v57  ;;  %v631_v57 = vld [vmem:[#allocation2 + $0x25a] sm:$0xff]  ;;  %v687_v9 = vmul.f32 %v5851_v52, %v619_v27 }
  0x80   :  { %11141 = vst [vmem:[#allocation37_spill] sm:$0xff] %v5908_v18  ;;  %11142 = vst [vmem:[#allocation38_spill] sm:$0xff] %v5911_v19  ;;  %v628_v62 = vld [vmem:[#allocation2 + $0x232] sm:$0xff]  ;;  %v638_v36 = vld [vmem:[#allocation2 + $0x2aa] sm:$0xff]  ;;  %v693_v19 = vmul.f32 %v5851_v52, %v625_v35 }
  0x81   :  { %11143 = vst [vmem:[#allocation39_spill] sm:$0xff] %v5914_v25  ;;  %11144 = vst [vmem:[#allocation40_spill] sm:$0xff] %v5917_v26  ;;  %v5935_v26 = vmul.f32 %v11124_v58, %v281_v60  ;;  %v5953_v60 = vmul.f32 %v11124_v58, %v287_v44  ;;  %v634_v44 = vld [vmem:[#allocation2 + $0x27a] sm:$0xff]  ;;  %v692_v25 = vmul.f32 %v5851_v52, %v624_v43  ;;  %v640_v18 = vld [vmem:[#allocation2 + $0x2c2] sm:$0xff] }
  0x82   :  { %11145 = vst [vmem:[#allocation41_spill] sm:$0xff] %v5920_v1  ;;  %11146 = vst [vmem:[#allocation42_spill] sm:$0xff] %v5923_v8  ;;  %v627_v8 = vld [vmem:[#allocation2 + $0x22a] sm:$0xff]  ;;  %v691_v1 = vmul.f32 %v5851_v52, %v623_v63  ;;  %v641_v0 = vld [vmem:[#allocation2 + $0x2d2] sm:$0xff]  ;;  %v699_v43 = vmul.f32 %v5851_v52, %v631_v57  ;;  %v706_v59 = vmul.f32 %v5851_v52, %v638_v36 }
  0x83   :  { %11147 = vst [vmem:[#allocation43_spill] sm:$0xff] %v5926_v28  ;;  %11148 = vst [vmem:[#allocation44_spill] sm:$0xff] %v5929_v29  ;;  %v626_v28 = vld [vmem:[#allocation2 + $0x21a] sm:$0xff]  ;;  %v5947_v29 = vmul.f32 %v11124_v58, %v285_v24  ;;  %v5965_v24 = vmul.f32 %v5633_v34, %v390_v17  ;;  %v690_v17 = vmul.f32 %v5851_v52, %v622_v30  ;;  %v643_v12 = vld [vmem:[#allocation2 + $0x2ea] sm:$0xff] }
  0x84   :  { %11149 = vst [vmem:[#allocation45_spill] sm:$0xff] %v5932_v38  ;;  %11150 = vst [vmem:[#allocation46_spill] sm:$0xff] %v5935_v26  ;;  %v630_v26 = vld [vmem:[#allocation2 + $0x24a] sm:$0xff]  ;;  %v686_v38 = vmul.f32 %v5851_v52, %v618_v55  ;;  %v642_v55 = vld [vmem:[#allocation2 + $0x2da] sm:$0xff]  ;;  %v694_v27 = vmul.f32 %v5851_v52, %v626_v28  ;;  %v708_v57 = vmul.f32 %v5851_v52, %v640_v18 }
  0x85   :  { %11151 = vst [vmem:[#allocation47_spill] sm:$0xff] %v5938_v6  ;;  %11152 = vst [vmem:[#allocation48_spill] sm:$0xff] %v5941_v7  ;;  %v629_v6 = vld [vmem:[#allocation2 + $0x242] sm:$0xff]  ;;  %v5959_v7 = vmul.f32 %v11124_v58, %v289_v46  ;;  %v689_v58 = vmul.f32 %v5851_v52, %v621_v10  ;;  %v696_v10 = vmul.f32 %v5851_v52, %v628_v62  ;;  %v646_v34 = vld [vmem:[#allocation2 + $0x30a] sm:$0xff] }
  0x86   :  { %11153 = vst [vmem:[#allocation49_spill] sm:$0xff] %v5944_v37  ;;  %11154 = vst [vmem:[#allocation50_spill] sm:$0xff] %v5947_v29  ;;  %v633_v29 = vld [vmem:[#allocation2 + $0x272] sm:$0xff]  ;;  %v637_v46 = vld [vmem:[#allocation2 + $0x2a2] sm:$0xff]  ;;  %v697_v14 = vmul.f32 %v5851_v52, %v629_v6  ;;  %v698_v63 = vmul.f32 %v5851_v52, %v630_v26  ;;  %v711_v53 = vmul.f32 %v5851_v52, %v643_v12 }
  0x87   :  { %11155 = vst [vmem:[#allocation51_spill] sm:$0xff] %v5950_v54  ;;  %11156 = vst [vmem:[#allocation52_spill] sm:$0xff] %v5953_v60  ;;  %v632_v54 = vld [vmem:[#allocation2 + $0x262] sm:$0xff]  ;;  %v635_v60 = vld [vmem:[#allocation2 + $0x28a] sm:$0xff]  ;;  %v705_v61 = vmul.f32 %v5851_v52, %v637_v46  ;;  %v715_v46 = vmul.f32 %v5851_v52, %v647_v20  ;;  %v6002_v18 = vadd.f32 %v687_v9, %v5754_v4 }
  0x88   :  { %11157 = vst [vmem:[#allocation53_spill] sm:$0xff] %v5956_v2  ;;  %11158 = vst [vmem:[#allocation54_spill] sm:$0xff] %v5959_v7  ;;  %v636_v37 = vld [vmem:[#allocation2 + $0x292] sm:$0xff]  ;;  %v688_v2 = vmul.f32 %v5851_v52, %v620_v11  ;;  %v639_v7 = vld [vmem:[#allocation2 + $0x2ba] sm:$0xff]  ;;  %v695_v11 = vmul.f32 %v5851_v52, %v627_v8  ;;  %v700_v35 = vmul.f32 %v5851_v52, %v632_v54 }
  0x89   :  { %11159 = vst [vmem:[#allocation55_spill] sm:$0xff] %v5962_v56  ;;  %11160 = vst [vmem:[#allocation56_spill] sm:$0xff] %v5965_v24  ;;  %v644_v24 = vld [vmem:[#allocation2 + $0x2f2] sm:$0xff]  ;;  %v645_v30 = vld [vmem:[#allocation2 + $0x302] sm:$0xff]  ;;  %v701_v56 = vmul.f32 %v5851_v52, %v633_v29  ;;  %v702_v8 = vmul.f32 %v5851_v52, %v634_v44  ;;  %v703_v62 = vmul.f32 %v5851_v52, %v635_v60 }
  0x8a   :  { %v648_v28 = vld [vmem:[#allocation2 + $0x322] sm:$0xff]  ;;  %v704_v6 = vmul.f32 %v5851_v52, %v636_v37  ;;  %v707_v26 = vmul.f32 %v5851_v52, %v639_v7  ;;  %v709_v54 = vmul.f32 %v5851_v52, %v641_v0  ;;  %v710_v29 = vmul.f32 %v5851_v52, %v642_v55 }
  0x8b   :  { %v712_v44 = vmul.f32 %v5851_v52, %v644_v24  ;;  %v713_v60 = vmul.f32 %v5851_v52, %v645_v30  ;;  %v714_v37 = vmul.f32 %v5851_v52, %v646_v34  ;;  %v716_v36 = vmul.f32 %v5851_v52, %v648_v28  ;;  %v400_v30 = vld [vmem:[#allocation2 + $0x81] sm:$0xff] }
  0x8c   :  { %v5999_v7 = vadd.f32 %v686_v38, %v5751_v45  ;;  %v6005_v0 = vadd.f32 %v688_v2, %v5757_v3  ;;  %v6008_v12 = vadd.f32 %v689_v58, %v5760_v23  ;;  %v6011_v24 = vadd.f32 %v690_v17, %v5763_v21  ;;  %v392_v38 = vld [vmem:[#allocation2 + $0x21] sm:$0xff]  ;;  %v399_v58 = vld [vmem:[#allocation2 + $0x79] sm:$0xff]  ;;  %v11170_v17 = vld [vmem:[#allocation16_spill] sm:$0xff] }
  0x8d   :  { %v6014_v34 = vadd.f32 %v691_v1, %v5766_v16  ;;  %v6017_v20 = vadd.f32 %v692_v25, %v5769_v15  ;;  %v6020_v45 = vadd.f32 %v693_v19, %v5772_v31  ;;  %v6023_v4 = vadd.f32 %v694_v27, %v5775_v32  ;;  %v393_v1 = vld [vmem:[#allocation2 + $0x31] sm:$0xff] }
  0x8e   :  { %v6026_v3 = vadd.f32 %v695_v11, %v5778_v33  ;;  %v6029_v23 = vadd.f32 %v696_v10, %v5781_v39  ;;  %v6032_v21 = vadd.f32 %v697_v14, %v5784_v40  ;;  %v6035_v16 = vadd.f32 %v698_v63, %v5787_v22  ;;  %v391_v39 = vld [vmem:[#allocation2 + $0x19] sm:$0xff]  ;;  %v395_v14 = vld [vmem:[#allocation2 + $0x49] sm:$0xff]  ;;  %v396_v19 = vld [vmem:[#allocation2 + $0x51] sm:$0xff] }
  0x8f   :  { %v6038_v15 = vadd.f32 %v699_v43, %v5790_v13  ;;  %v6041_v31 = vadd.f32 %v700_v35, %v5793_v5  ;;  %v6044_v32 = vadd.f32 %v701_v56, %v5796_v41  ;;  %v6047_v33 = vadd.f32 %v702_v8, %v5799_v42  ;;  %v394_v41 = vld [vmem:[#allocation2 + $0x39] sm:$0xff]  ;;  %v11162_v25 = vld [vmem:[#allocation12_spill] sm:$0xff]  ;;  %v11176_v35 = vld [vmem:[#allocation11_spill] sm:$0xff] }
  0x90   :  { %v6050_v40 = vadd.f32 %v703_v62, %v5802_v47  ;;  %v6053_v22 = vadd.f32 %v704_v6, %v5805_v48  ;;  %v6056_v13 = vadd.f32 %v705_v61, %v5808_v49  ;;  %v6059_v5 = vadd.f32 %v706_v59, %v5811_v50  ;;  %v11164_v47 = vld [vmem:[#allocation13_spill] sm:$0xff]  ;;  %v11166_v48 = vld [vmem:[#allocation14_spill] sm:$0xff]  ;;  %v398_v61 = vld [vmem:[#allocation2 + $0x69] sm:$0xff] }
  0x91   :  { %v6062_v42 = vadd.f32 %v707_v26, %v5814_v51  ;;  %v6065_v2 = vadd.f32 %v708_v57, %v11162_v25  ;;  %v6068_v56 = vadd.f32 %v709_v54, %v11164_v47  ;;  %v6071_v9 = vadd.f32 %v710_v29, %v11166_v48  ;;  %v397_v49 = vld [vmem:[#allocation2 + $0x61] sm:$0xff]  ;;  %v11172_v51 = vld [vmem:[#allocation17_spill] sm:$0xff]  ;;  %v403_v57 = vld [vmem:[#allocation2 + $0xa9] sm:$0xff] }
  0x92   :  { %v11168_v50 = vld [vmem:[#allocation15_spill] sm:$0xff]  ;;  %v6077_v55 = vadd.f32 %v712_v44, %v11170_v17  ;;  %v6080_v27 = vadd.f32 %v713_v60, %v11172_v51  ;;  %v11174_v11 = vld [vmem:[#allocation18_spill] sm:$0xff]  ;;  %v401_v63 = vld [vmem:[#allocation2 + $0x91] sm:$0xff]  ;;  %v459_v28 = vmul.f32 %v11176_v35, %v391_v39  ;;  %v460_v8 = vmul.f32 %v11176_v35, %v392_v38 }
  0x93   :  { %11161 = vst [vmem:[#allocation57_spill] sm:$0xff] %v6062_v42  ;;  %11163 = vst [vmem:[#allocation12_spill] sm:$0xff] %v6065_v2  ;;  %v6074_v59 = vadd.f32 %v711_v53, %v11168_v50  ;;  %v6083_v10 = vadd.f32 %v714_v37, %v11174_v11  ;;  %v402_v43 = vld [vmem:[#allocation2 + $0x99] sm:$0xff]  ;;  %v11177_v62 = vld [vmem:[#allocation19_spill] sm:$0xff]  ;;  %v461_v44 = vmul.f32 %v11176_v35, %v393_v1 }
  0x94   :  { %11165 = vst [vmem:[#allocation13_spill] sm:$0xff] %v6068_v56  ;;  %11167 = vst [vmem:[#allocation14_spill] sm:$0xff] %v6071_v9  ;;  %v6088_v6 = vadd.f32 %v715_v46, %v11177_v62  ;;  %v11179_v53 = vld [vmem:[#allocation20_spill] sm:$0xff]  ;;  %v405_v29 = vld [vmem:[#allocation2 + $0xc1] sm:$0xff]  ;;  %v462_v60 = vmul.f32 %v11176_v35, %v394_v41  ;;  %v463_v37 = vmul.f32 %v11176_v35, %v395_v14 }
  0x95   :  { %11169 = vst [vmem:[#allocation15_spill] sm:$0xff] %v6074_v59  ;;  %11171 = vst [vmem:[#allocation16_spill] sm:$0xff] %v6077_v55  ;;  %v6091_v26 = vadd.f32 %v716_v36, %v11179_v53  ;;  %v404_v54 = vld [vmem:[#allocation2 + $0xb1] sm:$0xff]  ;;  %v464_v25 = vmul.f32 %v11176_v35, %v396_v19  ;;  %v406_v39 = vld [vmem:[#allocation2 + $0xc9] sm:$0xff]  ;;  %v465_v46 = vmul.f32 %v11176_v35, %v397_v49 }
  0x96   :  { %11173 = vst [vmem:[#allocation17_spill] sm:$0xff] %v6080_v27  ;;  %11175 = vst [vmem:[#allocation18_spill] sm:$0xff] %v6083_v10  ;;  %v407_v47 = vld [vmem:[#allocation2 + $0xd9] sm:$0xff]  ;;  %v408_v38 = vld [vmem:[#allocation2 + $0xe1] sm:$0xff]  ;;  %v466_v48 = vmul.f32 %v11176_v35, %v398_v61  ;;  %v467_v36 = vmul.f32 %v11176_v35, %v399_v58  ;;  %v468_v14 = vmul.f32 %v11176_v35, %v400_v30 }
  0x97   :  { %11178 = vst [vmem:[#allocation11_spill] sm:$0xff] %v6088_v6  ;;  %11180 = vst [vmem:[#allocation19_spill] sm:$0xff] %v6091_v26  ;;  %v11181_v50 = vld [vmem:[#allocation10_spill] sm:$0xff]  ;;  %v11182_v17 = vld [vmem:[#allocation55_spill] sm:$0xff]  ;;  %v469_v19 = vmul.f32 %v11176_v35, %v401_v63  ;;  %v470_v62 = vmul.f32 %v11176_v35, %v402_v43  ;;  %v471_v10 = vmul.f32 %v11176_v35, %v403_v57 }
  0x98   :  { %v6102_v51 = vadd.f32 %v11182_v17, %v11181_v50  ;;  %v409_v1 = vld [vmem:[#allocation2 + $0xf1] sm:$0xff]  ;;  %v410_v11 = vld [vmem:[#allocation2 + $0xf9] sm:$0xff]  ;;  %v411_v41 = vld [vmem:[#allocation2 + $0x109] sm:$0xff]  ;;  %v472_v50 = vmul.f32 %v11176_v35, %v404_v54  ;;  %v473_v17 = vmul.f32 %v11176_v35, %v405_v29  ;;  %v474_v43 = vmul.f32 %v11176_v35, %v406_v39 }
  0x99   :  { %v11184_v53 = vld [vmem:[#allocation22_spill] sm:$0xff]  ;;  %v11185_v26 = vld [vmem:[#allocation56_spill] sm:$0xff]  ;;  %v477_v29 = vmul.f32 %v11176_v35, %v409_v1 }
  0x9a   :  { %11183 = vst [vmem:[#allocation20_spill] sm:$0xff] %v6102_v51  ;;  %v6109_v49 = vadd.f32 %v11185_v26, %v11184_v53  ;;  %v412_v61 = vld [vmem:[#allocation2 + $0x111] sm:$0xff]  ;;  %v413_v6 = vld [vmem:[#allocation2 + $0x121] sm:$0xff]  ;;  %v414_v58 = vld [vmem:[#allocation2 + $0x129] sm:$0xff]  ;;  %v475_v26 = vmul.f32 %v11176_v35, %v407_v47  ;;  %v476_v53 = vmul.f32 %v11176_v35, %v408_v38 }
  0x9b   :  { %v11187_v51 = vld [vmem:[#allocation23_spill] sm:$0xff]  ;;  %v415_v30 = vld [vmem:[#allocation2 + $0x139] sm:$0xff]  ;;  %v417_v55 = vld [vmem:[#allocation2 + $0x151] sm:$0xff]  ;;  %v480_v47 = vmul.f32 %v11176_v35, %v412_v61  ;;  %v481_v38 = vmul.f32 %v11176_v35, %v413_v6 }
  0x9c   :  { %11186 = vst [vmem:[#allocation10_spill] sm:$0xff] %v6109_v49  ;;  %v6115_v27 = vadd.f32 %v459_v28, %v11187_v51  ;;  %v416_v63 = vld [vmem:[#allocation2 + $0x141] sm:$0xff]  ;;  %v11189_v49 = vld [vmem:[#allocation24_spill] sm:$0xff]  ;;  %v418_v57 = vld [vmem:[#allocation2 + $0x159] sm:$0xff]  ;;  %v478_v28 = vmul.f32 %v11176_v35, %v410_v11  ;;  %v479_v51 = vmul.f32 %v11176_v35, %v411_v41  ;;  %v483_v2 = vmul.f32 %v11176_v35, %v415_v30 }
  0x9d   :  { %v6121_v59 = vadd.f32 %v460_v8, %v11189_v49  ;;  %v419_v9 = vld [vmem:[#allocation2 + $0x169] sm:$0xff]  ;;  %v420_v54 = vld [vmem:[#allocation2 + $0x171] sm:$0xff]  ;;  %v482_v8 = vmul.f32 %v11176_v35, %v414_v58  ;;  %v11193_v49 = vld [vmem:[#allocation26_spill] sm:$0xff]  ;;  %v484_v1 = vmul.f32 %v11176_v35, %v416_v63  ;;  %v485_v11 = vmul.f32 %v11176_v35, %v417_v55 }
  0x9e   :  { %11188 = vst [vmem:[#allocation55_spill] sm:$0xff] %v6115_v27  ;;  %v11191_v27 = vld [vmem:[#allocation25_spill] sm:$0xff]  ;;  %v11195_v41 = vld [vmem:[#allocation27_spill] sm:$0xff]  ;;  %v488_v6 = vmul.f32 %v11176_v35, %v420_v54  ;;  %v11197_v61 = vld [vmem:[#allocation28_spill] sm:$0xff] }
  0x9f   :  { %11190 = vst [vmem:[#allocation22_spill] sm:$0xff] %v6121_v59  ;;  %v6127_v56 = vadd.f32 %v461_v44, %v11191_v27  ;;  %v421_v39 = vld [vmem:[#allocation2 + $0x1b1] sm:$0xff]  ;;  %v6133_v59 = vadd.f32 %v462_v60, %v11193_v49  ;;  %v6139_v42 = vadd.f32 %v463_v37, %v11195_v41  ;;  %v486_v27 = vmul.f32 %v11176_v35, %v418_v57  ;;  %v11201_v63 = vld [vmem:[#allocation30_spill] sm:$0xff]  ;;  %v11203_v55 = vld [vmem:[#allocation31_spill] sm:$0xff] }
  0xa0   :  { %v487_v44 = vmul.f32 %v11176_v35, %v419_v9  ;;  %v6145_v58 = vadd.f32 %v464_v25, %v11197_v61  ;;  %v489_v60 = vmul.f32 %v11176_v35, %v421_v39  ;;  %v11199_v49 = vld [vmem:[#allocation29_spill] sm:$0xff]  ;;  %v6155_v37 = vadd.f32 %v467_v36, %v11203_v55  ;;  %v11205_v41 = vld [vmem:[#allocation32_spill] sm:$0xff]  ;;  %v11209_v54 = vld [vmem:[#allocation34_spill] sm:$0xff] }
  0xa1   :  { %11192 = vst [vmem:[#allocation56_spill] sm:$0xff] %v6127_v56  ;;  %11194 = vst [vmem:[#allocation23_spill] sm:$0xff] %v6133_v59  ;;  %v6149_v30 = vadd.f32 %v465_v46, %v11199_v49  ;;  %v6152_v59 = vadd.f32 %v466_v48, %v11201_v63  ;;  %v6158_v57 = vadd.f32 %v468_v14, %v11205_v41  ;;  %v11207_v9 = vld [vmem:[#allocation33_spill] sm:$0xff]  ;;  %v11211_v61 = vld [vmem:[#allocation35_spill] sm:$0xff] }
  0xa2   :  { %11196 = vst [vmem:[#allocation24_spill] sm:$0xff] %v6139_v42  ;;  %11198 = vst [vmem:[#allocation25_spill] sm:$0xff] %v6145_v58  ;;  %v6161_v42 = vadd.f32 %v469_v19, %v11207_v9  ;;  %v6164_v25 = vadd.f32 %v470_v62, %v11209_v54  ;;  %v6167_v35 = vadd.f32 %v471_v10, %v11211_v61  ;;  %v585_v46 = vld [vmem:[#allocation2 + $0x2] sm:$0xff]  ;;  %v586_v39 = vld [vmem:[#allocation2 + $0xa] sm:$0xff] }
  0xa3   :  { %11200 = vst [vmem:[#allocation26_spill] sm:$0xff] %v6149_v30  ;;  %11202 = vst [vmem:[#allocation27_spill] sm:$0xff] %v6152_v59  ;;  %v11213_v49 = vld [vmem:[#allocation37_spill] sm:$0xff]  ;;  %v11215_v63 = vld [vmem:[#allocation38_spill] sm:$0xff] }
  0xa4   :  { %11204 = vst [vmem:[#allocation28_spill] sm:$0xff] %v6155_v37  ;;  %11206 = vst [vmem:[#allocation29_spill] sm:$0xff] %v6158_v57  ;;  %v6170_v48 = vadd.f32 %v472_v50, %v11213_v49  ;;  %v6173_v36 = vadd.f32 %v473_v17, %v11215_v63  ;;  %v11217_v55 = vld [vmem:[#allocation39_spill] sm:$0xff]  ;;  %v11219_v41 = vld [vmem:[#allocation40_spill] sm:$0xff] }
  0xa5   :  { %11208 = vst [vmem:[#allocation30_spill] sm:$0xff] %v6161_v42  ;;  %11210 = vst [vmem:[#allocation31_spill] sm:$0xff] %v6164_v25  ;;  %v6176_v14 = vadd.f32 %v474_v43, %v11217_v55  ;;  %v6179_v19 = vadd.f32 %v475_v26, %v11219_v41  ;;  %v814_v9 = vld [vmem:[#allocation2 + $0x1d0] sm:$0xff]  ;;  %v815_v62 = vld [vmem:[#allocation2 + $0x1e0] sm:$0xff] }
  0xa6   :  { %11212 = vst [vmem:[#allocation32_spill] sm:$0xff] %v6167_v35  ;;  %11214 = vst [vmem:[#allocation33_spill] sm:$0xff] %v6170_v48  ;;  %v816_v54 = vld [vmem:[#allocation2 + $0x1e8] sm:$0xff]  ;;  %v817_v25 = vld [vmem:[#allocation2 + $0x1f8] sm:$0xff] }
  0xa7   :  { %11216 = vst [vmem:[#allocation34_spill] sm:$0xff] %v6173_v36  ;;  %11218 = vst [vmem:[#allocation35_spill] sm:$0xff] %v6176_v14  ;;  %v11221_v10 = vld [vmem:[#allocation41_spill] sm:$0xff]  ;;  %v11223_v35 = vld [vmem:[#allocation42_spill] sm:$0xff] }
  0xa8   :  { %11220 = vst [vmem:[#allocation37_spill] sm:$0xff] %v6179_v19  ;;  %v6182_v61 = vadd.f32 %v476_v53, %v11221_v10  ;;  %v6185_v42 = vadd.f32 %v477_v29, %v11223_v35  ;;  %v11225_v50 = vld [vmem:[#allocation43_spill] sm:$0xff]  ;;  %v11227_v17 = vld [vmem:[#allocation44_spill] sm:$0xff]  ;;  %v818_v43 = vld [vmem:[#allocation2 + $0x200] sm:$0xff] }
  0xa9   :  { %v6188_v49 = vadd.f32 %v478_v28, %v11225_v50  ;;  %v6191_v63 = vadd.f32 %v479_v51, %v11227_v17  ;;  %v819_v55 = vld [vmem:[#allocation2 + $0x210] sm:$0xff]  ;;  %v820_v26 = vld [vmem:[#allocation2 + $0x218] sm:$0xff]  ;;  %v11231_v14 = vld [vmem:[#allocation46_spill] sm:$0xff] }
  0xaa   :  { %11222 = vst [vmem:[#allocation38_spill] sm:$0xff] %v6182_v61  ;;  %11224 = vst [vmem:[#allocation39_spill] sm:$0xff] %v6185_v42  ;;  %v11229_v41 = vld [vmem:[#allocation45_spill] sm:$0xff]  ;;  %v6197_v36 = vadd.f32 %v481_v38, %v11231_v14  ;;  %v11233_v53 = vld [vmem:[#allocation47_spill] sm:$0xff] }
  0xab   :  { %11226 = vst [vmem:[#allocation40_spill] sm:$0xff] %v6188_v49  ;;  %11228 = vst [vmem:[#allocation41_spill] sm:$0xff] %v6191_v63  ;;  %v6194_v19 = vadd.f32 %v480_v47, %v11229_v41  ;;  %v6200_v10 = vadd.f32 %v482_v8, %v11233_v53  ;;  %v11235_v29 = vld [vmem:[#allocation48_spill] sm:$0xff]  ;;  %v821_v28 = vld [vmem:[#allocation2 + $0x228] sm:$0xff] }
  0xac   :  { %11232 = vst [vmem:[#allocation43_spill] sm:$0xff] %v6197_v36  ;;  %v6203_v35 = vadd.f32 %v483_v2, %v11235_v29  ;;  %v822_v50 = vld [vmem:[#allocation2 + $0x230] sm:$0xff]  ;;  %v823_v49 = vld [vmem:[#allocation2 + $0x240] sm:$0xff]  ;;  %v11237_v51 = vld [vmem:[#allocation49_spill] sm:$0xff] }
  0xad   :  { %11230 = vst [vmem:[#allocation42_spill] sm:$0xff] %v6194_v19  ;;  %11234 = vst [vmem:[#allocation44_spill] sm:$0xff] %v6200_v10  ;;  %v6206_v17 = vadd.f32 %v484_v1, %v11237_v51  ;;  %v11239_v63 = vld [vmem:[#allocation50_spill] sm:$0xff]  ;;  %v11241_v47 = vld [vmem:[#allocation51_spill] sm:$0xff]  ;;  %v6224_v1 = vmul.f32 %v5851_v52, %v585_v46 }
  0xae   :  { %11236 = vst [vmem:[#allocation45_spill] sm:$0xff] %v6203_v35  ;;  %v6209_v42 = vadd.f32 %v485_v11, %v11239_v63  ;;  %v6212_v41 = vadd.f32 %v486_v27, %v11241_v47  ;;  %v11243_v38 = vld [vmem:[#allocation52_spill] sm:$0xff]  ;;  %v824_v8 = vld [vmem:[#allocation2 + $0x248] sm:$0xff]  ;;  %v825_v53 = vld [vmem:[#allocation2 + $0x258] sm:$0xff]  ;;  %v6227_v11 = vmul.f32 %v5851_v52, %v586_v39 }
  0xaf   :  { %11238 = vst [vmem:[#allocation46_spill] sm:$0xff] %v6206_v17  ;;  %v6215_v14 = vadd.f32 %v487_v44, %v11243_v38  ;;  %v826_v10 = vld [vmem:[#allocation2 + $0x260] sm:$0xff]  ;;  %v11245_v2 = vld [vmem:[#allocation53_spill] sm:$0xff]  ;;  %11249 = vst [vmem:[#allocation52_spill] sm:$0xff] %v6224_v1 }
  0xb0   :  { %11240 = vst [vmem:[#allocation47_spill] sm:$0xff] %v6209_v42  ;;  %11242 = vst [vmem:[#allocation48_spill] sm:$0xff] %v6212_v41  ;;  %v6218_v29 = vadd.f32 %v488_v6, %v11245_v2  ;;  %v11247_v35 = vld [vmem:[#allocation54_spill] sm:$0xff]  ;;  %v827_v27 = vld [vmem:[#allocation2 + $0x270] sm:$0xff] }
  0xb1   :  { %11244 = vst [vmem:[#allocation49_spill] sm:$0xff] %v6215_v14  ;;  %v6221_v36 = vadd.f32 %v489_v60, %v11247_v35  ;;  %11250 = vst [vmem:[#allocation53_spill] sm:$0xff] %v6227_v11  ;;  %v828_v63 = vld [vmem:[#allocation2 + $0x278] sm:$0xff]  ;;  %v829_v51 = vld [vmem:[#allocation2 + $0x288] sm:$0xff] }
  0xb2   :  { %11246 = vst [vmem:[#allocation50_spill] sm:$0xff] %v6218_v29  ;;  %v830_v44 = vld [vmem:[#allocation2 + $0x290] sm:$0xff]  ;;  %v831_v47 = vld [vmem:[#allocation2 + $0x2a0] sm:$0xff]  ;;  %v832_v38 = vld [vmem:[#allocation2 + $0x2a8] sm:$0xff] }
  0xb3   :  { %11248 = vst [vmem:[#allocation51_spill] sm:$0xff] %v6221_v36  ;;  %v11251_v14 = vld [vmem:[#allocation7_spill] sm:$0xff]  ;;  %v833_v35 = vld [vmem:[#allocation2 + $0x2b8] sm:$0xff]  ;;  %v834_v46 = vld [vmem:[#allocation2 + $0x2c0] sm:$0xff] }
  0xb4   :  { %v882_v41 = vmul.f32 %v11251_v14, %v814_v9  ;;  %v883_v6 = vmul.f32 %v11251_v14, %v815_v62  ;;  %v884_v2 = vmul.f32 %v11251_v14, %v816_v54  ;;  %v885_v60 = vmul.f32 %v11251_v14, %v817_v25  ;;  %v835_v36 = vld [vmem:[#allocation2 + $0x2d0] sm:$0xff]  ;;  %v836_v19 = vld [vmem:[#allocation2 + $0x2d8] sm:$0xff]  ;;  %v837_v61 = vld [vmem:[#allocation2 + $0x2e8] sm:$0xff] }
  0xb5   :  { %v886_v39 = vmul.f32 %v11251_v14, %v818_v43  ;;  %v887_v29 = vmul.f32 %v11251_v14, %v819_v55  ;;  %v888_v42 = vmul.f32 %v11251_v14, %v820_v26  ;;  %v889_v17 = vmul.f32 %v11251_v14, %v821_v28  ;;  %v838_v9 = vld [vmem:[#allocation2 + $0x2f0] sm:$0xff]  ;;  %v839_v57 = vld [vmem:[#allocation2 + $0x300] sm:$0xff]  ;;  %v840_v37 = vld [vmem:[#allocation2 + $0x308] sm:$0xff] }
  0xb6   :  { %v890_v62 = vmul.f32 %v11251_v14, %v822_v50  ;;  %v891_v54 = vmul.f32 %v11251_v14, %v823_v49  ;;  %v892_v25 = vmul.f32 %v11251_v14, %v824_v8  ;;  %v893_v48 = vmul.f32 %v11251_v14, %v825_v53  ;;  %v841_v43 = vld [vmem:[#allocation2 + $0x318] sm:$0xff]  ;;  %v842_v30 = vld [vmem:[#allocation2 + $0x320] sm:$0xff]  ;;  %v843_v58 = vld [vmem:[#allocation2 + $0x330] sm:$0xff] }
  0xb7   :  { %v894_v55 = vmul.f32 %v11251_v14, %v826_v10  ;;  %v895_v26 = vmul.f32 %v11251_v14, %v827_v27  ;;  %v896_v28 = vmul.f32 %v11251_v14, %v828_v63  ;;  %v897_v59 = vmul.f32 %v11251_v14, %v829_v51  ;;  %v844_v50 = vld [vmem:[#allocation2 + $0x338] sm:$0xff] }
  0xb8   :  { %v898_v49 = vmul.f32 %v11251_v14, %v830_v44  ;;  %v899_v8 = vmul.f32 %v11251_v14, %v831_v47  ;;  %v900_v53 = vmul.f32 %v11251_v14, %v832_v38  ;;  %v901_v56 = vmul.f32 %v11251_v14, %v833_v35 }
  0xb9   :  { %v902_v11 = vmul.f32 %v11251_v14, %v834_v46  ;;  %v903_v10 = vmul.f32 %v11251_v14, %v835_v36  ;;  %v904_v27 = vmul.f32 %v11251_v14, %v836_v19  ;;  %v905_v63 = vmul.f32 %v11251_v14, %v837_v61 }
  0xba   :  { %v906_v51 = vmul.f32 %v11251_v14, %v838_v9  ;;  %v907_v1 = vmul.f32 %v11251_v14, %v839_v57  ;;  %v908_v44 = vmul.f32 %v11251_v14, %v840_v37  ;;  %v909_v47 = vmul.f32 %v11251_v14, %v841_v43 }
  0xbb   :  { %v910_v38 = vmul.f32 %v11251_v14, %v842_v30  ;;  %v911_v35 = vmul.f32 %v11251_v14, %v843_v58  ;;  %v912_v46 = vmul.f32 %v11251_v14, %v844_v50  ;;  %v6261_v36 = vadd.f32 %v882_v41, %v5999_v7  ;;  %v588_v41 = vld [vmem:[#allocation2 + $0x22] sm:$0xff]  ;;  %v11269_v50 = vld [vmem:[#allocation17_spill] sm:$0xff] }
  0xbc   :  { %v6264_v19 = vadd.f32 %v883_v6, %v6002_v18  ;;  %v6267_v61 = vadd.f32 %v884_v2, %v6005_v0  ;;  %v6270_v57 = vadd.f32 %v885_v60, %v6008_v12  ;;  %v6273_v37 = vadd.f32 %v886_v39, %v6011_v24  ;;  %v587_v0 = vld [vmem:[#allocation2 + $0x1a] sm:$0xff] }
  0xbd   :  { %v6276_v30 = vadd.f32 %v887_v29, %v6014_v34  ;;  %v6279_v58 = vadd.f32 %v888_v42, %v6017_v20  ;;  %v6282_v7 = vadd.f32 %v889_v17, %v6020_v45  ;;  %v6285_v18 = vadd.f32 %v890_v62, %v6023_v4  ;;  %v589_v42 = vld [vmem:[#allocation2 + $0x32] sm:$0xff]  ;;  %v590_v45 = vld [vmem:[#allocation2 + $0x3a] sm:$0xff]  ;;  %v591_v17 = vld [vmem:[#allocation2 + $0x4a] sm:$0xff] }
  0xbe   :  { %v6288_v12 = vadd.f32 %v891_v54, %v6026_v3  ;;  %v6291_v24 = vadd.f32 %v892_v25, %v6029_v23  ;;  %v6294_v34 = vadd.f32 %v893_v48, %v6032_v21  ;;  %v6297_v20 = vadd.f32 %v894_v55, %v6035_v16  ;;  %v592_v29 = vld [vmem:[#allocation2 + $0x52] sm:$0xff]  ;;  %v593_v21 = vld [vmem:[#allocation2 + $0x62] sm:$0xff]  ;;  %v594_v48 = vld [vmem:[#allocation2 + $0x6a] sm:$0xff] }
  0xbf   :  { %v6300_v4 = vadd.f32 %v895_v26, %v6038_v15  ;;  %v6303_v6 = vadd.f32 %v896_v28, %v6041_v31  ;;  %v6306_v3 = vadd.f32 %v897_v59, %v6044_v32  ;;  %v6309_v23 = vadd.f32 %v898_v49, %v6047_v33  ;;  %v595_v16 = vld [vmem:[#allocation2 + $0x7a] sm:$0xff]  ;;  %v596_v32 = vld [vmem:[#allocation2 + $0x82] sm:$0xff]  ;;  %v597_v59 = vld [vmem:[#allocation2 + $0x92] sm:$0xff] }
  0xc0   :  { %v6312_v2 = vadd.f32 %v899_v8, %v6050_v40  ;;  %v6315_v60 = vadd.f32 %v900_v53, %v6053_v22  ;;  %v6318_v15 = vadd.f32 %v901_v56, %v6056_v13  ;;  %v6321_v31 = vadd.f32 %v902_v11, %v6059_v5  ;;  %v598_v39 = vld [vmem:[#allocation2 + $0x9a] sm:$0xff]  ;;  %v11259_v62 = vld [vmem:[#allocation12_spill] sm:$0xff]  ;;  %v601_v55 = vld [vmem:[#allocation2 + $0xc2] sm:$0xff] }
  0xc1   :  { %11252 = vst [vmem:[#allocation54_spill] sm:$0xff] %v6309_v23  ;;  %v11257_v33 = vld [vmem:[#allocation57_spill] sm:$0xff]  ;;  %v6327_v54 = vadd.f32 %v904_v27, %v11259_v62  ;;  %v11263_v22 = vld [vmem:[#allocation14_spill] sm:$0xff]  ;;  %v599_v13 = vld [vmem:[#allocation2 + $0xaa] sm:$0xff]  ;;  %v6342_v49 = vadd.f32 %v909_v47, %v11269_v50  ;;  %v659_v50 = vmul.f32 %v5851_v52, %v591_v17  ;;  %v666_v17 = vmul.f32 %v5851_v52, %v598_v39 }
  0xc2   :  { %11253 = vst [vmem:[#allocation7_spill] sm:$0xff] %v6312_v2  ;;  %11254 = vst [vmem:[#allocation58_spill] sm:$0xff] %v6315_v60  ;;  %v6324_v9 = vadd.f32 %v903_v10, %v11257_v33  ;;  %v11261_v40 = vld [vmem:[#allocation13_spill] sm:$0xff]  ;;  %v6333_v43 = vadd.f32 %v906_v51, %v11263_v22  ;;  %v11265_v5 = vld [vmem:[#allocation15_spill] sm:$0xff]  ;;  %v655_v51 = vmul.f32 %v5851_v52, %v587_v0 }
  0xc3   :  { %11255 = vst [vmem:[#allocation59_spill] sm:$0xff] %v6318_v15  ;;  %11256 = vst [vmem:[#allocation60_spill] sm:$0xff] %v6321_v31  ;;  %v6330_v25 = vadd.f32 %v905_v63, %v11261_v40  ;;  %v600_v56 = vld [vmem:[#allocation2 + $0xb2] sm:$0xff]  ;;  %v6336_v11 = vadd.f32 %v907_v1, %v11265_v5  ;;  %v11271_v8 = vld [vmem:[#allocation18_spill] sm:$0xff]  ;;  %v656_v33 = vmul.f32 %v5851_v52, %v588_v41 }
  0xc4   :  { %11258 = vst [vmem:[#allocation57_spill] sm:$0xff] %v6324_v9  ;;  %11260 = vst [vmem:[#allocation12_spill] sm:$0xff] %v6327_v54  ;;  %v11267_v26 = vld [vmem:[#allocation16_spill] sm:$0xff]  ;;  %v6345_v53 = vadd.f32 %v910_v38, %v11271_v8  ;;  %v603_v27 = vld [vmem:[#allocation2 + $0xda] sm:$0xff]  ;;  %v658_v38 = vmul.f32 %v5851_v52, %v590_v45  ;;  %v660_v8 = vmul.f32 %v5851_v52, %v592_v29 }
  0xc5   :  { %11262 = vst [vmem:[#allocation13_spill] sm:$0xff] %v6330_v25  ;;  %11264 = vst [vmem:[#allocation14_spill] sm:$0xff] %v6333_v43  ;;  %v6339_v28 = vadd.f32 %v908_v44, %v11267_v26  ;;  %v602_v10 = vld [vmem:[#allocation2 + $0xca] sm:$0xff]  ;;  %v604_v63 = vld [vmem:[#allocation2 + $0xe2] sm:$0xff]  ;;  %v657_v26 = vmul.f32 %v5851_v52, %v589_v42  ;;  %v665_v45 = vmul.f32 %v5851_v52, %v597_v59 }
  0xc6   :  { %11266 = vst [vmem:[#allocation15_spill] sm:$0xff] %v6336_v11  ;;  %11270 = vst [vmem:[#allocation17_spill] sm:$0xff] %v6342_v49  ;;  %v11273_v62 = vld [vmem:[#allocation11_spill] sm:$0xff]  ;;  %v605_v44 = vld [vmem:[#allocation2 + $0xf2] sm:$0xff]  ;;  %v667_v29 = vmul.f32 %v5851_v52, %v599_v13  ;;  %v668_v49 = vmul.f32 %v5851_v52, %v600_v56  ;;  %v672_v43 = vmul.f32 %v5851_v52, %v604_v63 }
  0xc7   :  { %11268 = vst [vmem:[#allocation16_spill] sm:$0xff] %v6339_v28  ;;  %11272 = vst [vmem:[#allocation18_spill] sm:$0xff] %v6345_v53  ;;  %v6350_v40 = vadd.f32 %v911_v35, %v11273_v62  ;;  %v11275_v1 = vld [vmem:[#allocation19_spill] sm:$0xff]  ;;  %v606_v5 = vld [vmem:[#allocation2 + $0xfa] sm:$0xff]  ;;  %v661_v35 = vmul.f32 %v5851_v52, %v593_v21  ;;  %v662_v62 = vmul.f32 %v5851_v52, %v594_v48 }
  0xc8   :  { %v6353_v22 = vadd.f32 %v912_v46, %v11275_v1  ;;  %v607_v47 = vld [vmem:[#allocation2 + $0x10a] sm:$0xff]  ;;  %v608_v0 = vld [vmem:[#allocation2 + $0x112] sm:$0xff]  ;;  %v609_v53 = vld [vmem:[#allocation2 + $0x122] sm:$0xff]  ;;  %v663_v46 = vmul.f32 %v5851_v52, %v595_v16  ;;  %v664_v1 = vmul.f32 %v5851_v52, %v596_v32  ;;  %v669_v48 = vmul.f32 %v5851_v52, %v601_v55 }
  0xc9   :  { %11274 = vst [vmem:[#allocation11_spill] sm:$0xff] %v6350_v40  ;;  %v610_v41 = vld [vmem:[#allocation2 + $0x12a] sm:$0xff]  ;;  %v612_v40 = vld [vmem:[#allocation2 + $0x142] sm:$0xff]  ;;  %v613_v42 = vld [vmem:[#allocation2 + $0x152] sm:$0xff]  ;;  %v670_v16 = vmul.f32 %v5851_v52, %v602_v10  ;;  %v671_v32 = vmul.f32 %v5851_v52, %v603_v27  ;;  %v673_v59 = vmul.f32 %v5851_v52, %v605_v44  ;;  %v674_v39 = vmul.f32 %v5851_v52, %v606_v5 }
  0xca   :  { %11276 = vst [vmem:[#allocation19_spill] sm:$0xff] %v6353_v22  ;;  %v611_v22 = vld [vmem:[#allocation2 + $0x13a] sm:$0xff]  ;;  %v615_v11 = vld [vmem:[#allocation2 + $0x16a] sm:$0xff]  ;;  %v616_v21 = vld [vmem:[#allocation2 + $0x172] sm:$0xff]  ;;  %v675_v13 = vmul.f32 %v5851_v52, %v607_v47  ;;  %v676_v56 = vmul.f32 %v5851_v52, %v608_v0  ;;  %v677_v54 = vmul.f32 %v5851_v52, %v609_v53  ;;  %v678_v9 = vmul.f32 %v5851_v52, %v610_v41 }
  0xcb   :  { %v614_v28 = vld [vmem:[#allocation2 + $0x15a] sm:$0xff]  ;;  %v617_v25 = vld [vmem:[#allocation2 + $0x1b2] sm:$0xff]  ;;  %v679_v55 = vmul.f32 %v5851_v52, %v611_v22  ;;  %v680_v10 = vmul.f32 %v5851_v52, %v612_v40  ;;  %v681_v27 = vmul.f32 %v5851_v52, %v613_v42  ;;  %v683_v44 = vmul.f32 %v5851_v52, %v615_v11  ;;  %v11281_v22 = vld [vmem:[#allocation55_spill] sm:$0xff] }
  0xcc   :  { %v682_v63 = vmul.f32 %v5851_v52, %v614_v28  ;;  %v684_v5 = vmul.f32 %v5851_v52, %v616_v21  ;;  %v685_v47 = vmul.f32 %v5851_v52, %v617_v25  ;;  %v11277_v31 = vld [vmem:[#allocation20_spill] sm:$0xff]  ;;  %v11279_v53 = vld [vmem:[#allocation10_spill] sm:$0xff]  ;;  %v11280_v41 = vld [vmem:[#allocation53_spill] sm:$0xff]  ;;  %v6393_v40 = vadd.f32 %v655_v51, %v11281_v22 }
  0xcd   :  { %v11278_v0 = vld [vmem:[#allocation52_spill] sm:$0xff]  ;;  %v6390_v60 = vadd.f32 %v11280_v41, %v11279_v53  ;;  %v11282_v42 = vld [vmem:[#allocation22_spill] sm:$0xff]  ;;  %v11286_v21 = vld [vmem:[#allocation23_spill] sm:$0xff] }
  0xce   :  { %v6386_v15 = vadd.f32 %v11278_v0, %v11277_v31  ;;  %v6396_v2 = vadd.f32 %v656_v33, %v11282_v42  ;;  %v11284_v28 = vld [vmem:[#allocation56_spill] sm:$0xff]  ;;  %v6402_v23 = vadd.f32 %v658_v38, %v11286_v21  ;;  %v11290_v31 = vld [vmem:[#allocation25_spill] sm:$0xff]  ;;  %v11292_v53 = vld [vmem:[#allocation26_spill] sm:$0xff] }
  0xcf   :  { %v6399_v11 = vadd.f32 %v657_v26, %v11284_v28  ;;  %v11288_v52 = vld [vmem:[#allocation24_spill] sm:$0xff]  ;;  %v6408_v0 = vadd.f32 %v660_v8, %v11290_v31  ;;  %v6411_v41 = vadd.f32 %v661_v35, %v11292_v53  ;;  %v11294_v51 = vld [vmem:[#allocation27_spill] sm:$0xff]  ;;  %v11298_v26 = vld [vmem:[#allocation29_spill] sm:$0xff] }
  0xd0   :  { %11283 = vst [vmem:[#allocation20_spill] sm:$0xff] %v6396_v2  ;;  %11287 = vst [vmem:[#allocation10_spill] sm:$0xff] %v6402_v23  ;;  %v6405_v25 = vadd.f32 %v659_v50, %v11288_v52  ;;  %v6414_v22 = vadd.f32 %v662_v62, %v11294_v51  ;;  %v11296_v33 = vld [vmem:[#allocation28_spill] sm:$0xff]  ;;  %v6420_v28 = vadd.f32 %v664_v1, %v11298_v26  ;;  %v11300_v38 = vld [vmem:[#allocation30_spill] sm:$0xff] }
  0xd1   :  { %11285 = vst [vmem:[#allocation52_spill] sm:$0xff] %v6399_v11  ;;  %11291 = vst [vmem:[#allocation55_spill] sm:$0xff] %v6408_v0  ;;  %v6417_v42 = vadd.f32 %v663_v46, %v11296_v33  ;;  %v6423_v21 = vadd.f32 %v665_v45, %v11300_v38  ;;  %v11302_v50 = vld [vmem:[#allocation31_spill] sm:$0xff]  ;;  %v11304_v8 = vld [vmem:[#allocation32_spill] sm:$0xff] }
  0xd2   :  { %11289 = vst [vmem:[#allocation53_spill] sm:$0xff] %v6405_v25  ;;  %11293 = vst [vmem:[#allocation22_spill] sm:$0xff] %v6411_v41  ;;  %v6426_v52 = vadd.f32 %v666_v17, %v11302_v50  ;;  %v6429_v31 = vadd.f32 %v667_v29, %v11304_v8  ;;  %v781_v35 = vld [vmem:[#allocation2 + $0x18] sm:$0xff]  ;;  %v782_v53 = vld [vmem:[#allocation2 + $0x20] sm:$0xff] }
  0xd3   :  { %11295 = vst [vmem:[#allocation56_spill] sm:$0xff] %v6414_v22  ;;  %11297 = vst [vmem:[#allocation23_spill] sm:$0xff] %v6417_v42  ;;  %v11306_v41 = vld [vmem:[#allocation33_spill] sm:$0xff]  ;;  %v11308_v51 = vld [vmem:[#allocation34_spill] sm:$0xff] }
  0xd4   :  { %11299 = vst [vmem:[#allocation24_spill] sm:$0xff] %v6420_v28  ;;  %11301 = vst [vmem:[#allocation25_spill] sm:$0xff] %v6423_v21  ;;  %v6432_v62 = vadd.f32 %v668_v49, %v11306_v41  ;;  %v6435_v46 = vadd.f32 %v669_v48, %v11308_v51  ;;  %v11310_v33 = vld [vmem:[#allocation35_spill] sm:$0xff]  ;;  %v11312_v26 = vld [vmem:[#allocation37_spill] sm:$0xff] }
  0xd5   :  { %11303 = vst [vmem:[#allocation26_spill] sm:$0xff] %v6426_v52  ;;  %11305 = vst [vmem:[#allocation27_spill] sm:$0xff] %v6429_v31  ;;  %v6438_v1 = vadd.f32 %v670_v16, %v11310_v33  ;;  %v6441_v45 = vadd.f32 %v671_v32, %v11312_v26  ;;  %v1010_v38 = vld [vmem:[#allocation2 + $0x1d1] sm:$0xff]  ;;  %v1011_v17 = vld [vmem:[#allocation2 + $0x1e1] sm:$0xff] }
  0xd6   :  { %11307 = vst [vmem:[#allocation28_spill] sm:$0xff] %v6432_v62  ;;  %11309 = vst [vmem:[#allocation29_spill] sm:$0xff] %v6435_v46  ;;  %v1012_v50 = vld [vmem:[#allocation2 + $0x1e9] sm:$0xff]  ;;  %v1013_v52 = vld [vmem:[#allocation2 + $0x1f9] sm:$0xff] }
  0xd7   :  { %11311 = vst [vmem:[#allocation30_spill] sm:$0xff] %v6438_v1  ;;  %11313 = vst [vmem:[#allocation31_spill] sm:$0xff] %v6441_v45  ;;  %v11314_v29 = vld [vmem:[#allocation38_spill] sm:$0xff]  ;;  %v11316_v31 = vld [vmem:[#allocation39_spill] sm:$0xff] }
  0xd8   :  { %v6444_v8 = vadd.f32 %v672_v43, %v11314_v29  ;;  %v6447_v21 = vadd.f32 %v673_v59, %v11316_v31  ;;  %v11318_v49 = vld [vmem:[#allocation40_spill] sm:$0xff]  ;;  %v11320_v48 = vld [vmem:[#allocation41_spill] sm:$0xff]  ;;  %v1014_v16 = vld [vmem:[#allocation2 + $0x201] sm:$0xff] }
  0xd9   :  { %v6450_v41 = vadd.f32 %v674_v39, %v11318_v49  ;;  %v6453_v51 = vadd.f32 %v675_v13, %v11320_v48  ;;  %v1015_v33 = vld [vmem:[#allocation2 + $0x211] sm:$0xff]  ;;  %v1016_v32 = vld [vmem:[#allocation2 + $0x219] sm:$0xff]  ;;  %v11324_v1 = vld [vmem:[#allocation43_spill] sm:$0xff] }
  0xda   :  { %11315 = vst [vmem:[#allocation32_spill] sm:$0xff] %v6444_v8  ;;  %11317 = vst [vmem:[#allocation33_spill] sm:$0xff] %v6447_v21  ;;  %v11322_v26 = vld [vmem:[#allocation42_spill] sm:$0xff]  ;;  %v6459_v46 = vadd.f32 %v677_v54, %v11324_v1  ;;  %v11326_v43 = vld [vmem:[#allocation44_spill] sm:$0xff] }
  0xdb   :  { %11319 = vst [vmem:[#allocation34_spill] sm:$0xff] %v6450_v41  ;;  %11321 = vst [vmem:[#allocation35_spill] sm:$0xff] %v6453_v51  ;;  %v6456_v45 = vadd.f32 %v676_v56, %v11322_v26  ;;  %v6462_v29 = vadd.f32 %v678_v9, %v11326_v43  ;;  %v11328_v59 = vld [vmem:[#allocation45_spill] sm:$0xff]  ;;  %v1017_v39 = vld [vmem:[#allocation2 + $0x229] sm:$0xff] }
  0xdc   :  { %11325 = vst [vmem:[#allocation38_spill] sm:$0xff] %v6459_v46  ;;  %v6465_v31 = vadd.f32 %v679_v55, %v11328_v59  ;;  %v1018_v49 = vld [vmem:[#allocation2 + $0x231] sm:$0xff]  ;;  %v1019_v41 = vld [vmem:[#allocation2 + $0x241] sm:$0xff]  ;;  %v1020_v9 = vld [vmem:[#allocation2 + $0x249] sm:$0xff] }
  0xdd   :  { %11323 = vst [vmem:[#allocation37_spill] sm:$0xff] %v6456_v45  ;;  %11327 = vst [vmem:[#allocation39_spill] sm:$0xff] %v6462_v29  ;;  %v11330_v13 = vld [vmem:[#allocation46_spill] sm:$0xff]  ;;  %v11332_v51 = vld [vmem:[#allocation47_spill] sm:$0xff] }
  0xde   :  { %11329 = vst [vmem:[#allocation40_spill] sm:$0xff] %v6465_v31  ;;  %v6468_v48 = vadd.f32 %v680_v10, %v11330_v13  ;;  %v6471_v21 = vadd.f32 %v681_v27, %v11332_v51  ;;  %v11334_v56 = vld [vmem:[#allocation48_spill] sm:$0xff]  ;;  %v11336_v54 = vld [vmem:[#allocation49_spill] sm:$0xff]  ;;  %v1022_v29 = vld [vmem:[#allocation2 + $0x261] sm:$0xff]  ;;  %v6486_v10 = vmul.f32 %v11251_v14, %v781_v35  ;;  %v6489_v27 = vmul.f32 %v11251_v14, %v782_v53 }
  0xdf   :  { %v6474_v26 = vadd.f32 %v682_v63, %v11334_v56  ;;  %v6477_v1 = vadd.f32 %v683_v44, %v11336_v54  ;;  %v1021_v43 = vld [vmem:[#allocation2 + $0x259] sm:$0xff]  ;;  %v11340_v31 = vld [vmem:[#allocation51_spill] sm:$0xff]  ;;  %v1023_v63 = vld [vmem:[#allocation2 + $0x271] sm:$0xff] }
  0xe0   :  { %11331 = vst [vmem:[#allocation41_spill] sm:$0xff] %v6468_v48  ;;  %11333 = vst [vmem:[#allocation42_spill] sm:$0xff] %v6471_v21  ;;  %v11338_v55 = vld [vmem:[#allocation50_spill] sm:$0xff]  ;;  %v6483_v46 = vadd.f32 %v685_v47, %v11340_v31  ;;  %v1025_v13 = vld [vmem:[#allocation2 + $0x289] sm:$0xff] }
  0xe1   :  { %11335 = vst [vmem:[#allocation43_spill] sm:$0xff] %v6474_v26  ;;  %11337 = vst [vmem:[#allocation44_spill] sm:$0xff] %v6477_v1  ;;  %v6480_v59 = vadd.f32 %v684_v5, %v11338_v55  ;;  %v1024_v51 = vld [vmem:[#allocation2 + $0x279] sm:$0xff]  ;;  %v1026_v44 = vld [vmem:[#allocation2 + $0x291] sm:$0xff] }
  0xe2   :  { %11341 = vst [vmem:[#allocation46_spill] sm:$0xff] %v6483_v46  ;;  %v1027_v56 = vld [vmem:[#allocation2 + $0x2a1] sm:$0xff]  ;;  %v1028_v54 = vld [vmem:[#allocation2 + $0x2a9] sm:$0xff]  ;;  %v11342_v1 = vld [vmem:[#allocation21_spill] sm:$0xff] }
  0xe3   :  { %11339 = vst [vmem:[#allocation45_spill] sm:$0xff] %v6480_v59  ;;  %v1078_v26 = vmul.f32 %v11342_v1, %v1010_v38  ;;  %v1079_v5 = vmul.f32 %v11342_v1, %v1011_v17  ;;  %v1080_v55 = vmul.f32 %v11342_v1, %v1012_v50  ;;  %v1081_v47 = vmul.f32 %v11342_v1, %v1013_v52  ;;  %v1029_v31 = vld [vmem:[#allocation2 + $0x2b9] sm:$0xff]  ;;  %v1030_v35 = vld [vmem:[#allocation2 + $0x2c1] sm:$0xff]  ;;  %v1031_v46 = vld [vmem:[#allocation2 + $0x2d1] sm:$0xff] }
  0xe4   :  { %v1082_v53 = vmul.f32 %v11342_v1, %v1014_v16  ;;  %v1083_v59 = vmul.f32 %v11342_v1, %v1015_v33  ;;  %v1084_v21 = vmul.f32 %v11342_v1, %v1016_v32  ;;  %v1085_v48 = vmul.f32 %v11342_v1, %v1017_v39  ;;  %v1032_v45 = vld [vmem:[#allocation2 + $0x2d9] sm:$0xff]  ;;  %v1033_v8 = vld [vmem:[#allocation2 + $0x2e9] sm:$0xff]  ;;  %v1034_v38 = vld [vmem:[#allocation2 + $0x2f1] sm:$0xff] }
  0xe5   :  { %v1086_v17 = vmul.f32 %v11342_v1, %v1018_v49  ;;  %v1087_v50 = vmul.f32 %v11342_v1, %v1019_v41  ;;  %v1088_v52 = vmul.f32 %v11342_v1, %v1020_v9  ;;  %v1089_v62 = vmul.f32 %v11342_v1, %v1021_v43  ;;  %v1035_v28 = vld [vmem:[#allocation2 + $0x301] sm:$0xff]  ;;  %v1036_v42 = vld [vmem:[#allocation2 + $0x309] sm:$0xff]  ;;  %v1037_v16 = vld [vmem:[#allocation2 + $0x319] sm:$0xff] }
  0xe6   :  { %v1090_v33 = vmul.f32 %v11342_v1, %v1022_v29  ;;  %v1091_v32 = vmul.f32 %v11342_v1, %v1023_v63  ;;  %v1092_v39 = vmul.f32 %v11342_v1, %v1024_v51  ;;  %v1093_v22 = vmul.f32 %v11342_v1, %v1025_v13  ;;  %v1038_v0 = vld [vmem:[#allocation2 + $0x321] sm:$0xff]  ;;  %v1039_v25 = vld [vmem:[#allocation2 + $0x331] sm:$0xff]  ;;  %v1040_v49 = vld [vmem:[#allocation2 + $0x339] sm:$0xff] }
  0xe7   :  { %v1094_v41 = vmul.f32 %v11342_v1, %v1026_v44  ;;  %v1095_v9 = vmul.f32 %v11342_v1, %v1027_v56  ;;  %v1096_v43 = vmul.f32 %v11342_v1, %v1028_v54  ;;  %v1097_v23 = vmul.f32 %v11342_v1, %v1029_v31 }
  0xe8   :  { %v1098_v11 = vmul.f32 %v11342_v1, %v1030_v35  ;;  %v1099_v29 = vmul.f32 %v11342_v1, %v1031_v46  ;;  %v1100_v63 = vmul.f32 %v11342_v1, %v1032_v45  ;;  %v1101_v51 = vmul.f32 %v11342_v1, %v1033_v8 }
  0xe9   :  { %v1102_v13 = vmul.f32 %v11342_v1, %v1034_v38  ;;  %v1103_v2 = vmul.f32 %v11342_v1, %v1035_v28  ;;  %v1104_v44 = vmul.f32 %v11342_v1, %v1036_v42  ;;  %v1105_v56 = vmul.f32 %v11342_v1, %v1037_v16  ;;  %v11347_v38 = vld [vmem:[#allocation58_spill] sm:$0xff]  ;;  %v794_v16 = vld [vmem:[#allocation2 + $0xb0] sm:$0xff] }
  0xea   :  { %v1106_v54 = vmul.f32 %v11342_v1, %v1038_v0  ;;  %v1107_v31 = vmul.f32 %v11342_v1, %v1039_v25  ;;  %v1108_v35 = vmul.f32 %v11342_v1, %v1040_v49  ;;  %v6523_v46 = vadd.f32 %v1078_v26, %v6261_v36  ;;  %v784_v26 = vld [vmem:[#allocation2 + $0x38] sm:$0xff] }
  0xeb   :  { %v6526_v45 = vadd.f32 %v1079_v5, %v6264_v19  ;;  %v6529_v8 = vadd.f32 %v1080_v55, %v6267_v61  ;;  %v6532_v28 = vadd.f32 %v1081_v47, %v6270_v57  ;;  %v6535_v42 = vadd.f32 %v1082_v53, %v6273_v37  ;;  %v783_v61 = vld [vmem:[#allocation2 + $0x30] sm:$0xff]  ;;  %v11345_v47 = vld [vmem:[#allocation7_spill] sm:$0xff] }
  0xec   :  { %v6538_v0 = vadd.f32 %v1083_v59, %v6276_v30  ;;  %v6541_v25 = vadd.f32 %v1084_v21, %v6279_v58  ;;  %v6544_v36 = vadd.f32 %v1085_v48, %v6282_v7  ;;  %v6547_v19 = vadd.f32 %v1086_v17, %v6285_v18  ;;  %v785_v21 = vld [vmem:[#allocation2 + $0x48] sm:$0xff]  ;;  %v786_v7 = vld [vmem:[#allocation2 + $0x50] sm:$0xff]  ;;  %v787_v48 = vld [vmem:[#allocation2 + $0x60] sm:$0xff] }
  0xed   :  { %v6550_v57 = vadd.f32 %v1087_v50, %v6288_v12  ;;  %v6553_v37 = vadd.f32 %v1088_v52, %v6291_v24  ;;  %v6556_v30 = vadd.f32 %v1089_v62, %v6294_v34  ;;  %v6559_v58 = vadd.f32 %v1090_v33, %v6297_v20  ;;  %v788_v59 = vld [vmem:[#allocation2 + $0x68] sm:$0xff]  ;;  %v11343_v24 = vld [vmem:[#allocation54_spill] sm:$0xff]  ;;  %v789_v34 = vld [vmem:[#allocation2 + $0x78] sm:$0xff] }
  0xee   :  { %v6562_v18 = vadd.f32 %v1091_v32, %v6300_v4  ;;  %v6565_v5 = vadd.f32 %v1092_v39, %v6303_v6  ;;  %v6568_v12 = vadd.f32 %v1093_v22, %v6306_v3  ;;  %v6571_v55 = vadd.f32 %v1094_v41, %v11343_v24  ;;  %v790_v62 = vld [vmem:[#allocation2 + $0x80] sm:$0xff]  ;;  %v791_v20 = vld [vmem:[#allocation2 + $0x90] sm:$0xff]  ;;  %v11349_v4 = vld [vmem:[#allocation59_spill] sm:$0xff] }
  0xef   :  { %v6574_v53 = vadd.f32 %v1095_v9, %v11345_v47  ;;  %v6577_v17 = vadd.f32 %v1096_v43, %v11347_v38  ;;  %v6580_v50 = vadd.f32 %v1097_v23, %v11349_v4  ;;  %v11351_v6 = vld [vmem:[#allocation60_spill] sm:$0xff]  ;;  %v792_v3 = vld [vmem:[#allocation2 + $0x98] sm:$0xff]  ;;  %v793_v22 = vld [vmem:[#allocation2 + $0xa8] sm:$0xff] }
  0xf0   :  { %11344 = vst [vmem:[#allocation47_spill] sm:$0xff] %v6571_v55  ;;  %v6583_v52 = vadd.f32 %v1098_v11, %v11351_v6  ;;  %v11353_v33 = vld [vmem:[#allocation57_spill] sm:$0xff]  ;;  %v11355_v39 = vld [vmem:[#allocation12_spill] sm:$0xff]  ;;  %v11359_v43 = vld [vmem:[#allocation14_spill] sm:$0xff] }
  0xf1   :  { %11346 = vst [vmem:[#allocation48_spill] sm:$0xff] %v6574_v53  ;;  %11348 = vst [vmem:[#allocation49_spill] sm:$0xff] %v6577_v17  ;;  %v6586_v32 = vadd.f32 %v1099_v29, %v11353_v33  ;;  %v6589_v49 = vadd.f32 %v1100_v63, %v11355_v39  ;;  %v11357_v41 = vld [vmem:[#allocation13_spill] sm:$0xff]  ;;  %v6595_v24 = vadd.f32 %v1102_v13, %v11359_v43  ;;  %v795_v23 = vld [vmem:[#allocation2 + $0xc0] sm:$0xff] }
  0xf2   :  { %11350 = vst [vmem:[#allocation50_spill] sm:$0xff] %v6580_v50  ;;  %11352 = vst [vmem:[#allocation51_spill] sm:$0xff] %v6583_v52  ;;  %v6592_v9 = vadd.f32 %v1101_v51, %v11357_v41  ;;  %v796_v47 = vld [vmem:[#allocation2 + $0xc8] sm:$0xff]  ;;  %v797_v38 = vld [vmem:[#allocation2 + $0xd8] sm:$0xff]  ;;  %v851_v13 = vmul.f32 %v11251_v14, %v783_v61  ;;  %v852_v43 = vmul.f32 %v11251_v14, %v784_v26 }
  0xf3   :  { %11354 = vst [vmem:[#allocation21_spill] sm:$0xff] %v6586_v32  ;;  %11356 = vst [vmem:[#allocation54_spill] sm:$0xff] %v6589_v49  ;;  %v11361_v11 = vld [vmem:[#allocation15_spill] sm:$0xff]  ;;  %v11363_v6 = vld [vmem:[#allocation16_spill] sm:$0xff] }
  0xf4   :  { %11358 = vst [vmem:[#allocation7_spill] sm:$0xff] %v6592_v9  ;;  %11360 = vst [vmem:[#allocation58_spill] sm:$0xff] %v6595_v24  ;;  %v6598_v4 = vadd.f32 %v1103_v2, %v11361_v11  ;;  %v6601_v52 = vadd.f32 %v1104_v44, %v11363_v6  ;;  %v11365_v29 = vld [vmem:[#allocation17_spill] sm:$0xff]  ;;  %v11367_v63 = vld [vmem:[#allocation18_spill] sm:$0xff] }
  0xf5   :  { %v6604_v33 = vadd.f32 %v1105_v56, %v11365_v29  ;;  %v6607_v39 = vadd.f32 %v1106_v54, %v11367_v63  ;;  %v798_v51 = vld [vmem:[#allocation2 + $0xe0] sm:$0xff]  ;;  %v799_v41 = vld [vmem:[#allocation2 + $0xf0] sm:$0xff]  ;;  %v800_v9 = vld [vmem:[#allocation2 + $0xf8] sm:$0xff]  ;;  %v853_v29 = vmul.f32 %v11251_v14, %v785_v21  ;;  %v854_v54 = vmul.f32 %v11251_v14, %v786_v7 }
  0xf6   :  { %11362 = vst [vmem:[#allocation59_spill] sm:$0xff] %v6598_v4  ;;  %11364 = vst [vmem:[#allocation60_spill] sm:$0xff] %v6601_v52  ;;  %v11369_v24 = vld [vmem:[#allocation11_spill] sm:$0xff]  ;;  %v802_v6 = vld [vmem:[#allocation2 + $0x110] sm:$0xff]  ;;  %v855_v63 = vmul.f32 %v11251_v14, %v787_v48  ;;  %v861_v7 = vmul.f32 %v11251_v14, %v793_v22  ;;  %v862_v48 = vmul.f32 %v11251_v14, %v794_v16 }
  0xf7   :  { %11366 = vst [vmem:[#allocation57_spill] sm:$0xff] %v6604_v33  ;;  %11368 = vst [vmem:[#allocation12_spill] sm:$0xff] %v6607_v39  ;;  %v6612_v49 = vadd.f32 %v1107_v31, %v11369_v24  ;;  %v11371_v2 = vld [vmem:[#allocation19_spill] sm:$0xff]  ;;  %v803_v56 = vld [vmem:[#allocation2 + $0x120] sm:$0xff]  ;;  %v856_v39 = vmul.f32 %v11251_v14, %v788_v59  ;;  %v857_v31 = vmul.f32 %v11251_v14, %v789_v34 }
  0xf8   :  { %v6615_v11 = vadd.f32 %v1108_v35, %v11371_v2  ;;  %v801_v44 = vld [vmem:[#allocation2 + $0x108] sm:$0xff]  ;;  %v805_v33 = vld [vmem:[#allocation2 + $0x138] sm:$0xff]  ;;  %v806_v26 = vld [vmem:[#allocation2 + $0x140] sm:$0xff]  ;;  %v858_v24 = vmul.f32 %v11251_v14, %v790_v62  ;;  %v859_v35 = vmul.f32 %v11251_v14, %v791_v20  ;;  %v860_v2 = vmul.f32 %v11251_v14, %v792_v3 }
  0xf9   :  { %11370 = vst [vmem:[#allocation13_spill] sm:$0xff] %v6612_v49  ;;  %v804_v61 = vld [vmem:[#allocation2 + $0x128] sm:$0xff]  ;;  %v808_v49 = vld [vmem:[#allocation2 + $0x158] sm:$0xff]  ;;  %v863_v59 = vmul.f32 %v11251_v14, %v795_v23  ;;  %v864_v52 = vmul.f32 %v11251_v14, %v796_v47  ;;  %v810_v4 = vld [vmem:[#allocation2 + $0x170] sm:$0xff]  ;;  %v865_v62 = vmul.f32 %v11251_v14, %v797_v38  ;;  %v866_v20 = vmul.f32 %v11251_v14, %v798_v51 }
  0xfa   :  { %11372 = vst [vmem:[#allocation14_spill] sm:$0xff] %v6615_v11  ;;  %v807_v11 = vld [vmem:[#allocation2 + $0x150] sm:$0xff]  ;;  %v809_v21 = vld [vmem:[#allocation2 + $0x168] sm:$0xff]  ;;  %v811_v32 = vld [vmem:[#allocation2 + $0x180] sm:$0xff]  ;;  %v867_v3 = vmul.f32 %v11251_v14, %v799_v41  ;;  %v868_v50 = vmul.f32 %v11251_v14, %v800_v9  ;;  %v869_v22 = vmul.f32 %v11251_v14, %v801_v44  ;;  %v870_v16 = vmul.f32 %v11251_v14, %v802_v6 }
  0xfb   :  { %v812_v34 = vld [vmem:[#allocation2 + $0x188] sm:$0xff]  ;;  %v871_v23 = vmul.f32 %v11251_v14, %v803_v56  ;;  %v872_v47 = vmul.f32 %v11251_v14, %v804_v61  ;;  %v873_v53 = vmul.f32 %v11251_v14, %v805_v33  ;;  %v874_v55 = vmul.f32 %v11251_v14, %v806_v26 }
  0xfc   :  { %v813_v17 = vld [vmem:[#allocation2 + $0x1c8] sm:$0xff]  ;;  %v875_v38 = vmul.f32 %v11251_v14, %v807_v11  ;;  %v876_v51 = vmul.f32 %v11251_v14, %v808_v49  ;;  %v877_v41 = vmul.f32 %v11251_v14, %v809_v21  ;;  %v878_v9 = vmul.f32 %v11251_v14, %v810_v4  ;;  %v11373_v11 = vld [vmem:[#allocation20_spill] sm:$0xff]  ;;  %v11377_v21 = vld [vmem:[#allocation10_spill] sm:$0xff] }
  0xfd   :  { %v879_v44 = vmul.f32 %v11251_v14, %v811_v32  ;;  %v880_v6 = vmul.f32 %v11251_v14, %v812_v34  ;;  %v881_v56 = vmul.f32 %v11251_v14, %v813_v17  ;;  %v6648_v61 = vadd.f32 %v6486_v10, %v6386_v15  ;;  %v11375_v4 = vld [vmem:[#allocation52_spill] sm:$0xff]  ;;  %v11379_v14 = vld [vmem:[#allocation53_spill] sm:$0xff]  ;;  %v11381_v15 = vld [vmem:[#allocation55_spill] sm:$0xff] }
  0xfe   :  { %v6652_v33 = vadd.f32 %v6489_v27, %v6390_v60  ;;  %v6655_v49 = vadd.f32 %v851_v13, %v6393_v40  ;;  %v6658_v26 = vadd.f32 %v852_v43, %v11373_v11  ;;  %v6661_v32 = vadd.f32 %v853_v29, %v11375_v4  ;;  %v11383_v60 = vld [vmem:[#allocation22_spill] sm:$0xff]  ;;  %v11385_v40 = vld [vmem:[#allocation56_spill] sm:$0xff]  ;;  %v11387_v43 = vld [vmem:[#allocation23_spill] sm:$0xff] }
  0xff   :  { %v6664_v34 = vadd.f32 %v854_v54, %v11377_v21  ;;  %v6667_v17 = vadd.f32 %v855_v63, %v11379_v14  ;;  %v6670_v10 = vadd.f32 %v856_v39, %v11381_v15  ;;  %v6673_v27 = vadd.f32 %v857_v31, %v11383_v60  ;;  %v11389_v29 = vld [vmem:[#allocation24_spill] sm:$0xff]  ;;  %v11391_v54 = vld [vmem:[#allocation25_spill] sm:$0xff]  ;;  %v11393_v63 = vld [vmem:[#allocation26_spill] sm:$0xff] }
 0x100   :  { %11374 = vst [vmem:[#allocation15_spill] sm:$0xff] %v6658_v26  ;;  %11376 = vst [vmem:[#allocation16_spill] sm:$0xff] %v6661_v32  ;;  %v6676_v13 = vadd.f32 %v858_v24, %v11385_v40  ;;  %v6679_v11 = vadd.f32 %v859_v35, %v11387_v43  ;;  %v6682_v4 = vadd.f32 %v860_v2, %v11389_v29  ;;  %v11395_v39 = vld [vmem:[#allocation27_spill] sm:$0xff]  ;;  %v977_v31 = vld [vmem:[#allocation2 + $0x19] sm:$0xff] }
 0x101   :  { %11378 = vst [vmem:[#allocation17_spill] sm:$0xff] %v6664_v34  ;;  %11380 = vst [vmem:[#allocation18_spill] sm:$0xff] %v6667_v17  ;;  %v6685_v21 = vadd.f32 %v861_v7, %v11391_v54  ;;  %v6688_v14 = vadd.f32 %v862_v48, %v11393_v63  ;;  %v6691_v15 = vadd.f32 %v863_v59, %v11395_v39  ;;  %v978_v60 = vld [vmem:[#allocation2 + $0x21] sm:$0xff]  ;;  %v11399_v40 = vld [vmem:[#allocation29_spill] sm:$0xff] }
 0x102   :  { %11382 = vst [vmem:[#allocation11_spill] sm:$0xff] %v6670_v10  ;;  %11384 = vst [vmem:[#allocation19_spill] sm:$0xff] %v6673_v27  ;;  %v11397_v27 = vld [vmem:[#allocation28_spill] sm:$0xff]  ;;  %v6697_v35 = vadd.f32 %v865_v62, %v11399_v40  ;;  %v11401_v43 = vld [vmem:[#allocation30_spill] sm:$0xff] }
 0x103   :  { %11386 = vst [vmem:[#allocation20_spill] sm:$0xff] %v6676_v13  ;;  %11388 = vst [vmem:[#allocation52_spill] sm:$0xff] %v6679_v11  ;;  %v6694_v24 = vadd.f32 %v864_v52, %v11397_v27  ;;  %v6700_v2 = vadd.f32 %v866_v20, %v11401_v43  ;;  %v11403_v29 = vld [vmem:[#allocation31_spill] sm:$0xff]  ;;  %v1206_v54 = vld [vmem:[#allocation2 + $0x1d2] sm:$0xff] }
 0x104   :  { %11390 = vst [vmem:[#allocation10_spill] sm:$0xff] %v6682_v4  ;;  %11392 = vst [vmem:[#allocation53_spill] sm:$0xff] %v6685_v21  ;;  %v6703_v7 = vadd.f32 %v867_v3, %v11403_v29  ;;  %v1207_v48 = vld [vmem:[#allocation2 + $0x1e2] sm:$0xff]  ;;  %v1208_v63 = vld [vmem:[#allocation2 + $0x1ea] sm:$0xff] }
 0x105   :  { %11394 = vst [vmem:[#allocation55_spill] sm:$0xff] %v6688_v14  ;;  %11396 = vst [vmem:[#allocation22_spill] sm:$0xff] %v6691_v15  ;;  %v1209_v14 = vld [vmem:[#allocation2 + $0x1fa] sm:$0xff]  ;;  %v11405_v59 = vld [vmem:[#allocation32_spill] sm:$0xff] }
 0x106   :  { %11398 = vst [vmem:[#allocation56_spill] sm:$0xff] %v6694_v24  ;;  %11400 = vst [vmem:[#allocation23_spill] sm:$0xff] %v6697_v35  ;;  %v6706_v39 = vadd.f32 %v868_v50, %v11405_v59  ;;  %v11407_v15 = vld [vmem:[#allocation33_spill] sm:$0xff]  ;;  %v11409_v52 = vld [vmem:[#allocation34_spill] sm:$0xff] }
 0x107   :  { %11402 = vst [vmem:[#allocation24_spill] sm:$0xff] %v6700_v2  ;;  %11404 = vst [vmem:[#allocation25_spill] sm:$0xff] %v6703_v7  ;;  %v6709_v21 = vadd.f32 %v869_v22, %v11407_v15  ;;  %v6712_v27 = vadd.f32 %v870_v16, %v11409_v52  ;;  %v11411_v62 = vld [vmem:[#allocation35_spill] sm:$0xff]  ;;  %v1211_v43 = vld [vmem:[#allocation2 + $0x212] sm:$0xff] }
 0x108   :  { %11406 = vst [vmem:[#allocation26_spill] sm:$0xff] %v6706_v39  ;;  %v6715_v40 = vadd.f32 %v871_v23, %v11411_v62  ;;  %v1210_v20 = vld [vmem:[#allocation2 + $0x202] sm:$0xff]  ;;  %v1212_v3 = vld [vmem:[#allocation2 + $0x21a] sm:$0xff]  ;;  %v11419_v22 = vld [vmem:[#allocation40_spill] sm:$0xff] }
 0x109   :  { %11408 = vst [vmem:[#allocation27_spill] sm:$0xff] %v6709_v21  ;;  %11410 = vst [vmem:[#allocation28_spill] sm:$0xff] %v6712_v27  ;;  %v11413_v29 = vld [vmem:[#allocation37_spill] sm:$0xff]  ;;  %v11415_v2 = vld [vmem:[#allocation38_spill] sm:$0xff]  ;;  %v6727_v15 = vadd.f32 %v875_v38, %v11419_v22 }
 0x10a   :  { %11412 = vst [vmem:[#allocation29_spill] sm:$0xff] %v6715_v40  ;;  %v6718_v7 = vadd.f32 %v872_v47, %v11413_v29  ;;  %v6721_v35 = vadd.f32 %v873_v53, %v11415_v2  ;;  %v11417_v50 = vld [vmem:[#allocation39_spill] sm:$0xff]  ;;  %v1214_v52 = vld [vmem:[#allocation2 + $0x232] sm:$0xff]  ;;  %v11423_v40 = vld [vmem:[#allocation42_spill] sm:$0xff] }
 0x10b   :  { %v6724_v59 = vadd.f32 %v874_v55, %v11417_v50  ;;  %11420 = vst [vmem:[#allocation33_spill] sm:$0xff] %v6727_v15  ;;  %v1213_v16 = vld [vmem:[#allocation2 + $0x22a] sm:$0xff]  ;;  %v1215_v27 = vld [vmem:[#allocation2 + $0x242] sm:$0xff]  ;;  %v11421_v23 = vld [vmem:[#allocation41_spill] sm:$0xff]  ;;  %v6733_v21 = vadd.f32 %v877_v41, %v11423_v40  ;;  %v6751_v41 = vmul.f32 %v11342_v1, %v978_v60 }
 0x10c   :  { %11414 = vst [vmem:[#allocation30_spill] sm:$0xff] %v6718_v7  ;;  %11416 = vst [vmem:[#allocation31_spill] sm:$0xff] %v6721_v35  ;;  %v6730_v62 = vadd.f32 %v876_v51, %v11421_v23  ;;  %v11425_v47 = vld [vmem:[#allocation43_spill] sm:$0xff]  ;;  %v11427_v53 = vld [vmem:[#allocation44_spill] sm:$0xff]  ;;  %v6748_v51 = vmul.f32 %v11342_v1, %v977_v31 }
 0x10d   :  { %11418 = vst [vmem:[#allocation32_spill] sm:$0xff] %v6724_v59  ;;  %11424 = vst [vmem:[#allocation35_spill] sm:$0xff] %v6733_v21  ;;  %v6736_v29 = vadd.f32 %v878_v9, %v11425_v47  ;;  %v6739_v2 = vadd.f32 %v879_v44, %v11427_v53  ;;  %v1216_v55 = vld [vmem:[#allocation2 + $0x24a] sm:$0xff]  ;;  %v1217_v50 = vld [vmem:[#allocation2 + $0x25a] sm:$0xff] }
 0x10e   :  { %11422 = vst [vmem:[#allocation34_spill] sm:$0xff] %v6730_v62  ;;  %v1218_v59 = vld [vmem:[#allocation2 + $0x262] sm:$0xff]  ;;  %v11429_v38 = vld [vmem:[#allocation45_spill] sm:$0xff]  ;;  %v1221_v23 = vld [vmem:[#allocation2 + $0x28a] sm:$0xff] }
 0x10f   :  { %11426 = vst [vmem:[#allocation37_spill] sm:$0xff] %v6736_v29  ;;  %11428 = vst [vmem:[#allocation38_spill] sm:$0xff] %v6739_v2  ;;  %v6742_v22 = vadd.f32 %v880_v6, %v11429_v38  ;;  %v11431_v15 = vld [vmem:[#allocation46_spill] sm:$0xff]  ;;  %v1219_v9 = vld [vmem:[#allocation2 + $0x272] sm:$0xff] }
 0x110   :  { %v6745_v35 = vadd.f32 %v881_v56, %v11431_v15  ;;  %v1220_v40 = vld [vmem:[#allocation2 + $0x27a] sm:$0xff]  ;;  %v1222_v44 = vld [vmem:[#allocation2 + $0x292] sm:$0xff]  ;;  %v1223_v47 = vld [vmem:[#allocation2 + $0x2a2] sm:$0xff] }
 0x111   :  { %11430 = vst [vmem:[#allocation39_spill] sm:$0xff] %v6742_v22  ;;  %v1224_v53 = vld [vmem:[#allocation2 + $0x2aa] sm:$0xff]  ;;  %v1225_v15 = vld [vmem:[#allocation2 + $0x2ba] sm:$0xff]  ;;  %v1226_v31 = vld [vmem:[#allocation2 + $0x2c2] sm:$0xff] }
 0x112   :  { %11432 = vst [vmem:[#allocation40_spill] sm:$0xff] %v6745_v35  ;;  %v11433_v2 = vld [vmem:[#allocation36_spill] sm:$0xff]  ;;  %v1228_v7 = vld [vmem:[#allocation2 + $0x2da] sm:$0xff]  ;;  %v1231_v4 = vld [vmem:[#allocation2 + $0x302] sm:$0xff] }
 0x113   :  { %v1274_v29 = vmul.f32 %v11433_v2, %v1206_v54  ;;  %v1275_v6 = vmul.f32 %v11433_v2, %v1207_v48  ;;  %v1276_v38 = vmul.f32 %v11433_v2, %v1208_v63  ;;  %v1277_v56 = vmul.f32 %v11433_v2, %v1209_v14  ;;  %v1227_v35 = vld [vmem:[#allocation2 + $0x2d2] sm:$0xff]  ;;  %v1229_v39 = vld [vmem:[#allocation2 + $0x2ea] sm:$0xff]  ;;  %v1234_v10 = vld [vmem:[#allocation2 + $0x322] sm:$0xff] }
 0x114   :  { %v1278_v60 = vmul.f32 %v11433_v2, %v1210_v20  ;;  %v1279_v22 = vmul.f32 %v11433_v2, %v1211_v43  ;;  %v1280_v21 = vmul.f32 %v11433_v2, %v1212_v3  ;;  %v1281_v62 = vmul.f32 %v11433_v2, %v1213_v16  ;;  %v1230_v54 = vld [vmem:[#allocation2 + $0x2f2] sm:$0xff]  ;;  %v1232_v11 = vld [vmem:[#allocation2 + $0x30a] sm:$0xff]  ;;  %v1233_v20 = vld [vmem:[#allocation2 + $0x31a] sm:$0xff] }
 0x115   :  { %v1282_v48 = vmul.f32 %v11433_v2, %v1214_v52  ;;  %v1283_v63 = vmul.f32 %v11433_v2, %v1215_v27  ;;  %v1284_v14 = vmul.f32 %v11433_v2, %v1216_v55  ;;  %v1285_v24 = vmul.f32 %v11433_v2, %v1217_v50  ;;  %v1235_v17 = vld [vmem:[#allocation2 + $0x332] sm:$0xff]  ;;  %v1236_v52 = vld [vmem:[#allocation2 + $0x33a] sm:$0xff] }
 0x116   :  { %v1286_v43 = vmul.f32 %v11433_v2, %v1218_v59  ;;  %v1287_v3 = vmul.f32 %v11433_v2, %v1219_v9  ;;  %v1288_v16 = vmul.f32 %v11433_v2, %v1220_v40  ;;  %v1289_v13 = vmul.f32 %v11433_v2, %v1221_v23 }
 0x117   :  { %v1290_v27 = vmul.f32 %v11433_v2, %v1222_v44  ;;  %v1291_v55 = vmul.f32 %v11433_v2, %v1223_v47  ;;  %v1292_v50 = vmul.f32 %v11433_v2, %v1224_v53  ;;  %v1293_v34 = vmul.f32 %v11433_v2, %v1225_v15 }
 0x118   :  { %v1294_v32 = vmul.f32 %v11433_v2, %v1226_v31  ;;  %v1295_v59 = vmul.f32 %v11433_v2, %v1227_v35  ;;  %v1296_v9 = vmul.f32 %v11433_v2, %v1228_v7  ;;  %v1297_v40 = vmul.f32 %v11433_v2, %v1229_v39 }
 0x119   :  { %v1298_v23 = vmul.f32 %v11433_v2, %v1230_v54  ;;  %v1299_v26 = vmul.f32 %v11433_v2, %v1231_v4  ;;  %v1300_v44 = vmul.f32 %v11433_v2, %v1232_v11  ;;  %v1301_v47 = vmul.f32 %v11433_v2, %v1233_v20  ;;  %v11438_v54 = vld [vmem:[#allocation49_spill] sm:$0xff] }
 0x11a   :  { %v1302_v53 = vmul.f32 %v11433_v2, %v1234_v10  ;;  %v1303_v15 = vmul.f32 %v11433_v2, %v1235_v17  ;;  %v1304_v31 = vmul.f32 %v11433_v2, %v1236_v52  ;;  %v6785_v35 = vadd.f32 %v1274_v29, %v6523_v46  ;;  %v980_v29 = vld [vmem:[#allocation2 + $0x39] sm:$0xff]  ;;  %v990_v20 = vld [vmem:[#allocation2 + $0xb1] sm:$0xff] }
 0x11b   :  { %v6788_v7 = vadd.f32 %v1275_v6, %v6526_v45  ;;  %v6791_v39 = vadd.f32 %v1276_v38, %v6529_v8  ;;  %v6794_v4 = vadd.f32 %v1277_v56, %v6532_v28  ;;  %v6797_v11 = vadd.f32 %v1278_v60, %v6535_v42  ;;  %v979_v8 = vld [vmem:[#allocation2 + $0x31] sm:$0xff] }
 0x11c   :  { %v6800_v10 = vadd.f32 %v1279_v22, %v6538_v0  ;;  %v6803_v17 = vadd.f32 %v1280_v21, %v6541_v25  ;;  %v6806_v46 = vadd.f32 %v1281_v62, %v6544_v36  ;;  %v6809_v45 = vadd.f32 %v1282_v48, %v6547_v19  ;;  %v981_v21 = vld [vmem:[#allocation2 + $0x49] sm:$0xff]  ;;  %v982_v36 = vld [vmem:[#allocation2 + $0x51] sm:$0xff]  ;;  %v983_v62 = vld [vmem:[#allocation2 + $0x61] sm:$0xff] }
 0x11d   :  { %v6812_v28 = vadd.f32 %v1283_v63, %v6550_v57  ;;  %v6815_v42 = vadd.f32 %v1284_v14, %v6553_v37  ;;  %v6818_v0 = vadd.f32 %v1285_v24, %v6556_v30  ;;  %v6821_v25 = vadd.f32 %v1286_v43, %v6559_v58  ;;  %v984_v22 = vld [vmem:[#allocation2 + $0x69] sm:$0xff]  ;;  %v985_v30 = vld [vmem:[#allocation2 + $0x79] sm:$0xff]  ;;  %v986_v24 = vld [vmem:[#allocation2 + $0x81] sm:$0xff] }
 0x11e   :  { %v6824_v19 = vadd.f32 %v1287_v3, %v6562_v18  ;;  %v6827_v6 = vadd.f32 %v1288_v16, %v6565_v5  ;;  %v6830_v57 = vadd.f32 %v1289_v13, %v6568_v12  ;;  %v11434_v37 = vld [vmem:[#allocation47_spill] sm:$0xff]  ;;  %v987_v58 = vld [vmem:[#allocation2 + $0x91] sm:$0xff]  ;;  %v6839_v48 = vadd.f32 %v1292_v50, %v11438_v54  ;;  %v11440_v18 = vld [vmem:[#allocation50_spill] sm:$0xff] }
 0x11f   :  { %v6833_v38 = vadd.f32 %v1290_v27, %v11434_v37  ;;  %v11436_v56 = vld [vmem:[#allocation48_spill] sm:$0xff]  ;;  %v6842_v63 = vadd.f32 %v1293_v34, %v11440_v18  ;;  %v11442_v5 = vld [vmem:[#allocation51_spill] sm:$0xff]  ;;  %v988_v12 = vld [vmem:[#allocation2 + $0x99] sm:$0xff] }
 0x120   :  { %v6836_v60 = vadd.f32 %v1291_v55, %v11436_v56  ;;  %11439 = vst [vmem:[#allocation43_spill] sm:$0xff] %v6839_v48  ;;  %v6845_v14 = vadd.f32 %v1294_v32, %v11442_v5  ;;  %v989_v13 = vld [vmem:[#allocation2 + $0xa9] sm:$0xff]  ;;  %v11444_v43 = vld [vmem:[#allocation21_spill] sm:$0xff]  ;;  %v11446_v16 = vld [vmem:[#allocation54_spill] sm:$0xff] }
 0x121   :  { %11435 = vst [vmem:[#allocation41_spill] sm:$0xff] %v6833_v38  ;;  %11441 = vst [vmem:[#allocation44_spill] sm:$0xff] %v6842_v63  ;;  %v6848_v3 = vadd.f32 %v1295_v59, %v11444_v43  ;;  %v6851_v52 = vadd.f32 %v1296_v9, %v11446_v16  ;;  %v11448_v27 = vld [vmem:[#allocation7_spill] sm:$0xff]  ;;  %v11450_v50 = vld [vmem:[#allocation58_spill] sm:$0xff] }
 0x122   :  { %11437 = vst [vmem:[#allocation42_spill] sm:$0xff] %v6836_v60  ;;  %11443 = vst [vmem:[#allocation45_spill] sm:$0xff] %v6845_v14  ;;  %v6854_v55 = vadd.f32 %v1297_v40, %v11448_v27  ;;  %v6857_v37 = vadd.f32 %v1298_v23, %v11450_v50  ;;  %v991_v34 = vld [vmem:[#allocation2 + $0xc1] sm:$0xff]  ;;  %v992_v56 = vld [vmem:[#allocation2 + $0xc9] sm:$0xff]  ;;  %v1047_v23 = vmul.f32 %v11342_v1, %v979_v8 }
 0x123   :  { %11445 = vst [vmem:[#allocation46_spill] sm:$0xff] %v6848_v3  ;;  %11447 = vst [vmem:[#allocation36_spill] sm:$0xff] %v6851_v52  ;;  %v993_v54 = vld [vmem:[#allocation2 + $0xd9] sm:$0xff]  ;;  %v11452_v32 = vld [vmem:[#allocation59_spill] sm:$0xff]  ;;  %v1048_v50 = vmul.f32 %v11342_v1, %v980_v29 }
 0x124   :  { %11449 = vst [vmem:[#allocation47_spill] sm:$0xff] %v6854_v55  ;;  %11451 = vst [vmem:[#allocation48_spill] sm:$0xff] %v6857_v37  ;;  %v6860_v18 = vadd.f32 %v1299_v26, %v11452_v32  ;;  %v11454_v5 = vld [vmem:[#allocation60_spill] sm:$0xff]  ;;  %v11456_v59 = vld [vmem:[#allocation57_spill] sm:$0xff] }
 0x125   :  { %v6863_v14 = vadd.f32 %v1300_v44, %v11454_v5  ;;  %v6866_v43 = vadd.f32 %v1301_v47, %v11456_v59  ;;  %v11458_v9 = vld [vmem:[#allocation12_spill] sm:$0xff]  ;;  %v994_v40 = vld [vmem:[#allocation2 + $0xe1] sm:$0xff]  ;;  %v996_v55 = vld [vmem:[#allocation2 + $0xf9] sm:$0xff]  ;;  %v1049_v59 = vmul.f32 %v11342_v1, %v981_v21 }
 0x126   :  { %11453 = vst [vmem:[#allocation49_spill] sm:$0xff] %v6860_v18  ;;  %v6869_v16 = vadd.f32 %v1302_v53, %v11458_v9  ;;  %v995_v27 = vld [vmem:[#allocation2 + $0xf1] sm:$0xff]  ;;  %v11462_v26 = vld [vmem:[#allocation14_spill] sm:$0xff]  ;;  %v997_v44 = vld [vmem:[#allocation2 + $0x109] sm:$0xff]  ;;  %v1050_v53 = vmul.f32 %v11342_v1, %v982_v36  ;;  %v1051_v9 = vmul.f32 %v11342_v1, %v983_v62  ;;  %v1057_v36 = vmul.f32 %v11342_v1, %v989_v13 }
 0x127   :  { %11455 = vst [vmem:[#allocation50_spill] sm:$0xff] %v6863_v14  ;;  %11457 = vst [vmem:[#allocation51_spill] sm:$0xff] %v6866_v43  ;;  %v11460_v37 = vld [vmem:[#allocation13_spill] sm:$0xff]  ;;  %v6877_v32 = vadd.f32 %v1304_v31, %v11462_v26  ;;  %v999_v47 = vld [vmem:[#allocation2 + $0x121] sm:$0xff]  ;;  %v1055_v31 = vmul.f32 %v11342_v1, %v987_v58  ;;  %v1056_v26 = vmul.f32 %v11342_v1, %v988_v12 }
 0x128   :  { %11459 = vst [vmem:[#allocation21_spill] sm:$0xff] %v6869_v16  ;;  %v6874_v52 = vadd.f32 %v1303_v15, %v11460_v37  ;;  %v998_v5 = vld [vmem:[#allocation2 + $0x111] sm:$0xff]  ;;  %v1052_v16 = vmul.f32 %v11342_v1, %v984_v22  ;;  %v1000_v8 = vld [vmem:[#allocation2 + $0x129] sm:$0xff]  ;;  %v1001_v43 = vld [vmem:[#allocation2 + $0x139] sm:$0xff]  ;;  %v1053_v15 = vmul.f32 %v11342_v1, %v985_v30  ;;  %v1054_v37 = vmul.f32 %v11342_v1, %v986_v24 }
 0x129   :  { %11463 = vst [vmem:[#allocation7_spill] sm:$0xff] %v6877_v32  ;;  %v1002_v29 = vld [vmem:[#allocation2 + $0x141] sm:$0xff]  ;;  %v1003_v32 = vld [vmem:[#allocation2 + $0x151] sm:$0xff]  ;;  %v1005_v21 = vld [vmem:[#allocation2 + $0x169] sm:$0xff]  ;;  %v1058_v62 = vmul.f32 %v11342_v1, %v990_v20  ;;  %v1059_v22 = vmul.f32 %v11342_v1, %v991_v34  ;;  %v1060_v14 = vmul.f32 %v11342_v1, %v992_v56  ;;  %v1061_v24 = vmul.f32 %v11342_v1, %v993_v54 }
 0x12a   :  { %11461 = vst [vmem:[#allocation54_spill] sm:$0xff] %v6874_v52  ;;  %v1004_v52 = vld [vmem:[#allocation2 + $0x159] sm:$0xff]  ;;  %v1006_v18 = vld [vmem:[#allocation2 + $0x171] sm:$0xff]  ;;  %v1007_v3 = vld [vmem:[#allocation2 + $0x181] sm:$0xff]  ;;  %v1062_v58 = vmul.f32 %v11342_v1, %v994_v40  ;;  %v1063_v12 = vmul.f32 %v11342_v1, %v995_v27  ;;  %v1064_v63 = vmul.f32 %v11342_v1, %v996_v55  ;;  %v1065_v13 = vmul.f32 %v11342_v1, %v997_v44 }
 0x12b   :  { %v1008_v30 = vld [vmem:[#allocation2 + $0x189] sm:$0xff]  ;;  %v1066_v20 = vmul.f32 %v11342_v1, %v998_v5  ;;  %v1067_v34 = vmul.f32 %v11342_v1, %v999_v47  ;;  %v1068_v56 = vmul.f32 %v11342_v1, %v1000_v8  ;;  %v1069_v60 = vmul.f32 %v11342_v1, %v1001_v43 }
 0x12c   :  { %v1009_v48 = vld [vmem:[#allocation2 + $0x1c9] sm:$0xff]  ;;  %v1070_v38 = vmul.f32 %v11342_v1, %v1002_v29  ;;  %v1071_v54 = vmul.f32 %v11342_v1, %v1003_v32  ;;  %v1072_v40 = vmul.f32 %v11342_v1, %v1004_v52  ;;  %v1073_v27 = vmul.f32 %v11342_v1, %v1005_v21  ;;  %v11468_v21 = vld [vmem:[#allocation17_spill] sm:$0xff] }
 0x12d   :  { %v1074_v55 = vmul.f32 %v11342_v1, %v1006_v18  ;;  %v1075_v44 = vmul.f32 %v11342_v1, %v1007_v3  ;;  %v1076_v5 = vmul.f32 %v11342_v1, %v1008_v30  ;;  %v1077_v47 = vmul.f32 %v11342_v1, %v1009_v48  ;;  %v11464_v32 = vld [vmem:[#allocation15_spill] sm:$0xff]  ;;  %v11466_v18 = vld [vmem:[#allocation16_spill] sm:$0xff]  ;;  %v11470_v1 = vld [vmem:[#allocation18_spill] sm:$0xff] }
 0x12e   :  { %v6910_v8 = vadd.f32 %v6748_v51, %v6648_v61  ;;  %v6914_v43 = vadd.f32 %v6751_v41, %v6652_v33  ;;  %v6917_v52 = vadd.f32 %v1047_v23, %v6655_v49  ;;  %v6920_v29 = vadd.f32 %v1048_v50, %v11464_v32 }
 0x12f   :  { %v6923_v3 = vadd.f32 %v1049_v59, %v11466_v18  ;;  %v6926_v30 = vadd.f32 %v1050_v53, %v11468_v21  ;;  %v6929_v48 = vadd.f32 %v1051_v9, %v11470_v1 }
 0x130   :  { %11465 = vst [vmem:[#allocation58_spill] sm:$0xff] %v6920_v29 }
 0x131   :  { %11467 = vst [vmem:[#allocation59_spill] sm:$0xff] %v6923_v3  ;;  %11469 = vst [vmem:[#allocation60_spill] sm:$0xff] %v6926_v30 }
 0x132   :  { %11471 = vst [vmem:[#allocation57_spill] sm:$0xff] %v6929_v48 }
 0x133   :  { %8 = vsyncpa [#allocation4], 0  ;;  %v11472_v61 = vld [vmem:[#allocation11_spill] sm:$0xff]  ;;  %v11476_v49 = vld [vmem:[#allocation20_spill] sm:$0xff]  ;;  %vm3064_vm2 = vcmask 130048   ;;  %vm3626_vm3 = vcmask 1041409  }
 0x134   :  { %v6932_v51 = vadd.f32 %v1052_v16, %v11472_v61  ;;  %v11474_v33 = vld [vmem:[#allocation19_spill] sm:$0xff]  ;;  %v6938_v23 = vadd.f32 %v1054_v37, %v11476_v49  ;;  %v11478_v50 = vld [vmem:[#allocation52_spill] sm:$0xff]  ;;  %v11481_v53 = vld [vmem:[#allocation10_spill] sm:$0xff]  ;;  %vm3629_vm4 = vcmask 1042434   ;;  %vm3632_vm5 = vcmask 1043459   ;;  %s5090_s7 = smov 32  }
 0x135   :  { %v6935_v41 = vadd.f32 %v1053_v15, %v11474_v33  ;;  %v6941_v32 = vadd.f32 %v1055_v31, %v11478_v50  ;;  %v6946_v59 = vld [vmem:[%s10877_s1 + $0x8] sm:$0x7]  ;;  %v6949_v9 = vadd.f32 %v1056_v26, %v11481_v53  ;;  %v11483_v18 = vld [vmem:[#allocation53_spill] sm:$0xff]  ;;  %v11487_v1 = vld [vmem:[#allocation22_spill] sm:$0xff]  ;;  %vm3635_vm6 = vcmask 1044484   ;;  %s5089_s1 = smov 16  }
 0x136   :  { %11473 = vst [vmem:[#allocation12_spill] sm:$0xff] %v6932_v51  ;;  %11477 = vst [vmem:[#allocation14_spill] sm:$0xff] %v6938_v23  ;;  %v6952_v16 = vadd.f32 %v1057_v36, %v11483_v18  ;;  %v11485_v21 = vld [vmem:[#allocation55_spill] sm:$0xff]  ;;  %v6958_v37 = vadd.f32 %v1059_v22, %v11487_v1  ;;  %v1173_v61 = vld [vmem:[#allocation2 + $0x1a] sm:$0xff]  ;;  %vm3638_vm7 = vcmask 1045509   ;;  %vm3641_vm8 = vcmask 1046534  }
 0x137   :  { %11475 = vst [vmem:[#allocation13_spill] sm:$0xff] %v6935_v41  ;;  %11479 = vst [vmem:[#allocation15_spill] sm:$0xff] %v6941_v32  ;;  %v6955_v15 = vadd.f32 %v1058_v62, %v11485_v21  ;;  %v11489_v31 = vld [vmem:[#allocation56_spill] sm:$0xff]  ;;  %v11491_v49 = vld [vmem:[#allocation23_spill] sm:$0xff]  ;;  %vm3644_vm9 = vcmask 1047559   ;;  %s5091_s8 = smov 48  }
 0x138   :  { %11480 = vst [vmem:[#allocation16_spill] sm:$0xff] %v6946_v59  ;;  %11482 = vst [vmem:[#allocation17_spill] sm:$0xff] %v6949_v9  ;;  %v6961_v33 = vadd.f32 %v1060_v14, %v11489_v31  ;;  %v6964_v50 = vadd.f32 %v1061_v24, %v11491_v49  ;;  %v11493_v32 = vld [vmem:[#allocation24_spill] sm:$0xff]  ;;  %v11495_v26 = vld [vmem:[#allocation25_spill] sm:$0xff]  ;;  %s5092_s9 = smov 64   ;;  %s5093_s10 = smov 80  }
 0x139   :  { %11484 = vst [vmem:[#allocation18_spill] sm:$0xff] %v6952_v16  ;;  %11486 = vst [vmem:[#allocation11_spill] sm:$0xff] %v6955_v15  ;;  %v6967_v23 = vadd.f32 %v1062_v58, %v11493_v32  ;;  %v6970_v53 = vadd.f32 %v1063_v12, %v11495_v26  ;;  %v1174_v36 = vld [vmem:[#allocation2 + $0x22] sm:$0xff]  ;;  %v1175_v18 = vld [vmem:[#allocation2 + $0x32] sm:$0xff]  ;;  %s5094_s11 = smov 96   ;;  %s5095_s12 = smov 112  }
 0x13a   :  { %11488 = vst [vmem:[#allocation19_spill] sm:$0xff] %v6958_v37  ;;  %11490 = vst [vmem:[#allocation20_spill] sm:$0xff] %v6961_v33  ;;  %v1176_v62 = vld [vmem:[#allocation2 + $0x3a] sm:$0xff]  ;;  %v1177_v21 = vld [vmem:[#allocation2 + $0x4a] sm:$0xff]  ;;  %vm3764_vm10 = vcmask 261248   ;;  %vm3837_vm11 = vcmask 392448  }
 0x13b   :  { %11492 = vst [vmem:[#allocation52_spill] sm:$0xff] %v6964_v50  ;;  %11494 = vst [vmem:[#allocation10_spill] sm:$0xff] %v6967_v23  ;;  %v11497_v15 = vld [vmem:[#allocation26_spill] sm:$0xff]  ;;  %v11499_v1 = vld [vmem:[#allocation27_spill] sm:$0xff]  ;;  %vm3910_vm12 = vcmask 523648   ;;  %vm3983_vm13 = vcmask 654848  }
 0x13c   :  { %11496 = vst [vmem:[#allocation53_spill] sm:$0xff] %v6970_v53  ;;  %v6973_v22 = vadd.f32 %v1064_v63, %v11497_v15  ;;  %v6976_v37 = vadd.f32 %v1065_v13, %v11499_v1  ;;  %v11501_v14 = vld [vmem:[#allocation28_spill] sm:$0xff]  ;;  %v11503_v24 = vld [vmem:[#allocation29_spill] sm:$0xff]  ;;  %v1179_v32 = vld [vmem:[#allocation2 + $0x62] sm:$0xff]  ;;  %vm4056_vm14 = vcmask 786048   ;;  %vm4129_vm15 = vcmask 917248  }
 0x13d   :  { %v6979_v31 = vadd.f32 %v1066_v20, %v11501_v14  ;;  %v6982_v49 = vadd.f32 %v1067_v34, %v11503_v24  ;;  %v1178_v58 = vld [vmem:[#allocation2 + $0x52] sm:$0xff]  ;;  %v1403_v12 = vld [vmem:[#allocation2 + $0x1e8] sm:$0xff]  ;;  %v11505_v53 = vld [vmem:[#allocation30_spill] sm:$0xff]  ;;  %s5096_s13 = smov [#allocation3]  }
 0x13e   :  { %11498 = vst [vmem:[#allocation55_spill] sm:$0xff] %v6973_v22  ;;  %11500 = vst [vmem:[#allocation22_spill] sm:$0xff] %v6976_v37  ;;  %v1404_v26 = vld [vmem:[#allocation2 + $0x1f8] sm:$0xff]  ;;  %v6985_v23 = vadd.f32 %v1068_v56, %v11505_v53  ;;  %v11507_v50 = vld [vmem:[#allocation31_spill] sm:$0xff]  ;;  %s4812_s14 = sshll.u32 %s5096_s13, 4  ;;  %s4813_s14 = int_to_ptr.vmem [resolvable:$true] %s4812_s14 }
 0x13f   :  { %11502 = vst [vmem:[#allocation56_spill] sm:$0xff] %v6979_v31  ;;  %11504 = vst [vmem:[#allocation23_spill] sm:$0xff] %v6982_v49  ;;  %v6988_v33 = vadd.f32 %v1069_v60, %v11507_v50  ;;  %v11509_v63 = vld [vmem:[#allocation32_spill] sm:$0xff]  ;;  %v11511_v13 = vld [vmem:[#allocation33_spill] sm:$0xff]  ;;  %s5066_s15 = scalar_lea.vmem %s4813_s14, 1024  ;;  %p5071_p1 = scmp.lt.s32.totalorder %s4813_s14, %s4813_s14 }
 0x140   :  { %11506 = vst [vmem:[#allocation24_spill] sm:$0xff] %v6985_v23  ;;  %v6991_v15 = vadd.f32 %v1070_v38, %v11509_v63  ;;  %v6994_v1 = vadd.f32 %v1071_v54, %v11511_v13  ;;  %v1405_v20 = vld [vmem:[#allocation2 + $0x200] sm:$0xff]  ;;  %v1406_v14 = vld [vmem:[#allocation2 + $0x210] sm:$0xff]  ;;  %v1407_v34 = vld [vmem:[#allocation2 + $0x218] sm:$0xff]  ;;  %p5067_p0 = scmp.ne.s32.totalorder %s4813_s14, %s5066_s15  ;;  %p5072_p2 = scmp.lt.s32.totalorder %s5066_s15, %s5066_s15 }
 0x141   :  { %11508 = vst [vmem:[#allocation25_spill] sm:$0xff] %v6988_v33  ;;  %v1408_v24 = vld [vmem:[#allocation2 + $0x228] sm:$0xff]  ;;  %v11513_v49 = vld [vmem:[#allocation34_spill] sm:$0xff]  ;;  %v11517_v56 = vld [vmem:[#allocation37_spill] sm:$0xff] }
 0x142   :  { %11510 = vst [vmem:[#allocation26_spill] sm:$0xff] %v6991_v15  ;;  %11512 = vst [vmem:[#allocation27_spill] sm:$0xff] %v6994_v1  ;;  %v6997_v31 = vadd.f32 %v1072_v40, %v11513_v49  ;;  %v11515_v37 = vld [vmem:[#allocation35_spill] sm:$0xff]  ;;  %v7003_v53 = vadd.f32 %v1074_v55, %v11517_v56  ;;  %v11519_v60 = vld [vmem:[#allocation38_spill] sm:$0xff]  ;;  %v7015_v40 = vmul.f32 %v11433_v2, %v1173_v61  ;;  %p5073_p3 = por %p5072_p2, %p5071_p1 }
 0x143   :  { %v7000_v22 = vadd.f32 %v1073_v27, %v11515_v37  ;;  %v7006_v50 = vadd.f32 %v1075_v44, %v11519_v60  ;;  %v1409_v38 = vld [vmem:[#allocation2 + $0x230] sm:$0xff]  ;;  %v1410_v63 = vld [vmem:[#allocation2 + $0x240] sm:$0xff]  ;;  %v1411_v54 = vld [vmem:[#allocation2 + $0x248] sm:$0xff]  ;;  %v7022_v44 = vmul.f32 %v11433_v2, %v1174_v36  ;;  %v7025_v60 = vmul.f32 %v11433_v2, %v1175_v18 }
 0x144   :  { %11514 = vst [vmem:[#allocation28_spill] sm:$0xff] %v6997_v31  ;;  %11518 = vst [vmem:[#allocation30_spill] sm:$0xff] %v7003_v53  ;;  %v11521_v13 = vld [vmem:[#allocation39_spill] sm:$0xff]  ;;  %v11523_v15 = vld [vmem:[#allocation40_spill] sm:$0xff]  ;;  %p5074_p4 = pnand %p5073_p3, %p5067_p0 }
 0x145   :  { %11516 = vst [vmem:[#allocation29_spill] sm:$0xff] %v7000_v22  ;;  %11520 = vst [vmem:[#allocation31_spill] sm:$0xff] %v7006_v50  ;;  %v7009_v1 = vadd.f32 %v1076_v5, %v11521_v13  ;;  %v7012_v33 = vadd.f32 %v1077_v47, %v11523_v15  ;;  %v1412_v27 = vld [vmem:[#allocation2 + $0x258] sm:$0xff]  ;;  %v1413_v37 = vld [vmem:[#allocation2 + $0x260] sm:$0xff]  ;;  %v7028_v5 = vmul.f32 %v11433_v2, %v1176_v62 }
 0x146   :  { %v1414_v49 = vld [vmem:[#allocation2 + $0x270] sm:$0xff]  ;;  %11526 = vst [vmem:[#allocation34_spill] sm:$0xff] %v7025_v60  ;;  %v7031_v47 = vmul.f32 %v11433_v2, %v1177_v21  ;;  %v1415_v61 = vld [vmem:[#allocation2 + $0x278] sm:$0xff]  ;;  %v1416_v15 = vld [vmem:[#allocation2 + $0x288] sm:$0xff] }
 0x147   :  { %11522 = vst [vmem:[#allocation32_spill] sm:$0xff] %v7009_v1  ;;  %11524 = vst [vmem:[#allocation33_spill] sm:$0xff] %v7012_v33  ;;  %v11525_v55 = vld [vmem:[#allocation8_spill] sm:$0xff]  ;;  %v7034_v33 = vmul.f32 %v11433_v2, %v1178_v58  ;;  %v1418_v36 = vld [vmem:[#allocation2 + $0x2a0] sm:$0xff] }
 0x148   :  { %v7019_v56 = vrot.slane %v6946_v59, %v11525_v55  ;;  %11527 = vst [vmem:[#allocation35_spill] sm:$0xff] %v7028_v5  ;;  %11528 = vst [vmem:[#allocation37_spill] sm:$0xff] %v7031_v47  ;;  %v1417_v13 = vld [vmem:[#allocation2 + $0x290] sm:$0xff]  ;;  %v7037_v55 = vmul.f32 %v11433_v2, %v1179_v32  ;;  %v1419_v59 = vld [vmem:[#allocation2 + $0x2a8] sm:$0xff] }
 0x149   :  { %11529 = vst [vmem:[#allocation38_spill] sm:$0xff] %v7034_v33  ;;  %v1420_v1 = vld [vmem:[#allocation2 + $0x2b8] sm:$0xff]  ;;  %v1421_v50 = vld [vmem:[#allocation2 + $0x2c0] sm:$0xff]  ;;  %v1422_v53 = vld [vmem:[#allocation2 + $0x2d0] sm:$0xff] }
 0x14a   :  { %11530 = vst [vmem:[#allocation39_spill] sm:$0xff] %v7037_v55  ;;  %v1471_v18 = vmul.f32 %v7019_v56, %v1403_v12  ;;  %v1472_v62 = vmul.f32 %v7019_v56, %v1404_v26  ;;  %v1423_v21 = vld [vmem:[#allocation2 + $0x2d8] sm:$0xff]  ;;  %v1473_v22 = vmul.f32 %v7019_v56, %v1405_v20  ;;  %v1474_v31 = vmul.f32 %v7019_v56, %v1406_v14  ;;  %v1424_v32 = vld [vmem:[#allocation2 + $0x2e8] sm:$0xff]  ;;  %v1425_v16 = vld [vmem:[#allocation2 + $0x2f0] sm:$0xff] }
 0x14b   :  { %v1475_v58 = vmul.f32 %v7019_v56, %v1407_v34  ;;  %v1476_v23 = vmul.f32 %v7019_v56, %v1408_v24  ;;  %v1426_v9 = vld [vmem:[#allocation2 + $0x300] sm:$0xff]  ;;  %v1477_v41 = vmul.f32 %v7019_v56, %v1409_v38  ;;  %v1478_v12 = vmul.f32 %v7019_v56, %v1410_v63  ;;  %v1427_v55 = vld [vmem:[#allocation2 + $0x308] sm:$0xff]  ;;  %v1428_v48 = vld [vmem:[#allocation2 + $0x318] sm:$0xff] }
 0x14c   :  { %v1479_v26 = vmul.f32 %v7019_v56, %v1411_v54  ;;  %v1480_v51 = vmul.f32 %v7019_v56, %v1412_v27  ;;  %v1429_v20 = vld [vmem:[#allocation2 + $0x320] sm:$0xff]  ;;  %v1481_v14 = vmul.f32 %v7019_v56, %v1413_v37  ;;  %v1482_v34 = vmul.f32 %v7019_v56, %v1414_v49  ;;  %v1430_v30 = vld [vmem:[#allocation2 + $0x330] sm:$0xff]  ;;  %v1431_v47 = vld [vmem:[#allocation2 + $0x338] sm:$0xff] }
 0x14d   :  { %v1483_v24 = vmul.f32 %v7019_v56, %v1415_v61  ;;  %v1484_v33 = vmul.f32 %v7019_v56, %v1416_v15  ;;  %v1432_v38 = vld [vmem:[#allocation2 + $0x348] sm:$0xff]  ;;  %v1485_v63 = vmul.f32 %v7019_v56, %v1417_v13  ;;  %v1486_v54 = vmul.f32 %v7019_v56, %v1418_v36  ;;  %v1433_v5 = vld [vmem:[#allocation2 + $0x350] sm:$0xff] }
 0x14e   :  { %v1487_v27 = vmul.f32 %v7019_v56, %v1419_v59  ;;  %v1488_v3 = vmul.f32 %v7019_v56, %v1420_v1  ;;  %v1489_v37 = vmul.f32 %v7019_v56, %v1421_v50  ;;  %v1490_v49 = vmul.f32 %v7019_v56, %v1422_v53 }
 0x14f   :  { %v1491_v61 = vmul.f32 %v7019_v56, %v1423_v21  ;;  %v1492_v15 = vmul.f32 %v7019_v56, %v1424_v32  ;;  %v1493_v29 = vmul.f32 %v7019_v56, %v1425_v16  ;;  %v1494_v60 = vmul.f32 %v7019_v56, %v1426_v9 }
 0x150   :  { %v1495_v13 = vmul.f32 %v7019_v56, %v1427_v55  ;;  %v1496_v36 = vmul.f32 %v7019_v56, %v1428_v48  ;;  %v1497_v59 = vmul.f32 %v7019_v56, %v1429_v20  ;;  %v1498_v1 = vmul.f32 %v7019_v56, %v1430_v30 }
 0x151   :  { %v1499_v50 = vmul.f32 %v7019_v56, %v1431_v47  ;;  %v1500_v53 = vmul.f32 %v7019_v56, %v1432_v38  ;;  %v1501_v21 = vmul.f32 %v7019_v56, %v1433_v5  ;;  %v7071_v32 = vadd.f32 %v1471_v18, %v6785_v35  ;;  %v1190_v38 = vld [vmem:[#allocation2 + $0xe2] sm:$0xff] }
 0x152   :  { %v7074_v16 = vadd.f32 %v1472_v62, %v6788_v7  ;;  %v7077_v9 = vadd.f32 %v1473_v22, %v6791_v39  ;;  %v7080_v48 = vadd.f32 %v1474_v31, %v6794_v4  ;;  %v7083_v30 = vadd.f32 %v1475_v58, %v6797_v11  ;;  %v1180_v11 = vld [vmem:[#allocation2 + $0x6a] sm:$0xff]  ;;  %v1181_v22 = vld [vmem:[#allocation2 + $0x7a] sm:$0xff]  ;;  %v1182_v31 = vld [vmem:[#allocation2 + $0x82] sm:$0xff] }
 0x153   :  { %v7086_v47 = vadd.f32 %v1476_v23, %v6800_v10  ;;  %v7089_v5 = vadd.f32 %v1477_v41, %v6803_v17  ;;  %v7092_v35 = vadd.f32 %v1478_v12, %v6806_v46  ;;  %v7095_v7 = vadd.f32 %v1479_v26, %v6809_v45  ;;  %v1185_v41 = vld [vmem:[#allocation2 + $0xaa] sm:$0xff]  ;;  %v11531_v23 = vld [vmem:[#allocation41_spill] sm:$0xff] }
 0x154   :  { %v7098_v39 = vadd.f32 %v1480_v51, %v6812_v28  ;;  %v7101_v4 = vadd.f32 %v1481_v14, %v6815_v42  ;;  %v7104_v10 = vadd.f32 %v1482_v34, %v6818_v0  ;;  %v7107_v17 = vadd.f32 %v1483_v24, %v6821_v25  ;;  %v1183_v28 = vld [vmem:[#allocation2 + $0x92] sm:$0xff]  ;;  %v1184_v51 = vld [vmem:[#allocation2 + $0x9a] sm:$0xff]  ;;  %v11533_v25 = vld [vmem:[#allocation43_spill] sm:$0xff] }
 0x155   :  { %v7110_v46 = vadd.f32 %v1484_v33, %v6824_v19  ;;  %v7113_v45 = vadd.f32 %v1485_v63, %v6827_v6  ;;  %v7116_v42 = vadd.f32 %v1486_v54, %v6830_v57  ;;  %v7119_v55 = vadd.f32 %v1487_v27, %v11531_v23  ;;  %v11532_v0 = vld [vmem:[#allocation42_spill] sm:$0xff]  ;;  %v1186_v19 = vld [vmem:[#allocation2 + $0xb2] sm:$0xff]  ;;  %v1188_v58 = vld [vmem:[#allocation2 + $0xca] sm:$0xff] }
 0x156   :  { %v7122_v18 = vadd.f32 %v1488_v3, %v11532_v0  ;;  %v7125_v62 = vadd.f32 %v1489_v37, %v11533_v25  ;;  %v1187_v33 = vld [vmem:[#allocation2 + $0xc2] sm:$0xff]  ;;  %v11534_v6 = vld [vmem:[#allocation44_spill] sm:$0xff]  ;;  %v11535_v26 = vld [vmem:[#allocation45_spill] sm:$0xff] }
 0x157   :  { %v7128_v12 = vadd.f32 %v1490_v49, %v11534_v6  ;;  %v7131_v20 = vadd.f32 %v1491_v61, %v11535_v26  ;;  %v11537_v57 = vld [vmem:[#allocation46_spill] sm:$0xff]  ;;  %v11539_v34 = vld [vmem:[#allocation36_spill] sm:$0xff]  ;;  %v11541_v54 = vld [vmem:[#allocation47_spill] sm:$0xff] }
 0x158   :  { %v7134_v14 = vadd.f32 %v1492_v15, %v11537_v57  ;;  %v7137_v24 = vadd.f32 %v1493_v29, %v11539_v34  ;;  %v1189_v3 = vld [vmem:[#allocation2 + $0xda] sm:$0xff]  ;;  %v1191_v63 = vld [vmem:[#allocation2 + $0xf2] sm:$0xff]  ;;  %v7140_v27 = vadd.f32 %v1494_v60, %v11541_v54  ;;  %v1193_v6 = vld [vmem:[#allocation2 + $0x10a] sm:$0xff] }
 0x159   :  { %11536 = vst [vmem:[#allocation40_spill] sm:$0xff] %v7131_v20  ;;  %v11543_v37 = vld [vmem:[#allocation48_spill] sm:$0xff]  ;;  %v11545_v49 = vld [vmem:[#allocation49_spill] sm:$0xff]  ;;  %v11547_v61 = vld [vmem:[#allocation50_spill] sm:$0xff] }
 0x15a   :  { %11538 = vst [vmem:[#allocation8_spill] sm:$0xff] %v7134_v14  ;;  %11540 = vst [vmem:[#allocation41_spill] sm:$0xff] %v7137_v24  ;;  %v7143_v23 = vadd.f32 %v1495_v13, %v11543_v37  ;;  %v7146_v0 = vadd.f32 %v1496_v36, %v11545_v49  ;;  %v7149_v25 = vadd.f32 %v1497_v59, %v11547_v61  ;;  %v1192_v15 = vld [vmem:[#allocation2 + $0xfa] sm:$0xff]  ;;  %v1194_v26 = vld [vmem:[#allocation2 + $0x112] sm:$0xff] }
 0x15b   :  { %11542 = vst [vmem:[#allocation42_spill] sm:$0xff] %v7140_v27  ;;  %v11549_v29 = vld [vmem:[#allocation51_spill] sm:$0xff]  ;;  %v11551_v34 = vld [vmem:[#allocation21_spill] sm:$0xff]  ;;  %v11553_v60 = vld [vmem:[#allocation54_spill] sm:$0xff]  ;;  %v1248_v59 = vmul.f32 %v11433_v2, %v1180_v11  ;;  %v1249_v61 = vmul.f32 %v11433_v2, %v1181_v22  ;;  %v1256_v22 = vmul.f32 %v11433_v2, %v1188_v58 }
 0x15c   :  { %11544 = vst [vmem:[#allocation43_spill] sm:$0xff] %v7143_v23  ;;  %11546 = vst [vmem:[#allocation44_spill] sm:$0xff] %v7146_v0  ;;  %v7152_v57 = vadd.f32 %v1498_v1, %v11549_v29  ;;  %v7155_v24 = vadd.f32 %v1499_v50, %v11551_v34  ;;  %v7158_v54 = vadd.f32 %v1500_v53, %v11553_v60  ;;  %v11555_v13 = vld [vmem:[#allocation7_spill] sm:$0xff]  ;;  %v1197_v0 = vld [vmem:[#allocation2 + $0x13a] sm:$0xff] }
 0x15d   :  { %11548 = vst [vmem:[#allocation45_spill] sm:$0xff] %v7149_v25  ;;  %v7161_v37 = vadd.f32 %v1501_v21, %v11555_v13  ;;  %v1195_v36 = vld [vmem:[#allocation2 + $0x122] sm:$0xff]  ;;  %v1196_v49 = vld [vmem:[#allocation2 + $0x12a] sm:$0xff]  ;;  %v1250_v25 = vmul.f32 %v11433_v2, %v1182_v31  ;;  %v1251_v1 = vmul.f32 %v11433_v2, %v1183_v28  ;;  %v1199_v50 = vld [vmem:[#allocation2 + $0x152] sm:$0xff]  ;;  %v1252_v53 = vmul.f32 %v11433_v2, %v1184_v51 }
 0x15e   :  { %11550 = vst [vmem:[#allocation46_spill] sm:$0xff] %v7152_v57  ;;  %11552 = vst [vmem:[#allocation36_spill] sm:$0xff] %v7155_v24  ;;  %v1198_v29 = vld [vmem:[#allocation2 + $0x142] sm:$0xff]  ;;  %v1200_v34 = vld [vmem:[#allocation2 + $0x15a] sm:$0xff]  ;;  %v1253_v60 = vmul.f32 %v11433_v2, %v1185_v41  ;;  %v1254_v21 = vmul.f32 %v11433_v2, %v1186_v19  ;;  %v1255_v13 = vmul.f32 %v11433_v2, %v1187_v33 }
 0x15f   :  { %11554 = vst [vmem:[#allocation47_spill] sm:$0xff] %v7158_v54  ;;  %11556 = vst [vmem:[#allocation48_spill] sm:$0xff] %v7161_v37  ;;  %v1201_v37 = vld [vmem:[#allocation2 + $0x16a] sm:$0xff]  ;;  %v1202_v54 = vld [vmem:[#allocation2 + $0x172] sm:$0xff]  ;;  %v1257_v31 = vmul.f32 %v11433_v2, %v1189_v3  ;;  %v1258_v28 = vmul.f32 %v11433_v2, %v1190_v38  ;;  %v1259_v24 = vmul.f32 %v11433_v2, %v1191_v63 }
 0x160   :  { %v1203_v11 = vld [vmem:[#allocation2 + $0x182] sm:$0xff]  ;;  %v1204_v57 = vld [vmem:[#allocation2 + $0x18a] sm:$0xff]  ;;  %v1260_v51 = vmul.f32 %v11433_v2, %v1192_v15  ;;  %v1261_v41 = vmul.f32 %v11433_v2, %v1193_v6  ;;  %v1262_v19 = vmul.f32 %v11433_v2, %v1194_v26  ;;  %v1263_v33 = vmul.f32 %v11433_v2, %v1195_v36 }
 0x161   :  { %v1205_v23 = vld [vmem:[#allocation2 + $0x1ca] sm:$0xff]  ;;  %v1264_v27 = vmul.f32 %v11433_v2, %v1196_v49  ;;  %v1265_v58 = vmul.f32 %v11433_v2, %v1197_v0  ;;  %v1266_v3 = vmul.f32 %v11433_v2, %v1198_v29  ;;  %v1267_v38 = vmul.f32 %v11433_v2, %v1199_v50  ;;  %v11559_v29 = vld [vmem:[#allocation34_spill] sm:$0xff] }
 0x162   :  { %v1268_v63 = vmul.f32 %v11433_v2, %v1200_v34  ;;  %v1269_v14 = vmul.f32 %v11433_v2, %v1201_v37  ;;  %v1270_v15 = vmul.f32 %v11433_v2, %v1202_v54  ;;  %v1271_v6 = vmul.f32 %v11433_v2, %v1203_v11  ;;  %v11561_v37 = vld [vmem:[#allocation58_spill] sm:$0xff]  ;;  %v11562_v54 = vld [vmem:[#allocation35_spill] sm:$0xff] }
 0x163   :  { %v1272_v26 = vmul.f32 %v11433_v2, %v1204_v57  ;;  %v1273_v36 = vmul.f32 %v11433_v2, %v1205_v23  ;;  %v7191_v49 = vadd.f32 %v7015_v40, %v6910_v8  ;;  %v7195_v0 = vadd.f32 %v7022_v44, %v6914_v43  ;;  %v11564_v11 = vld [vmem:[#allocation59_spill] sm:$0xff]  ;;  %v11565_v57 = vld [vmem:[#allocation37_spill] sm:$0xff]  ;;  %v11567_v2 = vld [vmem:[#allocation60_spill] sm:$0xff] }
 0x164   :  { %v7199_v50 = vadd.f32 %v11559_v29, %v6917_v52  ;;  %v7203_v34 = vadd.f32 %v11562_v54, %v11561_v37  ;;  %v7207_v20 = vadd.f32 %v11565_v57, %v11564_v11  ;;  %v11568_v23 = vld [vmem:[#allocation38_spill] sm:$0xff]  ;;  %v11570_v40 = vld [vmem:[#allocation57_spill] sm:$0xff]  ;;  %v11573_v44 = vld [vmem:[#allocation12_spill] sm:$0xff] }
 0x165   :  { %11557 = vst [vmem:[#allocation49_spill] sm:$0xff] %v7191_v49  ;;  %11558 = vst [vmem:[#allocation50_spill] sm:$0xff] %v7195_v0  ;;  %v7211_v8 = vadd.f32 %v11568_v23, %v11567_v2  ;;  %v11571_v49 = vld [vmem:[#allocation39_spill] sm:$0xff]  ;;  %v7218_v0 = vadd.f32 %v1248_v59, %v11573_v44  ;;  %v11575_v52 = vld [vmem:[#allocation13_spill] sm:$0xff] }
 0x166   :  { %11560 = vst [vmem:[#allocation51_spill] sm:$0xff] %v7199_v50  ;;  %11563 = vst [vmem:[#allocation21_spill] sm:$0xff] %v7203_v34  ;;  %v7215_v43 = vadd.f32 %v11571_v49, %v11570_v40  ;;  %v7221_v29 = vadd.f32 %v1249_v61, %v11575_v52  ;;  %v11577_v37 = vld [vmem:[#allocation14_spill] sm:$0xff]  ;;  %v11579_v34 = vld [vmem:[#allocation15_spill] sm:$0xff] }
 0x167   :  { %11566 = vst [vmem:[#allocation54_spill] sm:$0xff] %v7207_v20  ;;  %11569 = vst [vmem:[#allocation7_spill] sm:$0xff] %v7211_v8  ;;  %v7224_v54 = vadd.f32 %v1250_v25, %v11577_v37  ;;  %v7227_v11 = vadd.f32 %v1251_v1, %v11579_v34  ;;  %v11581_v57 = vld [vmem:[#allocation17_spill] sm:$0xff]  ;;  %v11583_v2 = vld [vmem:[#allocation18_spill] sm:$0xff] }
 0x168   :  { %11572 = vst [vmem:[#allocation34_spill] sm:$0xff] %v7215_v43  ;;  %11574 = vst [vmem:[#allocation58_spill] sm:$0xff] %v7218_v0  ;;  %v7230_v20 = vadd.f32 %v1252_v53, %v11581_v57  ;;  %v7233_v23 = vadd.f32 %v1253_v60, %v11583_v2  ;;  %v11585_v49 = vld [vmem:[#allocation11_spill] sm:$0xff]  ;;  %v11589_v61 = vld [vmem:[#allocation20_spill] sm:$0xff] }
 0x169   :  { %11576 = vst [vmem:[#allocation35_spill] sm:$0xff] %v7221_v29  ;;  %11578 = vst [vmem:[#allocation59_spill] sm:$0xff] %v7224_v54  ;;  %v7236_v40 = vadd.f32 %v1254_v21, %v11585_v49  ;;  %v11587_v59 = vld [vmem:[#allocation19_spill] sm:$0xff]  ;;  %v7242_v52 = vadd.f32 %v1256_v22, %v11589_v61  ;;  %v11591_v25 = vld [vmem:[#allocation52_spill] sm:$0xff] }
 0x16a   :  { %11580 = vst [vmem:[#allocation37_spill] sm:$0xff] %v7227_v11  ;;  %11582 = vst [vmem:[#allocation60_spill] sm:$0xff] %v7230_v20  ;;  %v7239_v44 = vadd.f32 %v1255_v13, %v11587_v59  ;;  %v7245_v37 = vadd.f32 %v1257_v31, %v11591_v25  ;;  %v11593_v1 = vld [vmem:[#allocation10_spill] sm:$0xff]  ;;  %v1370_v53 = vld [vmem:[#allocation2 + $0x30] sm:$0xff] }
 0x16b   :  { %11584 = vst [vmem:[#allocation38_spill] sm:$0xff] %v7233_v23  ;;  %11586 = vst [vmem:[#allocation57_spill] sm:$0xff] %v7236_v40  ;;  %v7248_v34 = vadd.f32 %v1258_v28, %v11593_v1  ;;  %v1371_v57 = vld [vmem:[#allocation2 + $0x38] sm:$0xff]  ;;  %v1372_v20 = vld [vmem:[#allocation2 + $0x48] sm:$0xff] }
 0x16c   :  { %11588 = vst [vmem:[#allocation39_spill] sm:$0xff] %v7239_v44  ;;  %11590 = vst [vmem:[#allocation12_spill] sm:$0xff] %v7242_v52  ;;  %v11595_v60 = vld [vmem:[#allocation53_spill] sm:$0xff]  ;;  %v11597_v21 = vld [vmem:[#allocation55_spill] sm:$0xff] }
 0x16d   :  { %11592 = vst [vmem:[#allocation13_spill] sm:$0xff] %v7245_v37  ;;  %11594 = vst [vmem:[#allocation14_spill] sm:$0xff] %v7248_v34  ;;  %v7251_v2 = vadd.f32 %v1259_v24, %v11595_v60  ;;  %v7254_v49 = vadd.f32 %v1260_v51, %v11597_v21  ;;  %v11599_v13 = vld [vmem:[#allocation22_spill] sm:$0xff]  ;;  %v11601_v22 = vld [vmem:[#allocation56_spill] sm:$0xff] }
 0x16e   :  { %v7257_v59 = vadd.f32 %v1261_v41, %v11599_v13  ;;  %v7260_v61 = vadd.f32 %v1262_v19, %v11601_v22  ;;  %v1373_v31 = vld [vmem:[#allocation2 + $0x50] sm:$0xff]  ;;  %v1374_v25 = vld [vmem:[#allocation2 + $0x60] sm:$0xff]  ;;  %v11603_v1 = vld [vmem:[#allocation23_spill] sm:$0xff] }
 0x16f   :  { %11596 = vst [vmem:[#allocation15_spill] sm:$0xff] %v7251_v2  ;;  %11598 = vst [vmem:[#allocation17_spill] sm:$0xff] %v7254_v49  ;;  %v1599_v37 = vld [vmem:[#allocation2 + $0x1e9] sm:$0xff]  ;;  %v1600_v28 = vld [vmem:[#allocation2 + $0x1f9] sm:$0xff]  ;;  %v7263_v34 = vadd.f32 %v1263_v33, %v11603_v1 }
 0x170   :  { %11600 = vst [vmem:[#allocation18_spill] sm:$0xff] %v7257_v59  ;;  %11602 = vst [vmem:[#allocation11_spill] sm:$0xff] %v7260_v61  ;;  %v11605_v52 = vld [vmem:[#allocation24_spill] sm:$0xff]  ;;  %v11607_v24 = vld [vmem:[#allocation25_spill] sm:$0xff] }
 0x171   :  { %11604 = vst [vmem:[#allocation19_spill] sm:$0xff] %v7263_v34  ;;  %v7266_v44 = vadd.f32 %v1264_v27, %v11605_v52  ;;  %v7269_v60 = vadd.f32 %v1265_v58, %v11607_v24  ;;  %v11609_v51 = vld [vmem:[#allocation26_spill] sm:$0xff]  ;;  %v1602_v13 = vld [vmem:[#allocation2 + $0x211] sm:$0xff]  ;;  %v1604_v22 = vld [vmem:[#allocation2 + $0x229] sm:$0xff] }
 0x172   :  { %v7272_v21 = vadd.f32 %v1266_v3, %v11609_v51  ;;  %v1601_v41 = vld [vmem:[#allocation2 + $0x201] sm:$0xff]  ;;  %v1603_v19 = vld [vmem:[#allocation2 + $0x219] sm:$0xff]  ;;  %v11613_v49 = vld [vmem:[#allocation28_spill] sm:$0xff] }
 0x173   :  { %11606 = vst [vmem:[#allocation20_spill] sm:$0xff] %v7266_v44  ;;  %11608 = vst [vmem:[#allocation52_spill] sm:$0xff] %v7269_v60  ;;  %v11611_v61 = vld [vmem:[#allocation27_spill] sm:$0xff]  ;;  %v7278_v2 = vadd.f32 %v1268_v63, %v11613_v49  ;;  %v11615_v33 = vld [vmem:[#allocation29_spill] sm:$0xff] }
 0x174   :  { %11610 = vst [vmem:[#allocation10_spill] sm:$0xff] %v7272_v21  ;;  %v7275_v59 = vadd.f32 %v1267_v38, %v11611_v61  ;;  %v7281_v1 = vadd.f32 %v1269_v14, %v11615_v33  ;;  %v11617_v27 = vld [vmem:[#allocation30_spill] sm:$0xff]  ;;  %v1605_v58 = vld [vmem:[#allocation2 + $0x231] sm:$0xff]  ;;  %v1607_v3 = vld [vmem:[#allocation2 + $0x249] sm:$0xff] }
 0x175   :  { %11614 = vst [vmem:[#allocation55_spill] sm:$0xff] %v7278_v2  ;;  %v7284_v52 = vadd.f32 %v1270_v15, %v11617_v27  ;;  %v1606_v24 = vld [vmem:[#allocation2 + $0x241] sm:$0xff]  ;;  %v11621_v60 = vld [vmem:[#allocation32_spill] sm:$0xff]  ;;  %v11623_v38 = vld [vmem:[#allocation33_spill] sm:$0xff]  ;;  %v7300_v15 = vmul.f32 %v7019_v56, %v1370_v53  ;;  %v7303_v27 = vmul.f32 %v7019_v56, %v1371_v57 }
 0x176   :  { %11612 = vst [vmem:[#allocation53_spill] sm:$0xff] %v7275_v59  ;;  %11616 = vst [vmem:[#allocation22_spill] sm:$0xff] %v7281_v1  ;;  %v11619_v51 = vld [vmem:[#allocation31_spill] sm:$0xff]  ;;  %v7290_v44 = vadd.f32 %v1272_v26, %v11621_v60  ;;  %v7293_v61 = vadd.f32 %v1273_v36, %v11623_v38  ;;  %v1608_v63 = vld [vmem:[#allocation2 + $0x259] sm:$0xff] }
 0x177   :  { %11618 = vst [vmem:[#allocation56_spill] sm:$0xff] %v7284_v52  ;;  %v7287_v21 = vadd.f32 %v1271_v6, %v11619_v51  ;;  %v1609_v49 = vld [vmem:[#allocation2 + $0x261] sm:$0xff]  ;;  %v1610_v2 = vld [vmem:[#allocation2 + $0x271] sm:$0xff]  ;;  %11628 = vst [vmem:[#allocation27_spill] sm:$0xff] %v7303_v27  ;;  %v7306_v6 = vmul.f32 %v7019_v56, %v1372_v20 }
 0x178   :  { %11622 = vst [vmem:[#allocation24_spill] sm:$0xff] %v7290_v44  ;;  %11624 = vst [vmem:[#allocation25_spill] sm:$0xff] %v7293_v61  ;;  %v11625_v14 = vld [vmem:[#allocation9_spill] sm:$0xff]  ;;  %v11626_v33 = vld [vmem:[#allocation16_spill] sm:$0xff]  ;;  %v7313_v61 = vmul.f32 %v7019_v56, %v1373_v31 }
 0x179   :  { %11620 = vst [vmem:[#allocation23_spill] sm:$0xff] %v7287_v21  ;;  %v7297_v1 = vrot.slane %v11626_v33, %v11625_v14  ;;  %11629 = vst [vmem:[#allocation28_spill] sm:$0xff] %v7306_v6  ;;  %v1611_v26 = vld [vmem:[#allocation2 + $0x279] sm:$0xff]  ;;  %v1612_v60 = vld [vmem:[#allocation2 + $0x289] sm:$0xff]  ;;  %v7316_v14 = vmul.f32 %v7019_v56, %v1374_v25 }
 0x17a   :  { %v1613_v36 = vld [vmem:[#allocation2 + $0x291] sm:$0xff]  ;;  %v11630_v51 = vld [vmem:[#allocation6_spill] sm:$0xff]  ;;  %11632 = vst [vmem:[#allocation30_spill] sm:$0xff] %v7313_v61  ;;  %v1615_v44 = vld [vmem:[#allocation2 + $0x2a9] sm:$0xff] }
 0x17b   :  { %11627 = vst [vmem:[#allocation26_spill] sm:$0xff] %v7297_v1  ;;  %v7310_v38 = vrot.slane %v11626_v33, %v11630_v51  ;;  %11633 = vst [vmem:[#allocation31_spill] sm:$0xff] %v7316_v14  ;;  %v1614_v53 = vld [vmem:[#allocation2 + $0x2a1] sm:$0xff]  ;;  %v1616_v57 = vld [vmem:[#allocation2 + $0x2b9] sm:$0xff]  ;;  %v1667_v21 = vmul.f32 %v7297_v1, %v1599_v37  ;;  %v1668_v20 = vmul.f32 %v7297_v1, %v1600_v28 }
 0x17c   :  { %v1617_v52 = vld [vmem:[#allocation2 + $0x2c1] sm:$0xff]  ;;  %v1618_v59 = vld [vmem:[#allocation2 + $0x2d1] sm:$0xff]  ;;  %v1619_v34 = vld [vmem:[#allocation2 + $0x2d9] sm:$0xff]  ;;  %v1669_v40 = vmul.f32 %v7297_v1, %v1601_v41  ;;  %v1670_v33 = vmul.f32 %v7297_v1, %v1602_v13  ;;  %v1671_v31 = vmul.f32 %v7297_v1, %v1603_v19  ;;  %v1672_v51 = vmul.f32 %v7297_v1, %v1604_v22 }
 0x17d   :  { %11631 = vst [vmem:[#allocation29_spill] sm:$0xff] %v7310_v38  ;;  %v1620_v25 = vld [vmem:[#allocation2 + $0x2e9] sm:$0xff]  ;;  %v1621_v23 = vld [vmem:[#allocation2 + $0x2f1] sm:$0xff]  ;;  %v1622_v38 = vld [vmem:[#allocation2 + $0x301] sm:$0xff]  ;;  %v1673_v11 = vmul.f32 %v7297_v1, %v1605_v58  ;;  %v1674_v37 = vmul.f32 %v7297_v1, %v1606_v24  ;;  %v1675_v28 = vmul.f32 %v7297_v1, %v1607_v3  ;;  %v1676_v54 = vmul.f32 %v7297_v1, %v1608_v63 }
 0x17e   :  { %v1623_v29 = vld [vmem:[#allocation2 + $0x309] sm:$0xff]  ;;  %v1624_v0 = vld [vmem:[#allocation2 + $0x319] sm:$0xff]  ;;  %v1625_v41 = vld [vmem:[#allocation2 + $0x321] sm:$0xff]  ;;  %v1677_v13 = vmul.f32 %v7297_v1, %v1609_v49  ;;  %v1678_v19 = vmul.f32 %v7297_v1, %v1610_v2  ;;  %v1679_v22 = vmul.f32 %v7297_v1, %v1611_v26  ;;  %v1680_v43 = vmul.f32 %v7297_v1, %v1612_v60 }
 0x17f   :  { %v1626_v8 = vld [vmem:[#allocation2 + $0x331] sm:$0xff]  ;;  %v1627_v14 = vld [vmem:[#allocation2 + $0x339] sm:$0xff]  ;;  %v1628_v58 = vld [vmem:[#allocation2 + $0x349] sm:$0xff]  ;;  %v1681_v24 = vmul.f32 %v7297_v1, %v1613_v36  ;;  %v1682_v3 = vmul.f32 %v7297_v1, %v1614_v53  ;;  %v1683_v63 = vmul.f32 %v7297_v1, %v1615_v44  ;;  %v1684_v61 = vmul.f32 %v7297_v1, %v1616_v57 }
 0x180   :  { %v1629_v6 = vld [vmem:[#allocation2 + $0x351] sm:$0xff]  ;;  %v1685_v49 = vmul.f32 %v7297_v1, %v1617_v52  ;;  %v1686_v2 = vmul.f32 %v7297_v1, %v1618_v59  ;;  %v1687_v26 = vmul.f32 %v7297_v1, %v1619_v34  ;;  %v1688_v60 = vmul.f32 %v7297_v1, %v1620_v25 }
 0x181   :  { %v1689_v50 = vmul.f32 %v7297_v1, %v1621_v23  ;;  %v1690_v27 = vmul.f32 %v7297_v1, %v1622_v38  ;;  %v1691_v36 = vmul.f32 %v7297_v1, %v1623_v29  ;;  %v1692_v53 = vmul.f32 %v7297_v1, %v1624_v0 }
 0x182   :  { %v1693_v44 = vmul.f32 %v7297_v1, %v1625_v41  ;;  %v1694_v57 = vmul.f32 %v7297_v1, %v1626_v8  ;;  %v1695_v52 = vmul.f32 %v7297_v1, %v1627_v14  ;;  %v1696_v59 = vmul.f32 %v7297_v1, %v1628_v58  ;;  %v11652_v58 = vld [vmem:[#allocation45_spill] sm:$0xff] }
 0x183   :  { %v1697_v34 = vmul.f32 %v7297_v1, %v1629_v6  ;;  %v7350_v25 = vadd.f32 %v1667_v21, %v7071_v32  ;;  %v7353_v23 = vadd.f32 %v1668_v20, %v7074_v16  ;;  %v7356_v29 = vadd.f32 %v1669_v40, %v7077_v9  ;;  %v1376_v40 = vld [vmem:[#allocation2 + $0x78] sm:$0xff]  ;;  %v1377_v21 = vld [vmem:[#allocation2 + $0x80] sm:$0xff]  ;;  %v1383_v20 = vld [vmem:[#allocation2 + $0xc8] sm:$0xff] }
 0x184   :  { %v7359_v0 = vadd.f32 %v1670_v33, %v7080_v48  ;;  %v7362_v8 = vadd.f32 %v1671_v31, %v7083_v30  ;;  %v7365_v38 = vadd.f32 %v1672_v51, %v7086_v47  ;;  %v7368_v6 = vadd.f32 %v1673_v11, %v7089_v5  ;;  %v1375_v30 = vld [vmem:[#allocation2 + $0x68] sm:$0xff]  ;;  %v11640_v33 = vld [vmem:[#allocation40_spill] sm:$0xff] }
 0x185   :  { %v7371_v32 = vadd.f32 %v1674_v37, %v7092_v35  ;;  %v7374_v16 = vadd.f32 %v1675_v28, %v7095_v7  ;;  %v7377_v9 = vadd.f32 %v1676_v54, %v7098_v39  ;;  %v7380_v48 = vadd.f32 %v1677_v13, %v7101_v4  ;;  %v1378_v39 = vld [vmem:[#allocation2 + $0x90] sm:$0xff]  ;;  %v1379_v54 = vld [vmem:[#allocation2 + $0x98] sm:$0xff]  ;;  %v1380_v11 = vld [vmem:[#allocation2 + $0xa8] sm:$0xff] }
 0x186   :  { %v7383_v47 = vadd.f32 %v1678_v19, %v7104_v10  ;;  %v7386_v5 = vadd.f32 %v1679_v22, %v7107_v17  ;;  %v7389_v35 = vadd.f32 %v1680_v43, %v7110_v46  ;;  %v7392_v7 = vadd.f32 %v1681_v24, %v7113_v45  ;;  %v1381_v46 = vld [vmem:[#allocation2 + $0xb0] sm:$0xff]  ;;  %v1382_v43 = vld [vmem:[#allocation2 + $0xc0] sm:$0xff]  ;;  %v11648_v13 = vld [vmem:[#allocation43_spill] sm:$0xff] }
 0x187   :  { %v7395_v4 = vadd.f32 %v1682_v3, %v7116_v42  ;;  %v7398_v14 = vadd.f32 %v1683_v63, %v7119_v55  ;;  %v7401_v10 = vadd.f32 %v1684_v61, %v7122_v18  ;;  %v7404_v17 = vadd.f32 %v1685_v49, %v7125_v62  ;;  %v11642_v42 = vld [vmem:[#allocation8_spill] sm:$0xff]  ;;  %v11644_v55 = vld [vmem:[#allocation41_spill] sm:$0xff]  ;;  %v1385_v61 = vld [vmem:[#allocation2 + $0xe0] sm:$0xff] }
 0x188   :  { %11634 = vst [vmem:[#allocation32_spill] sm:$0xff] %v7392_v7  ;;  %v7407_v45 = vadd.f32 %v1686_v2, %v7128_v12  ;;  %v7410_v31 = vadd.f32 %v1687_v26, %v11640_v33  ;;  %v7413_v51 = vadd.f32 %v1688_v60, %v11642_v42  ;;  %v7416_v37 = vadd.f32 %v1689_v50, %v11644_v55  ;;  %v1384_v18 = vld [vmem:[#allocation2 + $0xd8] sm:$0xff]  ;;  %v1386_v28 = vld [vmem:[#allocation2 + $0xf0] sm:$0xff]  ;;  %v11646_v62 = vld [vmem:[#allocation42_spill] sm:$0xff] }
 0x189   :  { %11635 = vst [vmem:[#allocation33_spill] sm:$0xff] %v7395_v4  ;;  %11636 = vst [vmem:[#allocation9_spill] sm:$0xff] %v7398_v14  ;;  %v7419_v41 = vadd.f32 %v1690_v27, %v11646_v62  ;;  %v7422_v19 = vadd.f32 %v1691_v36, %v11648_v13  ;;  %v11650_v12 = vld [vmem:[#allocation44_spill] sm:$0xff]  ;;  %v7428_v24 = vadd.f32 %v1693_v44, %v11652_v58  ;;  %v1387_v3 = vld [vmem:[#allocation2 + $0xf8] sm:$0xff] }
 0x18a   :  { %11637 = vst [vmem:[#allocation16_spill] sm:$0xff] %v7401_v10  ;;  %11638 = vst [vmem:[#allocation6_spill] sm:$0xff] %v7404_v17  ;;  %v7425_v22 = vadd.f32 %v1692_v53, %v11650_v12  ;;  %v1388_v63 = vld [vmem:[#allocation2 + $0x108] sm:$0xff]  ;;  %v1389_v49 = vld [vmem:[#allocation2 + $0x110] sm:$0xff]  ;;  %v1443_v44 = vmul.f32 %v7019_v56, %v1375_v30  ;;  %v1444_v13 = vmul.f32 %v7019_v56, %v1376_v40 }
 0x18b   :  { %11639 = vst [vmem:[#allocation61_spill] sm:$0xff] %v7407_v45  ;;  %11641 = vst [vmem:[#allocation40_spill] sm:$0xff] %v7410_v31  ;;  %v11654_v50 = vld [vmem:[#allocation46_spill] sm:$0xff]  ;;  %v11656_v26 = vld [vmem:[#allocation36_spill] sm:$0xff]  ;;  %v7445_v12 = vmul.f32 %v7019_v56, %v1377_v21  ;;  %v7460_v30 = vmul.f32 %v7019_v56, %v1382_v43  ;;  %v7475_v43 = vmul.f32 %v7019_v56, %v1387_v3 }
 0x18c   :  { %11643 = vst [vmem:[#allocation8_spill] sm:$0xff] %v7413_v51  ;;  %11645 = vst [vmem:[#allocation41_spill] sm:$0xff] %v7416_v37  ;;  %v7431_v2 = vadd.f32 %v1694_v57, %v11654_v50  ;;  %v7434_v60 = vadd.f32 %v1695_v52, %v11656_v26  ;;  %v11658_v27 = vld [vmem:[#allocation47_spill] sm:$0xff]  ;;  %v11660_v36 = vld [vmem:[#allocation48_spill] sm:$0xff]  ;;  %v7448_v57 = vmul.f32 %v7019_v56, %v1378_v39 }
 0x18d   :  { %11647 = vst [vmem:[#allocation42_spill] sm:$0xff] %v7419_v41  ;;  %11649 = vst [vmem:[#allocation43_spill] sm:$0xff] %v7422_v19  ;;  %v7437_v33 = vadd.f32 %v1696_v59, %v11658_v27  ;;  %v7440_v42 = vadd.f32 %v1697_v34, %v11660_v36  ;;  %v1390_v53 = vld [vmem:[#allocation2 + $0x120] sm:$0xff]  ;;  %v1391_v55 = vld [vmem:[#allocation2 + $0x128] sm:$0xff]  ;;  %v7451_v50 = vmul.f32 %v7019_v56, %v1379_v54 }
 0x18e   :  { %11651 = vst [vmem:[#allocation44_spill] sm:$0xff] %v7425_v22  ;;  %11653 = vst [vmem:[#allocation45_spill] sm:$0xff] %v7428_v24  ;;  %v1392_v62 = vld [vmem:[#allocation2 + $0x138] sm:$0xff]  ;;  %v1393_v52 = vld [vmem:[#allocation2 + $0x140] sm:$0xff]  ;;  %v7454_v34 = vmul.f32 %v7019_v56, %v1380_v11  ;;  %v7457_v26 = vmul.f32 %v7019_v56, %v1381_v46  ;;  %v7463_v39 = vmul.f32 %v7019_v56, %v1383_v20 }
 0x18f   :  { %11655 = vst [vmem:[#allocation46_spill] sm:$0xff] %v7431_v2  ;;  %11657 = vst [vmem:[#allocation36_spill] sm:$0xff] %v7434_v60  ;;  %v1394_v58 = vld [vmem:[#allocation2 + $0x150] sm:$0xff]  ;;  %v1395_v59 = vld [vmem:[#allocation2 + $0x158] sm:$0xff]  ;;  %v7466_v36 = vmul.f32 %v7019_v56, %v1384_v18  ;;  %v7469_v54 = vmul.f32 %v7019_v56, %v1385_v61  ;;  %v7472_v11 = vmul.f32 %v7019_v56, %v1386_v28 }
 0x190   :  { %11659 = vst [vmem:[#allocation47_spill] sm:$0xff] %v7437_v33  ;;  %11661 = vst [vmem:[#allocation48_spill] sm:$0xff] %v7440_v42  ;;  %v1396_v40 = vld [vmem:[#allocation2 + $0x168] sm:$0xff]  ;;  %v1397_v21 = vld [vmem:[#allocation2 + $0x170] sm:$0xff]  ;;  %v7481_v20 = vmul.f32 %v7019_v56, %v1389_v49  ;;  %v7484_v18 = vmul.f32 %v7019_v56, %v1390_v53  ;;  %v7487_v61 = vmul.f32 %v7019_v56, %v1391_v55 }
 0x191   :  { %11662 = vst [vmem:[#allocation62_spill] sm:$0xff] %v7457_v26  ;;  %11663 = vst [vmem:[#allocation63_spill] sm:$0xff] %v7460_v30  ;;  %v1398_v27 = vld [vmem:[#allocation2 + $0x180] sm:$0xff]  ;;  %v1399_v46 = vld [vmem:[#allocation2 + $0x188] sm:$0xff]  ;;  %v7478_v30 = vmul.f32 %v7019_v56, %v1388_v63  ;;  %v7490_v28 = vmul.f32 %v7019_v56, %v1392_v62  ;;  %v7496_v3 = vmul.f32 %v7019_v56, %v1394_v58 }
 0x192   :  { %11664 = vst [vmem:[#allocation64_spill] sm:$0xff] %v7463_v39  ;;  %11665 = vst [vmem:[#allocation65_spill] sm:$0xff] %v7466_v36  ;;  %v1400_v26 = vld [vmem:[#allocation2 + $0x198] sm:$0xff]  ;;  %v7502_v49 = vmul.f32 %v7019_v56, %v1396_v40  ;;  %v7505_v53 = vmul.f32 %v7019_v56, %v1397_v21  ;;  %v7508_v55 = vmul.f32 %v7019_v56, %v1398_v27  ;;  %v11683_v40 = vld [vmem:[#allocation50_spill] sm:$0xff] }
 0x193   :  { %11666 = vst [vmem:[#allocation66_spill] sm:$0xff] %v7469_v54  ;;  %11667 = vst [vmem:[#allocation67_spill] sm:$0xff] %v7472_v11  ;;  %v7493_v11 = vmul.f32 %v7019_v56, %v1393_v52  ;;  %v1566_v63 = vld [vmem:[#allocation2 + $0x31] sm:$0xff]  ;;  %v1567_v62 = vld [vmem:[#allocation2 + $0x39] sm:$0xff]  ;;  %v7514_v58 = vmul.f32 %v7019_v56, %v1400_v26 }
 0x194   :  { %11668 = vst [vmem:[#allocation68_spill] sm:$0xff] %v7475_v43  ;;  %11669 = vst [vmem:[#allocation69_spill] sm:$0xff] %v7478_v30  ;;  %v7499_v30 = vmul.f32 %v7019_v56, %v1395_v59  ;;  %v1569_v52 = vld [vmem:[#allocation2 + $0x51] sm:$0xff]  ;;  %v1570_v21 = vld [vmem:[#allocation2 + $0x61] sm:$0xff] }
 0x195   :  { %11670 = vst [vmem:[#allocation70_spill] sm:$0xff] %v7481_v20  ;;  %11671 = vst [vmem:[#allocation71_spill] sm:$0xff] %v7484_v18  ;;  %v11682_v59 = vld [vmem:[#allocation49_spill] sm:$0xff]  ;;  %v1401_v27 = vld [vmem:[#allocation2 + $0x1a0] sm:$0xff]  ;;  %v1637_v60 = vmul.f32 %v7297_v1, %v1569_v52 }
 0x196   :  { %11672 = vst [vmem:[#allocation72_spill] sm:$0xff] %v7487_v61  ;;  %11673 = vst [vmem:[#allocation73_spill] sm:$0xff] %v7490_v28  ;;  %v1568_v28 = vld [vmem:[#allocation2 + $0x49] sm:$0xff]  ;;  %v1572_v61 = vld [vmem:[#allocation2 + $0x79] sm:$0xff] }
 0x197   :  { %11674 = vst [vmem:[#allocation74_spill] sm:$0xff] %v7493_v11  ;;  %11675 = vst [vmem:[#allocation75_spill] sm:$0xff] %v7496_v3  ;;  %v7511_v11 = vmul.f32 %v7019_v56, %v1399_v46  ;;  %v11685_v18 = vld [vmem:[#allocation51_spill] sm:$0xff]  ;;  %v11686_v20 = vld [vmem:[#allocation28_spill] sm:$0xff]  ;;  %v1636_v33 = vmul.f32 %v7297_v1, %v1568_v28 }
 0x198   :  { %11676 = vst [vmem:[#allocation76_spill] sm:$0xff] %v7499_v30  ;;  %11677 = vst [vmem:[#allocation77_spill] sm:$0xff] %v7502_v49  ;;  %v1502_v30 = vadd.f32 %v7300_v15, %v11682_v59  ;;  %v11684_v49 = vld [vmem:[#allocation27_spill] sm:$0xff]  ;;  %v1504_v43 = vadd.f32 %v11686_v20, %v11685_v18  ;;  %v11687_v54 = vld [vmem:[#allocation21_spill] sm:$0xff] }
 0x199   :  { %11678 = vst [vmem:[#allocation78_spill] sm:$0xff] %v7505_v53  ;;  %11679 = vst [vmem:[#allocation79_spill] sm:$0xff] %v7508_v55  ;;  %v1503_v3 = vadd.f32 %v11684_v49, %v11683_v40  ;;  %v1571_v53 = vld [vmem:[#allocation2 + $0x69] sm:$0xff]  ;;  %v1402_v55 = vld [vmem:[#allocation2 + $0x1e0] sm:$0xff]  ;;  %v1634_v49 = vmul.f32 %v7297_v1, %v1566_v63  ;;  %v1635_v40 = vmul.f32 %v7297_v1, %v1567_v62 }
 0x19a   :  { %11680 = vst [vmem:[#allocation80_spill] sm:$0xff] %v7511_v11  ;;  %11681 = vst [vmem:[#allocation81_spill] sm:$0xff] %v7514_v58  ;;  %v11688_v46 = vld [vmem:[#allocation30_spill] sm:$0xff]  ;;  %v11690_v26 = vld [vmem:[#allocation31_spill] sm:$0xff]  ;;  %v7536_v63 = vmul.f32 %v7019_v56, %v1401_v27  ;;  %v7539_v28 = vmul.f32 %v7019_v56, %v1402_v55 }
 0x19b   :  { %v1505_v11 = vadd.f32 %v11688_v46, %v11687_v54  ;;  %v11689_v36 = vld [vmem:[#allocation54_spill] sm:$0xff]  ;;  %v11691_v39 = vld [vmem:[#allocation7_spill] sm:$0xff]  ;;  %v1574_v59 = vld [vmem:[#allocation2 + $0x91] sm:$0xff]  ;;  %v1638_v54 = vmul.f32 %v7297_v1, %v1570_v21  ;;  %v1639_v46 = vmul.f32 %v7297_v1, %v1571_v53 }
 0x19c   :  { %v1506_v58 = vadd.f32 %v11690_v26, %v11689_v36  ;;  %v1507_v42 = vadd.f32 %v1443_v44, %v11691_v39  ;;  %v1573_v15 = vld [vmem:[#allocation2 + $0x81] sm:$0xff]  ;;  %v1762_v2 = vld [vmem:[#allocation2 + $0x32] sm:$0xff]  ;;  %v1640_v36 = vmul.f32 %v7297_v1, %v1572_v61  ;;  %v1764_v39 = vld [vmem:[#allocation2 + $0x4a] sm:$0xff]  ;;  %11693 = vst [vmem:[#allocation49_spill] sm:$0xff] %v7536_v63  ;;  %v7563_v63 = vadd.f32 %v1634_v49, %v1502_v30 }
 0x19d   :  { %v11692_v20 = vld [vmem:[#allocation34_spill] sm:$0xff]  ;;  %v1765_v26 = vld [vmem:[#allocation2 + $0x52] sm:$0xff]  ;;  %11694 = vst [vmem:[#allocation50_spill] sm:$0xff] %v7539_v28  ;;  %v1767_v53 = vld [vmem:[#allocation2 + $0x6a] sm:$0xff]  ;;  %v7558_v55 = vmul.f32 %v7297_v1, %v1573_v15 }
 0x19e   :  { %v1508_v18 = vadd.f32 %v1444_v13, %v11692_v20  ;;  %v1763_v44 = vld [vmem:[#allocation2 + $0x3a] sm:$0xff]  ;;  %v1766_v24 = vld [vmem:[#allocation2 + $0x62] sm:$0xff]  ;;  %v1795_v20 = vld [vmem:[#allocation2 + $0x1ea] sm:$0xff]  ;;  %v7571_v15 = vadd.f32 %v1638_v54, %v1506_v58 }
 0x19f   :  { %v11695_v62 = vld [vmem:[#allocation58_spill] sm:$0xff]  ;;  %v11697_v13 = vld [vmem:[#allocation35_spill] sm:$0xff]  ;;  %v11701_v27 = vld [vmem:[#allocation37_spill] sm:$0xff]  ;;  %11703 = vst [vmem:[#allocation30_spill] sm:$0xff] %v7558_v55 }
 0x1a0   :  { %v7543_v52 = vadd.f32 %v7445_v12, %v11695_v62  ;;  %v7547_v21 = vadd.f32 %v7448_v57, %v11697_v13  ;;  %v1768_v61 = vld [vmem:[#allocation2 + $0x7a] sm:$0xff]  ;;  %v11699_v19 = vld [vmem:[#allocation59_spill] sm:$0xff]  ;;  %v7555_v56 = vadd.f32 %v7454_v34, %v11701_v27  ;;  %v7561_v12 = vmul.f32 %v7297_v1, %v1574_v59  ;;  %v1798_v62 = vld [vmem:[#allocation2 + $0x212] sm:$0xff]  ;;  %11705 = vst [vmem:[#allocation31_spill] sm:$0xff] %v7571_v15 }
 0x1a1   :  { %v1796_v22 = vld [vmem:[#allocation2 + $0x1fa] sm:$0xff]  ;;  %v7551_v41 = vadd.f32 %v7451_v50, %v11699_v19  ;;  %v1797_v57 = vld [vmem:[#allocation2 + $0x202] sm:$0xff]  ;;  %v1800_v28 = vld [vmem:[#allocation2 + $0x22a] sm:$0xff]  ;;  %v7567_v19 = vadd.f32 %v1636_v33, %v1504_v43  ;;  %v7569_v50 = vadd.f32 %v1637_v60, %v1505_v11  ;;  %v7575_v59 = vadd.f32 %v1640_v36, %v1508_v18 }
 0x1a2   :  { %11696 = vst [vmem:[#allocation27_spill] sm:$0xff] %v7543_v52  ;;  %11698 = vst [vmem:[#allocation51_spill] sm:$0xff] %v7547_v21  ;;  %v1799_v13 = vld [vmem:[#allocation2 + $0x21a] sm:$0xff]  ;;  %v7565_v21 = vadd.f32 %v1635_v40, %v1503_v3  ;;  %v1801_v34 = vld [vmem:[#allocation2 + $0x232] sm:$0xff] }
 0x1a3   :  { %11700 = vst [vmem:[#allocation28_spill] sm:$0xff] %v7551_v41  ;;  %11702 = vst [vmem:[#allocation21_spill] sm:$0xff] %v7555_v56  ;;  %v1802_v27 = vld [vmem:[#allocation2 + $0x242] sm:$0xff]  ;;  %v1803_v56 = vld [vmem:[#allocation2 + $0x24a] sm:$0xff]  ;;  %v7573_v41 = vadd.f32 %v1639_v46, %v1507_v42 }
 0x1a4   :  { %11704 = vst [vmem:[#allocation54_spill] sm:$0xff] %v7561_v12  ;;  %11707 = vst [vmem:[#allocation34_spill] sm:$0xff] %v7575_v59  ;;  %v1804_v12 = vld [vmem:[#allocation2 + $0x25a] sm:$0xff]  ;;  %v1805_v55 = vld [vmem:[#allocation2 + $0x262] sm:$0xff] }
 0x1a5   :  { %11706 = vst [vmem:[#allocation7_spill] sm:$0xff] %v7573_v41  ;;  %v1806_v52 = vld [vmem:[#allocation2 + $0x272] sm:$0xff]  ;;  %v1807_v3 = vld [vmem:[#allocation2 + $0x27a] sm:$0xff]  ;;  %v1808_v40 = vld [vmem:[#allocation2 + $0x28a] sm:$0xff] }
 0x1a6   :  { %v11708_v30 = vld [vmem:[#allocation29_spill] sm:$0xff]  ;;  %v1810_v42 = vld [vmem:[#allocation2 + $0x2a2] sm:$0xff]  ;;  %v1811_v18 = vld [vmem:[#allocation2 + $0x2aa] sm:$0xff] }
 0x1a7   :  { %v1830_v49 = vmul.f32 %v11708_v30, %v1762_v2  ;;  %v1809_v33 = vld [vmem:[#allocation2 + $0x292] sm:$0xff]  ;;  %v1831_v60 = vmul.f32 %v11708_v30, %v1763_v44  ;;  %v1832_v11 = vmul.f32 %v11708_v30, %v1764_v39  ;;  %v1833_v43 = vmul.f32 %v11708_v30, %v1765_v26  ;;  %v1812_v54 = vld [vmem:[#allocation2 + $0x2ba] sm:$0xff]  ;;  %v1813_v59 = vld [vmem:[#allocation2 + $0x2c2] sm:$0xff] }
 0x1a8   :  { %v7582_v58 = vmul.f32 %v11708_v30, %v1766_v24  ;;  %v7585_v46 = vmul.f32 %v11708_v30, %v1767_v53  ;;  %v7588_v2 = vmul.f32 %v11708_v30, %v1768_v61  ;;  %v1863_v36 = vmul.f32 %v11708_v30, %v1795_v20  ;;  %v1814_v39 = vld [vmem:[#allocation2 + $0x2d2] sm:$0xff]  ;;  %v1815_v41 = vld [vmem:[#allocation2 + $0x2da] sm:$0xff]  ;;  %v1816_v53 = vld [vmem:[#allocation2 + $0x2ea] sm:$0xff] }
 0x1a9   :  { %v1864_v44 = vmul.f32 %v11708_v30, %v1796_v22  ;;  %v1865_v26 = vmul.f32 %v11708_v30, %v1797_v57  ;;  %v1866_v24 = vmul.f32 %v11708_v30, %v1798_v62  ;;  %v1867_v1 = vmul.f32 %v11708_v30, %v1799_v13  ;;  %v1818_v15 = vld [vmem:[#allocation2 + $0x302] sm:$0xff]  ;;  %v1819_v37 = vld [vmem:[#allocation2 + $0x30a] sm:$0xff]  ;;  %v1820_v51 = vld [vmem:[#allocation2 + $0x31a] sm:$0xff] }
 0x1aa   :  { %11709 = vst [vmem:[#allocation58_spill] sm:$0xff] %v7582_v58  ;;  %11710 = vst [vmem:[#allocation35_spill] sm:$0xff] %v7585_v46  ;;  %v1868_v58 = vmul.f32 %v11708_v30, %v1800_v28  ;;  %v1817_v46 = vld [vmem:[#allocation2 + $0x2f2] sm:$0xff]  ;;  %v1869_v61 = vmul.f32 %v11708_v30, %v1801_v34  ;;  %v1870_v20 = vmul.f32 %v11708_v30, %v1802_v27  ;;  %v1821_v57 = vld [vmem:[#allocation2 + $0x322] sm:$0xff] }
 0x1ab   :  { %11711 = vst [vmem:[#allocation59_spill] sm:$0xff] %v7588_v2  ;;  %v1871_v22 = vmul.f32 %v11708_v30, %v1803_v56  ;;  %v1872_v2 = vmul.f32 %v11708_v30, %v1804_v12  ;;  %v1873_v62 = vmul.f32 %v11708_v30, %v1805_v55  ;;  %v1874_v13 = vmul.f32 %v11708_v30, %v1806_v52  ;;  %v1822_v45 = vld [vmem:[#allocation2 + $0x332] sm:$0xff]  ;;  %v1823_v17 = vld [vmem:[#allocation2 + $0x33a] sm:$0xff]  ;;  %v1824_v34 = vld [vmem:[#allocation2 + $0x34a] sm:$0xff] }
 0x1ac   :  { %v1875_v28 = vmul.f32 %v11708_v30, %v1807_v3  ;;  %v1876_v31 = vmul.f32 %v11708_v30, %v1808_v40  ;;  %v1877_v27 = vmul.f32 %v11708_v30, %v1809_v33  ;;  %v1878_v56 = vmul.f32 %v11708_v30, %v1810_v42  ;;  %v1825_v14 = vld [vmem:[#allocation2 + $0x352] sm:$0xff] }
 0x1ad   :  { %v1879_v12 = vmul.f32 %v11708_v30, %v1811_v18  ;;  %v1880_v10 = vmul.f32 %v11708_v30, %v1812_v54  ;;  %v1881_v55 = vmul.f32 %v11708_v30, %v1813_v59  ;;  %v1882_v52 = vmul.f32 %v11708_v30, %v1814_v39 }
 0x1ae   :  { %v1883_v3 = vmul.f32 %v11708_v30, %v1815_v41  ;;  %v1884_v40 = vmul.f32 %v11708_v30, %v1816_v53  ;;  %v1885_v4 = vmul.f32 %v11708_v30, %v1817_v46  ;;  %v1886_v7 = vmul.f32 %v11708_v30, %v1818_v15 }
 0x1af   :  { %v1887_v33 = vmul.f32 %v11708_v30, %v1819_v37  ;;  %v1888_v42 = vmul.f32 %v11708_v30, %v1820_v51  ;;  %v1889_v18 = vmul.f32 %v11708_v30, %v1821_v57  ;;  %v1890_v54 = vmul.f32 %v11708_v30, %v1822_v45 }
 0x1b0   :  { %v1891_v59 = vmul.f32 %v11708_v30, %v1823_v17  ;;  %v1892_v39 = vmul.f32 %v11708_v30, %v1824_v34  ;;  %v1893_v41 = vmul.f32 %v11708_v30, %v1825_v14  ;;  %v7622_v53 = vadd.f32 %v1830_v49, %v7563_v63  ;;  %v11752_v34 = vld [vmem:[#allocation46_spill] sm:$0xff] }
 0x1b1   :  { %v7625_v46 = vadd.f32 %v1831_v60, %v7565_v21  ;;  %v7628_v37 = vadd.f32 %v1832_v11, %v7567_v19  ;;  %v7631_v51 = vadd.f32 %v1833_v43, %v7569_v50  ;;  %v7634_v45 = vadd.f32 %v1863_v36, %v7350_v25  ;;  %v11742_v36 = vld [vmem:[#allocation41_spill] sm:$0xff] }
 0x1b2   :  { %v7637_v17 = vadd.f32 %v1864_v44, %v7353_v23  ;;  %v7640_v14 = vadd.f32 %v1865_v26, %v7356_v29  ;;  %v7643_v63 = vadd.f32 %v1866_v24, %v7359_v0  ;;  %v7646_v21 = vadd.f32 %v1867_v1, %v7362_v8  ;;  %v1575_v26 = vld [vmem:[#allocation2 + $0x99] sm:$0xff] }
 0x1b3   :  { %11712 = vst [vmem:[#allocation37_spill] sm:$0xff] %v7634_v45  ;;  %v7649_v19 = vadd.f32 %v1868_v58, %v7365_v38  ;;  %v7652_v50 = vadd.f32 %v1869_v61, %v7368_v6  ;;  %v7655_v25 = vadd.f32 %v1870_v20, %v7371_v32  ;;  %v7658_v23 = vadd.f32 %v1871_v22, %v7374_v16  ;;  %v11726_v6 = vld [vmem:[#allocation32_spill] sm:$0xff]  ;;  %v11728_v16 = vld [vmem:[#allocation33_spill] sm:$0xff]  ;;  %v11744_v24 = vld [vmem:[#allocation42_spill] sm:$0xff] }
 0x1b4   :  { %11713 = vst [vmem:[#allocation29_spill] sm:$0xff] %v7637_v17  ;;  %11714 = vst [vmem:[#allocation82_spill] sm:$0xff] %v7640_v14  ;;  %v7661_v29 = vadd.f32 %v1872_v2, %v7377_v9  ;;  %v7664_v0 = vadd.f32 %v1873_v62, %v7380_v48  ;;  %v7667_v1 = vadd.f32 %v1874_v13, %v7383_v47  ;;  %v11730_v9 = vld [vmem:[#allocation9_spill] sm:$0xff]  ;;  %v11732_v48 = vld [vmem:[#allocation16_spill] sm:$0xff] }
 0x1b5   :  { %11715 = vst [vmem:[#allocation83_spill] sm:$0xff] %v7643_v63  ;;  %11716 = vst [vmem:[#allocation84_spill] sm:$0xff] %v7646_v21  ;;  %v7670_v8 = vadd.f32 %v1875_v28, %v7386_v5  ;;  %v7673_v38 = vadd.f32 %v1876_v31, %v7389_v35  ;;  %v7676_v32 = vadd.f32 %v1877_v27, %v11726_v6  ;;  %v11734_v47 = vld [vmem:[#allocation6_spill] sm:$0xff]  ;;  %v11736_v5 = vld [vmem:[#allocation61_spill] sm:$0xff] }
 0x1b6   :  { %11717 = vst [vmem:[#allocation85_spill] sm:$0xff] %v7649_v19  ;;  %11718 = vst [vmem:[#allocation86_spill] sm:$0xff] %v7652_v50  ;;  %v7679_v15 = vadd.f32 %v1878_v56, %v11728_v16  ;;  %v7682_v49 = vadd.f32 %v1879_v12, %v11730_v9  ;;  %v7685_v60 = vadd.f32 %v1880_v10, %v11732_v48  ;;  %v11738_v35 = vld [vmem:[#allocation40_spill] sm:$0xff]  ;;  %v11746_v10 = vld [vmem:[#allocation43_spill] sm:$0xff] }
 0x1b7   :  { %11719 = vst [vmem:[#allocation87_spill] sm:$0xff] %v7655_v25  ;;  %11720 = vst [vmem:[#allocation88_spill] sm:$0xff] %v7658_v23  ;;  %v7688_v11 = vadd.f32 %v1881_v55, %v11734_v47  ;;  %v7691_v43 = vadd.f32 %v1882_v52, %v11736_v5  ;;  %v7694_v31 = vadd.f32 %v1883_v3, %v11738_v35  ;;  %v11740_v58 = vld [vmem:[#allocation8_spill] sm:$0xff]  ;;  %v11750_v62 = vld [vmem:[#allocation45_spill] sm:$0xff] }
 0x1b8   :  { %11721 = vst [vmem:[#allocation89_spill] sm:$0xff] %v7661_v29  ;;  %11722 = vst [vmem:[#allocation90_spill] sm:$0xff] %v7664_v0  ;;  %v7697_v2 = vadd.f32 %v1884_v40, %v11740_v58  ;;  %v7700_v44 = vadd.f32 %v1885_v4, %v11742_v36  ;;  %v7703_v61 = vadd.f32 %v1886_v7, %v11744_v24  ;;  %v11748_v22 = vld [vmem:[#allocation44_spill] sm:$0xff]  ;;  %v1769_v28 = vld [vmem:[#allocation2 + $0x82] sm:$0xff] }
 0x1b9   :  { %11723 = vst [vmem:[#allocation91_spill] sm:$0xff] %v7667_v1  ;;  %11724 = vst [vmem:[#allocation92_spill] sm:$0xff] %v7670_v8  ;;  %v7706_v20 = vadd.f32 %v1887_v33, %v11746_v10  ;;  %v7709_v57 = vadd.f32 %v1888_v42, %v11748_v22  ;;  %v7712_v13 = vadd.f32 %v1889_v18, %v11750_v62  ;;  %v11754_v56 = vld [vmem:[#allocation36_spill] sm:$0xff]  ;;  %v11756_v12 = vld [vmem:[#allocation47_spill] sm:$0xff]  ;;  %v1958_v18 = vsel %vm15_vm0, %v7622_v53, 0.0 }
 0x1ba   :  { %11725 = vst [vmem:[#allocation93_spill] sm:$0xff] %v7673_v38  ;;  %11727 = vst [vmem:[#allocation32_spill] sm:$0xff] %v7676_v32  ;;  %v7715_v27 = vadd.f32 %v1890_v54, %v11752_v34  ;;  %v7718_v4 = vadd.f32 %v1891_v59, %v11754_v56  ;;  %v7721_v55 = vadd.f32 %v1892_v39, %v11756_v12  ;;  %v11758_v7 = vld [vmem:[#allocation48_spill] sm:$0xff]  ;;  %v11760_v40 = vld [vmem:[#allocation31_spill] sm:$0xff]  ;;  %v1959_v54 = vsel %vm15_vm0, %v7625_v46, 0.0 }
 0x1bb   :  { %11729 = vst [vmem:[#allocation33_spill] sm:$0xff] %v7679_v15  ;;  %11731 = vst [vmem:[#allocation9_spill] sm:$0xff] %v7682_v49  ;;  %v7724_v52 = vadd.f32 %v1893_v41, %v11758_v7  ;;  %v1576_v3 = vld [vmem:[#allocation2 + $0xa9] sm:$0xff]  ;;  %v11761_v33 = vld [vmem:[#allocation58_spill] sm:$0xff]  ;;  %v1961_v59 = vsel %vm15_vm0, %v7628_v37, 0.0  ;;  %v1960_v58 = vadd.f32 %v1959_v54, %v1958_v18  ;;  %v1837_v62 = vmul.f32 %v11708_v30, %v1769_v28 }
 0x1bc   :  { %11733 = vst [vmem:[#allocation16_spill] sm:$0xff] %v7685_v60  ;;  %11735 = vst [vmem:[#allocation6_spill] sm:$0xff] %v7688_v11  ;;  %v7728_v42 = vadd.f32 %v11761_v33, %v11760_v40  ;;  %v11762_v6 = vld [vmem:[#allocation60_spill] sm:$0xff]  ;;  %v11763_v39 = vld [vmem:[#allocation62_spill] sm:$0xff]  ;;  %v1963_v7 = vsel %vm15_vm0, %v7631_v51, 0.0 }
 0x1bd   :  { %11737 = vst [vmem:[#allocation61_spill] sm:$0xff] %v7691_v43  ;;  %11739 = vst [vmem:[#allocation40_spill] sm:$0xff] %v7694_v31  ;;  %v1513_v16 = vadd.f32 %v11763_v39, %v11762_v6  ;;  %v11764_v9 = vld [vmem:[#allocation38_spill] sm:$0xff]  ;;  %v11765_v41 = vld [vmem:[#allocation63_spill] sm:$0xff] }
 0x1be   :  { %11741 = vst [vmem:[#allocation8_spill] sm:$0xff] %v7697_v2  ;;  %11743 = vst [vmem:[#allocation41_spill] sm:$0xff] %v7700_v44  ;;  %v1514_v48 = vadd.f32 %v11765_v41, %v11764_v9  ;;  %v11766_v47 = vld [vmem:[#allocation26_spill] sm:$0xff]  ;;  %v1770_v35 = vld [vmem:[#allocation2 + $0x92] sm:$0xff]  ;;  %v1962_v41 = vadd.f32 %v1961_v59, %v1960_v58 }
 0x1bf   :  { %11745 = vst [vmem:[#allocation42_spill] sm:$0xff] %v7703_v61  ;;  %11747 = vst [vmem:[#allocation43_spill] sm:$0xff] %v7706_v20  ;;  %v1643_v5 = vmul.f32 %v11766_v47, %v1575_v26  ;;  %v1577_v36 = vld [vmem:[#allocation2 + $0xb1] sm:$0xff]  ;;  %v11767_v24 = vld [vmem:[#allocation27_spill] sm:$0xff]  ;;  %v1644_v18 = vmul.f32 %v11766_v47, %v1576_v3 }
 0x1c0   :  { %11749 = vst [vmem:[#allocation44_spill] sm:$0xff] %v7709_v57  ;;  %11751 = vst [vmem:[#allocation45_spill] sm:$0xff] %v7712_v13  ;;  %v11768_v10 = vld [vmem:[#allocation30_spill] sm:$0xff]  ;;  %v11769_v34 = vld [vmem:[#allocation7_spill] sm:$0xff]  ;;  %v1645_v58 = vmul.f32 %v11766_v47, %v1577_v36 }
 0x1c1   :  { %11753 = vst [vmem:[#allocation46_spill] sm:$0xff] %v7715_v27  ;;  %11755 = vst [vmem:[#allocation36_spill] sm:$0xff] %v7718_v4  ;;  %v1705_v22 = vadd.f32 %v11768_v10, %v11767_v24  ;;  %v11770_v56 = vld [vmem:[#allocation35_spill] sm:$0xff]  ;;  %v11771_v40 = vld [vmem:[#allocation57_spill] sm:$0xff] }
 0x1c2   :  { %11757 = vst [vmem:[#allocation47_spill] sm:$0xff] %v7721_v55  ;;  %11759 = vst [vmem:[#allocation48_spill] sm:$0xff] %v7724_v52  ;;  %v7746_v12 = vadd.f32 %v11770_v56, %v11769_v34  ;;  %v11772_v33 = vld [vmem:[#allocation64_spill] sm:$0xff]  ;;  %v11773_v39 = vld [vmem:[#allocation39_spill] sm:$0xff]  ;;  %v1838_v34 = vmul.f32 %v11708_v30, %v1770_v35 }
 0x1c3   :  { %v1515_v6 = vadd.f32 %v11772_v33, %v11771_v40  ;;  %v11774_v26 = vld [vmem:[#allocation65_spill] sm:$0xff]  ;;  %v1578_v24 = vld [vmem:[#allocation2 + $0xc1] sm:$0xff]  ;;  %v1965_v40 = vsel %vm15_vm0, %v7728_v42, 0.0  ;;  %v11779_v33 = vld [vmem:[#allocation12_spill] sm:$0xff] }
 0x1c4   :  { %v7754_v9 = vadd.f32 %v11774_v26, %v11773_v39  ;;  %v1771_v54 = vld [vmem:[#allocation2 + $0x9a] sm:$0xff]  ;;  %v11775_v28 = vld [vmem:[#allocation51_spill] sm:$0xff]  ;;  %v11783_v13 = vld [vmem:[#allocation28_spill] sm:$0xff]  ;;  %v1967_v20 = vsel %vm15_vm0, %v7746_v12, 0.0  ;;  %v1646_v36 = vmul.f32 %v11766_v47, %v1578_v24 }
 0x1c5   :  { %v11776_v10 = vld [vmem:[#allocation54_spill] sm:$0xff]  ;;  %v11778_v55 = vld [vmem:[#allocation59_spill] sm:$0xff]  ;;  %v11781_v3 = vld [vmem:[#allocation13_spill] sm:$0xff]  ;;  %v1707_v57 = vadd.f32 %v1643_v5, %v11783_v13 }
 0x1c6   :  { %v1706_v52 = vadd.f32 %v11776_v10, %v11775_v28  ;;  %v11777_v56 = vld [vmem:[#allocation34_spill] sm:$0xff]  ;;  %v11782_v27 = vld [vmem:[#allocation67_spill] sm:$0xff]  ;;  %v1964_v10 = vadd.f32 %v1963_v7, %v1962_v41  ;;  %v1773_v7 = vld [vmem:[#allocation2 + $0xb2] sm:$0xff] }
 0x1c7   :  { %v7762_v4 = vadd.f32 %v11778_v55, %v11777_v56  ;;  %v11780_v39 = vld [vmem:[#allocation66_spill] sm:$0xff]  ;;  %v7772_v59 = vadd.f32 %v11782_v27, %v11781_v3  ;;  %v1772_v28 = vld [vmem:[#allocation2 + $0xaa] sm:$0xff]  ;;  %v1839_v55 = vmul.f32 %v11708_v30, %v1771_v54  ;;  %v7777_v56 = vadd.f32 %v1837_v62, %v1705_v22  ;;  %v11787_v3 = vld [vmem:[#allocation69_spill] sm:$0xff] }
 0x1c8   :  { %v7768_v26 = vadd.f32 %v11780_v39, %v11779_v33  ;;  %v1579_v35 = vld [vmem:[#allocation2 + $0xc9] sm:$0xff]  ;;  %v11784_v33 = vld [vmem:[#allocation14_spill] sm:$0xff]  ;;  %v1966_v41 = vadd.f32 %v1965_v40, %v1964_v10  ;;  %v11788_v5 = vld [vmem:[#allocation21_spill] sm:$0xff]  ;;  %v1840_v22 = vmul.f32 %v11708_v30, %v1772_v28  ;;  %v7792_v62 = vadd.f32 %v1838_v34, %v1706_v52 }
 0x1c9   :  { %v11785_v39 = vld [vmem:[#allocation68_spill] sm:$0xff]  ;;  %v11786_v27 = vld [vmem:[#allocation15_spill] sm:$0xff]  ;;  %v1580_v13 = vld [vmem:[#allocation2 + $0xd9] sm:$0xff]  ;;  %v1708_v54 = vadd.f32 %v1644_v18, %v11788_v5  ;;  %v1969_v2 = vsel %vm15_vm0, %v7762_v4, 0.0  ;;  %v1647_v24 = vmul.f32 %v11766_v47, %v1579_v35  ;;  %v1709_v5 = vadd.f32 %v1645_v58, %v1513_v16 }
 0x1ca   :  { %v7783_v61 = vadd.f32 %v11785_v39, %v11784_v33  ;;  %v7787_v44 = vadd.f32 %v11787_v3, %v11786_v27  ;;  %v11789_v33 = vld [vmem:[#allocation17_spill] sm:$0xff]  ;;  %v11790_v39 = vld [vmem:[#allocation70_spill] sm:$0xff]  ;;  %v11792_v3 = vld [vmem:[#allocation71_spill] sm:$0xff]  ;;  %v1968_v10 = vadd.f32 %v1967_v20, %v1966_v41  ;;  %v1841_v52 = vmul.f32 %v11708_v30, %v1773_v7 }
 0x1cb   :  { %v7798_v31 = vadd.f32 %v11790_v39, %v11789_v33  ;;  %v11791_v27 = vld [vmem:[#allocation18_spill] sm:$0xff]  ;;  %v7806_v34 = vadd.f32 %v1839_v55, %v1707_v57  ;;  %v1971_v28 = vsel %vm15_vm0, %v7777_v56, 0.0  ;;  %v11793_v11 = vld [vmem:[#allocation11_spill] sm:$0xff]  ;;  %v11794_v33 = vld [vmem:[#allocation72_spill] sm:$0xff]  ;;  %v1648_v35 = vmul.f32 %v11766_v47, %v1580_v13 }
 0x1cc   :  { %v7802_v43 = vadd.f32 %v11792_v3, %v11791_v27  ;;  %v1774_v40 = vld [vmem:[#allocation2 + $0xc2] sm:$0xff]  ;;  %v7812_v39 = vadd.f32 %v11794_v33, %v11793_v11  ;;  %v11796_v27 = vld [vmem:[#allocation73_spill] sm:$0xff]  ;;  %v1775_v20 = vld [vmem:[#allocation2 + $0xca] sm:$0xff]  ;;  %v1970_v41 = vadd.f32 %v1969_v2, %v1968_v10  ;;  %v1710_v58 = vadd.f32 %v1646_v36, %v1514_v48 }
 0x1cd   :  { %v1581_v18 = vld [vmem:[#allocation2 + $0xe1] sm:$0xff]  ;;  %v1582_v16 = vld [vmem:[#allocation2 + $0xf1] sm:$0xff]  ;;  %v1842_v57 = vmul.f32 %v11708_v30, %v1774_v40  ;;  %v7820_v55 = vadd.f32 %v1840_v22, %v1708_v54  ;;  %v1973_v7 = vsel %vm15_vm0, %v7792_v62, 0.0  ;;  %v1583_v48 = vld [vmem:[#allocation2 + $0xf9] sm:$0xff]  ;;  %v1711_v36 = vadd.f32 %v1647_v24, %v1515_v6 }
 0x1ce   :  { %v11795_v60 = vld [vmem:[#allocation19_spill] sm:$0xff]  ;;  %v11797_v49 = vld [vmem:[#allocation20_spill] sm:$0xff]  ;;  %v11798_v11 = vld [vmem:[#allocation74_spill] sm:$0xff]  ;;  %v1649_v13 = vmul.f32 %v11766_v47, %v1581_v18  ;;  %v1972_v10 = vadd.f32 %v1971_v28, %v1970_v41  ;;  %v1843_v54 = vmul.f32 %v11708_v30, %v1775_v20  ;;  %v7834_v22 = vadd.f32 %v1841_v52, %v1709_v5 }
 0x1cf   :  { %v7816_v3 = vadd.f32 %v11796_v27, %v11795_v60  ;;  %v7826_v33 = vadd.f32 %v11798_v11, %v11797_v49  ;;  %v11799_v15 = vld [vmem:[#allocation52_spill] sm:$0xff]  ;;  %v11800_v60 = vld [vmem:[#allocation75_spill] sm:$0xff]  ;;  %v1776_v2 = vld [vmem:[#allocation2 + $0xda] sm:$0xff]  ;;  %v1975_v40 = vsel %vm15_vm0, %v7806_v34, 0.0  ;;  %v1650_v18 = vmul.f32 %v11766_v47, %v1582_v16 }
 0x1d0   :  { %v7830_v27 = vadd.f32 %v11800_v60, %v11799_v15  ;;  %v11801_v32 = vld [vmem:[#allocation10_spill] sm:$0xff]  ;;  %v11802_v49 = vld [vmem:[#allocation76_spill] sm:$0xff]  ;;  %v11803_v38 = vld [vmem:[#allocation53_spill] sm:$0xff]  ;;  %v1974_v41 = vadd.f32 %v1973_v7, %v1972_v10  ;;  %v1712_v24 = vadd.f32 %v1648_v35, %v7754_v9  ;;  %v1844_v5 = vmul.f32 %v11708_v30, %v1776_v2 }
 0x1d1   :  { %v7840_v11 = vadd.f32 %v11802_v49, %v11801_v32  ;;  %v11804_v15 = vld [vmem:[#allocation77_spill] sm:$0xff]  ;;  %v1777_v28 = vld [vmem:[#allocation2 + $0xe2] sm:$0xff]  ;;  %v7849_v52 = vadd.f32 %v1842_v57, %v1710_v58  ;;  %v1977_v20 = vsel %vm15_vm0, %v7820_v55, 0.0  ;;  %v1651_v16 = vmul.f32 %v11766_v47, %v1583_v48 }
 0x1d2   :  { %v7844_v60 = vadd.f32 %v11804_v15, %v11803_v38  ;;  %v1584_v6 = vld [vmem:[#allocation2 + $0x109] sm:$0xff]  ;;  %v11806_v49 = vld [vmem:[#allocation78_spill] sm:$0xff]  ;;  %v1778_v7 = vld [vmem:[#allocation2 + $0xf2] sm:$0xff]  ;;  %v1976_v10 = vadd.f32 %v1975_v40, %v1974_v41  ;;  %v1713_v35 = vadd.f32 %v1649_v13, %v7768_v26  ;;  %v1845_v58 = vmul.f32 %v11708_v30, %v1777_v28 }
 0x1d3   :  { %v11805_v32 = vld [vmem:[#allocation55_spill] sm:$0xff]  ;;  %v11807_v38 = vld [vmem:[#allocation22_spill] sm:$0xff]  ;;  %v1585_v9 = vld [vmem:[#allocation2 + $0x111] sm:$0xff]  ;;  %v7864_v57 = vadd.f32 %v1843_v54, %v1711_v36  ;;  %v1979_v2 = vsel %vm15_vm0, %v7834_v22, 0.0  ;;  %v1652_v48 = vmul.f32 %v11766_v47, %v1584_v6  ;;  %v1714_v36 = vadd.f32 %v1650_v18, %v7772_v59 }
 0x1d4   :  { %v7855_v8 = vadd.f32 %v11806_v49, %v11805_v32  ;;  %v11808_v15 = vld [vmem:[#allocation79_spill] sm:$0xff]  ;;  %v11809_v32 = vld [vmem:[#allocation56_spill] sm:$0xff]  ;;  %v1779_v40 = vld [vmem:[#allocation2 + $0xfa] sm:$0xff]  ;;  %v1978_v41 = vadd.f32 %v1977_v20, %v1976_v10  ;;  %v1846_v54 = vmul.f32 %v11708_v30, %v1778_v7  ;;  %v7879_v23 = vadd.f32 %v1844_v5, %v1712_v24 }
 0x1d5   :  { %v7859_v1 = vadd.f32 %v11808_v15, %v11807_v38  ;;  %v11810_v49 = vld [vmem:[#allocation80_spill] sm:$0xff]  ;;  %v11811_v38 = vld [vmem:[#allocation23_spill] sm:$0xff]  ;;  %v11812_v15 = vld [vmem:[#allocation81_spill] sm:$0xff]  ;;  %v1653_v20 = vmul.f32 %v11766_v47, %v1585_v9  ;;  %v1715_v24 = vadd.f32 %v1651_v16, %v7783_v61  ;;  %v1847_v5 = vmul.f32 %v11708_v30, %v1779_v40 }
 0x1d6   :  { %v7870_v0 = vadd.f32 %v11810_v49, %v11809_v32  ;;  %v7874_v29 = vadd.f32 %v11812_v15, %v11811_v38  ;;  %v1586_v26 = vld [vmem:[#allocation2 + $0x121] sm:$0xff]  ;;  %v1587_v13 = vld [vmem:[#allocation2 + $0x129] sm:$0xff]  ;;  %v1588_v28 = vld [vmem:[#allocation2 + $0x139] sm:$0xff]  ;;  %v1981_v32 = vsel %vm15_vm0, %v7849_v52, 0.0  ;;  %v1980_v19 = vadd.f32 %v1979_v2, %v1978_v41 }
 0x1d7   :  { %v11813_v49 = vld [vmem:[#allocation24_spill] sm:$0xff]  ;;  %v11814_v25 = vld [vmem:[#allocation49_spill] sm:$0xff]  ;;  %v11816_v6 = vld [vmem:[#allocation50_spill] sm:$0xff]  ;;  %v7894_v21 = vadd.f32 %v1845_v58, %v1713_v35  ;;  %v1656_v9 = vmul.f32 %v11766_v47, %v1588_v28  ;;  %v1716_v61 = vadd.f32 %v1652_v48, %v7787_v44  ;;  %v7903_v35 = vadd.f32 %v1846_v54, %v1714_v36 }
 0x1d8   :  { %v7885_v38 = vadd.f32 %v11814_v25, %v11813_v49  ;;  %v11815_v15 = vld [vmem:[#allocation25_spill] sm:$0xff]  ;;  %v1780_v10 = vld [vmem:[#allocation2 + $0x10a] sm:$0xff]  ;;  %v1589_v59 = vld [vmem:[#allocation2 + $0x141] sm:$0xff]  ;;  %v1983_v25 = vsel %vm15_vm0, %v7864_v57, 0.0  ;;  %v1654_v49 = vmul.f32 %v11766_v47, %v1586_v26  ;;  %v1982_v2 = vadd.f32 %v1981_v32, %v1980_v19 }
 0x1d9   :  { %v7889_v50 = vadd.f32 %v11816_v6, %v11815_v15  ;;  %v1590_v18 = vld [vmem:[#allocation2 + $0x151] sm:$0xff]  ;;  %v1591_v7 = vld [vmem:[#allocation2 + $0x159] sm:$0xff]  ;;  %v1655_v15 = vmul.f32 %v11766_v47, %v1587_v13  ;;  %v1592_v41 = vld [vmem:[#allocation2 + $0x169] sm:$0xff]  ;;  %v1848_v16 = vmul.f32 %v11708_v30, %v1780_v10  ;;  %11817 = vst [vmem:[#allocation31_spill] sm:$0xff] %v7903_v35  ;;  %v1985_v58 = vsel %vm15_vm0, %v7879_v23, 0.0 }
 0x1da   :  { %v1781_v6 = vld [vmem:[#allocation2 + $0x112] sm:$0xff]  ;;  %v1594_v14 = vld [vmem:[#allocation2 + $0x181] sm:$0xff]  ;;  %v1657_v40 = vmul.f32 %v11766_v47, %v1589_v59  ;;  %v1658_v26 = vmul.f32 %v11766_v47, %v1590_v18  ;;  %v1659_v13 = vmul.f32 %v11766_v47, %v1591_v7  ;;  %v1984_v19 = vadd.f32 %v1983_v25, %v1982_v2  ;;  %v1595_v32 = vld [vmem:[#allocation2 + $0x189] sm:$0xff] }
 0x1db   :  { %v1593_v63 = vld [vmem:[#allocation2 + $0x171] sm:$0xff]  ;;  %v1782_v28 = vld [vmem:[#allocation2 + $0x122] sm:$0xff]  ;;  %v1596_v17 = vld [vmem:[#allocation2 + $0x199] sm:$0xff]  ;;  %v1717_v44 = vadd.f32 %v1653_v20, %v7798_v31  ;;  %v1849_v48 = vmul.f32 %v11708_v30, %v1781_v6  ;;  %v7912_v36 = vadd.f32 %v1847_v5, %v1715_v24  ;;  %v1987_v54 = vsel %vm15_vm0, %v7894_v21, 0.0 }
 0x1dc   :  { %v1597_v45 = vld [vmem:[#allocation2 + $0x1a1] sm:$0xff]  ;;  %v1660_v10 = vmul.f32 %v11766_v47, %v1592_v41  ;;  %v7918_v59 = vmul.f32 %v11766_v47, %v1593_v63  ;;  %v7921_v18 = vmul.f32 %v11766_v47, %v1594_v14  ;;  %v1783_v7 = vld [vmem:[#allocation2 + $0x12a] sm:$0xff]  ;;  %v1986_v25 = vadd.f32 %v1985_v58, %v1984_v19 }
 0x1dd   :  { %v1598_v2 = vld [vmem:[#allocation2 + $0x1e1] sm:$0xff]  ;;  %v1718_v31 = vadd.f32 %v1654_v49, %v7802_v43  ;;  %v1850_v24 = vmul.f32 %v11708_v30, %v1782_v28  ;;  %v7925_v5 = vadd.f32 %v1848_v16, %v1716_v61  ;;  %v1989_v6 = vsel %vm15_vm0, %v7903_v35, 0.0  ;;  %v1786_v35 = vld [vmem:[#allocation2 + $0x152] sm:$0xff] }
 0x1de   :  { %v1784_v20 = vld [vmem:[#allocation2 + $0x13a] sm:$0xff]  ;;  %v7930_v41 = vmul.f32 %v11766_v47, %v1595_v32  ;;  %v7933_v63 = vmul.f32 %v11766_v47, %v1596_v17  ;;  %v7936_v14 = vmul.f32 %v11766_v47, %v1597_v45  ;;  %v1988_v58 = vadd.f32 %v1987_v54, %v1986_v25  ;;  %v1785_v17 = vld [vmem:[#allocation2 + $0x142] sm:$0xff] }
 0x1df   :  { %v1719_v43 = vadd.f32 %v1655_v15, %v7812_v39  ;;  %v1851_v49 = vmul.f32 %v11708_v30, %v1783_v7  ;;  %v7940_v28 = vadd.f32 %v1849_v48, %v1717_v44  ;;  %v1991_v61 = vsel %vm15_vm0, %v7912_v36, 0.0  ;;  %v1787_v7 = vld [vmem:[#allocation2 + $0x15a] sm:$0xff] }
 0x1e0   :  { %v7945_v16 = vmul.f32 %v11766_v47, %v1598_v2  ;;  %v1720_v19 = vadd.f32 %v1656_v9, %v7816_v3  ;;  %v1852_v32 = vmul.f32 %v11708_v30, %v1784_v20  ;;  %v1990_v45 = vadd.f32 %v1989_v6, %v1988_v58 }
 0x1e1   :  { %v7949_v54 = vadd.f32 %v1850_v24, %v1718_v31  ;;  %v1993_v39 = vsel %vm15_vm0, %v7925_v5, 0.0  ;;  %v2091_v15 = vmul.f32 %v7622_v53, %v7622_v53  ;;  %v2092_v44 = vmul.f32 %v7625_v46, %v7625_v46 }
 0x1e2   :  { %v1721_v47 = vadd.f32 %v1657_v40, %v7826_v33  ;;  %v1722_v3 = vadd.f32 %v1658_v26, %v7830_v27  ;;  %v1992_v9 = vadd.f32 %v1991_v61, %v1990_v45  ;;  %v2093_v48 = vmul.f32 %v7628_v37, %v7628_v37  ;;  %v1788_v26 = vld [vmem:[#allocation2 + $0x16a] sm:$0xff] }
 0x1e3   :  { %v1853_v25 = vmul.f32 %v11708_v30, %v1785_v17  ;;  %v7962_v2 = vadd.f32 %v1851_v49, %v1719_v43  ;;  %v1995_v31 = vsel %vm15_vm0, %v7940_v28, 0.0  ;;  %v2094_v20 = vmul.f32 %v7631_v51, %v7631_v51 }
 0x1e4   :  { %v1723_v24 = vadd.f32 %v1659_v13, %v7840_v11  ;;  %v1854_v33 = vmul.f32 %v11708_v30, %v1786_v35  ;;  %v7970_v27 = vadd.f32 %v1852_v32, %v1720_v19  ;;  %v1994_v40 = vadd.f32 %v1993_v39, %v1992_v9  ;;  %v1789_v13 = vld [vmem:[#allocation2 + $0x172] sm:$0xff] }
 0x1e5   :  { %11818 = vst [vmem:[#allocation58_spill] sm:$0xff] %v7962_v2  ;;  %v1997_v6 = vsel %vm15_vm0, %v7949_v54, 0.0  ;;  %v2095_v58 = vmul.f32 %v7728_v42, %v7728_v42  ;;  %v2155_v43 = vsel %vm15_vm0, %v2091_v15, 0.0  ;;  %v2156_v49 = vsel %vm15_vm0, %v2092_v44, 0.0 }
 0x1e6   :  { %11819 = vst [vmem:[#allocation60_spill] sm:$0xff] %v7970_v27  ;;  %v1855_v61 = vmul.f32 %v11708_v30, %v1787_v7  ;;  %v1996_v17 = vadd.f32 %v1995_v31, %v1994_v40  ;;  %v2157_v11 = vadd.f32 %v2156_v49, %v2155_v43  ;;  %v2158_v35 = vsel %vm15_vm0, %v2093_v48, 0.0  ;;  %v1790_v31 = vld [vmem:[#allocation2 + $0x182] sm:$0xff] }
 0x1e7   :  { %v7980_v19 = vadd.f32 %v1853_v25, %v1721_v47  ;;  %v1999_v32 = vsel %vm15_vm0, %v7962_v2, 0.0  ;;  %v2096_v45 = vmul.f32 %v7746_v12, %v7746_v12  ;;  %v2160_v39 = vsel %vm15_vm0, %v2094_v20, 0.0 }
 0x1e8   :  { %v1724_v15 = vadd.f32 %v1660_v10, %v7844_v60  ;;  %v1856_v44 = vmul.f32 %v11708_v30, %v1788_v26  ;;  %v1998_v9 = vadd.f32 %v1997_v6, %v1996_v17  ;;  %v2159_v7 = vadd.f32 %v2158_v35, %v2157_v11  ;;  %v1791_v6 = vld [vmem:[#allocation2 + $0x18a] sm:$0xff]  ;;  %v1792_v11 = vld [vmem:[#allocation2 + $0x19a] sm:$0xff] }
 0x1e9   :  { %11820 = vst [vmem:[#allocation62_spill] sm:$0xff] %v7980_v19  ;;  %v7989_v40 = vadd.f32 %v1854_v33, %v1722_v3  ;;  %v2001_v47 = vsel %vm15_vm0, %v7970_v27, 0.0  ;;  %v2097_v48 = vmul.f32 %v7762_v4, %v7762_v4  ;;  %v2162_v25 = vsel %vm15_vm0, %v2095_v58, 0.0 }
 0x1ea   :  { %v1725_v20 = vadd.f32 %v7918_v59, %v7855_v8  ;;  %v1857_v60 = vmul.f32 %v11708_v30, %v1789_v13  ;;  %v2000_v10 = vadd.f32 %v1999_v32, %v1998_v9  ;;  %v2161_v26 = vadd.f32 %v2160_v39, %v2159_v7  ;;  %v1793_v39 = vld [vmem:[#allocation2 + $0x1a2] sm:$0xff] }
 0x1eb   :  { %11821 = vst [vmem:[#allocation38_spill] sm:$0xff] %v7989_v40  ;;  %v7999_v43 = vadd.f32 %v1855_v61, %v1723_v24  ;;  %v2003_v3 = vsel %vm15_vm0, %v7980_v19, 0.0  ;;  %v2098_v33 = vmul.f32 %v7777_v56, %v7777_v56  ;;  %v2164_v49 = vsel %vm15_vm0, %v2096_v45, 0.0 }
 0x1ec   :  { %v1726_v58 = vadd.f32 %v7921_v18, %v7859_v1  ;;  %v1858_v8 = vmul.f32 %v11708_v30, %v1790_v31  ;;  %v2002_v59 = vadd.f32 %v2001_v47, %v2000_v10  ;;  %v2163_v17 = vadd.f32 %v2162_v25, %v2161_v26 }
 0x1ed   :  { %11822 = vst [vmem:[#allocation63_spill] sm:$0xff] %v7999_v43  ;;  %v8009_v35 = vadd.f32 %v1856_v44, %v1724_v15  ;;  %v2005_v24 = vsel %vm15_vm0, %v7989_v40, 0.0  ;;  %v2099_v61 = vmul.f32 %v7792_v62, %v7792_v62  ;;  %v2166_v13 = vsel %vm15_vm0, %v2097_v48, 0.0  ;;  %v1794_v48 = vld [vmem:[#allocation2 + $0x1e2] sm:$0xff] }
 0x1ee   :  { %v1727_v32 = vadd.f32 %v7930_v41, %v7870_v0  ;;  %v1859_v1 = vmul.f32 %v11708_v30, %v1791_v6  ;;  %v2004_v18 = vadd.f32 %v2003_v3, %v2002_v59  ;;  %v2165_v45 = vadd.f32 %v2164_v49, %v2163_v17 }
 0x1ef   :  { %11823 = vst [vmem:[#allocation26_spill] sm:$0xff] %v8009_v35  ;;  %v8019_v9 = vadd.f32 %v1857_v60, %v1725_v20  ;;  %v2007_v15 = vsel %vm15_vm0, %v7999_v43, 0.0  ;;  %v2100_v44 = vmul.f32 %v7806_v34, %v7806_v34  ;;  %v2168_v7 = vsel %vm15_vm0, %v2098_v33, 0.0 }
 0x1f0   :  { %v1728_v31 = vadd.f32 %v7933_v63, %v7874_v29  ;;  %v1860_v0 = vmul.f32 %v11708_v30, %v1792_v11  ;;  %v2006_v41 = vadd.f32 %v2005_v24, %v2004_v18  ;;  %v2167_v47 = vadd.f32 %v2166_v13, %v2165_v45 }
 0x1f1   :  { %v8029_v25 = vadd.f32 %v1858_v8, %v1726_v58  ;;  %v2009_v20 = vsel %vm15_vm0, %v8009_v35, 0.0  ;;  %v2101_v60 = vmul.f32 %v7820_v55, %v7820_v55  ;;  %v2170_v10 = vsel %vm15_vm0, %v2099_v61, 0.0 }
 0x1f2   :  { %v1729_v26 = vadd.f32 %v7936_v14, %v7885_v38  ;;  %v1861_v29 = vmul.f32 %v11708_v30, %v1793_v39  ;;  %v2008_v63 = vadd.f32 %v2007_v15, %v2006_v41  ;;  %v2169_v6 = vadd.f32 %v2168_v7, %v2167_v47 }
 0x1f3   :  { %v8039_v3 = vadd.f32 %v1859_v1, %v1727_v32  ;;  %v2011_v33 = vsel %vm15_vm0, %v8019_v9, 0.0  ;;  %v2102_v49 = vmul.f32 %v7834_v22, %v7834_v22  ;;  %v2172_v58 = vsel %vm15_vm0, %v2100_v44, 0.0 }
 0x1f4   :  { %v1730_v8 = vadd.f32 %v7945_v16, %v7889_v50  ;;  %v1862_v59 = vmul.f32 %v11708_v30, %v1794_v48  ;;  %v2010_v38 = vadd.f32 %v2009_v20, %v2008_v63  ;;  %v2171_v14 = vadd.f32 %v2170_v10, %v2169_v6 }
 0x1f5   :  { %v8049_v17 = vadd.f32 %v1860_v0, %v1728_v31  ;;  %v2013_v11 = vsel %vm15_vm0, %v8029_v25, 0.0  ;;  %v2103_v24 = vmul.f32 %v7849_v52, %v7849_v52  ;;  %v2174_v61 = vsel %vm15_vm0, %v2101_v60, 0.0 }
 0x1f6   :  { %v2012_v13 = vadd.f32 %v2011_v33, %v2010_v38  ;;  %v2173_v32 = vadd.f32 %v2172_v58, %v2171_v14  ;;  %v8056_v1 = vadd.f32 %v1861_v29, %v1729_v26  ;;  %v2015_v50 = vsel %vm15_vm0, %v8039_v3, 0.0  ;;  %v11824_v26 = vld [vmem:[#allocation31_spill] sm:$0xff] }
 0x1f7   :  { %v2104_v30 = vmul.f32 %v7864_v57, %v7864_v57  ;;  %v2176_v16 = vsel %vm15_vm0, %v2102_v49, 0.0  ;;  %v8063_v39 = vadd.f32 %v1862_v59, %v1730_v8  ;;  %v2017_v15 = vsel %vm15_vm0, %v8049_v17, 0.0  ;;  %v11825_v49 = vld [vmem:[#allocation37_spill] sm:$0xff] }
 0x1f8   :  { %v2014_v18 = vadd.f32 %v2013_v11, %v2012_v13  ;;  %v2175_v45 = vadd.f32 %v2174_v61, %v2173_v32  ;;  %v2105_v44 = vmul.f32 %v7879_v23, %v7879_v23  ;;  %v2178_v7 = vsel %vm15_vm0, %v2103_v24, 0.0  ;;  %v11826_v11 = vld [vmem:[#allocation29_spill] sm:$0xff] }
 0x1f9   :  { %v2019_v41 = vsel %vm15_vm0, %v8056_v1, 0.0  ;;  %v2106_v47 = vmul.f32 %v7894_v21, %v7894_v21  ;;  %v2180_v48 = vsel %vm15_vm0, %v2104_v30, 0.0  ;;  %v2021_v10 = vsel %vm15_vm0, %v8063_v39, 0.0  ;;  %v11827_v30 = vld [vmem:[#allocation82_spill] sm:$0xff] }
 0x1fa   :  { %v2016_v31 = vadd.f32 %v2015_v50, %v2014_v18  ;;  %v2177_v0 = vadd.f32 %v2176_v16, %v2175_v45  ;;  %v2107_v29 = vmul.f32 %v11824_v26, %v11824_v26  ;;  %v2182_v63 = vsel %vm15_vm0, %v2105_v44, 0.0 }
 0x1fb   :  { %v2023_v58 = vsel %vm15_vm0, %v11825_v49, 0.0  ;;  %v2108_v8 = vmul.f32 %v7912_v36, %v7912_v36  ;;  %v2184_v59 = vsel %vm15_vm0, %v2106_v47, 0.0  ;;  %v2025_v24 = vsel %vm15_vm0, %v11826_v11, 0.0 }
 0x1fc   :  { %v2018_v20 = vadd.f32 %v2017_v15, %v2016_v31  ;;  %v2179_v60 = vadd.f32 %v2178_v7, %v2177_v0  ;;  %v2109_v61 = vmul.f32 %v7925_v5, %v7925_v5  ;;  %v2186_v13 = vsel %vm15_vm0, %v2107_v29, 0.0  ;;  %v11828_v7 = vld [vmem:[#allocation83_spill] sm:$0xff] }
 0x1fd   :  { %v2027_v16 = vsel %vm15_vm0, %v11827_v30, 0.0  ;;  %v2110_v18 = vmul.f32 %v7940_v28, %v7940_v28  ;;  %v2188_v45 = vsel %vm15_vm0, %v2108_v8, 0.0  ;;  %v2029_v31 = vsel %vm15_vm0, %v11828_v7, 0.0 }
 0x1fe   :  { %v2020_v6 = vadd.f32 %v2019_v41, %v2018_v20  ;;  %v2181_v33 = vadd.f32 %v2180_v48, %v2179_v60  ;;  %v2111_v0 = vmul.f32 %v7949_v54, %v7949_v54  ;;  %v2190_v41 = vsel %vm15_vm0, %v2109_v61, 0.0  ;;  %v11829_v20 = vld [vmem:[#allocation84_spill] sm:$0xff] }
 0x1ff   :  { %v2031_v60 = vsel %vm15_vm0, %v11829_v20, 0.0  ;;  %v2192_v29 = vsel %vm15_vm0, %v2110_v18, 0.0  ;;  %v2113_v8 = vmul.f32 %v7970_v27, %v7970_v27  ;;  %v11832_v18 = vld [vmem:[#allocation87_spill] sm:$0xff]  ;;  %v2125_v27 = vmul.f32 %v11826_v11, %v11826_v11 }
 0x200   :  { %v2022_v38 = vadd.f32 %v2021_v10, %v2020_v6  ;;  %v2183_v14 = vadd.f32 %v2182_v63, %v2181_v33  ;;  %v2112_v10 = vmul.f32 %v7962_v2, %v7962_v2  ;;  %v11830_v33 = vld [vmem:[#allocation85_spill] sm:$0xff]  ;;  %v2126_v2 = vmul.f32 %v11827_v30, %v11827_v30 }
 0x201   :  { %v2127_v11 = vmul.f32 %v11828_v7, %v11828_v7  ;;  %v2128_v30 = vmul.f32 %v11829_v20, %v11829_v20  ;;  %v2129_v7 = vmul.f32 %v11830_v33, %v11830_v33 }
 0x202   :  { %v2024_v32 = vadd.f32 %v2023_v58, %v2022_v38  ;;  %v2185_v50 = vadd.f32 %v2184_v59, %v2183_v14  ;;  %v2033_v58 = vsel %vm15_vm0, %v11830_v33, 0.0  ;;  %v2194_v59 = vsel %vm15_vm0, %v2111_v0, 0.0 }
 0x204   :  { %v2026_v15 = vadd.f32 %v2025_v24, %v2024_v32  ;;  %v2187_v44 = vadd.f32 %v2186_v13, %v2185_v50  ;;  %v11831_v24 = vld [vmem:[#allocation86_spill] sm:$0xff]  ;;  %v2114_v13 = vmul.f32 %v7980_v19, %v7980_v19  ;;  %v2196_v32 = vsel %vm15_vm0, %v2112_v10, 0.0 }
 0x205   :  { %v2035_v61 = vsel %vm15_vm0, %v11831_v24, 0.0  ;;  %v2124_v19 = vmul.f32 %v11825_v49, %v11825_v49  ;;  %v2130_v20 = vmul.f32 %v11831_v24, %v11831_v24 }
 0x206   :  { %v2028_v47 = vadd.f32 %v2027_v16, %v2026_v15  ;;  %v2189_v48 = vadd.f32 %v2188_v45, %v2187_v44  ;;  %v2037_v45 = vsel %vm15_vm0, %v11832_v18, 0.0  ;;  %v2115_v15 = vmul.f32 %v7989_v40, %v7989_v40 }
 0x207   :  { %v2198_v44 = vsel %vm15_vm0, %v2113_v8, 0.0  ;;  %v2123_v40 = vmul.f32 %v8063_v39, %v8063_v39 }
 0x208   :  { %v2030_v63 = vadd.f32 %v2029_v31, %v2028_v47  ;;  %v2191_v6 = vadd.f32 %v2190_v41, %v2189_v48  ;;  %v11833_v41 = vld [vmem:[#allocation88_spill] sm:$0xff]  ;;  %v2116_v48 = vmul.f32 %v7999_v43, %v7999_v43  ;;  %v2202_v8 = vsel %vm15_vm0, %v2115_v15, 0.0 }
 0x209   :  { %v2039_v47 = vsel %vm15_vm0, %v11833_v41, 0.0  ;;  %v2122_v43 = vmul.f32 %v8056_v1, %v8056_v1 }
 0x20a   :  { %v2032_v38 = vadd.f32 %v2031_v60, %v2030_v63  ;;  %v2193_v14 = vadd.f32 %v2192_v29, %v2191_v6  ;;  %v2200_v60 = vsel %vm15_vm0, %v2114_v13, 0.0  ;;  %v11834_v63 = vld [vmem:[#allocation89_spill] sm:$0xff]  ;;  %v2204_v13 = vsel %vm15_vm0, %v2116_v48, 0.0 }
 0x20b   :  { %v2041_v6 = vsel %vm15_vm0, %v11834_v63, 0.0 }
 0x20c   :  { %v2034_v50 = vadd.f32 %v2033_v58, %v2032_v38  ;;  %v2195_v16 = vadd.f32 %v2194_v59, %v2193_v14  ;;  %v2117_v58 = vmul.f32 %v8009_v35, %v8009_v35  ;;  %v11835_v14 = vld [vmem:[#allocation90_spill] sm:$0xff]  ;;  %v2121_v35 = vmul.f32 %v8049_v17, %v8049_v17 }
 0x20e   :  { %v2036_v31 = vadd.f32 %v2035_v61, %v2034_v50  ;;  %v2197_v0 = vadd.f32 %v2196_v32, %v2195_v16  ;;  %v2043_v61 = vsel %vm15_vm0, %v11835_v14, 0.0  ;;  %v2118_v32 = vmul.f32 %v8019_v9, %v8019_v9 }
 0x20f   :  { %v2206_v15 = vsel %vm15_vm0, %v2117_v58, 0.0 }
 0x210   :  { %v2038_v10 = vadd.f32 %v2037_v45, %v2036_v31  ;;  %v2199_v29 = vadd.f32 %v2198_v44, %v2197_v0  ;;  %v11836_v45 = vld [vmem:[#allocation91_spill] sm:$0xff]  ;;  %v2119_v31 = vmul.f32 %v8029_v25, %v8029_v25  ;;  %v2208_v48 = vsel %vm15_vm0, %v2118_v32, 0.0 }
 0x211   :  { %v2045_v44 = vsel %vm15_vm0, %v11836_v45, 0.0 }
 0x212   :  { %v2040_v59 = vadd.f32 %v2039_v47, %v2038_v10  ;;  %v2201_v38 = vadd.f32 %v2200_v60, %v2199_v29  ;;  %v11837_v60 = vld [vmem:[#allocation92_spill] sm:$0xff]  ;;  %v2120_v29 = vmul.f32 %v8039_v3, %v8039_v3  ;;  %v2210_v58 = vsel %vm15_vm0, %v2119_v31, 0.0 }
 0x213   :  { %v2047_v10 = vsel %vm15_vm0, %v11837_v60, 0.0  ;;  %v2214_v31 = vsel %vm15_vm0, %v2121_v35, 0.0  ;;  %v2218_v35 = vsel %vm15_vm0, %v2123_v40, 0.0  ;;  %v2222_v40 = vsel %vm15_vm0, %v2125_v27, 0.0 }
 0x214   :  { %v2042_v50 = vadd.f32 %v2041_v6, %v2040_v59  ;;  %v2203_v16 = vadd.f32 %v2202_v8, %v2201_v38  ;;  %v11838_v59 = vld [vmem:[#allocation93_spill] sm:$0xff]  ;;  %v2212_v32 = vsel %vm15_vm0, %v2120_v29, 0.0  ;;  %v2216_v29 = vsel %vm15_vm0, %v2122_v43, 0.0 }
 0x215   :  { %v2049_v38 = vsel %vm15_vm0, %v11838_v59, 0.0  ;;  %v2220_v43 = vsel %vm15_vm0, %v2124_v19, 0.0  ;;  %v2224_v19 = vsel %vm15_vm0, %v2126_v2, 0.0  ;;  %v2226_v27 = vsel %vm15_vm0, %v2127_v11, 0.0  ;;  %v11848_v11 = vld [vmem:[#allocation42_spill] sm:$0xff] }
 0x216   :  { %v2044_v0 = vadd.f32 %v2043_v61, %v2042_v50  ;;  %v2205_v47 = vadd.f32 %v2204_v13, %v2203_v16  ;;  %v11839_v50 = vld [vmem:[#allocation32_spill] sm:$0xff]  ;;  %v2228_v2 = vsel %vm15_vm0, %v2128_v30, 0.0  ;;  %v2133_v30 = vmul.f32 %v11834_v63, %v11834_v63 }
 0x217   :  { %v2051_v16 = vsel %vm15_vm0, %v11839_v50, 0.0  ;;  %v11850_v63 = vld [vmem:[#allocation44_spill] sm:$0xff] }
 0x218   :  { %v2046_v6 = vadd.f32 %v2045_v44, %v2044_v0  ;;  %v2207_v8 = vadd.f32 %v2206_v15, %v2205_v47  ;;  %v11840_v0 = vld [vmem:[#allocation33_spill] sm:$0xff] }
 0x219   :  { %v2053_v47 = vsel %vm15_vm0, %v11840_v0, 0.0 }
 0x21a   :  { %v2048_v61 = vadd.f32 %v2047_v10, %v2046_v6  ;;  %v2209_v13 = vadd.f32 %v2208_v48, %v2207_v8  ;;  %v11841_v6 = vld [vmem:[#allocation9_spill] sm:$0xff] }
 0x21b   :  { %v2055_v8 = vsel %vm15_vm0, %v11841_v6, 0.0 }
 0x21c   :  { %v2050_v44 = vadd.f32 %v2049_v38, %v2048_v61  ;;  %v2211_v15 = vadd.f32 %v2210_v58, %v2209_v13  ;;  %v11842_v61 = vld [vmem:[#allocation16_spill] sm:$0xff] }
 0x21d   :  { %v2057_v13 = vsel %vm15_vm0, %v11842_v61, 0.0 }
 0x21e   :  { %v2052_v10 = vadd.f32 %v2051_v16, %v2050_v44  ;;  %v2213_v48 = vadd.f32 %v2212_v32, %v2211_v15  ;;  %v11843_v44 = vld [vmem:[#allocation6_spill] sm:$0xff] }
 0x21f   :  { %v2059_v15 = vsel %vm15_vm0, %v11843_v44, 0.0 }
 0x220   :  { %v2054_v38 = vadd.f32 %v2053_v47, %v2052_v10  ;;  %v2215_v58 = vadd.f32 %v2214_v31, %v2213_v48  ;;  %v11844_v10 = vld [vmem:[#allocation61_spill] sm:$0xff] }
 0x221   :  { %v2061_v48 = vsel %vm15_vm0, %v11844_v10, 0.0 }
 0x222   :  { %v2056_v16 = vadd.f32 %v2055_v8, %v2054_v38  ;;  %v2217_v32 = vadd.f32 %v2216_v29, %v2215_v58  ;;  %v11845_v38 = vld [vmem:[#allocation40_spill] sm:$0xff] }
 0x223   :  { %v2063_v58 = vsel %vm15_vm0, %v11845_v38, 0.0 }
 0x224   :  { %v2058_v47 = vadd.f32 %v2057_v13, %v2056_v16  ;;  %v2219_v31 = vadd.f32 %v2218_v35, %v2217_v32  ;;  %v11846_v16 = vld [vmem:[#allocation8_spill] sm:$0xff] }
 0x225   :  { %v2065_v32 = vsel %vm15_vm0, %v11846_v16, 0.0 }
 0x226   :  { %v2060_v8 = vadd.f32 %v2059_v15, %v2058_v47  ;;  %v2221_v29 = vadd.f32 %v2220_v43, %v2219_v31  ;;  %v11847_v47 = vld [vmem:[#allocation41_spill] sm:$0xff] }
 0x227   :  { %v2067_v31 = vsel %vm15_vm0, %v11847_v47, 0.0 }
 0x228   :  { %v2062_v13 = vadd.f32 %v2061_v48, %v2060_v8  ;;  %v2223_v35 = vadd.f32 %v2222_v40, %v2221_v29  ;;  %v2131_v8 = vmul.f32 %v11832_v18, %v11832_v18  ;;  %v2230_v29 = vsel %vm15_vm0, %v2129_v7, 0.0 }
 0x22a   :  { %v2064_v15 = vadd.f32 %v2063_v58, %v2062_v13  ;;  %v2225_v43 = vadd.f32 %v2224_v19, %v2223_v35  ;;  %v2069_v58 = vsel %vm15_vm0, %v11848_v11, 0.0  ;;  %v2132_v19 = vmul.f32 %v11833_v41, %v11833_v41 }
 0x22b   :  { %v2232_v13 = vsel %vm15_vm0, %v2130_v20, 0.0  ;;  %v2135_v20 = vmul.f32 %v11836_v45, %v11836_v45  ;;  %v11851_v45 = vld [vmem:[#allocation45_spill] sm:$0xff] }
 0x22c   :  { %v2066_v48 = vadd.f32 %v2065_v32, %v2064_v15  ;;  %v2227_v40 = vadd.f32 %v2226_v27, %v2225_v43  ;;  %v2234_v32 = vsel %vm15_vm0, %v2131_v8, 0.0  ;;  %v11849_v43 = vld [vmem:[#allocation43_spill] sm:$0xff]  ;;  %v2136_v8 = vmul.f32 %v11837_v60, %v11837_v60 }
 0x22d   :  { %v2071_v7 = vsel %vm15_vm0, %v11849_v43, 0.0 }
 0x22e   :  { %v2068_v33 = vadd.f32 %v2067_v31, %v2066_v48  ;;  %v2229_v49 = vadd.f32 %v2228_v2, %v2227_v40  ;;  %v2134_v31 = vmul.f32 %v11835_v14, %v11835_v14  ;;  %v2236_v2 = vsel %vm15_vm0, %v2132_v19, 0.0 }
 0x22f   :  { %v2137_v19 = vmul.f32 %v11838_v59, %v11838_v59  ;;  %v11852_v59 = vld [vmem:[#allocation46_spill] sm:$0xff] }
 0x230   :  { %v2231_v35 = vadd.f32 %v2230_v29, %v2229_v49  ;;  %v2070_v27 = vadd.f32 %v2069_v58, %v2068_v33  ;;  %v2238_v49 = vsel %vm15_vm0, %v2133_v30, 0.0  ;;  %v2073_v33 = vsel %vm15_vm0, %v11850_v63, 0.0 }
 0x231   :  { %v2240_v58 = vsel %vm15_vm0, %v2134_v31, 0.0  ;;  %v2075_v30 = vsel %vm15_vm0, %v11851_v45, 0.0  ;;  %v2139_v31 = vmul.f32 %v11840_v0, %v11840_v0  ;;  %v11853_v0 = vld [vmem:[#allocation36_spill] sm:$0xff] }
 0x232   :  { %v2233_v15 = vadd.f32 %v2232_v13, %v2231_v35  ;;  %v2072_v40 = vadd.f32 %v2071_v7, %v2070_v27  ;;  %v2242_v35 = vsel %vm15_vm0, %v2135_v20, 0.0  ;;  %v2138_v27 = vmul.f32 %v11839_v50, %v11839_v50 }
 0x233   :  { %v2244_v7 = vsel %vm15_vm0, %v2136_v8, 0.0  ;;  %v2077_v20 = vsel %vm15_vm0, %v11852_v59, 0.0  ;;  %v2141_v8 = vmul.f32 %v11842_v61, %v11842_v61  ;;  %v11854_v61 = vld [vmem:[#allocation47_spill] sm:$0xff] }
 0x234   :  { %v2235_v48 = vadd.f32 %v2234_v32, %v2233_v15  ;;  %v2074_v32 = vadd.f32 %v2073_v33, %v2072_v40  ;;  %v2140_v40 = vmul.f32 %v11841_v6, %v11841_v6  ;;  %v2248_v33 = vsel %vm15_vm0, %v2138_v27, 0.0  ;;  %v11855_v6 = vld [vmem:[#allocation48_spill] sm:$0xff] }
 0x235   :  { %v2143_v27 = vmul.f32 %v11844_v10, %v11844_v10 }
 0x236   :  { %v2237_v29 = vadd.f32 %v2236_v2, %v2235_v48  ;;  %v2246_v48 = vsel %vm15_vm0, %v2137_v19, 0.0  ;;  %v2079_v19 = vsel %vm15_vm0, %v11853_v0, 0.0 }
 0x238   :  { %v2239_v13 = vadd.f32 %v2238_v49, %v2237_v29  ;;  %v2076_v49 = vadd.f32 %v2075_v30, %v2074_v32  ;;  %v2142_v32 = vmul.f32 %v11843_v44, %v11843_v44  ;;  %v2252_v30 = vsel %vm15_vm0, %v2140_v40, 0.0 }
 0x239   :  { %v2145_v40 = vmul.f32 %v11846_v16, %v11846_v16 }
 0x23a   :  { %v2241_v15 = vadd.f32 %v2240_v58, %v2239_v13  ;;  %v2250_v13 = vsel %vm15_vm0, %v2139_v31, 0.0  ;;  %v2081_v31 = vsel %vm15_vm0, %v11854_v61, 0.0 }
 0x23c   :  { %v2243_v2 = vadd.f32 %v2242_v35, %v2241_v15  ;;  %v2078_v35 = vadd.f32 %v2077_v20, %v2076_v49  ;;  %v2144_v49 = vmul.f32 %v11845_v38, %v11845_v38  ;;  %v2256_v20 = vsel %vm15_vm0, %v2142_v32, 0.0 }
 0x23d   :  { %v2147_v32 = vmul.f32 %v11848_v11, %v11848_v11 }
 0x23e   :  { %v2245_v29 = vadd.f32 %v2244_v7, %v2243_v2  ;;  %v2254_v2 = vsel %vm15_vm0, %v2141_v8, 0.0  ;;  %v2083_v8 = vsel %vm15_vm0, %v11855_v6, 0.0 }
 0x240   :  { %v2247_v58 = vadd.f32 %v2246_v48, %v2245_v29  ;;  %v2080_v48 = vadd.f32 %v2079_v19, %v2078_v35  ;;  %v2146_v35 = vmul.f32 %v11847_v47, %v11847_v47  ;;  %v2260_v19 = vsel %vm15_vm0, %v2144_v49, 0.0 }
 0x242   :  { %v2249_v15 = vadd.f32 %v2248_v33, %v2247_v58  ;;  %v2258_v58 = vsel %vm15_vm0, %v2143_v27, 0.0  ;;  %v2148_v27 = vmul.f32 %v11849_v43, %v11849_v43 }
 0x244   :  { %v2251_v7 = vadd.f32 %v2250_v13, %v2249_v15  ;;  %v2082_v13 = vadd.f32 %v2081_v31, %v2080_v48  ;;  %v2264_v48 = vsel %vm15_vm0, %v2146_v35, 0.0 }
 0x246   :  { %v2253_v29 = vadd.f32 %v2252_v30, %v2251_v7  ;;  %v2262_v7 = vsel %vm15_vm0, %v2145_v40, 0.0  ;;  %v2268_v40 = vsel %vm15_vm0, %v2148_v27, 0.0 }
 0x248   :  { %v2255_v33 = vadd.f32 %v2254_v2, %v2253_v29  ;;  %v2084_v2 = vadd.f32 %v2083_v8, %v2082_v13  ;;  %v2151_v8 = vmul.f32 %v11852_v59, %v11852_v59 }
 0x24a   :  { %v2257_v15 = vadd.f32 %v2256_v20, %v2255_v33  ;;  %v2149_v20 = vmul.f32 %v11850_v63, %v11850_v63  ;;  %v2266_v33 = vsel %vm15_vm0, %v2147_v32, 0.0  ;;  %v2085_v49 = vrot.slane %v2084_v2, 4 }
 0x24c   :  { %v2259_v30 = vadd.f32 %v2258_v58, %v2257_v15  ;;  %v2150_v15 = vmul.f32 %v11851_v45, %v11851_v45  ;;  %v2086_v35 = vadd.f32 %v2085_v49, %v2084_v2 }
 0x24e   :  { %v2261_v29 = vadd.f32 %v2260_v19, %v2259_v30  ;;  %v2270_v19 = vsel %vm15_vm0, %v2149_v20, 0.0  ;;  %v2272_v32 = vsel %vm15_vm0, %v2150_v15, 0.0  ;;  %v2087_v27 = vrot.slane %v2086_v35, 2 }
 0x250   :  { %v2263_v31 = vadd.f32 %v2262_v7, %v2261_v29  ;;  %v2152_v7 = vmul.f32 %v11853_v0, %v11853_v0 }
 0x252   :  { %v2265_v58 = vadd.f32 %v2264_v48, %v2263_v31  ;;  %v2153_v48 = vmul.f32 %v11854_v61, %v11854_v61  ;;  %v2274_v31 = vsel %vm15_vm0, %v2151_v8, 0.0  ;;  %v2276_v20 = vsel %vm15_vm0, %v2152_v7, 0.0 }
 0x254   :  { %v2267_v13 = vadd.f32 %v2266_v33, %v2265_v58  ;;  %v2154_v58 = vmul.f32 %v11855_v6, %v11855_v6  ;;  %v2278_v49 = vsel %vm15_vm0, %v2153_v48, 0.0 }
 0x256   :  { %v2269_v30 = vadd.f32 %v2268_v40, %v2267_v13  ;;  %v2088_v40 = vadd.f32 %v2087_v27, %v2086_v35  ;;  %v2280_v15 = vsel %vm15_vm0, %v2154_v58, 0.0 }
 0x258   :  { %v2271_v29 = vadd.f32 %v2270_v19, %v2269_v30  ;;  %v2089_v30 = vrot.slane %v2088_v40, 1 }
 0x25a   :  { %v2273_v33 = vadd.f32 %v2272_v32, %v2271_v29  ;;  %v2090_v61 = vadd.f32 %v2089_v30, %v2088_v40 }
 0x25c   :  { %v2275_v2 = vadd.f32 %v2274_v31, %v2273_v33  ;;  %v8285_v29 = vmul.f32 0.001953125, %v2090_v61 }
 0x25e   :  { %v2277_v13 = vadd.f32 %v2276_v20, %v2275_v2  ;;  %v2290_v7 = vmul.f32 %v8285_v29, %v8285_v29  ;;  %v2292_v27 = vsub.f32 %v7622_v53, %v8285_v29  ;;  %v2293_v33 = vsub.f32 %v7625_v46, %v8285_v29 }
 0x25f   :  { %v2297_v46 = vsub.f32 %v7746_v12, %v8285_v29  ;;  %v2300_v40 = vsub.f32 %v7792_v62, %v8285_v29  ;;  %v2302_v12 = vsub.f32 %v7820_v55, %v8285_v29  ;;  %v2305_v62 = vsub.f32 %v7864_v57, %v8285_v29 }
 0x260   :  { %v2279_v19 = vadd.f32 %v2278_v49, %v2277_v13  ;;  %v2299_v49 = vsub.f32 %v7777_v56, %v8285_v29  ;;  %v2301_v13 = vsub.f32 %v7806_v34, %v8285_v29  ;;  %v2306_v34 = vsub.f32 %v7879_v23, %v8285_v29  ;;  %v11866_v23 = vld [vmem:[#allocation47_spill] sm:$0xff] }
 0x262   :  { %v2281_v50 = vadd.f32 %v2280_v15, %v2279_v19  ;;  %v2304_v15 = vsub.f32 %v7849_v52, %v8285_v29  ;;  %v2308_v52 = vsub.f32 %v11824_v26, %v8285_v29 }
 0x264   :  { %v2282_v60 = vrot.slane %v2281_v50, 4 }
 0x266   :  { %v2283_v8 = vadd.f32 %v2282_v60, %v2281_v50  ;;  %v2294_v60 = vsub.f32 %v7628_v37, %v8285_v29  ;;  %v2295_v50 = vsub.f32 %v7631_v51, %v8285_v29  ;;  %v2298_v37 = vsub.f32 %v7762_v4, %v8285_v29 }
 0x267   :  { %v2303_v4 = vsub.f32 %v7834_v22, %v8285_v29  ;;  %v2307_v22 = vsub.f32 %v7894_v21, %v8285_v29 }
 0x268   :  { %v2284_v0 = vrot.slane %v2283_v8, 2 }
 0x26a   :  { %v2285_v32 = vadd.f32 %v2284_v0, %v2283_v8  ;;  %v2296_v0 = vsub.f32 %v7728_v42, %v8285_v29  ;;  %v2309_v8 = vsub.f32 %v7912_v36, %v8285_v29 }
 0x26c   :  { %v2286_v6 = vrot.slane %v2285_v32, 1 }
 0x26e   :  { %v2287_v59 = vadd.f32 %v2286_v6, %v2285_v32  ;;  %v2310_v32 = vsub.f32 %v7925_v5, %v8285_v29  ;;  %v11870_v5 = vld [vmem:[#allocation92_spill] sm:$0xff] }
 0x270   :  { %v2289_v48 = vmul.f32 0.001953125, %v2287_v59 }
 0x272   :  { %v2291_v35 = vsub.f32 %v2289_v48, %v2290_v7  ;;  %v2311_v7 = vsub.f32 %v7940_v28, %v8285_v29  ;;  %v2312_v48 = vsub.f32 %v7949_v54, %v8285_v29  ;;  %v11876_v54 = vld [vmem:[#allocation33_spill] sm:$0xff] }
 0x274   :  { %v2356_v31 = vadd.f32 1e-05, %v2291_v35 }
 0x276   :  { %5062 = vrsqrt.f32 %v2356_v31  ;;  %v2319_v31 = vsub.f32 %v8019_v9, %v8285_v29 }
 0x283   :  { %v8299_v6 = vpop.eup %5062 }
 0x284   :  { %v2358_v59 = vmul.f32 %v8299_v6, %v2292_v27  ;;  %v2359_v61 = vmul.f32 %v8299_v6, %v2293_v33  ;;  %v2360_v53 = vmul.f32 %v8299_v6, %v2294_v60  ;;  %v2361_v58 = vmul.f32 %v8299_v6, %v2295_v50 }
 0x285   :  { %v2362_v42 = vmul.f32 %v8299_v6, %v2296_v0  ;;  %v2363_v19 = vmul.f32 %v8299_v6, %v2297_v46  ;;  %v2364_v30 = vmul.f32 %v8299_v6, %v2298_v37  ;;  %v2365_v35 = vmul.f32 %v8299_v6, %v2299_v49  ;;  %v11858_v46 = vld [vmem:[#allocation82_spill] sm:$0xff]  ;;  %v11859_v37 = vld [vmem:[#allocation83_spill] sm:$0xff] }
 0x286   :  { %v2422_v51 = vmax.f32 %v2358_v59, 0.0  ;;  %v2423_v20 = vmax.f32 %v2359_v61, 0.0  ;;  %v2424_v2 = vmax.f32 %v2360_v53, 0.0  ;;  %v2425_v56 = vmax.f32 %v2361_v58, 0.0  ;;  %v11856_v61 = vld [vmem:[#allocation37_spill] sm:$0xff] }
 0x287   :  { %v2426_v55 = vmax.f32 %v2362_v42, 0.0  ;;  %v2320_v27 = vsub.f32 %v8029_v25, %v8285_v29  ;;  %v2321_v33 = vsub.f32 %v8039_v3, %v8285_v29  ;;  %v2427_v60 = vmax.f32 %v2363_v19, 0.0  ;;  %v11857_v53 = vld [vmem:[#allocation29_spill] sm:$0xff] }
 0x288   :  { %4954 = vmatprep.mubr.msk.f32.mxu0 %vm15_vm0, %v2422_v51  ;;  %v2322_v50 = vsub.f32 %v8049_v17, %v8285_v29  ;;  %v2323_v0 = vsub.f32 %v8056_v1, %v8285_v29  ;;  %v2324_v59 = vsub.f32 %v8063_v39, %v8285_v29  ;;  %v2428_v9 = vmax.f32 %v2364_v30, 0.0  ;;  %v11860_v51 = vld [vmem:[#allocation84_spill] sm:$0xff] }
 0x289   :  { %4955 = vmatmul.mubr.msk.f32.vlgmr.msra.gmra.mxu0 %vm15_vm0, %v2423_v20  ;;  %v2366_v25 = vmul.f32 %v8299_v6, %v2300_v40  ;;  %v2325_v3 = vsub.f32 %v11856_v61, %v8285_v29  ;;  %v2326_v58 = vsub.f32 %v11857_v53, %v8285_v29  ;;  %v2327_v17 = vsub.f32 %v11858_v46, %v8285_v29  ;;  %v11861_v20 = vld [vmem:[#allocation85_spill] sm:$0xff] }
 0x28a   :  { %4957 = vmatprep.mubr.msk.f32.mxu0 %vm15_vm0, %v2424_v2  ;;  %v2328_v1 = vsub.f32 %v11859_v37, %v8285_v29  ;;  %v2329_v39 = vsub.f32 %v11860_v51, %v8285_v29  ;;  %v2330_v2 = vsub.f32 %v11861_v20, %v8285_v29  ;;  %v2429_v42 = vmax.f32 %v2365_v35, 0.0 }
 0x28b   :  { %v2367_v49 = vmul.f32 %v8299_v6, %v2301_v13  ;;  %v2368_v40 = vmul.f32 %v8299_v6, %v2302_v12  ;;  %v8378_v19 = vmul.f32 %v8299_v6, %v2320_v27  ;;  %v8384_v30 = vmul.f32 %v8299_v6, %v2322_v50 }
 0x28c   :  { %v8387_v35 = vmul.f32 %v8299_v6, %v2323_v0  ;;  %v2430_v13 = vmax.f32 %v2366_v25, 0.0  ;;  %v2331_v12 = vsub.f32 %v11831_v24, %v8285_v29  ;;  %v2333_v27 = vsub.f32 %v11833_v41, %v8285_v29  ;;  %v11863_v0 = vld [vmem:[#allocation91_spill] sm:$0xff] }
 0x28d   :  { %4958 = vmatmul.mubr.msk.f32.gmra.mxu0 %vm15_vm0, %v2425_v56  ;;  %v8374_v56 = vmul.f32 %v8299_v6, %v2319_v31  ;;  %v2332_v31 = vsub.f32 %v11832_v18, %v8285_v29  ;;  %v2335_v50 = vsub.f32 %v11835_v14, %v8285_v29  ;;  %v2369_v24 = vmul.f32 %v8299_v6, %v2303_v4  ;;  %v11873_v14 = vld [vmem:[#allocation62_spill] sm:$0xff] }
 0x28e   :  { %4960 = vmatprep.mubr.msk.f32.mxu0 %vm15_vm0, %v2426_v55  ;;  %v8381_v55 = vmul.f32 %v8299_v6, %v2321_v33  ;;  %v11862_v33 = vld [vmem:[#allocation89_spill] sm:$0xff]  ;;  %v2390_v25 = vmul.f32 %v8299_v6, %v2324_v59  ;;  %v2391_v18 = vmul.f32 %v8299_v6, %v2325_v3  ;;  %v2392_v41 = vmul.f32 %v8299_v6, %v2326_v58 }
 0x28f   :  { %v2431_v53 = vmax.f32 %v2367_v49, 0.0  ;;  %v2432_v46 = vmax.f32 %v2368_v40, 0.0  ;;  %v2370_v37 = vmul.f32 %v8299_v6, %v2304_v15  ;;  %v2393_v51 = vmul.f32 %v8299_v6, %v2327_v17  ;;  %v11865_v40 = vld [vmem:[#allocation36_spill] sm:$0xff] }
 0x290   :  { %v2454_v20 = vmax.f32 %v2390_v25, 0.0  ;;  %v2456_v61 = vmax.f32 %v2392_v41, 0.0  ;;  %v2394_v4 = vmul.f32 %v8299_v6, %v2328_v1  ;;  %v2344_v59 = vsub.f32 %v11844_v10, %v8285_v29 }
 0x291   :  { %4961 = vmatmul.mubr.msk.f32.gmra.mxu0 %vm15_vm0, %v2427_v60  ;;  %v2334_v60 = vsub.f32 %v11862_v33, %v8285_v29  ;;  %v2345_v3 = vsub.f32 %v11845_v38, %v8285_v29  ;;  %v2346_v58 = vsub.f32 %v11846_v16, %v8285_v29  ;;  %v2347_v15 = vsub.f32 %v11847_v47, %v8285_v29 }
 0x292   :  { %4963 = vmatprep.mubr.msk.f32.mxu0 %vm15_vm0, %v2428_v9  ;;  %v2343_v9 = vsub.f32 %v11843_v44, %v8285_v29  ;;  %v2455_v44 = vmax.f32 %v2391_v18, 0.0  ;;  %v2371_v17 = vmul.f32 %v8299_v6, %v2305_v62  ;;  %5002 = vmatprep.mubr.msk.f32.mxu1 %vm15_vm0, %v2454_v20  ;;  %v2348_v1 = vsub.f32 %v11848_v11, %v8285_v29 }
 0x293   :  { %v2349_v10 = vsub.f32 %v11849_v43, %v8285_v29  ;;  %v2350_v38 = vsub.f32 %v11850_v63, %v8285_v29  ;;  %v2433_v16 = vmax.f32 %v2369_v24, 0.0  ;;  %v2457_v47 = vmax.f32 %v2393_v51, 0.0 }
 0x294   :  { %5003 = vmatmul.mubr.msk.f32.vlgmr.msra.gmra.mxu1 %vm15_vm0, %v2455_v44  ;;  %v2395_v57 = vmul.f32 %v8299_v6, %v2329_v39  ;;  %v2351_v62 = vsub.f32 %v11851_v45, %v8285_v29  ;;  %v2434_v11 = vmax.f32 %v2370_v37, 0.0  ;;  %v2372_v43 = vmul.f32 %v8299_v6, %v2306_v34  ;;  %v11864_v45 = vld [vmem:[#allocation46_spill] sm:$0xff] }
 0x295   :  { %4964 = vmatmul.mubr.msk.f32.gmra.mxu0 %vm15_vm0, %v2429_v42  ;;  %5005 = vmatprep.mubr.msk.f32.mxu1 %vm15_vm0, %v2456_v61  ;;  %v2458_v63 = vmax.f32 %v2394_v4, 0.0  ;;  %v2396_v42 = vmul.f32 %v8299_v6, %v2330_v2  ;;  %v2373_v39 = vmul.f32 %v8299_v6, %v2307_v22  ;;  %v2352_v49 = vsub.f32 %v11864_v45, %v8285_v29  ;;  %v11867_v2 = vld [vmem:[#allocation48_spill] sm:$0xff] }
 0x296   :  { %4966 = vmatprep.mubr.msk.f32.mxu0 %vm15_vm0, %v2430_v13  ;;  %v2353_v13 = vsub.f32 %v11865_v40, %v8285_v29  ;;  %v2354_v24 = vsub.f32 %v11866_v23, %v8285_v29  ;;  %v2435_v34 = vmax.f32 %v2371_v17, 0.0  ;;  %v2397_v61 = vmul.f32 %v8299_v6, %v2331_v12 }
 0x297   :  { %v8456_v25 = vmul.f32 %v8299_v6, %v2343_v9  ;;  %v2355_v21 = vsub.f32 %v11867_v2, %v8285_v29  ;;  %v2459_v22 = vmax.f32 %v2395_v57, 0.0  ;;  %v8463_v18 = vmul.f32 %v8299_v6, %v2344_v59 }
 0x298   :  { %5006 = vmatmul.mubr.msk.f32.gmra.mxu1 %vm15_vm0, %v2457_v47  ;;  %v8466_v41 = vmul.f32 %v8299_v6, %v2345_v3  ;;  %v2436_v12 = vmax.f32 %v2372_v43, 0.0  ;;  %v2374_v9 = vmul.f32 %v8299_v6, %v2308_v52  ;;  %v2398_v37 = vmul.f32 %v8299_v6, %v2332_v31  ;;  %v11869_v47 = vld [vmem:[#allocation60_spill] sm:$0xff] }
 0x299   :  { %4967 = vmatmul.mubr.msk.f32.gmra.mxu0 %vm15_vm0, %v2431_v53  ;;  %v8469_v53 = vmul.f32 %v8299_v6, %v2346_v58  ;;  %5008 = vmatprep.mubr.msk.f32.mxu1 %vm15_vm0, %v2458_v63  ;;  %v2437_v51 = vmax.f32 %v2373_v39, 0.0  ;;  %v2375_v20 = vmul.f32 %v8299_v6, %v2309_v8  ;;  %v2399_v44 = vmul.f32 %v8299_v6, %v2333_v27 }
 0x29a   :  { %4969 = vmatprep.mubr.msk.f32.mxu0 %vm15_vm0, %v2432_v46  ;;  %v2460_v46 = vmax.f32 %v2396_v42, 0.0  ;;  %v8484_v4 = vmul.f32 %v8299_v6, %v2347_v15  ;;  %v8487_v26 = vmul.f32 %v8299_v6, %v2348_v1  ;;  %v8490_v52 = vmul.f32 %v8299_v6, %v2349_v10 }
 0x29b   :  { %v8493_v59 = vmul.f32 %v8299_v6, %v2350_v38  ;;  %v8496_v31 = vmul.f32 %v8299_v6, %v2351_v62  ;;  %v2461_v36 = vmax.f32 %v2397_v61, 0.0  ;;  %v8501_v8 = vmul.f32 %v8299_v6, %v2352_v49  ;;  %v11868_v38 = vld [vmem:[#allocation58_spill] sm:$0xff]  ;;  %v11871_v62 = vld [vmem:[#allocation93_spill] sm:$0xff] }
 0x29c   :  { %5009 = vmatmul.mubr.msk.f32.gmra.mxu1 %vm15_vm0, %v2459_v22  ;;  %v8504_v27 = vmul.f32 %v8299_v6, %v2353_v13  ;;  %v8507_v3 = vmul.f32 %v8299_v6, %v2354_v24  ;;  %v2438_v58 = vmax.f32 %v2374_v9, 0.0  ;;  %v2376_v15 = vmul.f32 %v8299_v6, %v2310_v32  ;;  %v11875_v13 = vld [vmem:[#allocation32_spill] sm:$0xff]  ;;  %v11877_v9 = vld [vmem:[#allocation63_spill] sm:$0xff] }
 0x29d   :  { %4970 = vmatmul.mubr.msk.f32.gmra.mxu0 %vm15_vm0, %v2433_v16  ;;  %5011 = vmatprep.mubr.msk.f32.mxu1 %vm15_vm0, %v2460_v46  ;;  %v2462_v17 = vmax.f32 %v2398_v37, 0.0  ;;  %v2400_v1 = vmul.f32 %v8299_v6, %v2334_v60  ;;  %v8520_v10 = vmul.f32 %v8299_v6, %v2355_v21  ;;  %v2313_v16 = vsub.f32 %v11868_v38, %v8285_v29  ;;  %v11878_v37 = vld [vmem:[#allocation26_spill] sm:$0xff] }
 0x29e   :  { %4972 = vmatprep.mubr.msk.f32.mxu0 %vm15_vm0, %v2434_v11  ;;  %v2314_v57 = vsub.f32 %v11869_v47, %v8285_v29  ;;  %v2337_v32 = vsub.f32 %v11870_v5, %v8285_v29  ;;  %v2338_v11 = vsub.f32 %v11871_v62, %v8285_v29  ;;  %v2439_v33 = vmax.f32 %v2375_v20, 0.0  ;;  %v11879_v20 = vld [vmem:[#allocation9_spill] sm:$0xff] }
 0x29f   :  { %v2377_v60 = vmul.f32 %v8299_v6, %v2311_v7  ;;  %v2463_v43 = vmax.f32 %v2399_v44, 0.0  ;;  %v2401_v63 = vmul.f32 %v8299_v6, %v2335_v50  ;;  %v2440_v42 = vmax.f32 %v2376_v15, 0.0  ;;  %v11874_v50 = vld [vmem:[#allocation38_spill] sm:$0xff] }
 0x2a0   :  { %5012 = vmatmul.mubr.msk.f32.gmra.mxu1 %vm15_vm0, %v2461_v36  ;;  %v2378_v39 = vmul.f32 %v8299_v6, %v2312_v48  ;;  %v2464_v28 = vmax.f32 %v2400_v1, 0.0  ;;  %v11872_v7 = vsub.f32 %v11863_v0, %v8285_v29  ;;  %v2315_v49 = vsub.f32 %v11873_v14, %v8285_v29  ;;  %v11880_v36 = vld [vmem:[#allocation16_spill] sm:$0xff] }
 0x2a1   :  { %4973 = vmatmul.mubr.msk.f32.gmra.mxu0 %vm15_vm0, %v2435_v34  ;;  %5014 = vmatprep.mubr.msk.f32.mxu1 %vm15_vm0, %v2462_v17  ;;  %v2316_v40 = vsub.f32 %v11874_v50, %v8285_v29  ;;  %v2339_v23 = vsub.f32 %v11875_v13, %v8285_v29  ;;  %v2340_v48 = vsub.f32 %v11876_v54, %v8285_v29  ;;  %v2441_v24 = vmax.f32 %v2377_v60, 0.0 }
 0x2a2   :  { %4975 = vmatprep.mubr.msk.f32.mxu0 %vm15_vm0, %v2436_v12  ;;  %v2402_v45 = vmul.f32 %v8299_v6, %v11872_v7  ;;  %v2379_v34 = vmul.f32 %v8299_v6, %v2313_v16  ;;  %v2465_v0 = vmax.f32 %v2401_v63, 0.0  ;;  %v2403_v61 = vmul.f32 %v8299_v6, %v2337_v32 }
 0x2a3   :  { %v2442_v2 = vmax.f32 %v2378_v39, 0.0  ;;  %v2380_v21 = vmul.f32 %v8299_v6, %v2314_v57  ;;  %v2404_v12 = vmul.f32 %v8299_v6, %v2338_v11  ;;  %v2317_v46 = vsub.f32 %v11877_v9, %v8285_v29 }
 0x2a4   :  { %5015 = vmatmul.mubr.msk.f32.gmra.mxu1 %vm15_vm0, %v2463_v43  ;;  %v2466_v22 = vmax.f32 %v2402_v45, 0.0  ;;  %v2341_v44 = vsub.f32 %v11879_v20, %v8285_v29  ;;  %v2443_v15 = vmax.f32 %v2379_v34, 0.0  ;;  %v2381_v17 = vmul.f32 %v8299_v6, %v2315_v49 }
 0x2a5   :  { %4976 = vmatmul.mubr.msk.f32.gmra.mxu0 %vm15_vm0, %v2437_v51  ;;  %5017 = vmatprep.mubr.msk.f32.mxu1 %vm15_vm0, %v2464_v28  ;;  %v2318_v51 = vsub.f32 %v11878_v37, %v8285_v29  ;;  %v2467_v1 = vmax.f32 %v2403_v61, 0.0  ;;  %v2405_v38 = vmul.f32 %v8299_v6, %v2339_v23  ;;  %v2444_v16 = vmax.f32 %v2380_v21, 0.0 }
 0x2a6   :  { %4978 = vmatprep.mubr.msk.f32.mxu0 %vm15_vm0, %v2438_v58  ;;  %v2342_v58 = vsub.f32 %v11880_v36, %v8285_v29  ;;  %v2382_v47 = vmul.f32 %v8299_v6, %v2316_v40  ;;  %v2468_v57 = vmax.f32 %v2404_v12, 0.0  ;;  %v2406_v29 = vmul.f32 %v8299_v6, %v2340_v48 }
 0x2a7   :  { %v2445_v5 = vmax.f32 %v2381_v17, 0.0  ;;  %v2383_v32 = vmul.f32 %v8299_v6, %v2317_v46  ;;  %v2469_v62 = vmax.f32 %v2405_v38, 0.0  ;;  %v2407_v11 = vmul.f32 %v8299_v6, %v2341_v44 }
 0x2a8   :  { %5018 = vmatmul.mubr.msk.f32.gmra.mxu1 %vm15_vm0, %v2465_v0  ;;  %v2384_v60 = vmul.f32 %v8299_v6, %v2318_v51  ;;  %v2470_v43 = vmax.f32 %v2406_v29, 0.0  ;;  %v2408_v63 = vmul.f32 %v8299_v6, %v2342_v58  ;;  %v2449_v45 = vmax.f32 %v8374_v56, 0.0 }
 0x2a9   :  { %4979 = vmatmul.mubr.msk.f32.gmra.mxu0 %vm15_vm0, %v2439_v33  ;;  %5020 = vmatprep.mubr.msk.f32.mxu1 %vm15_vm0, %v2466_v22  ;;  %v2446_v33 = vmax.f32 %v2382_v47, 0.0  ;;  %v2471_v39 = vmax.f32 %v2407_v11, 0.0  ;;  %v2473_v6 = vmax.f32 %v8456_v25, 0.0  ;;  %v2450_v14 = vmax.f32 %v8378_v19, 0.0 }
 0x2aa   :  { %4981 = vmatprep.mubr.msk.f32.mxu0 %vm15_vm0, %v2440_v42  ;;  %v2447_v42 = vmax.f32 %v2383_v32, 0.0  ;;  %v2448_v28 = vmax.f32 %v2384_v60, 0.0  ;;  %v2472_v7 = vmax.f32 %v2408_v63, 0.0  ;;  %v2474_v49 = vmax.f32 %v8463_v18, 0.0 }
 0x2ab   :  { %v2451_v50 = vmax.f32 %v8381_v55, 0.0  ;;  %v2475_v56 = vmax.f32 %v8466_v41, 0.0  ;;  %v2452_v25 = vmax.f32 %v8384_v30, 0.0  ;;  %v2476_v19 = vmax.f32 %v8469_v53, 0.0 }
 0x2ac   :  { %5021 = vmatmul.mubr.msk.f32.gmra.mxu1 %vm15_vm0, %v2467_v1  ;;  %v2453_v18 = vmax.f32 %v8387_v35, 0.0  ;;  %v2477_v55 = vmax.f32 %v8484_v4, 0.0  ;;  %v2478_v41 = vmax.f32 %v8487_v26, 0.0  ;;  %v2479_v30 = vmax.f32 %v8490_v52, 0.0 }
 0x2ad   :  { %4982 = vmatmul.mubr.msk.f32.gmra.mxu0 %vm15_vm0, %v2441_v24  ;;  %5023 = vmatprep.mubr.msk.f32.mxu1 %vm15_vm0, %v2468_v57  ;;  %v2480_v35 = vmax.f32 %v8493_v59, 0.0  ;;  %v2481_v53 = vmax.f32 %v8496_v31, 0.0  ;;  %v2482_v4 = vmax.f32 %v8501_v8, 0.0  ;;  %v2483_v26 = vmax.f32 %v8504_v27, 0.0 }
 0x2ae   :  { %4984 = vmatprep.mubr.msk.f32.mxu0 %vm15_vm0, %v2442_v2  ;;  %v2484_v52 = vmax.f32 %v8507_v3, 0.0  ;;  %v2485_v59 = vmax.f32 %v8520_v10, 0.0 }
 0x2b0   :  { %5024 = vmatmul.mubr.msk.f32.gmra.mxu1 %vm15_vm0, %v2469_v62 }
 0x2b1   :  { %4985 = vmatmul.mubr.msk.f32.gmra.mxu0 %vm15_vm0, %v2443_v15  ;;  %5026 = vmatprep.mubr.msk.f32.mxu1 %vm15_vm0, %v2470_v43 }
 0x2b2   :  { %4987 = vmatprep.mubr.msk.f32.mxu0 %vm15_vm0, %v2444_v16 }
 0x2b4   :  { %5027 = vmatmul.mubr.msk.f32.gmra.mxu1 %vm15_vm0, %v2471_v39 }
 0x2b5   :  { %4988 = vmatmul.mubr.msk.f32.gmra.mxu0 %vm15_vm0, %v2445_v5  ;;  %5029 = vmatprep.mubr.msk.f32.mxu1 %vm15_vm0, %v2472_v7 }
 0x2b6   :  { %4990 = vmatprep.mubr.msk.f32.mxu0 %vm15_vm0, %v2446_v33 }
 0x2b8   :  { %5030 = vmatmul.mubr.msk.f32.gmra.mxu1 %vm15_vm0, %v2473_v6 }
 0x2b9   :  { %4991 = vmatmul.mubr.msk.f32.gmra.mxu0 %vm15_vm0, %v2447_v42  ;;  %5032 = vmatprep.mubr.msk.f32.mxu1 %vm15_vm0, %v2474_v49 }
 0x2ba   :  { %4993 = vmatprep.mubr.msk.f32.mxu0 %vm15_vm0, %v2448_v28 }
 0x2bc   :  { %5033 = vmatmul.mubr.msk.f32.gmra.mxu1 %vm15_vm0, %v2475_v56 }
 0x2bd   :  { %4994 = vmatmul.mubr.msk.f32.gmra.mxu0 %vm15_vm0, %v2449_v45  ;;  %5035 = vmatprep.mubr.msk.f32.mxu1 %vm15_vm0, %v2476_v19 }
 0x2be   :  { %4996 = vmatprep.mubr.msk.f32.mxu0 %vm15_vm0, %v2450_v14 }
 0x2c0   :  { %5036 = vmatmul.mubr.msk.f32.gmra.mxu1 %vm15_vm0, %v2477_v55 }
 0x2c1   :  { %4997 = vmatmul.mubr.msk.f32.gmra.mxu0 %vm15_vm0, %v2451_v50  ;;  %5038 = vmatprep.mubr.msk.f32.mxu1 %vm15_vm0, %v2478_v41 }
 0x2c2   :  { %4999 = vmatprep.mubr.msk.f32.mxu0 %vm15_vm0, %v2452_v25 }
 0x2c4   :  { %5039 = vmatmul.mubr.msk.f32.gmra.mxu1 %vm15_vm0, %v2479_v30 }
 0x2c5   :  { %5000 = vmatmul.mubr.msk.f32.gmra.mxu0 %vm15_vm0, %v2453_v18  ;;  %5041 = vmatprep.mubr.msk.f32.mxu1 %vm15_vm0, %v2480_v35 }
 0x2c8   :  { %5042 = vmatmul.mubr.msk.f32.gmra.mxu1 %vm15_vm0, %v2481_v53 }
 0x2c9   :  { %5044 = vmatprep.mubr.msk.f32.mxu1 %vm15_vm0, %v2482_v4 }
 0x2cc   :  { %5045 = vmatmul.mubr.msk.f32.gmra.mxu1 %vm15_vm0, %v2483_v26 }
 0x2cd   :  { %5047 = vmatprep.mubr.msk.f32.mxu1 %vm15_vm0, %v2484_v52 }
 0x2d0   :  { %5048 = vmatmul.mubr.msk.f32.gmra.mxu1 %vm15_vm0, %v2485_v59  ;;  %vm4202_vm0 = vcmask 1048448  }
 0x349   :  { %v8634_v31 = vpop.f32.mrf.mxu0 }
 0x34a   :  { %v3199_v27 = vmul.f32 %v8634_v31, %v8634_v31  ;;  %v3066_v10 = vsel %vm3064_vm2, %v8634_v31, 0.0 }
 0x34b   :  { %v8636_v8 = vpop.f32.mrf.mxu0 }
 0x34c   :  { %v3065_v40 = vsel %vm3064_vm2, %v8636_v8, 0.0  ;;  %v3198_v3 = vmul.f32 %v8636_v8, %v8636_v8  ;;  %v3263_v24 = vsel %vm3064_vm2, %v3199_v27, 0.0 }
 0x34d   :  { %v8644_v13 = vpop.f32.mrf.mxu0  ;;  %v3067_v54 = vadd.f32 %v3066_v10, %v3065_v40 }
 0x34e   :  { %v3262_v23 = vsel %vm3064_vm2, %v3198_v3, 0.0  ;;  %v3201_v34 = vmul.f32 %v8644_v13, %v8644_v13  ;;  %v3070_v12 = vsel %vm3064_vm2, %v8644_v13, 0.0 }
 0x34f   :  { %v8649_v48 = vpop.f32.mrf.mxu0  ;;  %v3264_v2 = vadd.f32 %v3263_v24, %v3262_v23 }
 0x350   :  { %v3068_v0 = vsel %vm3064_vm2, %v8649_v48, 0.0  ;;  %v3200_v61 = vmul.f32 %v8649_v48, %v8649_v48  ;;  %v3267_v20 = vsel %vm3064_vm2, %v3201_v34, 0.0 }
 0x351   :  { %v3069_v21 = vadd.f32 %v3068_v0, %v3067_v54  ;;  %v8658_v22 = vpop.f32.mrf.mxu0 }
 0x352   :  { %v3265_v9 = vsel %vm3064_vm2, %v3200_v61, 0.0  ;;  %v3203_v44 = vmul.f32 %v8658_v22, %v8658_v22  ;;  %v3074_v38 = vsel %vm3064_vm2, %v8658_v22, 0.0 }
 0x353   :  { %v3266_v46 = vadd.f32 %v3265_v9, %v3264_v2  ;;  %v8663_v37 = vpop.f32.mrf.mxu0  ;;  %v3071_v51 = vadd.f32 %v3070_v12, %v3069_v21 }
 0x354   :  { %v3072_v36 = vsel %vm3064_vm2, %v8663_v37, 0.0  ;;  %v3202_v58 = vmul.f32 %v8663_v37, %v8663_v37  ;;  %v3271_v5 = vsel %vm3064_vm2, %v3203_v44, 0.0  ;;  %v8688_v63 = vpop.f32.mrf.mxu1 }
 0x355   :  { %v3073_v15 = vadd.f32 %v3072_v36, %v3071_v51  ;;  %v3268_v17 = vadd.f32 %v3267_v20, %v3266_v46  ;;  %v8672_v1 = vpop.f32.mrf.mxu0  ;;  %11881 = vst [vmem:[#allocation27_spill] sm:$0xff] %v8688_v63 }
 0x356   :  { %v3269_v16 = vsel %vm3064_vm2, %v3202_v58, 0.0  ;;  %v3205_v32 = vmul.f32 %v8672_v1, %v8672_v1  ;;  %v3078_v42 = vsel %vm3064_vm2, %v8672_v1, 0.0  ;;  %v8695_v6 = vpop.f32.mrf.mxu1 }
 0x357   :  { %v3270_v47 = vadd.f32 %v3269_v16, %v3268_v17  ;;  %v8677_v57 = vpop.f32.mrf.mxu0  ;;  %v3075_v29 = vadd.f32 %v3074_v38, %v3073_v15 }
 0x358   :  { %v3076_v62 = vsel %vm3064_vm2, %v8677_v57, 0.0  ;;  %v3204_v11 = vmul.f32 %v8677_v57, %v8677_v57  ;;  %v3275_v14 = vsel %vm3064_vm2, %v3205_v32, 0.0  ;;  %v8706_v55 = vpop.f32.mrf.mxu1 }
 0x359   :  { %v3077_v33 = vadd.f32 %v3076_v62, %v3075_v29  ;;  %v3272_v60 = vadd.f32 %v3271_v5, %v3270_v47  ;;  %v8686_v43 = vpop.f32.mrf.mxu0  ;;  %11882 = vst [vmem:[#allocation30_spill] sm:$0xff] %v8706_v55 }
 0x35a   :  { %v3273_v39 = vsel %vm3064_vm2, %v3204_v11, 0.0  ;;  %v3207_v49 = vmul.f32 %v8686_v43, %v8686_v43  ;;  %v3082_v41 = vsel %vm3064_vm2, %v8686_v43, 0.0  ;;  %v8713_v26 = vpop.f32.mrf.mxu1 }
 0x35b   :  { %v3274_v28 = vadd.f32 %v3273_v39, %v3272_v60  ;;  %v8693_v7 = vpop.f32.mrf.mxu0  ;;  %v3079_v45 = vadd.f32 %v3078_v42, %v3077_v33 }
 0x35c   :  { %v3080_v50 = vsel %vm3064_vm2, %v8693_v7, 0.0  ;;  %v3206_v56 = vmul.f32 %v8693_v7, %v8693_v7  ;;  %v3279_v52 = vsel %vm3064_vm2, %v3207_v49, 0.0  ;;  %v8724_v54 = vpop.f32.mrf.mxu1 }
 0x35d   :  { %v3081_v25 = vadd.f32 %v3080_v50, %v3079_v45  ;;  %v3276_v19 = vadd.f32 %v3275_v14, %v3274_v28  ;;  %v8704_v18 = vpop.f32.mrf.mxu0  ;;  %11883 = vst [vmem:[#allocation7_spill] sm:$0xff] %v8724_v54 }
 0x35e   :  { %v3277_v30 = vsel %vm3064_vm2, %v3206_v56, 0.0  ;;  %v3209_v59 = vmul.f32 %v8704_v18, %v8704_v18  ;;  %v3086_v24 = vsel %vm3064_vm2, %v8704_v18, 0.0  ;;  %v8731_v21 = vpop.f32.mrf.mxu1 }
 0x35f   :  { %v3278_v35 = vadd.f32 %v3277_v30, %v3276_v19  ;;  %v8711_v53 = vpop.f32.mrf.mxu0  ;;  %v3083_v4 = vadd.f32 %v3082_v41, %v3081_v25 }
 0x360   :  { %v3084_v27 = vsel %vm3064_vm2, %v8711_v53, 0.0  ;;  %v3208_v40 = vmul.f32 %v8711_v53, %v8711_v53  ;;  %v3283_v12 = vsel %vm3064_vm2, %v3209_v59, 0.0  ;;  %v8742_v58 = vpop.f32.mrf.mxu1 }
 0x361   :  { %v3085_v3 = vadd.f32 %v3084_v27, %v3083_v4  ;;  %v3280_v10 = vadd.f32 %v3279_v52, %v3278_v35  ;;  %v8722_v23 = vpop.f32.mrf.mxu0  ;;  %11884 = vst [vmem:[#allocation35_spill] sm:$0xff] %v8742_v58 }
 0x362   :  { %v3281_v34 = vsel %vm3064_vm2, %v3208_v40, 0.0  ;;  %v3211_v9 = vmul.f32 %v8722_v23, %v8722_v23  ;;  %v3090_v15 = vsel %vm3064_vm2, %v8722_v23, 0.0  ;;  %v8749_v29 = vpop.f32.mrf.mxu1 }
 0x363   :  { %v3282_v0 = vadd.f32 %v3281_v34, %v3280_v10  ;;  %v8729_v61 = vpop.f32.mrf.mxu0  ;;  %v3087_v2 = vadd.f32 %v3086_v24, %v3085_v3 }
 0x364   :  { %v3088_v46 = vsel %vm3064_vm2, %v8729_v61, 0.0  ;;  %v3210_v51 = vmul.f32 %v8729_v61, %v8729_v61  ;;  %v3287_v5 = vsel %vm3064_vm2, %v3211_v9, 0.0  ;;  %v8760_v39 = vpop.f32.mrf.mxu1 }
 0x365   :  { %v3089_v20 = vadd.f32 %v3088_v46, %v3087_v2  ;;  %v3284_v44 = vadd.f32 %v3283_v12, %v3282_v0  ;;  %v8740_v36 = vpop.f32.mrf.mxu0  ;;  %11885 = vst [vmem:[#allocation57_spill] sm:$0xff] %v8760_v39 }
 0x366   :  { %v3285_v17 = vsel %vm3064_vm2, %v3210_v51, 0.0  ;;  %v3213_v32 = vmul.f32 %v8740_v36, %v8740_v36  ;;  %v3094_v28 = vsel %vm3064_vm2, %v8740_v36, 0.0  ;;  %v8767_v56 = vpop.f32.mrf.mxu1 }
 0x367   :  { %v3286_v38 = vadd.f32 %v3285_v17, %v3284_v44  ;;  %v8747_v16 = vpop.f32.mrf.mxu0  ;;  %v3091_v47 = vadd.f32 %v3090_v15, %v3089_v20 }
 0x368   :  { %v3092_v62 = vsel %vm3064_vm2, %v8747_v16, 0.0  ;;  %v3212_v11 = vmul.f32 %v8747_v16, %v8747_v16  ;;  %v3291_v25 = vsel %vm3064_vm2, %v3213_v32, 0.0  ;;  %v8783_v24 = vpop.f32.mrf.mxu1 }
 0x369   :  { %v3093_v33 = vadd.f32 %v3092_v62, %v3091_v47  ;;  %v3288_v60 = vadd.f32 %v3287_v5, %v3286_v38  ;;  %v8758_v42 = vpop.f32.mrf.mxu0  ;;  %11886 = vst [vmem:[#allocation64_spill] sm:$0xff] %v8783_v24 }
 0x36a   :  { %v3289_v45 = vsel %vm3064_vm2, %v3212_v11, 0.0  ;;  %v3215_v19 = vmul.f32 %v8758_v42, %v8758_v42  ;;  %v3098_v59 = vsel %vm3064_vm2, %v8758_v42, 0.0  ;;  %v8799_v47 = vpop.f32.mrf.mxu1 }
 0x36b   :  { %v3290_v14 = vadd.f32 %v3289_v45, %v3288_v60  ;;  %v8765_v49 = vpop.f32.mrf.mxu0  ;;  %v3095_v50 = vadd.f32 %v3094_v28, %v3093_v33 }
 0x36c   :  { %v3096_v41 = vsel %vm3064_vm2, %v8765_v49, 0.0  ;;  %v3214_v30 = vmul.f32 %v8765_v49, %v8765_v49  ;;  %v3295_v34 = vsel %vm3064_vm2, %v3215_v19, 0.0 }
 0x36d   :  { %v3097_v35 = vadd.f32 %v3096_v41, %v3095_v50  ;;  %v3292_v4 = vadd.f32 %v3291_v25, %v3290_v14  ;;  %v8776_v52 = vpop.f32.mrf.mxu0  ;;  %v8815_v41 = vpop.f32.mrf.mxu1 }
 0x36e   :  { %v3293_v27 = vsel %vm3064_vm2, %v3214_v30, 0.0  ;;  %v3217_v0 = vmul.f32 %v8776_v52, %v8776_v52  ;;  %v3102_v20 = vsel %vm3064_vm2, %v8776_v52, 0.0  ;;  %11887 = vst [vmem:[#allocation39_spill] sm:$0xff] %v8815_v41 }
 0x36f   :  { %v3294_v40 = vadd.f32 %v3293_v27, %v3292_v4  ;;  %v8781_v3 = vpop.f32.mrf.mxu0  ;;  %v3099_v10 = vadd.f32 %v3098_v59, %v3097_v35 }
 0x370   :  { %v3100_v2 = vsel %vm3064_vm2, %v8781_v3, 0.0  ;;  %v3216_v12 = vmul.f32 %v8781_v3, %v8781_v3  ;;  %v3299_v5 = vsel %vm3064_vm2, %v3217_v0, 0.0 }
 0x371   :  { %v3101_v9 = vadd.f32 %v3100_v2, %v3099_v10  ;;  %v3296_v46 = vadd.f32 %v3295_v34, %v3294_v40  ;;  %v8792_v51 = vpop.f32.mrf.mxu0 }
 0x372   :  { %v3297_v44 = vsel %vm3064_vm2, %v3216_v12, 0.0  ;;  %v3219_v32 = vmul.f32 %v8792_v51, %v8792_v51  ;;  %v3106_v45 = vsel %vm3064_vm2, %v8792_v51, 0.0 }
 0x373   :  { %v3298_v15 = vadd.f32 %v3297_v44, %v3296_v46  ;;  %v8797_v17 = vpop.f32.mrf.mxu0  ;;  %v3103_v38 = vadd.f32 %v3102_v20, %v3101_v9  ;;  %v8831_v46 = vpop.f32.mrf.mxu1 }
 0x374   :  { %v3104_v62 = vsel %vm3064_vm2, %v8797_v17, 0.0  ;;  %v3218_v11 = vmul.f32 %v8797_v17, %v8797_v17  ;;  %v3303_v30 = vsel %vm3064_vm2, %v3219_v32, 0.0 }
 0x375   :  { %v3105_v33 = vadd.f32 %v3104_v62, %v3103_v38  ;;  %v3300_v60 = vadd.f32 %v3299_v5, %v3298_v15  ;;  %v8808_v28 = vpop.f32.mrf.mxu0 }
 0x376   :  { %v3301_v14 = vsel %vm3064_vm2, %v3218_v11, 0.0  ;;  %v3221_v35 = vmul.f32 %v8808_v28, %v8808_v28  ;;  %v3110_v34 = vsel %vm3064_vm2, %v8808_v28, 0.0 }
 0x377   :  { %v3302_v50 = vadd.f32 %v3301_v14, %v3300_v60  ;;  %v8813_v25 = vpop.f32.mrf.mxu0  ;;  %v3107_v19 = vadd.f32 %v3106_v45, %v3105_v33 }
 0x378   :  { %v3108_v4 = vsel %vm3064_vm2, %v8813_v25, 0.0  ;;  %v3220_v59 = vmul.f32 %v8813_v25, %v8813_v25  ;;  %v3307_v20 = vsel %vm3064_vm2, %v3221_v35, 0.0 }
 0x379   :  { %v3109_v27 = vadd.f32 %v3108_v4, %v3107_v19  ;;  %v3304_v40 = vadd.f32 %v3303_v30, %v3302_v50  ;;  %v8824_v10 = vpop.f32.mrf.mxu0  ;;  %v8847_v50 = vpop.f32.mrf.mxu1 }
 0x37a   :  { %v3305_v0 = vsel %vm3064_vm2, %v3220_v59, 0.0  ;;  %v3223_v44 = vmul.f32 %v8824_v10, %v8824_v10  ;;  %v3114_v11 = vsel %vm3064_vm2, %v8824_v10, 0.0  ;;  %11888 = vst [vmem:[#allocation65_spill] sm:$0xff] %v8847_v50 }
 0x37b   :  { %v3306_v2 = vadd.f32 %v3305_v0, %v3304_v40  ;;  %v8829_v12 = vpop.f32.mrf.mxu0  ;;  %v3111_v9 = vadd.f32 %v3110_v34, %v3109_v27 }
 0x37c   :  { %v3112_v15 = vsel %vm3064_vm2, %v8829_v12, 0.0  ;;  %v3222_v38 = vmul.f32 %v8829_v12, %v8829_v12  ;;  %v3311_v19 = vsel %vm3064_vm2, %v3223_v44, 0.0  ;;  %v8863_v44 = vpop.f32.mrf.mxu1 }
 0x37d   :  { %v3113_v5 = vadd.f32 %v3112_v15, %v3111_v9  ;;  %v3308_v32 = vadd.f32 %v3307_v20, %v3306_v2  ;;  %v8840_v62 = vpop.f32.mrf.mxu0 }
 0x37e   :  { %v3309_v33 = vsel %vm3064_vm2, %v3222_v38, 0.0  ;;  %v3225_v30 = vmul.f32 %v8840_v62, %v8840_v62  ;;  %v3118_v34 = vsel %vm3064_vm2, %v8840_v62, 0.0 }
 0x37f   :  { %v3310_v60 = vadd.f32 %v3309_v33, %v3308_v32  ;;  %v8845_v45 = vpop.f32.mrf.mxu0  ;;  %v3115_v14 = vadd.f32 %v3114_v11, %v3113_v5 }
 0x380   :  { %v3116_v35 = vsel %vm3064_vm2, %v8845_v45, 0.0  ;;  %v3224_v4 = vmul.f32 %v8845_v45, %v8845_v45  ;;  %v3315_v15 = vsel %vm3064_vm2, %v3225_v30, 0.0 }
 0x381   :  { %v3117_v59 = vadd.f32 %v3116_v35, %v3115_v14  ;;  %v3312_v27 = vadd.f32 %v3311_v19, %v3310_v60  ;;  %v8856_v40 = vpop.f32.mrf.mxu0 }
 0x382   :  { %11889 = vst [vmem:[#allocation51_spill] sm:$0xff] %v8856_v40  ;;  %v3313_v0 = vsel %vm3064_vm2, %v3224_v4, 0.0  ;;  %v3227_v38 = vmul.f32 %v8856_v40, %v8856_v40  ;;  %v3122_v14 = vsel %vm3064_vm2, %v8856_v40, 0.0  ;;  %v3231_v40 = vmul.f32 %v8688_v63, %v8688_v63 }
 0x383   :  { %v3314_v2 = vadd.f32 %v3313_v0, %v3312_v27  ;;  %v8861_v9 = vpop.f32.mrf.mxu0  ;;  %v3119_v20 = vadd.f32 %v3118_v34, %v3117_v59  ;;  %v8879_v59 = vpop.f32.mrf.mxu1 }
 0x384   :  { %v3120_v5 = vsel %vm3064_vm2, %v8861_v9, 0.0  ;;  %v3226_v32 = vmul.f32 %v8861_v9, %v8861_v9  ;;  %11891 = vst [vmem:[#allocation34_spill] sm:$0xff] %v8879_v59  ;;  %v3319_v27 = vsel %vm3064_vm2, %v3227_v38, 0.0 }
 0x385   :  { %v3121_v11 = vadd.f32 %v3120_v5, %v3119_v20  ;;  %v3316_v33 = vadd.f32 %v3315_v15, %v3314_v2  ;;  %v8872_v60 = vpop.f32.mrf.mxu0 }
 0x386   :  { %11890 = vst [vmem:[#allocation54_spill] sm:$0xff] %v8872_v60  ;;  %v3317_v19 = vsel %vm3064_vm2, %v3226_v32, 0.0  ;;  %v3229_v34 = vmul.f32 %v8872_v60, %v8872_v60  ;;  %v3126_v5 = vsel %vm3064_vm2, %v8872_v60, 0.0  ;;  %v3233_v60 = vmul.f32 %v8706_v55, %v8706_v55 }
 0x387   :  { %v3318_v35 = vadd.f32 %v3317_v19, %v3316_v33  ;;  %v8877_v30 = vpop.f32.mrf.mxu0  ;;  %v3123_v4 = vadd.f32 %v3122_v14, %v3121_v11  ;;  %v3230_v11 = vmul.f32 %v8695_v6, %v8695_v6  ;;  %v8893_v14 = vpop.f32.mrf.mxu1 }
 0x388   :  { %v3124_v0 = vsel %vm3064_vm2, %v8877_v30, 0.0  ;;  %v3228_v2 = vmul.f32 %v8877_v30, %v8877_v30  ;;  %11892 = vst [vmem:[#allocation59_spill] sm:$0xff] %v8893_v14  ;;  %v3323_v19 = vsel %vm3064_vm2, %v3229_v34, 0.0  ;;  %v3327_v34 = vsel %vm3064_vm2, %v3231_v40, 0.0 }
 0x389   :  { %v3125_v20 = vadd.f32 %v3124_v0, %v3123_v4  ;;  %v3320_v15 = vadd.f32 %v3319_v27, %v3318_v35  ;;  %v3128_v35 = vsel %vm3064_vm2, %v8695_v6, 0.0  ;;  %v3130_v0 = vsel %vm3064_vm2, %v8688_v63, 0.0 }
 0x38a   :  { %v3321_v32 = vsel %vm3064_vm2, %v3228_v2, 0.0  ;;  %v3325_v2 = vsel %vm3064_vm2, %v3230_v11, 0.0  ;;  %v3134_v11 = vsel %vm3064_vm2, %v8706_v55, 0.0  ;;  %v3331_v40 = vsel %vm3064_vm2, %v3233_v60, 0.0 }
 0x38b   :  { %v3127_v38 = vadd.f32 %v3126_v5, %v3125_v20  ;;  %v3322_v33 = vadd.f32 %v3321_v32, %v3320_v15  ;;  %v3232_v20 = vmul.f32 %v8713_v26, %v8713_v26  ;;  %v8905_v32 = vpop.f32.mrf.mxu1  ;;  %v3235_v63 = vmul.f32 %v8724_v54, %v8724_v54 }
 0x38c   :  { %11893 = vst [vmem:[#allocation12_spill] sm:$0xff] %v8905_v32  ;;  %v3237_v55 = vmul.f32 %v8742_v58, %v8742_v58 }
 0x38d   :  { %v3324_v4 = vadd.f32 %v3323_v19, %v3322_v33  ;;  %v3129_v27 = vadd.f32 %v3128_v35, %v3127_v38  ;;  %v3132_v38 = vsel %vm3064_vm2, %v8713_v26, 0.0  ;;  %v3329_v35 = vsel %vm3064_vm2, %v3232_v20, 0.0 }
 0x38e   :  { %v3138_v20 = vsel %vm3064_vm2, %v8724_v54, 0.0  ;;  %v3335_v60 = vsel %vm3064_vm2, %v3235_v63, 0.0  ;;  %v3339_v63 = vsel %vm3064_vm2, %v3237_v55, 0.0  ;;  %v3239_v54 = vmul.f32 %v8760_v39, %v8760_v39 }
 0x38f   :  { %v3326_v15 = vadd.f32 %v3325_v2, %v3324_v4  ;;  %v3131_v5 = vadd.f32 %v3130_v0, %v3129_v27  ;;  %v3234_v4 = vmul.f32 %v8731_v21, %v8731_v21  ;;  %v8917_v2 = vpop.f32.mrf.mxu1 }
 0x390   :  { %11894 = vst [vmem:[#allocation66_spill] sm:$0xff] %v8917_v2  ;;  %v3343_v55 = vsel %vm3064_vm2, %v3239_v54, 0.0 }
 0x391   :  { %v3133_v33 = vadd.f32 %v3132_v38, %v3131_v5  ;;  %v3328_v19 = vadd.f32 %v3327_v34, %v3326_v15  ;;  %v3136_v15 = vsel %vm3064_vm2, %v8731_v21, 0.0  ;;  %v3333_v38 = vsel %vm3064_vm2, %v3234_v4, 0.0 }
 0x392   :  { %v3142_v4 = vsel %vm3064_vm2, %v8742_v58, 0.0  ;;  %v3241_v58 = vmul.f32 %v8783_v24, %v8783_v24 }
 0x393   :  { %v3330_v27 = vadd.f32 %v3329_v35, %v3328_v19  ;;  %v3135_v0 = vadd.f32 %v3134_v11, %v3133_v33  ;;  %v3236_v33 = vmul.f32 %v8749_v29, %v8749_v29  ;;  %v8929_v35 = vpop.f32.mrf.mxu1 }
 0x394   :  { %11895 = vst [vmem:[#allocation13_spill] sm:$0xff] %v8929_v35  ;;  %v3347_v54 = vsel %vm3064_vm2, %v3241_v58, 0.0 }
 0x395   :  { %v3137_v5 = vadd.f32 %v3136_v15, %v3135_v0  ;;  %v3332_v34 = vadd.f32 %v3331_v40, %v3330_v27  ;;  %v3140_v27 = vsel %vm3064_vm2, %v8749_v29, 0.0  ;;  %v3337_v15 = vsel %vm3064_vm2, %v3236_v33, 0.0 }
 0x396   :  { %v3146_v33 = vsel %vm3064_vm2, %v8760_v39, 0.0  ;;  %v3243_v39 = vmul.f32 %v8815_v41, %v8815_v41 }
 0x397   :  { %v3334_v19 = vadd.f32 %v3333_v38, %v3332_v34  ;;  %v3139_v11 = vadd.f32 %v3138_v20, %v3137_v5  ;;  %v3238_v5 = vmul.f32 %v8767_v56, %v8767_v56  ;;  %v8941_v38 = vpop.f32.mrf.mxu1 }
 0x398   :  { %11896 = vst [vmem:[#allocation67_spill] sm:$0xff] %v8941_v38  ;;  %v3351_v58 = vsel %vm3064_vm2, %v3243_v39, 0.0 }
 0x399   :  { %v3141_v0 = vadd.f32 %v3140_v27, %v3139_v11  ;;  %v3336_v40 = vadd.f32 %v3335_v60, %v3334_v19  ;;  %v3144_v19 = vsel %vm3064_vm2, %v8767_v56, 0.0  ;;  %v3341_v27 = vsel %vm3064_vm2, %v3238_v5, 0.0 }
 0x39a   :  { %v3150_v5 = vsel %vm3064_vm2, %v8783_v24, 0.0  ;;  %v3245_v24 = vmul.f32 %v8847_v50, %v8847_v50 }
 0x39b   :  { %v3338_v34 = vadd.f32 %v3337_v15, %v3336_v40  ;;  %v3143_v20 = vadd.f32 %v3142_v4, %v3141_v0  ;;  %v3240_v0 = vmul.f32 %v8799_v47, %v8799_v47  ;;  %v8953_v15 = vpop.f32.mrf.mxu1 }
 0x39c   :  { %11897 = vst [vmem:[#allocation28_spill] sm:$0xff] %v8953_v15  ;;  %v3355_v39 = vsel %vm3064_vm2, %v3245_v24, 0.0 }
 0x39d   :  { %v3145_v11 = vadd.f32 %v3144_v19, %v3143_v20  ;;  %v3340_v60 = vadd.f32 %v3339_v63, %v3338_v34  ;;  %v3148_v34 = vsel %vm3064_vm2, %v8799_v47, 0.0  ;;  %v3345_v19 = vsel %vm3064_vm2, %v3240_v0, 0.0 }
 0x39e   :  { %v3154_v0 = vsel %vm3064_vm2, %v8815_v41, 0.0  ;;  %v3247_v41 = vmul.f32 %v8879_v59, %v8879_v59 }
 0x39f   :  { %v3342_v40 = vadd.f32 %v3341_v27, %v3340_v60  ;;  %v3147_v4 = vadd.f32 %v3146_v33, %v3145_v11  ;;  %v3242_v11 = vmul.f32 %v8831_v46, %v8831_v46  ;;  %v8965_v27 = vpop.f32.mrf.mxu1 }
 0x3a0   :  { %11898 = vst [vmem:[#allocation14_spill] sm:$0xff] %v8965_v27  ;;  %v3359_v24 = vsel %vm3064_vm2, %v3247_v41, 0.0 }
 0x3a1   :  { %v3149_v20 = vadd.f32 %v3148_v34, %v3147_v4  ;;  %v3344_v63 = vadd.f32 %v3343_v55, %v3342_v40  ;;  %v3152_v40 = vsel %vm3064_vm2, %v8831_v46, 0.0  ;;  %v3349_v34 = vsel %vm3064_vm2, %v3242_v11, 0.0 }
 0x3a2   :  { %v3158_v11 = vsel %vm3064_vm2, %v8847_v50, 0.0  ;;  %v3249_v50 = vmul.f32 %v8905_v32, %v8905_v32 }
 0x3a3   :  { %v3346_v60 = vadd.f32 %v3345_v19, %v3344_v63  ;;  %v3151_v33 = vadd.f32 %v3150_v5, %v3149_v20  ;;  %v3244_v20 = vmul.f32 %v8863_v44, %v8863_v44  ;;  %v8977_v19 = vpop.f32.mrf.mxu1 }
 0x3a4   :  { %11899 = vst [vmem:[#allocation68_spill] sm:$0xff] %v8977_v19  ;;  %v3363_v41 = vsel %vm3064_vm2, %v3249_v50, 0.0 }
 0x3a5   :  { %v3153_v4 = vadd.f32 %v3152_v40, %v3151_v33  ;;  %v3348_v55 = vadd.f32 %v3347_v54, %v3346_v60  ;;  %v3156_v60 = vsel %vm3064_vm2, %v8863_v44, 0.0  ;;  %v3353_v40 = vsel %vm3064_vm2, %v3244_v20, 0.0 }
 0x3a6   :  { %v3162_v20 = vsel %vm3064_vm2, %v8879_v59, 0.0  ;;  %v3251_v59 = vmul.f32 %v8929_v35, %v8929_v35 }
 0x3a7   :  { %v3350_v63 = vadd.f32 %v3349_v34, %v3348_v55  ;;  %v3155_v5 = vadd.f32 %v3154_v0, %v3153_v4  ;;  %v3246_v4 = vmul.f32 %v8893_v14, %v8893_v14  ;;  %v8989_v34 = vpop.f32.mrf.mxu1 }
 0x3a8   :  { %11900 = vst [vmem:[#allocation15_spill] sm:$0xff] %v8989_v34  ;;  %v3367_v50 = vsel %vm3064_vm2, %v3251_v59, 0.0 }
 0x3a9   :  { %v3157_v33 = vadd.f32 %v3156_v60, %v3155_v5  ;;  %v3352_v54 = vadd.f32 %v3351_v58, %v3350_v63  ;;  %v3160_v63 = vsel %vm3064_vm2, %v8893_v14, 0.0  ;;  %v3357_v60 = vsel %vm3064_vm2, %v3246_v4, 0.0 }
 0x3aa   :  { %v3166_v4 = vsel %vm3064_vm2, %v8905_v32, 0.0  ;;  %v3253_v32 = vmul.f32 %v8953_v15, %v8953_v15 }
 0x3ab   :  { %v3354_v55 = vadd.f32 %v3353_v40, %v3352_v54  ;;  %v3159_v0 = vadd.f32 %v3158_v11, %v3157_v33  ;;  %v3248_v33 = vmul.f32 %v8917_v2, %v8917_v2  ;;  %v9001_v40 = vpop.f32.mrf.mxu1 }
 0x3ac   :  { %11901 = vst [vmem:[#allocation69_spill] sm:$0xff] %v9001_v40  ;;  %v3371_v59 = vsel %vm3064_vm2, %v3253_v32, 0.0 }
 0x3ad   :  { %v3161_v5 = vadd.f32 %v3160_v63, %v3159_v0  ;;  %v3356_v58 = vadd.f32 %v3355_v39, %v3354_v55  ;;  %v3164_v55 = vsel %vm3064_vm2, %v8917_v2, 0.0  ;;  %v3361_v63 = vsel %vm3064_vm2, %v3248_v33, 0.0 }
 0x3ae   :  { %v3170_v33 = vsel %vm3064_vm2, %v8929_v35, 0.0  ;;  %v3255_v35 = vmul.f32 %v8977_v19, %v8977_v19 }
 0x3af   :  { %v3358_v54 = vadd.f32 %v3357_v60, %v3356_v58  ;;  %v3163_v11 = vadd.f32 %v3162_v20, %v3161_v5  ;;  %v3250_v5 = vmul.f32 %v8941_v38, %v8941_v38  ;;  %v9013_v60 = vpop.f32.mrf.mxu1 }
 0x3b0   :  { %11902 = vst [vmem:[#allocation21_spill] sm:$0xff] %v9013_v60  ;;  %v3375_v32 = vsel %vm3064_vm2, %v3255_v35, 0.0 }
 0x3b1   :  { %v3165_v0 = vadd.f32 %v3164_v55, %v3163_v11  ;;  %v3360_v39 = vadd.f32 %v3359_v24, %v3358_v54  ;;  %v3168_v54 = vsel %vm3064_vm2, %v8941_v38, 0.0  ;;  %v3365_v55 = vsel %vm3064_vm2, %v3250_v5, 0.0 }
 0x3b2   :  { %v3174_v5 = vsel %vm3064_vm2, %v8953_v15, 0.0  ;;  %v3257_v15 = vmul.f32 %v9001_v40, %v9001_v40 }
 0x3b3   :  { %v3362_v58 = vadd.f32 %v3361_v63, %v3360_v39  ;;  %v3167_v20 = vadd.f32 %v3166_v4, %v3165_v0  ;;  %v3252_v0 = vmul.f32 %v8965_v27, %v8965_v27  ;;  %v9025_v63 = vpop.f32.mrf.mxu1 }
 0x3b4   :  { %11903 = vst [vmem:[#allocation17_spill] sm:$0xff] %v9025_v63  ;;  %v3379_v35 = vsel %vm3064_vm2, %v3257_v15, 0.0 }
 0x3b5   :  { %v3169_v11 = vadd.f32 %v3168_v54, %v3167_v20  ;;  %v3364_v24 = vadd.f32 %v3363_v41, %v3362_v58  ;;  %v3172_v58 = vsel %vm3064_vm2, %v8965_v27, 0.0  ;;  %v3369_v54 = vsel %vm3064_vm2, %v3252_v0, 0.0 }
 0x3b6   :  { %v3178_v0 = vsel %vm3064_vm2, %v8977_v19, 0.0  ;;  %v3259_v19 = vmul.f32 %v9025_v63, %v9025_v63 }
 0x3b7   :  { %v3366_v39 = vadd.f32 %v3365_v55, %v3364_v24  ;;  %v3171_v4 = vadd.f32 %v3170_v33, %v3169_v11  ;;  %v3254_v11 = vmul.f32 %v8989_v34, %v8989_v34  ;;  %v9037_v55 = vpop.f32.mrf.mxu1 }
 0x3b8   :  { %11904 = vst [vmem:[#allocation70_spill] sm:$0xff] %v9037_v55  ;;  %v3383_v15 = vsel %vm3064_vm2, %v3259_v19, 0.0 }
 0x3b9   :  { %v3173_v20 = vadd.f32 %v3172_v58, %v3171_v4  ;;  %v3368_v41 = vadd.f32 %v3367_v50, %v3366_v39  ;;  %v3176_v39 = vsel %vm3064_vm2, %v8989_v34, 0.0  ;;  %v3373_v58 = vsel %vm3064_vm2, %v3254_v11, 0.0 }
 0x3ba   :  { %v3182_v11 = vsel %vm3064_vm2, %v9001_v40, 0.0 }
 0x3bb   :  { %v3370_v24 = vadd.f32 %v3369_v54, %v3368_v41  ;;  %v3175_v33 = vadd.f32 %v3174_v5, %v3173_v20  ;;  %v3256_v20 = vmul.f32 %v9013_v60, %v9013_v60  ;;  %v9049_v54 = vpop.f32.mrf.mxu1 }
 0x3bc   :  { %11905 = vst [vmem:[#allocation18_spill] sm:$0xff] %v9049_v54 }
 0x3bd   :  { %v3177_v4 = vadd.f32 %v3176_v39, %v3175_v33  ;;  %v3372_v50 = vadd.f32 %v3371_v59, %v3370_v24  ;;  %v3180_v24 = vsel %vm3064_vm2, %v9013_v60, 0.0  ;;  %v3377_v39 = vsel %vm3064_vm2, %v3256_v20, 0.0 }
 0x3be   :  { %v3186_v20 = vsel %vm3064_vm2, %v9025_v63, 0.0 }
 0x3bf   :  { %v3374_v41 = vadd.f32 %v3373_v58, %v3372_v50  ;;  %v3179_v5 = vadd.f32 %v3178_v0, %v3177_v4  ;;  %v3258_v4 = vmul.f32 %v9037_v55, %v9037_v55  ;;  %v9061_v58 = vpop.f32.mrf.mxu1 }
 0x3c1   :  { %v3181_v33 = vadd.f32 %v3180_v24, %v3179_v5  ;;  %v3376_v59 = vadd.f32 %v3375_v32, %v3374_v41  ;;  %v3184_v41 = vsel %vm3064_vm2, %v9037_v55, 0.0  ;;  %v3381_v24 = vsel %vm3064_vm2, %v3258_v4, 0.0 }
 0x3c2   :  { %v3188_v55 = vsel %vm3064_vm2, %v9061_v58, 0.0 }
 0x3c3   :  { %v3378_v50 = vadd.f32 %v3377_v39, %v3376_v59  ;;  %v3183_v0 = vadd.f32 %v3182_v11, %v3181_v33  ;;  %v3260_v33 = vmul.f32 %v9061_v58, %v9061_v58  ;;  %v3261_v39 = vmul.f32 %v9049_v54, %v9049_v54 }
 0x3c5   :  { %v3185_v5 = vadd.f32 %v3184_v41, %v3183_v0  ;;  %v3380_v32 = vadd.f32 %v3379_v35, %v3378_v50  ;;  %v3190_v35 = vsel %vm3064_vm2, %v9049_v54, 0.0  ;;  %v3385_v4 = vsel %vm3064_vm2, %v3260_v33, 0.0 }
 0x3c7   :  { %v3382_v59 = vadd.f32 %v3381_v24, %v3380_v32  ;;  %v3187_v11 = vadd.f32 %v3186_v20, %v3185_v5  ;;  %v3387_v32 = vsel %vm3064_vm2, %v3261_v39, 0.0 }
 0x3c9   :  { %v3189_v0 = vadd.f32 %v3188_v55, %v3187_v11  ;;  %v3384_v50 = vadd.f32 %v3383_v15, %v3382_v59 }
 0x3cb   :  { %v3191_v41 = vadd.f32 %v3190_v35, %v3189_v0  ;;  %v3386_v63 = vadd.f32 %v3385_v4, %v3384_v50 }
 0x3cd   :  { %v3192_v5 = vrot.slane %v3191_v41, 4  ;;  %v3388_v20 = vadd.f32 %v3387_v32, %v3386_v63 }
 0x3cf   :  { %v3193_v19 = vadd.f32 %v3192_v5, %v3191_v41  ;;  %v3389_v24 = vrot.slane %v3388_v20, 4  ;;  %v11917_v41 = vld [vmem:[#allocation12_spill] sm:$0xff] }
 0x3d1   :  { %v3194_v40 = vrot.slane %v3193_v19, 2  ;;  %v3390_v60 = vadd.f32 %v3389_v24, %v3388_v20 }
 0x3d3   :  { %v3195_v34 = vadd.f32 %v3194_v40, %v3193_v19  ;;  %v3391_v27 = vrot.slane %v3390_v60, 2  ;;  %v11925_v40 = vld [vmem:[#allocation69_spill] sm:$0xff] }
 0x3d5   :  { %v3196_v38 = vrot.slane %v3195_v34, 1  ;;  %v3392_v55 = vadd.f32 %v3391_v27, %v3390_v60 }
 0x3d7   :  { %v3197_v59 = vadd.f32 %v3196_v38, %v3195_v34  ;;  %v3393_v11 = vrot.slane %v3392_v55, 1 }
 0x3d9   :  { %v3394_v15 = vadd.f32 %v3393_v11, %v3392_v55  ;;  %v9082_v54 = vmul.f32 0.001953125, %v3197_v59  ;;  %v11906_v11 = vld [vmem:[#allocation51_spill] sm:$0xff]  ;;  %v11909_v59 = vld [vmem:[#allocation30_spill] sm:$0xff] }
 0x3db   :  { %v3396_v33 = vmul.f32 0.001953125, %v3394_v15  ;;  %v3397_v0 = vmul.f32 %v9082_v54, %v9082_v54  ;;  %v3435_v24 = vsub.f32 %v8731_v21, %v9082_v54  ;;  %v11910_v15 = vld [vmem:[#allocation7_spill] sm:$0xff]  ;;  %v3437_v55 = vsub.f32 %v8749_v29, %v9082_v54  ;;  %v11913_v21 = vld [vmem:[#allocation64_spill] sm:$0xff] }
 0x3dc   :  { %v3439_v19 = vsub.f32 %v8767_v56, %v9082_v54  ;;  %v3441_v20 = vsub.f32 %v8799_v47, %v9082_v54  ;;  %v3443_v5 = vsub.f32 %v8831_v46, %v9082_v54  ;;  %v11914_v29 = vld [vmem:[#allocation39_spill] sm:$0xff]  ;;  %v3445_v32 = vsub.f32 %v8863_v44, %v9082_v54  ;;  %v11915_v56 = vld [vmem:[#allocation65_spill] sm:$0xff] }
 0x3dd   :  { %v3398_v39 = vsub.f32 %v3396_v33, %v3397_v0  ;;  %v11907_v33 = vld [vmem:[#allocation54_spill] sm:$0xff]  ;;  %v3431_v0 = vsub.f32 %v8695_v6, %v9082_v54  ;;  %v11911_v6 = vld [vmem:[#allocation35_spill] sm:$0xff]  ;;  %v11928_v14 = vsub.f32 %v9061_v58, %v9082_v54 }
 0x3df   :  { %v3463_v50 = vadd.f32 1e-05, %v3398_v39  ;;  %v11908_v39 = vld [vmem:[#allocation27_spill] sm:$0xff] }
 0x3e1   :  { %5064 = vrsqrt.f32 %v3463_v50  ;;  %v3433_v50 = vsub.f32 %v8713_v26, %v9082_v54  ;;  %v11912_v26 = vld [vmem:[#allocation57_spill] sm:$0xff] }
 0x3ee   :  { %v9204_v35 = vpop.eup %5064 }
 0x3ef   :  { %v3527_v2 = vmul.f32 %v9204_v35, %v11928_v14  ;;  %v3497_v46 = vmul.f32 %v9204_v35, %v3431_v0  ;;  %v3499_v47 = vmul.f32 %v9204_v35, %v3433_v50  ;;  %v3501_v38 = vmul.f32 %v9204_v35, %v3435_v24  ;;  %v11930_v14 = vld [vmem:[#allocation18_spill] sm:$0xff] }
 0x3f0   :  { %v3503_v44 = vmul.f32 %v9204_v35, %v3437_v55  ;;  %v3505_v60 = vmul.f32 %v9204_v35, %v3439_v19  ;;  %v3507_v4 = vmul.f32 %v9204_v35, %v3441_v20  ;;  %v3509_v63 = vmul.f32 %v9204_v35, %v3443_v5 }
 0x3f1   :  { %v9225_v34 = vmax.f32 %v3527_v2, 0.0  ;;  %v3511_v0 = vmul.f32 %v9204_v35, %v3445_v32  ;;  %v9230_v50 = vmax.f32 %v3497_v46, 0.0  ;;  %v9232_v24 = vmax.f32 %v3501_v38, 0.0 }
 0x3f2   :  { %v9234_v27 = vmax.f32 %v3503_v44, 0.0  ;;  %v9236_v55 = vmax.f32 %v3505_v60, 0.0  ;;  %v9238_v19 = vmax.f32 %v3507_v4, 0.0  ;;  %v9240_v20 = vmax.f32 %v3499_v47, 0.0 }
 0x3f3   :  { %11929 = vst [vmem:[#allocation71_spill] sm:$0xff] %v9225_v34  ;;  %11931 = vst [vmem:[#allocation11_spill] sm:$0xff] %v9230_v50  ;;  %v9242_v5 = vmax.f32 %v3509_v63, 0.0  ;;  %v9244_v2 = vmax.f32 %v3511_v0, 0.0  ;;  %v3724_v58 = vrot.slane %v9230_v50, 1  ;;  %v3726_v32 = vrot.slane %v9232_v24, 7 }
 0x3f4   :  { %11932 = vst [vmem:[#allocation72_spill] sm:$0xff] %v9232_v24  ;;  %11933 = vst [vmem:[#allocation19_spill] sm:$0xff] %v9234_v27  ;;  %v3728_v46 = vrot.slane %v9234_v27, 6  ;;  %v3730_v38 = vrot.slane %v9236_v55, 5  ;;  %v11939_v60 = vsub.f32 %v8636_v8, %v9082_v54  ;;  %v3732_v47 = vrot.slane %v9238_v19, 4 }
 0x3f5   :  { %11934 = vst [vmem:[#allocation73_spill] sm:$0xff] %v9236_v55  ;;  %11935 = vst [vmem:[#allocation20_spill] sm:$0xff] %v9238_v19  ;;  %v3725_v63 = vsel %vm3626_vm3, %v9240_v20, %v3724_v58  ;;  %v3734_v44 = vrot.slane %v9242_v5, 3  ;;  %v11940_v0 = vsub.f32 %v8634_v31, %v9082_v54  ;;  %v3736_v8 = vrot.slane %v9244_v2, 2 }
 0x3f6   :  { %11936 = vst [vmem:[#allocation74_spill] sm:$0xff] %v9240_v20  ;;  %11937 = vst [vmem:[#allocation52_spill] sm:$0xff] %v9242_v5  ;;  %v9254_v4 = vmul.f32 %v9204_v35, %v11939_v60  ;;  %v3727_v55 = vsel %vm3629_vm4, %v3726_v32, %v3725_v63  ;;  %v11941_v60 = vsub.f32 %v8649_v48, %v9082_v54 }
 0x3f7   :  { %11938 = vst [vmem:[#allocation75_spill] sm:$0xff] %v9244_v2  ;;  %v9264_v24 = vmul.f32 %v9204_v35, %v11940_v0  ;;  %v11942_v58 = vsub.f32 %v8644_v13, %v9082_v54  ;;  %v3729_v31 = vsel %vm3632_vm5, %v3728_v46, %v3727_v55  ;;  %v11943_v0 = vsub.f32 %v8663_v37, %v9082_v54 }
 0x3f8   :  { %v3467_v27 = vmul.f32 %v9204_v35, %v11941_v60  ;;  %v11944_v63 = vsub.f32 %v8658_v22, %v9082_v54  ;;  %v11945_v60 = vsub.f32 %v8672_v1, %v9082_v54  ;;  %v11946_v55 = vsub.f32 %v8677_v57, %v9082_v54 }
 0x3f9   :  { %v9276_v5 = vmul.f32 %v9204_v35, %v11942_v58  ;;  %v3469_v32 = vmul.f32 %v9204_v35, %v11943_v0  ;;  %v3731_v58 = vsel %vm3635_vm6, %v3730_v38, %v3729_v31  ;;  %v11947_v46 = vsub.f32 %v8693_v7, %v9082_v54 }
 0x3fa   :  { %v9287_v48 = vmul.f32 %v9204_v35, %v11944_v63  ;;  %v9293_v13 = vmul.f32 %v9204_v35, %v11945_v60  ;;  %v3471_v37 = vmul.f32 %v9204_v35, %v11946_v55  ;;  %v11948_v0 = vsub.f32 %v8686_v43, %v9082_v54 }
 0x3fb   :  { %v3473_v22 = vmul.f32 %v9204_v35, %v11947_v46  ;;  %v3733_v63 = vsel %vm3638_vm7, %v3732_v47, %v3731_v58  ;;  %v11949_v38 = vsub.f32 %v8711_v53, %v9082_v54  ;;  %v11950_v31 = vsub.f32 %v8704_v18, %v9082_v54 }
 0x3fc   :  { %v9308_v1 = vmul.f32 %v9204_v35, %v11948_v0  ;;  %v11951_v60 = vsub.f32 %v8722_v23, %v9082_v54  ;;  %v3735_v55 = vsel %vm3641_vm8, %v3734_v44, %v3733_v63  ;;  %v11952_v47 = vsub.f32 %v8729_v61, %v9082_v54 }
 0x3fd   :  { %v3475_v57 = vmul.f32 %v9204_v35, %v11949_v38  ;;  %v9319_v7 = vmul.f32 %v9204_v35, %v11950_v31  ;;  %v11953_v58 = vsub.f32 %v8747_v16, %v9082_v54  ;;  %v11954_v46 = vsub.f32 %v8740_v36, %v9082_v54 }
 0x3fe   :  { %v9325_v43 = vmul.f32 %v9204_v35, %v11951_v60  ;;  %v3477_v53 = vmul.f32 %v9204_v35, %v11952_v47  ;;  %v3737_v0 = vsel %vm3644_vm9, %v3736_v8, %v3735_v55  ;;  %v11955_v44 = vsub.f32 %v8765_v49, %v9082_v54 }
 0x3ff   :  { %v3479_v18 = vmul.f32 %v9204_v35, %v11953_v58  ;;  %v9340_v23 = vmul.f32 %v9204_v35, %v11954_v46  ;;  %v11956_v63 = vsub.f32 %v8758_v42, %v9082_v54  ;;  %v11957_v36 = vsub.f32 %v8776_v52, %v9082_v54  ;;  %3756 = vrot.lane.b32.xlu1 %v3737_v0, %s5089_s1 }
 0x400   :  { %v9347_v61 = vmul.f32 %v9204_v35, %v11955_v44  ;;  %v11958_v49 = vsub.f32 %v8781_v3, %v9082_v54  ;;  %v11959_v42 = vsub.f32 %v8797_v17, %v9082_v54  ;;  %v11960_v52 = vsub.f32 %v8792_v51, %v9082_v54 }
 0x401   :  { %v9353_v16 = vmul.f32 %v9204_v35, %v11956_v63  ;;  %v9359_v38 = vmul.f32 %v9204_v35, %v11957_v36  ;;  %v11961_v55 = vsub.f32 %v8808_v28, %v9082_v54  ;;  %v11962_v47 = vsub.f32 %v8813_v25, %v9082_v54 }
 0x402   :  { %v9366_v8 = vmul.f32 %v9204_v35, %v11958_v49  ;;  %v9372_v31 = vmul.f32 %v9204_v35, %v11959_v42  ;;  %v9378_v60 = vmul.f32 %v9204_v35, %v11960_v52  ;;  %v11963_v58 = vsub.f32 %v8829_v12, %v9082_v54 }
 0x403   :  { %v9384_v3 = vmul.f32 %v9204_v35, %v11961_v55  ;;  %v9390_v17 = vmul.f32 %v9204_v35, %v11962_v47  ;;  %v11964_v46 = vsub.f32 %v8824_v10, %v9082_v54  ;;  %v11965_v0 = vsub.f32 %v8840_v62, %v9082_v54 }
 0x404   :  { %v9396_v51 = vmul.f32 %v9204_v35, %v11963_v58  ;;  %v11966_v44 = vsub.f32 %v8845_v45, %v9082_v54  ;;  %v11967_v63 = vsub.f32 %v8861_v9, %v9082_v54  ;;  %v11968_v36 = vsub.f32 %v11906_v11, %v9082_v54 }
 0x405   :  { %v9402_v28 = vmul.f32 %v9204_v35, %v11964_v46  ;;  %v9408_v25 = vmul.f32 %v9204_v35, %v11965_v0  ;;  %v11969_v49 = vsub.f32 %v11907_v33, %v9082_v54  ;;  %v11970_v42 = vsub.f32 %v11908_v39, %v9082_v54 }
 0x406   :  { %v9414_v12 = vmul.f32 %v9204_v35, %v11966_v44  ;;  %v9420_v10 = vmul.f32 %v9204_v35, %v11967_v63  ;;  %v9426_v62 = vmul.f32 %v9204_v35, %v11968_v36  ;;  %v11971_v52 = vsub.f32 %v11909_v59, %v9082_v54  ;;  %v11979_v36 = vld [vmem:[#allocation59_spill] sm:$0xff] }
 0x407   :  { %v9432_v45 = vmul.f32 %v9204_v35, %v11969_v49  ;;  %v9438_v9 = vmul.f32 %v9204_v35, %v11970_v42  ;;  %v11972_v55 = vsub.f32 %v11910_v15, %v9082_v54  ;;  %v11973_v47 = vsub.f32 %v11911_v6, %v9082_v54 }
 0x408   :  { %v9444_v11 = vmul.f32 %v9204_v35, %v11971_v52  ;;  %v11974_v58 = vsub.f32 %v11912_v26, %v9082_v54  ;;  %v11975_v46 = vsub.f32 %v11913_v21, %v9082_v54  ;;  %v11976_v0 = vsub.f32 %v11914_v29, %v9082_v54  ;;  %v11981_v29 = vld [vmem:[#allocation34_spill] sm:$0xff] }
 0x409   :  { %v9450_v33 = vmul.f32 %v9204_v35, %v11972_v55  ;;  %v9456_v39 = vmul.f32 %v9204_v35, %v11973_v47  ;;  %v11977_v44 = vsub.f32 %v11915_v56, %v9082_v54  ;;  %v11978_v63 = vsub.f32 %v8877_v30, %v9082_v54  ;;  %v11984_v30 = vld [vmem:[#allocation66_spill] sm:$0xff] }
 0x40a   :  { %v9462_v59 = vmul.f32 %v9204_v35, %v11974_v58  ;;  %v9468_v15 = vmul.f32 %v9204_v35, %v11975_v46  ;;  %v9474_v6 = vmul.f32 %v9204_v35, %v11976_v0  ;;  %v11980_v49 = vsub.f32 %v11979_v36, %v9082_v54  ;;  %v11986_v0 = vld [vmem:[#allocation67_spill] sm:$0xff]  ;;  %v11988_v36 = vld [vmem:[#allocation13_spill] sm:$0xff] }
 0x40b   :  { %v9480_v26 = vmul.f32 %v9204_v35, %v11977_v44  ;;  %v3495_v21 = vmul.f32 %v9204_v35, %v11978_v63  ;;  %v11982_v52 = vsub.f32 %v11981_v29, %v9082_v54  ;;  %v11983_v56 = vsub.f32 %v11917_v41, %v9082_v54  ;;  %v11990_v29 = vld [vmem:[#allocation28_spill] sm:$0xff] }
 0x40c   :  { %v9490_v42 = vmul.f32 %v9204_v35, %v11980_v49  ;;  %v11985_v58 = vsub.f32 %v11984_v30, %v9082_v54  ;;  %v11987_v44 = vsub.f32 %v11986_v0, %v9082_v54  ;;  %v11989_v49 = vsub.f32 %v11988_v36, %v9082_v54  ;;  %v11992_v30 = vld [vmem:[#allocation14_spill] sm:$0xff] }
 0x40d   :  { %v9496_v55 = vmul.f32 %v9204_v35, %v11982_v52  ;;  %v9502_v47 = vmul.f32 %v9204_v35, %v11983_v56  ;;  %v11991_v52 = vsub.f32 %v11990_v29, %v9082_v54  ;;  %v9573_v34 = vmax.f32 %v3467_v27, 0.0 }
 0x40e   :  { %v9508_v46 = vmul.f32 %v9204_v35, %v11985_v58  ;;  %v9514_v63 = vmul.f32 %v9204_v35, %v11987_v44  ;;  %v9520_v41 = vmul.f32 %v9204_v35, %v11989_v49  ;;  %v11993_v58 = vsub.f32 %v11992_v30, %v9082_v54  ;;  %v11994_v44 = vld [vmem:[#allocation15_spill] sm:$0xff]  ;;  %v11996_v49 = vld [vmem:[#allocation68_spill] sm:$0xff] }
 0x40f   :  { %v9526_v56 = vmul.f32 %v9204_v35, %v11991_v52  ;;  %v11995_v2 = vsub.f32 %v11994_v44, %v9082_v54  ;;  %v11997_v19 = vsub.f32 %v11996_v49, %v9082_v54  ;;  %v11998_v52 = vsub.f32 %v11925_v40, %v9082_v54 }
 0x410   :  { %v9532_v0 = vmul.f32 %v9204_v35, %v11993_v58  ;;  %v12000_v58 = vld [vmem:[#allocation21_spill] sm:$0xff] }
 0x411   :  { %v9538_v36 = vmul.f32 %v9204_v35, %v11995_v2  ;;  %v9544_v29 = vmul.f32 %v9204_v35, %v11997_v19  ;;  %v9550_v30 = vmul.f32 %v9204_v35, %v11998_v52  ;;  %v12001_v20 = vsub.f32 %v12000_v58, %v9082_v54  ;;  %v12002_v2 = vld [vmem:[#allocation17_spill] sm:$0xff] }
 0x412   :  { %v12003_v50 = vsub.f32 %v12002_v2, %v9082_v54  ;;  %v12005_v19 = vsub.f32 %v11930_v14, %v9082_v54  ;;  %v9571_v52 = vmax.f32 %v9254_v4, 0.0  ;;  %v9575_v58 = vmax.f32 %v3469_v32, 0.0 }
 0x413   :  { %11999 = vst [vmem:[#allocation10_spill] sm:$0xff] %v9550_v30  ;;  %v9556_v44 = vmul.f32 %v9204_v35, %v12001_v20  ;;  %v9577_v20 = vmax.f32 %v3471_v37, 0.0  ;;  %v9579_v30 = vmax.f32 %v3473_v22, 0.0  ;;  %v9581_v2 = vmax.f32 %v3475_v57, 0.0 }
 0x414   :  { %v9562_v49 = vmul.f32 %v9204_v35, %v12003_v50  ;;  %v9568_v40 = vmul.f32 %v9204_v35, %v12005_v19  ;;  %12006 = vst [vmem:[#allocation53_spill] sm:$0xff] %v9571_v52  ;;  %12007 = vst [vmem:[#allocation77_spill] sm:$0xff] %v9575_v58  ;;  %v9583_v50 = vmax.f32 %v3477_v53, 0.0  ;;  %v3696_v14 = vrot.slane %v9571_v52, 1  ;;  %v12010_v19 = vld [vmem:[#allocation70_spill] sm:$0xff] }
 0x415   :  { %v12011_v4 = vsub.f32 %v12010_v19, %v9082_v54  ;;  %v3698_v32 = vrot.slane %v9575_v58, 7  ;;  %v3700_v37 = vrot.slane %v9577_v20, 6  ;;  %v3702_v22 = vrot.slane %v9579_v30, 5 }
 0x416   :  { %12004 = vst [vmem:[#allocation76_spill] sm:$0xff] %v9562_v49  ;;  %12008 = vst [vmem:[#allocation55_spill] sm:$0xff] %v9583_v50  ;;  %v9585_v49 = vmax.f32 %v3479_v18, 0.0  ;;  %v3697_v57 = vsel %vm3626_vm3, %v9573_v34, %v3696_v14  ;;  %v3704_v53 = vrot.slane %v9581_v2, 4  ;;  %v3706_v18 = vrot.slane %v9583_v50, 3 }
 0x417   :  { %v3525_v27 = vmul.f32 %v9204_v35, %v12011_v4  ;;  %v9600_v52 = vmax.f32 %v9264_v24, 0.0  ;;  %v3699_v54 = vsel %vm3629_vm4, %v3698_v32, %v3697_v57  ;;  %v9605_v19 = vmax.f32 %v9276_v5, 0.0 }
 0x418   :  { %12009 = vst [vmem:[#allocation78_spill] sm:$0xff] %v9585_v49  ;;  %v3708_v35 = vrot.slane %v9585_v49, 2  ;;  %v9608_v4 = vmax.f32 %v9287_v48, 0.0  ;;  %v3701_v58 = vsel %vm3632_vm5, %v3700_v37, %v3699_v54  ;;  %v9612_v14 = vmax.f32 %v9293_v13, 0.0 }
 0x419   :  { %v9615_v50 = vmax.f32 %v9308_v1, 0.0  ;;  %v9618_v24 = vmax.f32 %v9319_v7, 0.0  ;;  %v3703_v32 = vsel %vm3635_vm6, %v3702_v22, %v3701_v58  ;;  %v9622_v57 = vmax.f32 %v9325_v43, 0.0 }
 0x41a   :  { %v9625_v5 = vmax.f32 %v9340_v23, 0.0  ;;  %v9628_v48 = vmax.f32 %v9347_v61, 0.0  ;;  %v3705_v13 = vsel %vm3638_vm7, %v3704_v53, %v3703_v32  ;;  %v9632_v37 = vmax.f32 %v9353_v16, 0.0 }
 0x41b   :  { %12012 = vst [vmem:[#allocation22_spill] sm:$0xff] %v9622_v57  ;;  %v9635_v1 = vmax.f32 %v9366_v8, 0.0  ;;  %v9638_v7 = vmax.f32 %v9359_v38, 0.0  ;;  %v3707_v43 = vsel %vm3641_vm8, %v3706_v18, %v3705_v13  ;;  %v9642_v58 = vmax.f32 %v9372_v31, 0.0 }
 0x41c   :  { %12013 = vst [vmem:[#allocation79_spill] sm:$0xff] %v9625_v5  ;;  %12014 = vst [vmem:[#allocation56_spill] sm:$0xff] %v9628_v48  ;;  %v9645_v23 = vmax.f32 %v9378_v60, 0.0  ;;  %v9648_v61 = vmax.f32 %v9390_v17, 0.0  ;;  %v3709_v16 = vsel %vm3644_vm9, %v3708_v35, %v3707_v43  ;;  %v9652_v22 = vmax.f32 %v9384_v3, 0.0 }
 0x41d   :  { %12015 = vst [vmem:[#allocation80_spill] sm:$0xff] %v9632_v37  ;;  %12016 = vst [vmem:[#allocation23_spill] sm:$0xff] %v9635_v1  ;;  %v9655_v8 = vmax.f32 %v9396_v51, 0.0  ;;  %v9658_v38 = vmax.f32 %v9402_v28, 0.0  ;;  %3752 = vrot.lane.b32.xlu0 %v3709_v16, %s5089_s1  ;;  %v9662_v31 = vmax.f32 %v9414_v12, 0.0  ;;  %v9665_v60 = vmax.f32 %v9408_v25, 0.0 }
 0x41e   :  { %12017 = vst [vmem:[#allocation81_spill] sm:$0xff] %v9642_v58  ;;  %12018 = vst [vmem:[#allocation24_spill] sm:$0xff] %v9645_v23  ;;  %v9668_v17 = vmax.f32 %v9420_v10, 0.0  ;;  %v9671_v3 = vmax.f32 %v9426_v62, 0.0  ;;  %v9673_v53 = vmax.f32 %v3495_v21, 0.0  ;;  %v9676_v51 = vmax.f32 %v9432_v45, 0.0 }
 0x41f   :  { %12019 = vst [vmem:[#allocation49_spill] sm:$0xff] %v9648_v61  ;;  %12020 = vst [vmem:[#allocation25_spill] sm:$0xff] %v9655_v8  ;;  %v9679_v28 = vmax.f32 %v9438_v9, 0.0  ;;  %v9682_v12 = vmax.f32 %v9444_v11, 0.0  ;;  %v9685_v25 = vmax.f32 %v9450_v33, 0.0  ;;  %v9688_v10 = vmax.f32 %v9456_v39, 0.0 }
 0x420   :  { %12021 = vst [vmem:[#allocation50_spill] sm:$0xff] %v9658_v38  ;;  %12022 = vst [vmem:[#allocation31_spill] sm:$0xff] %v9662_v31  ;;  %v9691_v62 = vmax.f32 %v9462_v59, 0.0  ;;  %v9694_v21 = vmax.f32 %v9468_v15, 0.0  ;;  %v9697_v45 = vmax.f32 %v9474_v6, 0.0  ;;  %v9700_v9 = vmax.f32 %v9480_v26, 0.0 }
 0x421   :  { %12023 = vst [vmem:[#allocation86_spill] sm:$0xff] %v9668_v17  ;;  %12024 = vst [vmem:[#allocation87_spill] sm:$0xff] %v9673_v53  ;;  %v9703_v11 = vmax.f32 %v9490_v42, 0.0  ;;  %v9706_v33 = vmax.f32 %v9496_v55, 0.0  ;;  %v9709_v39 = vmax.f32 %v9508_v46, 0.0  ;;  %v9712_v59 = vmax.f32 %v9502_v47, 0.0 }
 0x422   :  { %12025 = vst [vmem:[#allocation88_spill] sm:$0xff] %v9679_v28  ;;  %12026 = vst [vmem:[#allocation90_spill] sm:$0xff] %v9682_v12  ;;  %v9715_v15 = vmax.f32 %v9514_v63, 0.0  ;;  %v9718_v6 = vmax.f32 %v9532_v0, 0.0  ;;  %v9721_v26 = vmax.f32 %v9520_v41, 0.0  ;;  %v9724_v42 = vmax.f32 %v9526_v56, 0.0 }
 0x423   :  { %12027 = vst [vmem:[#allocation6_spill] sm:$0xff] %v9685_v25  ;;  %12028 = vst [vmem:[#allocation61_spill] sm:$0xff] %v9688_v10  ;;  %v9727_v55 = vmax.f32 %v9538_v36, 0.0  ;;  %v9730_v46 = vmax.f32 %v9556_v44, 0.0  ;;  %v9733_v47 = vmax.f32 %v9544_v29, 0.0  ;;  %v12044_v63 = vld [vmem:[#allocation10_spill] sm:$0xff] }
 0x424   :  { %12029 = vst [vmem:[#allocation40_spill] sm:$0xff] %v9691_v62  ;;  %12030 = vst [vmem:[#allocation8_spill] sm:$0xff] %v9694_v21  ;;  %v9736_v18 = vmax.f32 %v12044_v63, 0.0  ;;  %v9738_v0 = vmax.f32 %v3525_v27, 0.0  ;;  %v12047_v54 = vld [vmem:[#allocation76_spill] sm:$0xff]  ;;  %v9744_v56 = vmax.f32 %v9568_v40, 0.0 }
 0x425   :  { %12031 = vst [vmem:[#allocation41_spill] sm:$0xff] %v9697_v45  ;;  %12032 = vst [vmem:[#allocation42_spill] sm:$0xff] %v9700_v9  ;;  %v9741_v41 = vmax.f32 %v12047_v54, 0.0  ;;  %v3738_v36 = vrot.slane %v9703_v11, 1  ;;  %v3740_v35 = vrot.slane %v9715_v15, 7  ;;  %v3742_v44 = vrot.slane %v9718_v6, 6 }
 0x426   :  { %12033 = vst [vmem:[#allocation43_spill] sm:$0xff] %v9703_v11  ;;  %12034 = vst [vmem:[#allocation44_spill] sm:$0xff] %v9706_v33  ;;  %v3744_v29 = vrot.slane %v9727_v55, 5  ;;  %v3746_v32 = vrot.slane %v9730_v46, 4  ;;  %v3748_v13 = vrot.slane %v9738_v0, 3  ;;  %v3710_v27 = vrot.slane %v9628_v48, 1 }
 0x427   :  { %12035 = vst [vmem:[#allocation45_spill] sm:$0xff] %v9709_v39  ;;  %12036 = vst [vmem:[#allocation37_spill] sm:$0xff] %v9712_v59  ;;  %v3739_v43 = vsel %vm3626_vm3, %v9709_v39, %v3738_v36  ;;  %v12050_v16 = vld [vmem:[#allocation71_spill] sm:$0xff]  ;;  %v3712_v63 = vrot.slane %v9642_v58, 7  ;;  %v3714_v54 = vrot.slane %v9648_v61, 6  ;;  %v3716_v21 = vrot.slane %v9655_v8, 5 }
 0x428   :  { %12037 = vst [vmem:[#allocation29_spill] sm:$0xff] %v9715_v15  ;;  %12038 = vst [vmem:[#allocation82_spill] sm:$0xff] %v9718_v6  ;;  %v3750_v40 = vrot.slane %v12050_v16, 2  ;;  %v3741_v9 = vsel %vm3629_vm4, %v3740_v35, %v3739_v43  ;;  %v3711_v45 = vsel %vm3626_vm3, %v9635_v1, %v3710_v27  ;;  %v3718_v12 = vrot.slane %v9662_v31, 4  ;;  %v12060_v33 = vld [vmem:[#allocation72_spill] sm:$0xff] }
 0x429   :  { %12039 = vst [vmem:[#allocation83_spill] sm:$0xff] %v9721_v26  ;;  %12040 = vst [vmem:[#allocation84_spill] sm:$0xff] %v9724_v42  ;;  %v3743_v62 = vsel %vm3632_vm5, %v3742_v44, %v3741_v9  ;;  %v3713_v10 = vsel %vm3629_vm4, %v3712_v63, %v3711_v45  ;;  %v3720_v36 = vrot.slane %v9668_v17, 3  ;;  %v3722_v35 = vrot.slane %v9673_v53, 2  ;;  %v12057_v42 = vld [vmem:[#allocation73_spill] sm:$0xff] }
 0x42a   :  { %12041 = vst [vmem:[#allocation85_spill] sm:$0xff] %v9727_v55  ;;  %12042 = vst [vmem:[#allocation89_spill] sm:$0xff] %v9730_v46  ;;  %v3745_v25 = vsel %vm3635_vm6, %v3744_v29, %v3743_v62  ;;  %v3715_v28 = vsel %vm3632_vm5, %v3714_v54, %v3713_v10  ;;  %v3784_v27 = vrot.slane %v9635_v1, 1  ;;  %v3787_v9 = vrot.slane %v9648_v61, 7 }
 0x42b   :  { %12043 = vst [vmem:[#allocation91_spill] sm:$0xff] %v9733_v47  ;;  %12045 = vst [vmem:[#allocation46_spill] sm:$0xff] %v9736_v18  ;;  %v3747_v43 = vsel %vm3638_vm7, %v3746_v32, %v3745_v25  ;;  %v3789_v45 = vrot.slane %v9655_v8, 6  ;;  %v3791_v10 = vrot.slane %v9662_v31, 5 }
 0x42c   :  { %12046 = vst [vmem:[#allocation36_spill] sm:$0xff] %v9738_v0  ;;  %12048 = vst [vmem:[#allocation47_spill] sm:$0xff] %v9741_v41  ;;  %v3717_v41 = vsel %vm3635_vm6, %v3716_v21, %v3715_v28  ;;  %v3749_v44 = vsel %vm3641_vm8, %v3748_v13, %v3747_v43  ;;  %v3793_v28 = vrot.slane %v9668_v17, 4 }
 0x42d   :  { %12049 = vst [vmem:[#allocation48_spill] sm:$0xff] %v9744_v56  ;;  %v3783_v56 = vrot.slane %v9628_v48, 2  ;;  %v3719_v63 = vsel %vm3638_vm7, %v3718_v12, %v3717_v41  ;;  %v3751_v29 = vsel %vm3644_vm9, %v3750_v40, %v3749_v44  ;;  %v12051_v12 = vld [vmem:[#allocation53_spill] sm:$0xff]  ;;  %v3795_v40 = vrot.slane %v9673_v53, 3  ;;  %v12052_v44 = vld [vmem:[#allocation55_spill] sm:$0xff] }
 0x42e   :  { %v3721_v54 = vsel %vm3641_vm8, %v3720_v36, %v3719_v63  ;;  %3758 = vrot.lane.b32.xlu1 %v3751_v29, %s5089_s1  ;;  %v3769_v41 = vrot.slane %v12051_v12, 2  ;;  %v3773_v36 = vrot.slane %v9577_v20, 7  ;;  %v3779_v63 = vrot.slane %v12052_v44, 4  ;;  %v12053_v29 = vld [vmem:[#allocation77_spill] sm:$0xff] }
 0x42f   :  { %v3785_v62 = vsel %vm3626_vm3, %v3784_v27, %v3783_v56  ;;  %v3723_v21 = vsel %vm3644_vm9, %v3722_v35, %v3721_v54  ;;  %v3770_v56 = vrot.slane %v9573_v34, 1  ;;  %v3775_v27 = vrot.slane %v9579_v30, 6 }
 0x430   :  { %v3786_v25 = vsel %vm3629_vm4, %v9642_v58, %v3785_v62  ;;  %3754 = vrot.lane.b32.xlu0 %v3723_v21, %s5089_s1 }
 0x431   :  { %v3788_v32 = vsel %vm3632_vm5, %v3787_v9, %v3786_v25  ;;  %v3771_v35 = vsel %vm3626_vm3, %v3770_v56, %v3769_v41  ;;  %v3777_v9 = vrot.slane %v9581_v2, 5  ;;  %v3812_v25 = vrot.slane %v9709_v39, 1 }
 0x432   :  { %v3790_v13 = vsel %vm3635_vm6, %v3789_v45, %v3788_v32  ;;  %v3772_v54 = vsel %vm3629_vm4, %v12053_v29, %v3771_v35  ;;  %v3811_v45 = vrot.slane %v9703_v11, 2  ;;  %v3815_v41 = vrot.slane %v9718_v6, 7 }
 0x433   :  { %v3792_v43 = vsel %vm3638_vm7, %v3791_v10, %v3790_v13  ;;  %v3774_v32 = vsel %vm3632_vm5, %v3773_v36, %v3772_v54  ;;  %v3781_v10 = vrot.slane %v9585_v49, 3  ;;  %v3817_v13 = vrot.slane %v9727_v55, 6 }
 0x434   :  { %v3794_v62 = vsel %vm3641_vm8, %v3793_v28, %v3792_v43  ;;  %v3776_v28 = vsel %vm3635_vm6, %v3775_v27, %v3774_v32  ;;  %v3813_v56 = vsel %vm3626_vm3, %v3812_v25, %v3811_v45  ;;  %v3819_v43 = vrot.slane %v9730_v46, 5  ;;  %v12055_v45 = vld [vmem:[#allocation74_spill] sm:$0xff] }
 0x435   :  { %v3796_v21 = vsel %vm3644_vm9, %v3795_v40, %v3794_v62  ;;  %v3778_v35 = vsel %vm3638_vm7, %v3777_v9, %v3776_v28  ;;  %v3814_v40 = vsel %vm3629_vm4, %v9715_v15, %v3813_v56  ;;  %v3821_v36 = vrot.slane %v9738_v0, 4  ;;  %v12054_v62 = vld [vmem:[#allocation11_spill] sm:$0xff] }
 0x436   :  { %3827 = vrot.lane.b32.xlu1 %v3796_v21, %s5090_s7  ;;  %v3797_v54 = vrot.slane %v12054_v62, 2  ;;  %v3780_v18 = vsel %vm3641_vm8, %v3779_v63, %v3778_v35  ;;  %v3816_v21 = vsel %vm3632_vm5, %v3815_v41, %v3814_v40  ;;  %v3823_v27 = vrot.slane %v12050_v16, 3  ;;  %v12056_v9 = vld [vmem:[#allocation19_spill] sm:$0xff]  ;;  %v12058_v35 = vld [vmem:[#allocation20_spill] sm:$0xff] }
 0x437   :  { %v3798_v25 = vrot.slane %v12055_v45, 1  ;;  %v3782_v32 = vsel %vm3644_vm9, %v3781_v10, %v3780_v18  ;;  %v3818_v47 = vsel %vm3635_vm6, %v3817_v13, %v3816_v21  ;;  %v3801_v28 = vrot.slane %v12056_v9, 7  ;;  %v12059_v40 = vld [vmem:[#allocation52_spill] sm:$0xff] }
 0x438   :  { %v3803_v56 = vrot.slane %v12057_v42, 6  ;;  %3825 = vrot.lane.b32.xlu0 %v3782_v32, %s5090_s7  ;;  %v3820_v59 = vsel %vm3638_vm7, %v3819_v43, %v3818_v47  ;;  %v3805_v41 = vrot.slane %v12058_v35, 5  ;;  %v3807_v26 = vrot.slane %v12059_v40, 4  ;;  %v12061_v47 = vld [vmem:[#allocation75_spill] sm:$0xff] }
 0x439   :  { %v3799_v63 = vsel %vm3626_vm3, %v3798_v25, %v3797_v54  ;;  %v3822_v5 = vsel %vm3641_vm8, %v3821_v36, %v3820_v59  ;;  %v3856_v10 = vrot.slane %v9628_v48, 3  ;;  %v3857_v13 = vrot.slane %v9635_v1, 2 }
 0x43a   :  { %v3800_v18 = vsel %vm3629_vm4, %v12060_v33, %v3799_v63  ;;  %v3824_v21 = vsel %vm3644_vm9, %v3823_v27, %v3822_v5  ;;  %v3809_v43 = vrot.slane %v12061_v47, 3  ;;  %v3859_v54 = vrot.slane %v9642_v58, 1 }
 0x43b   :  { %v3802_v32 = vsel %vm3632_vm5, %v3801_v28, %v3800_v18  ;;  %3831 = vrot.lane.b32.xlu1 %v3824_v21, %s5090_s7  ;;  %v3858_v59 = vsel %vm3626_vm3, %v3857_v13, %v3856_v10  ;;  %v3862_v36 = vrot.slane %v9655_v8, 7  ;;  %v3864_v63 = vrot.slane %v9662_v31, 6 }
 0x43c   :  { %v3804_v25 = vsel %vm3635_vm6, %v3803_v56, %v3802_v32  ;;  %v3860_v5 = vsel %vm3629_vm4, %v3859_v54, %v3858_v59  ;;  %v3866_v27 = vrot.slane %v9668_v17, 5  ;;  %v3842_v28 = vrot.slane %v12051_v12, 3 }
 0x43d   :  { %v3806_v57 = vsel %vm3638_vm7, %v3805_v41, %v3804_v25  ;;  %v3861_v21 = vsel %vm3632_vm5, %v9648_v61, %v3860_v5  ;;  %v3843_v56 = vrot.slane %v9573_v34, 2  ;;  %v3845_v10 = vrot.slane %v12053_v29, 1 }
 0x43e   :  { %v3808_v18 = vsel %vm3641_vm8, %v3807_v26, %v3806_v57  ;;  %v3863_v32 = vsel %vm3635_vm6, %v3862_v36, %v3861_v21  ;;  %v3868_v41 = vrot.slane %v9673_v53, 4  ;;  %v3848_v54 = vrot.slane %v9579_v30, 7 }
 0x43f   :  { %v3810_v13 = vsel %vm3644_vm9, %v3809_v43, %v3808_v18  ;;  %v3865_v25 = vsel %vm3638_vm7, %v3864_v63, %v3863_v32  ;;  %v3844_v57 = vsel %vm3626_vm3, %v3843_v56, %v3842_v28  ;;  %v3850_v26 = vrot.slane %v9581_v2, 6 }
 0x440   :  { %3829 = vrot.lane.b32.xlu0 %v3810_v13, %s5090_s7  ;;  %v3852_v59 = vrot.slane %v12052_v44, 5  ;;  %v3867_v5 = vsel %vm3641_vm8, %v3866_v27, %v3865_v25  ;;  %v3846_v43 = vsel %vm3629_vm4, %v3845_v10, %v3844_v57  ;;  %v3884_v36 = vrot.slane %v9703_v11, 3 }
 0x441   :  { %v3885_v18 = vrot.slane %v9709_v39, 2  ;;  %v3869_v21 = vsel %vm3644_vm9, %v3868_v41, %v3867_v5  ;;  %v3847_v13 = vsel %vm3632_vm5, %v9577_v20, %v3846_v43  ;;  %v3854_v63 = vrot.slane %v9585_v49, 4 }
 0x442   :  { %v3887_v28 = vrot.slane %v9715_v15, 1  ;;  %3900 = vrot.lane.b32.xlu1 %v3869_v21, %s5091_s8  ;;  %v3849_v27 = vsel %vm3635_vm6, %v3848_v54, %v3847_v13  ;;  %v3890_v10 = vrot.slane %v9727_v55, 7  ;;  %v3892_v32 = vrot.slane %v9730_v46, 6 }
 0x443   :  { %v3886_v56 = vsel %vm3626_vm3, %v3885_v18, %v3884_v36  ;;  %v3851_v41 = vsel %vm3638_vm7, %v3850_v26, %v3849_v27  ;;  %v3894_v57 = vrot.slane %v9738_v0, 5  ;;  %v3870_v5 = vrot.slane %v12054_v62, 3 }
 0x444   :  { %v3888_v25 = vsel %vm3629_vm4, %v3887_v28, %v3886_v56  ;;  %v3853_v43 = vsel %vm3641_vm8, %v3852_v59, %v3851_v41  ;;  %v3871_v54 = vrot.slane %v12055_v45, 2  ;;  %v3873_v36 = vrot.slane %v12060_v33, 1 }
 0x445   :  { %v3889_v21 = vsel %vm3632_vm5, %v9718_v6, %v3888_v25  ;;  %v3855_v18 = vsel %vm3644_vm9, %v3854_v63, %v3853_v43  ;;  %v3896_v26 = vrot.slane %v12050_v16, 4  ;;  %v3876_v28 = vrot.slane %v12057_v42, 7 }
 0x446   :  { %v3891_v13 = vsel %vm3635_vm6, %v3890_v10, %v3889_v21  ;;  %3898 = vrot.lane.b32.xlu0 %v3855_v18, %s5091_s8  ;;  %v3872_v59 = vsel %vm3626_vm3, %v3871_v54, %v3870_v5  ;;  %v3878_v56 = vrot.slane %v12058_v35, 6  ;;  %v3880_v41 = vrot.slane %v12059_v40, 5 }
 0x447   :  { %v3893_v27 = vsel %vm3638_vm7, %v3892_v32, %v3891_v13  ;;  %v3874_v63 = vsel %vm3629_vm4, %v3873_v36, %v3872_v59  ;;  %v3929_v10 = vrot.slane %v9628_v48, 4  ;;  %v3930_v43 = vrot.slane %v9635_v1, 3 }
 0x448   :  { %v3895_v25 = vsel %vm3641_vm8, %v3894_v57, %v3893_v27  ;;  %v3875_v18 = vsel %vm3632_vm5, %v12056_v9, %v3874_v63  ;;  %v3882_v32 = vrot.slane %v12061_v47, 4  ;;  %v3932_v5 = vrot.slane %v9642_v58, 2 }
 0x449   :  { %v3897_v21 = vsel %vm3644_vm9, %v3896_v26, %v3895_v25  ;;  %v3877_v54 = vsel %vm3635_vm6, %v3876_v28, %v3875_v18  ;;  %v3931_v57 = vsel %vm3626_vm3, %v3930_v43, %v3929_v10  ;;  %v3934_v36 = vrot.slane %v9648_v61, 1 }
 0x44a   :  { %3904 = vrot.lane.b32.xlu1 %v3897_v21, %s5091_s8  ;;  %v3937_v13 = vrot.slane %v9662_v31, 7  ;;  %v3879_v27 = vsel %vm3638_vm7, %v3878_v56, %v3877_v54  ;;  %v3933_v26 = vsel %vm3629_vm4, %v3932_v5, %v3931_v57  ;;  %v3939_v59 = vrot.slane %v9668_v17, 6 }
 0x44b   :  { %v3915_v25 = vrot.slane %v12051_v12, 4  ;;  %v3881_v63 = vsel %vm3641_vm8, %v3880_v41, %v3879_v27  ;;  %v3935_v21 = vsel %vm3632_vm5, %v3934_v36, %v3933_v26  ;;  %v3916_v28 = vrot.slane %v9573_v34, 3 }
 0x44c   :  { %v3918_v10 = vrot.slane %v12053_v29, 2  ;;  %v3883_v43 = vsel %vm3644_vm9, %v3882_v32, %v3881_v63  ;;  %v3936_v18 = vsel %vm3635_vm6, %v9655_v8, %v3935_v21  ;;  %v3941_v56 = vrot.slane %v9673_v53, 5 }
 0x44d   :  { %v3920_v5 = vrot.slane %v9577_v20, 1  ;;  %3902 = vrot.lane.b32.xlu0 %v3883_v43, %s5091_s8  ;;  %v3938_v54 = vsel %vm3638_vm7, %v3937_v13, %v3936_v18  ;;  %v3917_v41 = vsel %vm3626_vm3, %v3916_v28, %v3915_v25  ;;  %v3923_v57 = vrot.slane %v9581_v2, 7 }
 0x44e   :  { %v3925_v36 = vrot.slane %v12052_v44, 6  ;;  %v3940_v27 = vsel %vm3641_vm8, %v3939_v59, %v3938_v54  ;;  %v3919_v32 = vsel %vm3629_vm4, %v3918_v10, %v3917_v41  ;;  %v3957_v26 = vrot.slane %v9703_v11, 4 }
 0x44f   :  { %v3958_v63 = vrot.slane %v9709_v39, 3  ;;  %v3942_v21 = vsel %vm3644_vm9, %v3941_v56, %v3940_v27  ;;  %v3921_v43 = vsel %vm3632_vm5, %v3920_v5, %v3919_v32  ;;  %v3927_v13 = vrot.slane %v9585_v49, 5 }
 0x450   :  { %v3960_v25 = vrot.slane %v9715_v15, 2  ;;  %3973 = vrot.lane.b32.xlu1 %v3942_v21, %s5092_s9  ;;  %v3922_v59 = vsel %vm3635_vm6, %v9579_v30, %v3921_v43  ;;  %v3962_v10 = vrot.slane %v9718_v6, 1  ;;  %v3965_v18 = vrot.slane %v9730_v46, 7 }
 0x451   :  { %v3959_v28 = vsel %vm3626_vm3, %v3958_v63, %v3957_v26  ;;  %v3924_v56 = vsel %vm3638_vm7, %v3923_v57, %v3922_v59  ;;  %v3967_v54 = vrot.slane %v9738_v0, 6  ;;  %v3943_v41 = vrot.slane %v12054_v62, 4 }
 0x452   :  { %v3961_v5 = vsel %vm3629_vm4, %v3960_v25, %v3959_v28  ;;  %v3926_v27 = vsel %vm3641_vm8, %v3925_v36, %v3924_v56  ;;  %v3944_v21 = vrot.slane %v12055_v45, 3  ;;  %v3946_v26 = vrot.slane %v12060_v33, 2 }
 0x453   :  { %v3963_v32 = vsel %vm3632_vm5, %v3962_v10, %v3961_v5  ;;  %v3928_v63 = vsel %vm3644_vm9, %v3927_v13, %v3926_v27  ;;  %v3969_v57 = vrot.slane %v12050_v16, 5  ;;  %v3948_v25 = vrot.slane %v12056_v9, 1 }
 0x454   :  { %v3964_v43 = vsel %vm3635_vm6, %v9727_v55, %v3963_v32  ;;  %3971 = vrot.lane.b32.xlu0 %v3928_v63, %s5092_s9  ;;  %v3945_v36 = vsel %vm3626_vm3, %v3944_v21, %v3943_v41  ;;  %v3951_v28 = vrot.slane %v12058_v35, 7  ;;  %v3953_v10 = vrot.slane %v12059_v40, 6 }
 0x455   :  { %v3966_v59 = vsel %vm3638_vm7, %v3965_v18, %v3964_v43  ;;  %v3947_v13 = vsel %vm3629_vm4, %v3946_v26, %v3945_v36  ;;  %v4002_v5 = vrot.slane %v9628_v48, 5  ;;  %v4003_v27 = vrot.slane %v9635_v1, 4 }
 0x456   :  { %v3968_v56 = vsel %vm3641_vm8, %v3967_v54, %v3966_v59  ;;  %v3949_v63 = vsel %vm3632_vm5, %v3948_v25, %v3947_v13  ;;  %v3955_v18 = vrot.slane %v12061_v47, 5  ;;  %v4005_v41 = vrot.slane %v9642_v58, 3 }
 0x457   :  { %v3970_v32 = vsel %vm3644_vm9, %v3969_v57, %v3968_v56  ;;  %v3950_v21 = vsel %vm3635_vm6, %v12057_v42, %v3949_v63  ;;  %v4004_v54 = vsel %vm3626_vm3, %v4003_v27, %v4002_v5  ;;  %v4007_v26 = vrot.slane %v9648_v61, 2 }
 0x458   :  { %3977 = vrot.lane.b32.xlu1 %v3970_v32, %s5092_s9  ;;  %v4009_v43 = vrot.slane %v9655_v8, 1  ;;  %v3952_v59 = vsel %vm3638_vm7, %v3951_v28, %v3950_v21  ;;  %v4006_v57 = vsel %vm3629_vm4, %v4005_v41, %v4004_v54  ;;  %v4012_v25 = vrot.slane %v9668_v17, 7 }
 0x459   :  { %v3988_v36 = vrot.slane %v12051_v12, 5  ;;  %v3954_v56 = vsel %vm3641_vm8, %v3953_v10, %v3952_v59  ;;  %v4008_v13 = vsel %vm3632_vm5, %v4007_v26, %v4006_v57  ;;  %v3989_v32 = vrot.slane %v9573_v34, 4 }
 0x45a   :  { %v3991_v5 = vrot.slane %v12053_v29, 3  ;;  %v3956_v27 = vsel %vm3644_vm9, %v3955_v18, %v3954_v56  ;;  %v4010_v63 = vsel %vm3635_vm6, %v4009_v43, %v4008_v13  ;;  %v4014_v28 = vrot.slane %v9673_v53, 6 }
 0x45b   :  { %v3993_v41 = vrot.slane %v9577_v20, 2  ;;  %3975 = vrot.lane.b32.xlu0 %v3956_v27, %s5092_s9  ;;  %v4011_v21 = vsel %vm3638_vm7, %v9662_v31, %v4010_v63  ;;  %v3990_v10 = vsel %vm3626_vm3, %v3989_v32, %v3988_v36  ;;  %v3995_v54 = vrot.slane %v9579_v30, 1 }
 0x45c   :  { %v3998_v26 = vrot.slane %v12052_v44, 7  ;;  %v4013_v59 = vsel %vm3641_vm8, %v4012_v25, %v4011_v21  ;;  %v3992_v18 = vsel %vm3629_vm4, %v3991_v5, %v3990_v10  ;;  %v4030_v43 = vrot.slane %v9703_v11, 5 }
 0x45d   :  { %v4031_v57 = vrot.slane %v9709_v39, 4  ;;  %v4015_v56 = vsel %vm3644_vm9, %v4014_v28, %v4013_v59  ;;  %v3994_v13 = vsel %vm3632_vm5, %v3993_v41, %v3992_v18  ;;  %v4000_v27 = vrot.slane %v9585_v49, 6 }
 0x45e   :  { %v4033_v36 = vrot.slane %v9715_v15, 3  ;;  %4046 = vrot.lane.b32.xlu1 %v4015_v56, %s5093_s10  ;;  %v3996_v32 = vsel %vm3635_vm6, %v3995_v54, %v3994_v13  ;;  %v4035_v5 = vrot.slane %v9718_v6, 2  ;;  %v4037_v63 = vrot.slane %v9727_v55, 1 }
 0x45f   :  { %v4032_v25 = vsel %vm3626_vm3, %v4031_v57, %v4030_v43  ;;  %v3997_v28 = vsel %vm3638_vm7, %v9581_v2, %v3996_v32  ;;  %v4040_v21 = vrot.slane %v9738_v0, 7  ;;  %v4016_v10 = vrot.slane %v12054_v62, 5 }
 0x460   :  { %v4034_v41 = vsel %vm3629_vm4, %v4033_v36, %v4032_v25  ;;  %v3999_v59 = vsel %vm3641_vm8, %v3998_v26, %v3997_v28  ;;  %v4017_v54 = vrot.slane %v12055_v45, 4  ;;  %v4019_v43 = vrot.slane %v12060_v33, 3 }
 0x461   :  { %v4036_v18 = vsel %vm3632_vm5, %v4035_v5, %v4034_v41  ;;  %v4001_v57 = vsel %vm3644_vm9, %v4000_v27, %v3999_v59  ;;  %v4042_v13 = vrot.slane %v12050_v16, 6  ;;  %v4021_v36 = vrot.slane %v12056_v9, 2 }
 0x462   :  { %v4038_v56 = vsel %vm3635_vm6, %v4037_v63, %v4036_v18  ;;  %4044 = vrot.lane.b32.xlu0 %v4001_v57, %s5093_s10  ;;  %v4018_v26 = vsel %vm3626_vm3, %v4017_v54, %v4016_v10  ;;  %v4023_v25 = vrot.slane %v12057_v42, 1  ;;  %v4026_v5 = vrot.slane %v12059_v40, 7 }
 0x463   :  { %v4039_v32 = vsel %vm3638_vm7, %v9730_v46, %v4038_v56  ;;  %v4020_v27 = vsel %vm3629_vm4, %v4019_v43, %v4018_v26  ;;  %v4075_v63 = vrot.slane %v9628_v48, 6  ;;  %v4076_v41 = vrot.slane %v9635_v1, 5 }
 0x464   :  { %v4041_v28 = vsel %vm3641_vm8, %v4040_v21, %v4039_v32  ;;  %v4022_v18 = vsel %vm3632_vm5, %v4021_v36, %v4020_v27  ;;  %v4028_v57 = vrot.slane %v12061_v47, 6  ;;  %v4078_v10 = vrot.slane %v9642_v58, 4 }
 0x465   :  { %v4043_v59 = vsel %vm3644_vm9, %v4042_v13, %v4041_v28  ;;  %v4024_v54 = vsel %vm3635_vm6, %v4023_v25, %v4022_v18  ;;  %v4077_v21 = vsel %vm3626_vm3, %v4076_v41, %v4075_v63  ;;  %v4080_v43 = vrot.slane %v9648_v61, 3 }
 0x466   :  { %4050 = vrot.lane.b32.xlu1 %v4043_v59, %s5093_s10  ;;  %v4082_v56 = vrot.slane %v9655_v8, 2  ;;  %v4025_v32 = vsel %vm3638_vm7, %v12058_v35, %v4024_v54  ;;  %v4079_v13 = vsel %vm3629_vm4, %v4078_v10, %v4077_v21  ;;  %v4084_v36 = vrot.slane %v9662_v31, 1 }
 0x467   :  { %v4061_v26 = vrot.slane %v12051_v12, 6  ;;  %v4027_v28 = vsel %vm3641_vm8, %v4026_v5, %v4025_v32  ;;  %v4081_v27 = vsel %vm3632_vm5, %v4080_v43, %v4079_v13  ;;  %v4062_v25 = vrot.slane %v9573_v34, 5 }
 0x468   :  { %v4064_v63 = vrot.slane %v12053_v29, 4  ;;  %v4029_v41 = vsel %vm3644_vm9, %v4028_v57, %v4027_v28  ;;  %v4083_v59 = vsel %vm3635_vm6, %v4082_v56, %v4081_v27  ;;  %v4087_v18 = vrot.slane %v9673_v53, 7 }
 0x469   :  { %v4066_v10 = vrot.slane %v9577_v20, 3  ;;  %4048 = vrot.lane.b32.xlu0 %v4029_v41, %s5093_s10  ;;  %v4085_v54 = vsel %vm3638_vm7, %v4084_v36, %v4083_v59  ;;  %v4063_v5 = vsel %vm3626_vm3, %v4062_v25, %v4061_v26  ;;  %v4068_v21 = vrot.slane %v9579_v30, 2 }
 0x46a   :  { %v4070_v43 = vrot.slane %v9581_v2, 1  ;;  %v4086_v32 = vsel %vm3641_vm8, %v9668_v17, %v4085_v54  ;;  %v4065_v57 = vsel %vm3629_vm4, %v4064_v63, %v4063_v5  ;;  %v4103_v56 = vrot.slane %v9703_v11, 6 }
 0x46b   :  { %v4104_v13 = vrot.slane %v9709_v39, 5  ;;  %v4088_v28 = vsel %vm3644_vm9, %v4087_v18, %v4086_v32  ;;  %v4067_v27 = vsel %vm3632_vm5, %v4066_v10, %v4065_v57  ;;  %v4073_v36 = vrot.slane %v9585_v49, 7  ;;  %v12072_v49 = vld [vmem:[#allocation6_spill] sm:$0xff] }
 0x46c   :  { %v4106_v26 = vrot.slane %v9715_v15, 4  ;;  %4119 = vrot.lane.b32.xlu1 %v4088_v28, %s5094_s11  ;;  %v4069_v25 = vsel %vm3635_vm6, %v4068_v21, %v4067_v27  ;;  %v4108_v63 = vrot.slane %v9718_v6, 3  ;;  %v4110_v59 = vrot.slane %v9727_v55, 2  ;;  %v12076_v55 = vld [vmem:[#allocation90_spill] sm:$0xff] }
 0x46d   :  { %v4105_v41 = vsel %vm3626_vm3, %v4104_v13, %v4103_v56  ;;  %v4071_v54 = vsel %vm3638_vm7, %v4070_v43, %v4069_v25  ;;  %v4112_v10 = vrot.slane %v9730_v46, 1  ;;  %v4089_v5 = vrot.slane %v12054_v62, 6 }
 0x46e   :  { %v4107_v18 = vsel %vm3629_vm4, %v4106_v26, %v4105_v41  ;;  %v4072_v32 = vsel %vm3641_vm8, %v12052_v44, %v4071_v54  ;;  %v4090_v21 = vrot.slane %v12055_v45, 5  ;;  %v4092_v56 = vrot.slane %v12060_v33, 4  ;;  %v12073_v45 = vld [vmem:[#allocation48_spill] sm:$0xff] }
 0x46f   :  { %v4109_v57 = vsel %vm3632_vm5, %v4108_v63, %v4107_v18  ;;  %v4074_v13 = vsel %vm3644_vm9, %v4073_v36, %v4072_v32  ;;  %v4115_v43 = vrot.slane %v12050_v16, 7  ;;  %v4094_v27 = vrot.slane %v12056_v9, 3  ;;  %v12066_v16 = vld [vmem:[#allocation37_spill] sm:$0xff] }
 0x470   :  { %v4111_v28 = vsel %vm3635_vm6, %v4110_v59, %v4109_v57  ;;  %4117 = vrot.lane.b32.xlu0 %v4074_v13, %s5094_s11  ;;  %v4091_v25 = vsel %vm3626_vm3, %v4090_v21, %v4089_v5  ;;  %v4096_v41 = vrot.slane %v12057_v42, 2  ;;  %v4098_v63 = vrot.slane %v12058_v35, 1 }
 0x471   :  { %v4113_v26 = vsel %vm3638_vm7, %v4112_v10, %v4111_v28  ;;  %v4093_v36 = vsel %vm3629_vm4, %v4092_v56, %v4091_v25  ;;  %v4317_v59 = vrot.slane %v9632_v37, 1  ;;  %v4319_v18 = vrot.slane %v9645_v23, 7 }
 0x472   :  { %v4114_v54 = vsel %vm3641_vm8, %v9738_v0, %v4113_v26  ;;  %v4095_v57 = vsel %vm3632_vm5, %v4094_v27, %v4093_v36  ;;  %v4101_v10 = vrot.slane %v12061_v47, 7  ;;  %v4321_v5 = vrot.slane %v9652_v22, 6 }
 0x473   :  { %v4116_v32 = vsel %vm3644_vm9, %v4115_v43, %v4114_v54  ;;  %v4097_v21 = vsel %vm3635_vm6, %v4096_v41, %v4095_v57  ;;  %v4318_v13 = vsel %vm3626_vm3, %v9638_v7, %v4317_v59  ;;  %v4323_v56 = vrot.slane %v9658_v38, 5 }
 0x474   :  { %4123 = vrot.lane.b32.xlu1 %v4116_v32, %s5094_s11  ;;  %v4325_v28 = vrot.slane %v9665_v60, 4  ;;  %v4099_v26 = vsel %vm3638_vm7, %v4098_v63, %v4097_v21  ;;  %v4320_v43 = vsel %vm3629_vm4, %v4319_v18, %v4318_v13  ;;  %v4327_v27 = vrot.slane %v9671_v3, 3 }
 0x475   :  { %v4303_v25 = vrot.slane %v9600_v52, 1  ;;  %v4100_v54 = vsel %vm3641_vm8, %v12059_v40, %v4099_v26  ;;  %v4322_v41 = vsel %vm3632_vm5, %v4321_v5, %v4320_v43  ;;  %v4329_v36 = vrot.slane %v9676_v51, 2  ;;  %v12064_v40 = vld [vmem:[#allocation79_spill] sm:$0xff] }
 0x476   :  { %v4305_v59 = vrot.slane %v9608_v4, 7  ;;  %v4102_v32 = vsel %vm3644_vm9, %v4101_v10, %v4100_v54  ;;  %v4324_v57 = vsel %vm3635_vm6, %v4323_v56, %v4322_v41  ;;  %v4307_v18 = vrot.slane %v9612_v14, 6  ;;  %v12062_v56 = vld [vmem:[#allocation22_spill] sm:$0xff]  ;;  %v12063_v41 = vld [vmem:[#allocation44_spill] sm:$0xff] }
 0x477   :  { %v4304_v63 = vsel %vm3626_vm3, %v9605_v19, %v4303_v25  ;;  %4121 = vrot.lane.b32.xlu0 %v4102_v32, %s5094_s11  ;;  %v4326_v21 = vsel %vm3638_vm7, %v4325_v28, %v4324_v57  ;;  %v4309_v5 = vrot.slane %v9615_v50, 5  ;;  %v4311_v26 = vrot.slane %v9618_v24, 4  ;;  %v12065_v57 = vld [vmem:[#allocation83_spill] sm:$0xff] }
 0x478   :  { %v4306_v13 = vsel %vm3629_vm4, %v4305_v59, %v4304_v63  ;;  %v4328_v43 = vsel %vm3641_vm8, %v4327_v27, %v4326_v21  ;;  %v4313_v54 = vrot.slane %v12062_v56, 3  ;;  %v4345_v25 = vrot.slane %v12063_v41, 1 }
 0x479   :  { %v4308_v10 = vsel %vm3632_vm5, %v4307_v18, %v4306_v13  ;;  %v4330_v47 = vsel %vm3644_vm9, %v4329_v36, %v4328_v43  ;;  %v4315_v28 = vrot.slane %v12064_v40, 2  ;;  %v4347_v59 = vrot.slane %v12065_v57, 7  ;;  %v12067_v18 = vld [vmem:[#allocation84_spill] sm:$0xff]  ;;  %v12068_v13 = vld [vmem:[#allocation91_spill] sm:$0xff] }
 0x47a   :  { %v4310_v32 = vsel %vm3635_vm6, %v4309_v5, %v4308_v10  ;;  %4361 = vrot.lane.b32.xlu1 %v4330_v47, %s5089_s1  ;;  %v4346_v27 = vsel %vm3626_vm3, %v12066_v16, %v4345_v25  ;;  %v4349_v21 = vrot.slane %v12067_v18, 6  ;;  %v4351_v35 = vrot.slane %v12068_v13, 5  ;;  %v12069_v5 = vld [vmem:[#allocation46_spill] sm:$0xff]  ;;  %v12070_v10 = vld [vmem:[#allocation47_spill] sm:$0xff] }
 0x47b   :  { %v4312_v63 = vsel %vm3638_vm7, %v4311_v26, %v4310_v32  ;;  %v4348_v36 = vsel %vm3629_vm4, %v4347_v59, %v4346_v27  ;;  %v4353_v43 = vrot.slane %v12069_v5, 4  ;;  %v4355_v9 = vrot.slane %v12070_v10, 3  ;;  %v12071_v26 = vld [vmem:[#allocation88_spill] sm:$0xff] }
 0x47c   :  { %v4314_v42 = vsel %vm3641_vm8, %v4313_v54, %v4312_v63  ;;  %v4350_v47 = vsel %vm3632_vm5, %v4349_v21, %v4348_v36  ;;  %v4331_v32 = vrot.slane %v12071_v26, 1  ;;  %v4333_v25 = vrot.slane %v12072_v49, 7  ;;  %v12074_v63 = vld [vmem:[#allocation61_spill] sm:$0xff]  ;;  %v12075_v27 = vld [vmem:[#allocation40_spill] sm:$0xff] }
 0x47d   :  { %v4316_v0 = vsel %vm3644_vm9, %v4315_v28, %v4314_v42  ;;  %v4352_v33 = vsel %vm3635_vm6, %v4351_v35, %v4350_v47  ;;  %v4357_v54 = vrot.slane %v12073_v45, 2  ;;  %v4335_v59 = vrot.slane %v12074_v63, 6  ;;  %v12077_v28 = vld [vmem:[#allocation8_spill] sm:$0xff]  ;;  %v12078_v36 = vld [vmem:[#allocation41_spill] sm:$0xff] }
 0x47e   :  { %4359 = vrot.lane.b32.xlu0 %v4316_v0, %s5089_s1  ;;  %v4337_v62 = vrot.slane %v12075_v27, 5  ;;  %v4354_v46 = vsel %vm3638_vm7, %v4353_v43, %v4352_v33  ;;  %v4332_v42 = vsel %vm3626_vm3, %v12076_v55, %v4331_v32  ;;  %v4339_v21 = vrot.slane %v12077_v28, 4  ;;  %v12079_v33 = vld [vmem:[#allocation42_spill] sm:$0xff] }
 0x47f   :  { %v4341_v6 = vrot.slane %v12078_v36, 3  ;;  %v4356_v15 = vsel %vm3641_vm8, %v4355_v9, %v4354_v46  ;;  %v4334_v0 = vsel %vm3629_vm4, %v4333_v25, %v4332_v42  ;;  %v4389_v35 = vrot.slane %v9632_v37, 2 }
 0x480   :  { %v4390_v47 = vrot.slane %v9638_v7, 1  ;;  %v4358_v44 = vsel %vm3644_vm9, %v4357_v54, %v4356_v15  ;;  %v4336_v53 = vsel %vm3632_vm5, %v4335_v59, %v4334_v0  ;;  %v4343_v43 = vrot.slane %v12079_v33, 2 }
 0x481   :  { %v4393_v32 = vrot.slane %v9652_v22, 7  ;;  %4365 = vrot.lane.b32.xlu1 %v4358_v44, %s5089_s1  ;;  %v4338_v39 = vsel %vm3635_vm6, %v4337_v62, %v4336_v53  ;;  %v4395_v9 = vrot.slane %v9658_v38, 6  ;;  %v4397_v25 = vrot.slane %v9665_v60, 5 }
 0x482   :  { %v4391_v46 = vsel %vm3626_vm3, %v4390_v47, %v4389_v35  ;;  %v4340_v42 = vsel %vm3638_vm7, %v4339_v21, %v4338_v39  ;;  %v4399_v54 = vrot.slane %v9671_v3, 4  ;;  %v4375_v59 = vrot.slane %v9600_v52, 2 }
 0x483   :  { %v4392_v15 = vsel %vm3629_vm4, %v9645_v23, %v4391_v46  ;;  %v4342_v0 = vsel %vm3641_vm8, %v4341_v6, %v4340_v42  ;;  %v4401_v53 = vrot.slane %v9676_v51, 3  ;;  %v4376_v62 = vrot.slane %v9605_v19, 1 }
 0x484   :  { %v4394_v44 = vsel %vm3632_vm5, %v4393_v32, %v4392_v15  ;;  %v4344_v35 = vsel %vm3644_vm9, %v4343_v43, %v4342_v0  ;;  %v4379_v39 = vrot.slane %v9612_v14, 7  ;;  %v4381_v21 = vrot.slane %v9615_v50, 6 }
 0x485   :  { %v4396_v47 = vsel %vm3635_vm6, %v4395_v9, %v4394_v44  ;;  %4363 = vrot.lane.b32.xlu0 %v4344_v35, %s5089_s1  ;;  %v4377_v6 = vsel %vm3626_vm3, %v4376_v62, %v4375_v59  ;;  %v4383_v32 = vrot.slane %v9618_v24, 5  ;;  %v4385_v42 = vrot.slane %v12062_v56, 4 }
 0x486   :  { %v4398_v46 = vsel %vm3638_vm7, %v4397_v25, %v4396_v47  ;;  %v4378_v43 = vsel %vm3629_vm4, %v9608_v4, %v4377_v6  ;;  %v4417_v9 = vrot.slane %v12063_v41, 2  ;;  %v4418_v0 = vrot.slane %v12066_v16, 1 }
 0x487   :  { %v4400_v15 = vsel %vm3641_vm8, %v4399_v54, %v4398_v46  ;;  %v4380_v35 = vsel %vm3632_vm5, %v4379_v39, %v4378_v43  ;;  %v4387_v25 = vrot.slane %v12064_v40, 3  ;;  %v4421_v59 = vrot.slane %v12067_v18, 7 }
 0x488   :  { %v4402_v44 = vsel %vm3644_vm9, %v4401_v53, %v4400_v15  ;;  %v4382_v62 = vsel %vm3635_vm6, %v4381_v21, %v4380_v35  ;;  %v4419_v54 = vsel %vm3626_vm3, %v4418_v0, %v4417_v9  ;;  %v4423_v47 = vrot.slane %v12068_v13, 6 }
 0x489   :  { %4433 = vrot.lane.b32.xlu1 %v4402_v44, %s5090_s7  ;;  %v4425_v46 = vrot.slane %v12069_v5, 5  ;;  %v4384_v6 = vsel %vm3638_vm7, %v4383_v32, %v4382_v62  ;;  %v4420_v53 = vsel %vm3629_vm4, %v12065_v57, %v4419_v54  ;;  %v4427_v39 = vrot.slane %v12070_v10, 4 }
 0x48a   :  { %v4403_v15 = vrot.slane %v12071_v26, 2  ;;  %v4386_v43 = vsel %vm3641_vm8, %v4385_v42, %v4384_v6  ;;  %v4422_v44 = vsel %vm3632_vm5, %v4421_v59, %v4420_v53  ;;  %v4429_v21 = vrot.slane %v12073_v45, 3 }
 0x48b   :  { %v4404_v9 = vrot.slane %v12076_v55, 1  ;;  %v4388_v0 = vsel %vm3644_vm9, %v4387_v25, %v4386_v43  ;;  %v4424_v35 = vsel %vm3635_vm6, %v4423_v47, %v4422_v44  ;;  %v4407_v32 = vrot.slane %v12074_v63, 7 }
 0x48c   :  { %v4409_v62 = vrot.slane %v12075_v27, 6  ;;  %4431 = vrot.lane.b32.xlu0 %v4388_v0, %s5090_s7  ;;  %v4426_v54 = vsel %vm3638_vm7, %v4425_v46, %v4424_v35  ;;  %v4411_v59 = vrot.slane %v12077_v28, 5  ;;  %v4413_v6 = vrot.slane %v12078_v36, 4 }
 0x48d   :  { %v4405_v42 = vsel %vm3626_vm3, %v4404_v9, %v4403_v15  ;;  %v4428_v53 = vsel %vm3641_vm8, %v4427_v39, %v4426_v54  ;;  %v4461_v47 = vrot.slane %v9632_v37, 3  ;;  %v4462_v43 = vrot.slane %v9638_v7, 2 }
 0x48e   :  { %v4406_v25 = vsel %vm3629_vm4, %v12072_v49, %v4405_v42  ;;  %v4430_v44 = vsel %vm3644_vm9, %v4429_v21, %v4428_v53  ;;  %v4415_v46 = vrot.slane %v12079_v33, 3  ;;  %v4464_v15 = vrot.slane %v9645_v23, 1 }
 0x48f   :  { %v4408_v0 = vsel %vm3632_vm5, %v4407_v32, %v4406_v25  ;;  %4437 = vrot.lane.b32.xlu1 %v4430_v44, %s5090_s7  ;;  %v4463_v39 = vsel %vm3626_vm3, %v4462_v43, %v4461_v47  ;;  %v4467_v35 = vrot.slane %v9658_v38, 7  ;;  %v4469_v54 = vrot.slane %v9665_v60, 6 }
 0x490   :  { %v4410_v9 = vsel %vm3635_vm6, %v4409_v62, %v4408_v0  ;;  %v4465_v21 = vsel %vm3629_vm4, %v4464_v15, %v4463_v39  ;;  %v4471_v32 = vrot.slane %v9671_v3, 5  ;;  %v4447_v53 = vrot.slane %v9600_v52, 3 }
 0x491   :  { %v4412_v42 = vsel %vm3638_vm7, %v4411_v59, %v4410_v9  ;;  %v4466_v44 = vsel %vm3632_vm5, %v9652_v22, %v4465_v21  ;;  %v4448_v62 = vrot.slane %v9605_v19, 2  ;;  %v4450_v47 = vrot.slane %v9608_v4, 1 }
 0x492   :  { %v4414_v25 = vsel %vm3641_vm8, %v4413_v6, %v4412_v42  ;;  %v4468_v0 = vsel %vm3635_vm6, %v4467_v35, %v4466_v44  ;;  %v4473_v59 = vrot.slane %v9676_v51, 4  ;;  %v4453_v15 = vrot.slane %v9615_v50, 7 }
 0x493   :  { %v4416_v43 = vsel %vm3644_vm9, %v4415_v46, %v4414_v25  ;;  %v4470_v9 = vsel %vm3638_vm7, %v4469_v54, %v4468_v0  ;;  %v4449_v6 = vsel %vm3626_vm3, %v4448_v62, %v4447_v53  ;;  %v4455_v39 = vrot.slane %v9618_v24, 6 }
 0x494   :  { %4435 = vrot.lane.b32.xlu0 %v4416_v43, %s5090_s7  ;;  %v4457_v42 = vrot.slane %v12062_v56, 5  ;;  %v4472_v21 = vsel %vm3641_vm8, %v4471_v32, %v4470_v9  ;;  %v4451_v46 = vsel %vm3629_vm4, %v4450_v47, %v4449_v6  ;;  %v4489_v35 = vrot.slane %v12063_v41, 3 }
 0x495   :  { %v4490_v25 = vrot.slane %v12066_v16, 2  ;;  %v4474_v44 = vsel %vm3644_vm9, %v4473_v59, %v4472_v21  ;;  %v4452_v43 = vsel %vm3632_vm5, %v9612_v14, %v4451_v46  ;;  %v4459_v54 = vrot.slane %v12064_v40, 4 }
 0x496   :  { %v4492_v53 = vrot.slane %v12065_v57, 1  ;;  %4505 = vrot.lane.b32.xlu1 %v4474_v44, %s5091_s8  ;;  %v4454_v62 = vsel %vm3635_vm6, %v4453_v15, %v4452_v43  ;;  %v4495_v47 = vrot.slane %v12068_v13, 7  ;;  %v4497_v0 = vrot.slane %v12069_v5, 6 }
 0x497   :  { %v4491_v32 = vsel %vm3626_vm3, %v4490_v25, %v4489_v35  ;;  %v4456_v9 = vsel %vm3638_vm7, %v4455_v39, %v4454_v62  ;;  %v4499_v6 = vrot.slane %v12070_v10, 5  ;;  %v4475_v21 = vrot.slane %v12071_v26, 3 }
 0x498   :  { %v4493_v59 = vsel %vm3629_vm4, %v4492_v53, %v4491_v32  ;;  %v4458_v46 = vsel %vm3641_vm8, %v4457_v42, %v4456_v9  ;;  %v4476_v15 = vrot.slane %v12076_v55, 2  ;;  %v4478_v35 = vrot.slane %v12072_v49, 1 }
 0x499   :  { %v4494_v44 = vsel %vm3632_vm5, %v12067_v18, %v4493_v59  ;;  %v4460_v25 = vsel %vm3644_vm9, %v4459_v54, %v4458_v46  ;;  %v4501_v39 = vrot.slane %v12073_v45, 4  ;;  %v4481_v53 = vrot.slane %v12075_v27, 7 }
 0x49a   :  { %v4496_v43 = vsel %vm3635_vm6, %v4495_v47, %v4494_v44  ;;  %4503 = vrot.lane.b32.xlu0 %v4460_v25, %s5091_s8  ;;  %v4477_v42 = vsel %vm3626_vm3, %v4476_v15, %v4475_v21  ;;  %v4483_v32 = vrot.slane %v12077_v28, 6  ;;  %v4485_v9 = vrot.slane %v12078_v36, 5 }
 0x49b   :  { %v4498_v62 = vsel %vm3638_vm7, %v4497_v0, %v4496_v43  ;;  %v4479_v54 = vsel %vm3629_vm4, %v4478_v35, %v4477_v42  ;;  %v4533_v47 = vrot.slane %v9632_v37, 4  ;;  %v4534_v46 = vrot.slane %v9638_v7, 3 }
 0x49c   :  { %v4500_v59 = vsel %vm3641_vm8, %v4499_v6, %v4498_v62  ;;  %v4480_v25 = vsel %vm3632_vm5, %v12074_v63, %v4479_v54  ;;  %v4487_v0 = vrot.slane %v12079_v33, 4  ;;  %v4536_v21 = vrot.slane %v9645_v23, 2 }
 0x49d   :  { %v4502_v44 = vsel %vm3644_vm9, %v4501_v39, %v4500_v59  ;;  %v4482_v15 = vsel %vm3635_vm6, %v4481_v53, %v4480_v25  ;;  %v4535_v6 = vsel %vm3626_vm3, %v4534_v46, %v4533_v47  ;;  %v4538_v35 = vrot.slane %v9652_v22, 1 }
 0x49e   :  { %4509 = vrot.lane.b32.xlu1 %v4502_v44, %s5091_s8  ;;  %v4541_v43 = vrot.slane %v9665_v60, 7  ;;  %v4484_v62 = vsel %vm3638_vm7, %v4483_v32, %v4482_v15  ;;  %v4537_v39 = vsel %vm3629_vm4, %v4536_v21, %v4535_v6  ;;  %v4543_v42 = vrot.slane %v9671_v3, 6 }
 0x49f   :  { %v4519_v59 = vrot.slane %v9600_v52, 4  ;;  %v4486_v54 = vsel %vm3641_vm8, %v4485_v9, %v4484_v62  ;;  %v4539_v44 = vsel %vm3632_vm5, %v4538_v35, %v4537_v39  ;;  %v4520_v53 = vrot.slane %v9605_v19, 3 }
 0x4a0   :  { %v4522_v47 = vrot.slane %v9608_v4, 2  ;;  %v4488_v46 = vsel %vm3644_vm9, %v4487_v0, %v4486_v54  ;;  %v4540_v25 = vsel %vm3635_vm6, %v9658_v38, %v4539_v44  ;;  %v4545_v32 = vrot.slane %v9676_v51, 5 }
 0x4a1   :  { %v4524_v21 = vrot.slane %v9612_v14, 1  ;;  %4507 = vrot.lane.b32.xlu0 %v4488_v46, %s5091_s8  ;;  %v4542_v15 = vsel %vm3638_vm7, %v4541_v43, %v4540_v25  ;;  %v4521_v9 = vsel %vm3626_vm3, %v4520_v53, %v4519_v59  ;;  %v4527_v6 = vrot.slane %v9618_v24, 7 }
 0x4a2   :  { %v4529_v35 = vrot.slane %v12062_v56, 6  ;;  %v4544_v62 = vsel %vm3641_vm8, %v4543_v42, %v4542_v15  ;;  %v4523_v0 = vsel %vm3629_vm4, %v4522_v47, %v4521_v9  ;;  %v4561_v39 = vrot.slane %v12063_v41, 4 }
 0x4a3   :  { %v4562_v54 = vrot.slane %v12066_v16, 3  ;;  %v4546_v44 = vsel %vm3644_vm9, %v4545_v32, %v4544_v62  ;;  %v4525_v46 = vsel %vm3632_vm5, %v4524_v21, %v4523_v0  ;;  %v4531_v43 = vrot.slane %v12064_v40, 5 }
 0x4a4   :  { %v4564_v59 = vrot.slane %v12065_v57, 2  ;;  %4577 = vrot.lane.b32.xlu1 %v4546_v44, %s5092_s9  ;;  %v4526_v53 = vsel %vm3635_vm6, %v9615_v50, %v4525_v46  ;;  %v4566_v47 = vrot.slane %v12067_v18, 1  ;;  %v4569_v25 = vrot.slane %v12069_v5, 7 }
 0x4a5   :  { %v4563_v42 = vsel %vm3626_vm3, %v4562_v54, %v4561_v39  ;;  %v4528_v15 = vsel %vm3638_vm7, %v4527_v6, %v4526_v53  ;;  %v4571_v21 = vrot.slane %v12070_v10, 6  ;;  %v4547_v9 = vrot.slane %v12071_v26, 4  ;;  %v10332_v54 = vpop.permute.xlu1 %3756 }
 0x4a6   :  { %v4565_v32 = vsel %vm3629_vm4, %v4564_v59, %v4563_v42  ;;  %v4530_v62 = vsel %vm3641_vm8, %v4529_v35, %v4528_v15  ;;  %v4548_v44 = vrot.slane %v12076_v55, 3  ;;  %v4550_v39 = vrot.slane %v12072_v49, 2  ;;  %12080 = vst [vmem:[#allocation58_spill] sm:$0xff] %v10332_v54 }
 0x4a7   :  { %v4567_v0 = vsel %vm3632_vm5, %v4566_v47, %v4565_v32  ;;  %v4532_v46 = vsel %vm3644_vm9, %v4531_v43, %v4530_v62  ;;  %v4573_v59 = vrot.slane %v12073_v45, 5  ;;  %v4552_v53 = vrot.slane %v12074_v63, 1 }
 0x4a8   :  { %v4568_v6 = vsel %vm3635_vm6, %v12068_v13, %v4567_v0  ;;  %4575 = vrot.lane.b32.xlu0 %v4532_v46, %s5092_s9  ;;  %v4549_v42 = vsel %vm3626_vm3, %v4548_v44, %v4547_v9  ;;  %v4555_v47 = vrot.slane %v12077_v28, 7  ;;  %v4557_v15 = vrot.slane %v12078_v36, 6  ;;  %v10352_v44 = vpop.permute.xlu0 %3752 }
 0x4a9   :  { %v4570_v35 = vsel %vm3638_vm7, %v4569_v25, %v4568_v6  ;;  %v4551_v43 = vsel %vm3629_vm4, %v4550_v39, %v4549_v42  ;;  %v4605_v62 = vrot.slane %v9632_v37, 5  ;;  %v4606_v0 = vrot.slane %v9638_v7, 4  ;;  %12081 = vst [vmem:[#allocation60_spill] sm:$0xff] %v10352_v44 }
 0x4aa   :  { %v4572_v32 = vsel %vm3641_vm8, %v4571_v21, %v4570_v35  ;;  %v4553_v46 = vsel %vm3632_vm5, %v4552_v53, %v4551_v43  ;;  %v4559_v25 = vrot.slane %v12079_v33, 5  ;;  %v4608_v9 = vrot.slane %v9645_v23, 3  ;;  %v10364_v43 = vpop.permute.xlu1 %3758 }
 0x4ab   :  { %v4574_v54 = vsel %vm3644_vm9, %v4573_v59, %v4572_v32  ;;  %v4554_v21 = vsel %vm3635_vm6, %v12075_v27, %v4553_v46  ;;  %v4607_v39 = vsel %vm3626_vm3, %v4606_v0, %v4605_v62  ;;  %v4610_v6 = vrot.slane %v9652_v22, 2  ;;  %12082 = vst [vmem:[#allocation92_spill] sm:$0xff] %v10364_v43 }
 0x4ac   :  { %4581 = vrot.lane.b32.xlu1 %v4574_v54, %s5092_s9  ;;  %v4612_v35 = vrot.slane %v9658_v38, 1  ;;  %v4556_v59 = vsel %vm3638_vm7, %v4555_v47, %v4554_v21  ;;  %v4609_v53 = vsel %vm3629_vm4, %v4608_v9, %v4607_v39  ;;  %v4615_v42 = vrot.slane %v9671_v3, 7 }
 0x4ad   :  { %v4591_v32 = vrot.slane %v9600_v52, 5  ;;  %v4558_v54 = vsel %vm3641_vm8, %v4557_v15, %v4556_v59  ;;  %v4611_v46 = vsel %vm3632_vm5, %v4610_v6, %v4609_v53  ;;  %v4592_v62 = vrot.slane %v9605_v19, 4 }
 0x4ae   :  { %v4594_v0 = vrot.slane %v9608_v4, 3  ;;  %v4560_v44 = vsel %vm3644_vm9, %v4559_v25, %v4558_v54  ;;  %v4613_v47 = vsel %vm3635_vm6, %v4612_v35, %v4611_v46  ;;  %v4617_v9 = vrot.slane %v9676_v51, 6  ;;  %v10384_v46 = vpop.permute.xlu0 %3754  ;;  %v10395_v43 = vpop.permute.xlu1 %3827 }
 0x4af   :  { %v4596_v21 = vrot.slane %v9612_v14, 2  ;;  %4579 = vrot.lane.b32.xlu0 %v4560_v44, %s5092_s9  ;;  %v4614_v39 = vsel %vm3638_vm7, %v9665_v60, %v4613_v47  ;;  %v4593_v15 = vsel %vm3626_vm3, %v4592_v62, %v4591_v32  ;;  %v4598_v6 = vrot.slane %v9615_v50, 1  ;;  %12083 = vst [vmem:[#allocation93_spill] sm:$0xff] %v10384_v46  ;;  %12084 = vst [vmem:[#allocation62_spill] sm:$0xff] %v10395_v43 }
 0x4b0   :  { %v4601_v59 = vrot.slane %v12062_v56, 7  ;;  %v4616_v53 = vsel %vm3641_vm8, %v4615_v42, %v4614_v39  ;;  %v4595_v25 = vsel %vm3629_vm4, %v4594_v0, %v4593_v15  ;;  %v4633_v35 = vrot.slane %v12063_v41, 5 }
 0x4b1   :  { %v4634_v54 = vrot.slane %v12066_v16, 4  ;;  %v4618_v44 = vsel %vm3644_vm9, %v4617_v9, %v4616_v53  ;;  %v4597_v47 = vsel %vm3632_vm5, %v4596_v21, %v4595_v25  ;;  %v4603_v32 = vrot.slane %v12064_v40, 6 }
 0x4b2   :  { %v4636_v62 = vrot.slane %v12065_v57, 3  ;;  %4649 = vrot.lane.b32.xlu1 %v4618_v44, %s5093_s10  ;;  %v4599_v42 = vsel %vm3635_vm6, %v4598_v6, %v4597_v47  ;;  %v4638_v39 = vrot.slane %v12067_v18, 2  ;;  %v4640_v15 = vrot.slane %v12068_v13, 1  ;;  %v10426_v46 = vpop.permute.xlu1 %3831 }
 0x4b3   :  { %v4635_v0 = vsel %vm3626_vm3, %v4634_v54, %v4633_v35  ;;  %v4600_v9 = vsel %vm3638_vm7, %v9618_v24, %v4599_v42  ;;  %v4643_v53 = vrot.slane %v12070_v10, 7  ;;  %v4619_v25 = vrot.slane %v12071_v26, 5  ;;  %12086 = vst [vmem:[#allocation32_spill] sm:$0xff] %v10426_v46 }
 0x4b4   :  { %v4637_v21 = vsel %vm3629_vm4, %v4636_v62, %v4635_v0  ;;  %v4602_v44 = vsel %vm3641_vm8, %v4601_v59, %v4600_v9  ;;  %v4620_v35 = vrot.slane %v12076_v55, 4  ;;  %v4622_v54 = vrot.slane %v12072_v49, 3 }
 0x4b5   :  { %v4639_v6 = vsel %vm3632_vm5, %v4638_v39, %v4637_v21  ;;  %v4604_v47 = vsel %vm3644_vm9, %v4603_v32, %v4602_v44  ;;  %v4645_v42 = vrot.slane %v12073_v45, 6  ;;  %v4624_v62 = vrot.slane %v12074_v63, 2  ;;  %v10416_v21 = vpop.permute.xlu0 %3825 }
 0x4b6   :  { %v4641_v43 = vsel %vm3635_vm6, %v4640_v15, %v4639_v6  ;;  %4647 = vrot.lane.b32.xlu0 %v4604_v47, %s5093_s10  ;;  %v4621_v59 = vsel %vm3626_vm3, %v4620_v35, %v4619_v25  ;;  %v4626_v39 = vrot.slane %v12075_v27, 1  ;;  %v4629_v9 = vrot.slane %v12078_v36, 7  ;;  %12085 = vst [vmem:[#allocation38_spill] sm:$0xff] %v10416_v21 }
 0x4b7   :  { %v4642_v0 = vsel %vm3638_vm7, %v12069_v5, %v4641_v43  ;;  %v4623_v15 = vsel %vm3629_vm4, %v4622_v54, %v4621_v59  ;;  %v4677_v44 = vrot.slane %v9632_v37, 6  ;;  %v4678_v6 = vrot.slane %v9638_v7, 5 }
 0x4b8   :  { %v4644_v32 = vsel %vm3641_vm8, %v4643_v53, %v4642_v0  ;;  %v4625_v43 = vsel %vm3632_vm5, %v4624_v62, %v4623_v15  ;;  %v4631_v25 = vrot.slane %v12079_v33, 6  ;;  %v4680_v35 = vrot.slane %v9645_v23, 4 }
 0x4b9   :  { %v4646_v47 = vsel %vm3644_vm9, %v4645_v42, %v4644_v32  ;;  %v4627_v53 = vsel %vm3635_vm6, %v4626_v39, %v4625_v43  ;;  %v4679_v54 = vsel %vm3626_vm3, %v4678_v6, %v4677_v44  ;;  %v4682_v0 = vrot.slane %v9652_v22, 3 }
 0x4ba   :  { %4653 = vrot.lane.b32.xlu1 %v4646_v47, %s5093_s10  ;;  %v4684_v59 = vrot.slane %v9658_v38, 2  ;;  %v4628_v42 = vsel %vm3638_vm7, %v12077_v28, %v4627_v53  ;;  %v4681_v62 = vsel %vm3629_vm4, %v4680_v35, %v4679_v54  ;;  %v4686_v32 = vrot.slane %v9665_v60, 1  ;;  %v10446_v54 = vpop.permute.xlu0 %3829 }
 0x4bb   :  { %v4663_v15 = vrot.slane %v9600_v52, 6  ;;  %v4630_v46 = vsel %vm3641_vm8, %v4629_v9, %v4628_v42  ;;  %v4683_v47 = vsel %vm3632_vm5, %v4682_v0, %v4681_v62  ;;  %v4664_v39 = vrot.slane %v9605_v19, 5  ;;  %12087 = vst [vmem:[#allocation33_spill] sm:$0xff] %v10446_v54  ;;  %v10458_v54 = vpop.permute.xlu1 %3900 }
 0x4bc   :  { %v4666_v44 = vrot.slane %v9608_v4, 4  ;;  %v4632_v6 = vsel %vm3644_vm9, %v4631_v25, %v4630_v46  ;;  %v4685_v43 = vsel %vm3635_vm6, %v4684_v59, %v4683_v47  ;;  %v4689_v53 = vrot.slane %v9676_v51, 7  ;;  %12088 = vst [vmem:[#allocation63_spill] sm:$0xff] %v10458_v54 }
 0x4bd   :  { %v4668_v35 = vrot.slane %v9612_v14, 3  ;;  %4651 = vrot.lane.b32.xlu0 %v4632_v6, %s5093_s10  ;;  %v4687_v9 = vsel %vm3638_vm7, %v4686_v32, %v4685_v43  ;;  %v4665_v0 = vsel %vm3626_vm3, %v4664_v39, %v4663_v15  ;;  %v4670_v42 = vrot.slane %v9615_v50, 2 }
 0x4be   :  { %v4672_v62 = vrot.slane %v9618_v24, 1  ;;  %v4688_v46 = vsel %vm3641_vm8, %v9671_v3, %v4687_v9  ;;  %v4667_v25 = vsel %vm3629_vm4, %v4666_v44, %v4665_v0  ;;  %v4705_v59 = vrot.slane %v12063_v41, 6 }
 0x4bf   :  { %v4706_v47 = vrot.slane %v12066_v16, 5  ;;  %v4690_v6 = vsel %vm3644_vm9, %v4689_v53, %v4688_v46  ;;  %v4669_v32 = vsel %vm3632_vm5, %v4668_v35, %v4667_v25  ;;  %v4675_v15 = vrot.slane %v12064_v40, 7  ;;  %v10489_v21 = vpop.permute.xlu1 %3904 }
 0x4c0   :  { %v4708_v39 = vrot.slane %v12065_v57, 4  ;;  %4721 = vrot.lane.b32.xlu1 %v4690_v6, %s5094_s11  ;;  %v4671_v43 = vsel %vm3635_vm6, %v4670_v42, %v4669_v32  ;;  %v4710_v9 = vrot.slane %v12067_v18, 3  ;;  %v4712_v0 = vrot.slane %v12068_v13, 2  ;;  %12090 = vst [vmem:[#allocation9_spill] sm:$0xff] %v10489_v21 }
 0x4c1   :  { %v4707_v44 = vsel %vm3626_vm3, %v4706_v47, %v4705_v59  ;;  %v4673_v54 = vsel %vm3638_vm7, %v4672_v62, %v4671_v43  ;;  %v4714_v35 = vrot.slane %v12069_v5, 1  ;;  %v4691_v46 = vrot.slane %v12071_v26, 6  ;;  %v10478_v47 = vpop.permute.xlu0 %3898 }
 0x4c2   :  { %v4709_v53 = vsel %vm3629_vm4, %v4708_v39, %v4707_v44  ;;  %v4674_v25 = vsel %vm3641_vm8, %v12062_v56, %v4673_v54  ;;  %v4692_v42 = vrot.slane %v12076_v55, 5  ;;  %v4694_v59 = vrot.slane %v12072_v49, 4  ;;  %12089 = vst [vmem:[#allocation26_spill] sm:$0xff] %v10478_v47 }
 0x4c3   :  { %v4711_v6 = vsel %vm3632_vm5, %v4710_v9, %v4709_v53  ;;  %v4676_v32 = vsel %vm3644_vm9, %v4675_v15, %v4674_v25  ;;  %v4717_v39 = vrot.slane %v12073_v45, 7  ;;  %v4696_v43 = vrot.slane %v12074_v63, 3 }
 0x4c4   :  { %v4713_v62 = vsel %vm3635_vm6, %v4712_v0, %v4711_v6  ;;  %4719 = vrot.lane.b32.xlu0 %v4676_v32, %s5094_s11  ;;  %v4693_v44 = vsel %vm3626_vm3, %v4692_v42, %v4691_v46  ;;  %v4698_v9 = vrot.slane %v12075_v27, 2  ;;  %v4700_v53 = vrot.slane %v12077_v28, 1 }
 0x4c5   :  { %v4715_v54 = vsel %vm3638_vm7, %v4714_v35, %v4713_v62  ;;  %v4695_v0 = vsel %vm3629_vm4, %v4694_v59, %v4693_v44  ;;  %v4148_v25 = vrot.slane %v9628_v48, 7  ;;  %v4149_v6 = vrot.slane %v9635_v1, 6 }
 0x4c6   :  { %v4716_v15 = vsel %vm3641_vm8, %v12070_v10, %v4715_v54  ;;  %v4697_v35 = vsel %vm3632_vm5, %v4696_v43, %v4695_v0  ;;  %v4703_v46 = vrot.slane %v12079_v33, 7  ;;  %v4151_v42 = vrot.slane %v9642_v58, 5  ;;  %v10509_v0 = vpop.permute.xlu0 %3902 }
 0x4c7   :  { %v4718_v32 = vsel %vm3644_vm9, %v4717_v39, %v4716_v15  ;;  %v4699_v62 = vsel %vm3635_vm6, %v4698_v9, %v4697_v35  ;;  %v4150_v54 = vsel %vm3626_vm3, %v4149_v6, %v4148_v25  ;;  %v4153_v59 = vrot.slane %v9648_v61, 4  ;;  %12091 = vst [vmem:[#allocation16_spill] sm:$0xff] %v10509_v0  ;;  %v12101_v61 = vld [vmem:[#allocation11_spill] sm:$0xff] }
 0x4c8   :  { %4725 = vrot.lane.b32.xlu1 %v4718_v32, %s5094_s11  ;;  %v4155_v44 = vrot.slane %v9655_v8, 3  ;;  %v4701_v21 = vsel %vm3638_vm7, %v4700_v53, %v4699_v62  ;;  %v4152_v39 = vsel %vm3629_vm4, %v4151_v42, %v4150_v54  ;;  %v4157_v43 = vrot.slane %v9662_v31, 2  ;;  %v10520_v54 = vpop.permute.xlu1 %3973  ;;  %v12098_v31 = vld [vmem:[#allocation85_spill] sm:$0xff] }
 0x4c9   :  { %v4134_v15 = vrot.slane %v12051_v12, 7  ;;  %v4702_v32 = vsel %vm3641_vm8, %v12078_v36, %v4701_v21  ;;  %v4154_v9 = vsel %vm3632_vm5, %v4153_v59, %v4152_v39  ;;  %v4135_v25 = vrot.slane %v9573_v34, 6  ;;  %12092 = vst [vmem:[#allocation51_spill] sm:$0xff] %v10520_v54 }
 0x4ca   :  { %v4137_v6 = vrot.slane %v12053_v29, 5  ;;  %v4704_v35 = vsel %vm3644_vm9, %v4703_v46, %v4702_v32  ;;  %v4156_v53 = vsel %vm3635_vm6, %v4155_v44, %v4154_v9  ;;  %v4159_v42 = vrot.slane %v9668_v17, 1  ;;  %v12093_v9 = vld [vmem:[#allocation45_spill] sm:$0xff]  ;;  %v12094_v17 = vld [vmem:[#allocation87_spill] sm:$0xff]  ;;  %v10541_v48 = vpop.permute.xlu0 %3971 }
 0x4cb   :  { %v4139_v62 = vrot.slane %v9577_v20, 4  ;;  %4723 = vrot.lane.b32.xlu0 %v4704_v35, %s5094_s11  ;;  %v4158_v21 = vsel %vm3638_vm7, %v4157_v43, %v4156_v53  ;;  %v4136_v59 = vsel %vm3626_vm3, %v4135_v25, %v4134_v15  ;;  %v4141_v39 = vrot.slane %v9579_v30, 3  ;;  %v12095_v43 = vld [vmem:[#allocation55_spill] sm:$0xff]  ;;  %v12096_v15 = vld [vmem:[#allocation29_spill] sm:$0xff]  ;;  %12099 = vst [vmem:[#allocation54_spill] sm:$0xff] %v10541_v48 }
 0x4cc   :  { %v4143_v0 = vrot.slane %v9581_v2, 2  ;;  %v4160_v46 = vsel %vm3641_vm8, %v4159_v42, %v4158_v21  ;;  %v4138_v44 = vsel %vm3629_vm4, %v4137_v6, %v4136_v59  ;;  %v4176_v32 = vrot.slane %v9703_v11, 7  ;;  %v12097_v21 = vld [vmem:[#allocation82_spill] sm:$0xff]  ;;  %v10551_v11 = vpop.permute.xlu1 %3977 }
 0x4cd   :  { %v4177_v47 = vrot.slane %v12093_v9, 6  ;;  %v4161_v54 = vsel %vm3644_vm9, %v12094_v17, %v4160_v46  ;;  %v4140_v35 = vsel %vm3632_vm5, %v4139_v62, %v4138_v44  ;;  %v4145_v53 = vrot.slane %v12095_v43, 1  ;;  %v12100_v44 = vld [vmem:[#allocation89_spill] sm:$0xff]  ;;  %12104 = vst [vmem:[#allocation27_spill] sm:$0xff] %v10551_v11 }
 0x4ce   :  { %v4179_v25 = vrot.slane %v12096_v15, 5  ;;  %4192 = vrot.lane.b32.xlu1 %v4161_v54, %s5095_s12  ;;  %v4142_v42 = vsel %vm3635_vm6, %v4141_v39, %v4140_v35  ;;  %v4181_v59 = vrot.slane %v12097_v21, 4  ;;  %v4183_v8 = vrot.slane %v12098_v31, 3  ;;  %v12102_v35 = vld [vmem:[#allocation74_spill] sm:$0xff]  ;;  %v12109_v21 = vld [vmem:[#allocation20_spill] sm:$0xff] }
 0x4cf   :  { %v4178_v6 = vsel %vm3626_vm3, %v4177_v47, %v4176_v32  ;;  %v4144_v46 = vsel %vm3638_vm7, %v4143_v0, %v4142_v42  ;;  %v4185_v17 = vrot.slane %v12100_v44, 2  ;;  %v4162_v58 = vrot.slane %v12101_v61, 7  ;;  %v12103_v32 = vld [vmem:[#allocation72_spill] sm:$0xff]  ;;  %v12105_v31 = vld [vmem:[#allocation78_spill] sm:$0xff] }
 0x4d0   :  { %v4180_v62 = vsel %vm3629_vm4, %v4179_v25, %v4178_v6  ;;  %v4146_v54 = vsel %vm3641_vm8, %v4145_v53, %v4144_v46  ;;  %v4163_v47 = vrot.slane %v12102_v35, 6  ;;  %v4165_v1 = vrot.slane %v12103_v32, 5  ;;  %v12106_v25 = vld [vmem:[#allocation36_spill] sm:$0xff]  ;;  %v12107_v6 = vld [vmem:[#allocation19_spill] sm:$0xff]  ;;  %v12108_v46 = vld [vmem:[#allocation73_spill] sm:$0xff] }
 0x4d1   :  { %v4182_v39 = vsel %vm3632_vm5, %v4181_v59, %v4180_v62  ;;  %v4147_v48 = vsel %vm3644_vm9, %v12105_v31, %v4146_v54  ;;  %v4187_v42 = vrot.slane %v12106_v25, 1  ;;  %v4167_v44 = vrot.slane %v12107_v6, 4  ;;  %v12110_v25 = vld [vmem:[#allocation71_spill] sm:$0xff] }
 0x4d2   :  { %v4184_v0 = vsel %vm3635_vm6, %v4183_v8, %v4182_v39  ;;  %4190 = vrot.lane.b32.xlu0 %v4147_v48, %s5095_s12  ;;  %v4164_v59 = vsel %vm3626_vm3, %v4163_v47, %v4162_v58  ;;  %v4169_v62 = vrot.slane %v12108_v46, 3  ;;  %v4171_v15 = vrot.slane %v12109_v21, 2  ;;  %v10572_v47 = vpop.permute.xlu0 %3975 }
 0x4d3   :  { %v4186_v53 = vsel %vm3638_vm7, %v4185_v17, %v4184_v0  ;;  %v4166_v54 = vsel %vm3629_vm4, %v4165_v1, %v4164_v59  ;;  %v4749_v8 = vrot.slane %v9632_v37, 7  ;;  %v4750_v39 = vrot.slane %v9638_v7, 6  ;;  %v12111_v17 = vld [vmem:[#allocation52_spill] sm:$0xff] }
 0x4d4   :  { %v4188_v11 = vsel %vm3641_vm8, %v4187_v42, %v4186_v53  ;;  %v4168_v48 = vsel %vm3632_vm5, %v4167_v44, %v4166_v54  ;;  %v4173_v0 = vrot.slane %v12111_v17, 1  ;;  %v4752_v58 = vrot.slane %v9645_v23, 5  ;;  %v10583_v23 = vpop.permute.xlu1 %4046 }
 0x4d5   :  { %v4189_v31 = vsel %vm3644_vm9, %v12110_v25, %v4188_v11  ;;  %v4170_v42 = vsel %vm3635_vm6, %v4169_v62, %v4168_v48  ;;  %v4751_v1 = vsel %vm3626_vm3, %v4750_v39, %v4749_v8  ;;  %v4754_v53 = vrot.slane %v9652_v22, 4  ;;  %12112 = vst [vmem:[#allocation30_spill] sm:$0xff] %v10583_v23  ;;  %v12113_v48 = vld [vmem:[#allocation75_spill] sm:$0xff] }
 0x4d6   :  { %4196 = vrot.lane.b32.xlu1 %v4189_v31, %s5095_s12  ;;  %v4756_v59 = vrot.slane %v9658_v38, 3  ;;  %v4172_v11 = vsel %vm3638_vm7, %v4171_v15, %v4170_v42  ;;  %v4753_v44 = vsel %vm3629_vm4, %v4752_v58, %v4751_v1  ;;  %v4758_v54 = vrot.slane %v9665_v60, 2  ;;  %v10603_v23 = vpop.permute.xlu0 %4044 }
 0x4d7   :  { %v4735_v37 = vrot.slane %v9600_v52, 7  ;;  %v4174_v31 = vsel %vm3641_vm8, %v4173_v0, %v4172_v11  ;;  %v4755_v62 = vsel %vm3632_vm5, %v4754_v53, %v4753_v44  ;;  %v4736_v8 = vrot.slane %v9605_v19, 6 }
 0x4d8   :  { %v4738_v39 = vrot.slane %v9608_v4, 5  ;;  %v4175_v38 = vsel %vm3644_vm9, %v12113_v48, %v4174_v31  ;;  %v4757_v15 = vsel %vm3635_vm6, %v4756_v59, %v4755_v62  ;;  %v4760_v58 = vrot.slane %v9671_v3, 1 }
 0x4d9   :  { %v4740_v42 = vrot.slane %v9612_v14, 4  ;;  %4194 = vrot.lane.b32.xlu0 %v4175_v38, %s5095_s12  ;;  %v4759_v1 = vsel %vm3638_vm7, %v4758_v54, %v4757_v15  ;;  %v4737_v0 = vsel %vm3626_vm3, %v4736_v8, %v4735_v37  ;;  %v4742_v53 = vrot.slane %v9615_v50, 3 }
 0x4da   :  { %v4744_v11 = vrot.slane %v9618_v24, 2  ;;  %v4761_v44 = vsel %vm3641_vm8, %v4760_v58, %v4759_v1  ;;  %v4739_v31 = vsel %vm3629_vm4, %v4738_v39, %v4737_v0  ;;  %v4777_v59 = vrot.slane %v12063_v41, 7  ;;  %v10615_v0 = vpop.permute.xlu1 %4050 }
 0x4db   :  { %v4778_v62 = vrot.slane %v12066_v16, 6  ;;  %v4762_v38 = vsel %vm3644_vm9, %v9676_v51, %v4761_v44  ;;  %v4741_v54 = vsel %vm3632_vm5, %v4740_v42, %v4739_v31  ;;  %v4746_v37 = vrot.slane %v12062_v56, 1 }
 0x4dc   :  { %v4780_v8 = vrot.slane %v12065_v57, 5  ;;  %4793 = vrot.lane.b32.xlu1 %v4762_v38, %s5095_s12  ;;  %v4743_v15 = vsel %vm3635_vm6, %v4742_v53, %v4741_v54  ;;  %v4782_v58 = vrot.slane %v12067_v18, 4  ;;  %v4784_v1 = vrot.slane %v12068_v13, 3 }
 0x4dd   :  { %v4779_v39 = vsel %vm3626_vm3, %v4778_v62, %v4777_v59  ;;  %v4745_v44 = vsel %vm3638_vm7, %v4744_v11, %v4743_v15  ;;  %v4786_v31 = vrot.slane %v12069_v5, 2  ;;  %v4763_v41 = vrot.slane %v12071_v26, 7 }
 0x4de   :  { %v4781_v42 = vsel %vm3629_vm4, %v4780_v8, %v4779_v39  ;;  %v4747_v38 = vsel %vm3641_vm8, %v4746_v37, %v4745_v44  ;;  %v4764_v59 = vrot.slane %v12076_v55, 6  ;;  %v4766_v62 = vrot.slane %v12072_v49, 5  ;;  %v10635_v44 = vpop.permute.xlu0 %4048 }
 0x4df   :  { %v4783_v53 = vsel %vm3632_vm5, %v4782_v58, %v4781_v42  ;;  %v4748_v54 = vsel %vm3644_vm9, %v12064_v40, %v4747_v38  ;;  %v4788_v11 = vrot.slane %v12070_v10, 1  ;;  %v4768_v8 = vrot.slane %v12074_v63, 4 }
 0x4e0   :  { %v4785_v13 = vsel %vm3635_vm6, %v4784_v1, %v4783_v53  ;;  %4791 = vrot.lane.b32.xlu0 %v4748_v54, %s5095_s12  ;;  %v4765_v37 = vsel %vm3626_vm3, %v4764_v59, %v4763_v41  ;;  %v4770_v39 = vrot.slane %v12075_v27, 3  ;;  %v4772_v58 = vrot.slane %v12077_v28, 2  ;;  %v10646_v59 = vpop.permute.xlu1 %4119 }
 0x4e1   :  { %v4787_v15 = vsel %vm3638_vm7, %v4786_v31, %v4785_v13  ;;  %v4767_v1 = vsel %vm3629_vm4, %v4766_v62, %v4765_v37  ;;  %v3660_v38 = vrot.slane %v12102_v35, 7  ;;  %v3662_v53 = vrot.slane %v12103_v32, 6 }
 0x4e2   :  { %v4789_v42 = vsel %vm3641_vm8, %v4788_v11, %v4787_v15  ;;  %v4769_v13 = vsel %vm3632_vm5, %v4768_v8, %v4767_v1  ;;  %v4774_v41 = vrot.slane %v12078_v36, 1  ;;  %v3664_v31 = vrot.slane %v12107_v6, 5  ;;  %v10666_v1 = vpop.permute.xlu0 %4117 }
 0x4e3   :  { %v4790_v54 = vsel %vm3644_vm9, %v12073_v45, %v4789_v42  ;;  %v4771_v11 = vsel %vm3635_vm6, %v4770_v39, %v4769_v13  ;;  %v3666_v62 = vrot.slane %v12108_v46, 4  ;;  %v3668_v35 = vrot.slane %v12109_v21, 3 }
 0x4e4   :  { %4797 = vrot.lane.b32.xlu1 %v4790_v54, %s5095_s12  ;;  %v3670_v32 = vrot.slane %v12111_v17, 2  ;;  %v4773_v15 = vsel %vm3638_vm7, %v4772_v58, %v4771_v11  ;;  %v3672_v8 = vrot.slane %v12113_v48, 1  ;;  %v3661_v37 = vsel %vm3626_vm3, %v3660_v38, %v12101_v61  ;;  %v12115_v11 = vld [vmem:[#allocation78_spill] sm:$0xff] }
 0x4e5   :  { %v3625_v6 = vrot.slane %v9573_v34, 7  ;;  %v4775_v42 = vsel %vm3641_vm8, %v4774_v41, %v4773_v15  ;;  %v3663_v39 = vsel %vm3629_vm4, %v3662_v53, %v3661_v37  ;;  %v3628_v46 = vrot.slane %v12053_v29, 6  ;;  %v12117_v37 = vld [vmem:[#allocation43_spill] sm:$0xff] }
 0x4e6   :  { %v4776_v21 = vsel %vm3644_vm9, %v12079_v33, %v4775_v42  ;;  %v3665_v17 = vsel %vm3632_vm5, %v3664_v31, %v3663_v39  ;;  %v3631_v58 = vrot.slane %v9577_v20, 5  ;;  %v3634_v48 = vrot.slane %v9579_v30, 4  ;;  %v12114_v30 = vld [vmem:[#allocation29_spill] sm:$0xff]  ;;  %v10678_v41 = vpop.permute.xlu1 %4123 }
 0x4e7   :  { %4795 = vrot.lane.b32.xlu0 %v4776_v21, %s5095_s12  ;;  %v3667_v34 = vsel %vm3635_vm6, %v3666_v62, %v3665_v17  ;;  %v3637_v61 = vrot.slane %v9581_v2, 3  ;;  %v3640_v38 = vrot.slane %v12095_v43, 2  ;;  %v3627_v29 = vsel %vm3626_vm3, %v3625_v6, %v12051_v12  ;;  %v12116_v43 = vld [vmem:[#allocation82_spill] sm:$0xff]  ;;  %v12120_v17 = vld [vmem:[#allocation36_spill] sm:$0xff] }
 0x4e8   :  { %v3669_v53 = vsel %vm3638_vm7, %v3668_v35, %v3667_v34  ;;  %v3630_v54 = vsel %vm3629_vm4, %v3628_v46, %v3627_v29  ;;  %v3674_v20 = vrot.slane %v12093_v9, 7  ;;  %v3676_v13 = vrot.slane %v12114_v30, 6  ;;  %v12118_v9 = vld [vmem:[#allocation85_spill] sm:$0xff]  ;;  %v12121_v34 = vld [vmem:[#allocation58_spill] sm:$0xff]  ;;  %v12122_v29 = vld [vmem:[#allocation23_spill] sm:$0xff] }
 0x4e9   :  { %v3671_v31 = vsel %vm3641_vm8, %v3670_v32, %v3669_v53  ;;  %v3643_v62 = vrot.slane %v12115_v11, 1  ;;  %v3633_v2 = vsel %vm3632_vm5, %v3631_v58, %v3630_v54  ;;  %v3678_v15 = vrot.slane %v12116_v43, 5  ;;  %v12119_v46 = vld [vmem:[#allocation89_spill] sm:$0xff]  ;;  %v4122_v30 = vpop.permute.xlu0 %4121 }
 0x4ea   :  { %v3673_v12 = vsel %vm3644_vm9, %v3672_v8, %v3671_v31  ;;  %v3636_v35 = vsel %vm3635_vm6, %v3634_v48, %v3633_v2  ;;  %v3675_v6 = vsel %vm3626_vm3, %v3674_v20, %v12117_v37  ;;  %v3680_v42 = vrot.slane %v12118_v9, 4  ;;  %v12123_v54 = vld [vmem:[#allocation81_spill] sm:$0xff]  ;;  %v12127_v37 = vld [vmem:[#allocation31_spill] sm:$0xff] }
 0x4eb   :  { %3694 = vst.msk [vmem:[#allocation3 + $0x20] sm:$0xff] %vm3064_vm2, %v3673_v12  ;;  %v3639_v39 = vsel %vm3638_vm7, %v3637_v61, %v3636_v35  ;;  %v3677_v32 = vsel %vm3629_vm4, %v3676_v13, %v3675_v6  ;;  %v3682_v21 = vrot.slane %v12119_v46, 3  ;;  %v3684_v58 = vrot.slane %v12120_v17, 2  ;;  %v12124_v11 = vld [vmem:[#allocation49_spill] sm:$0xff]  ;;  %v12130_v17 = vld [vmem:[#allocation38_spill] sm:$0xff] }
 0x4ec   :  { %3767 = vst.msk [vmem:[#allocation3 + $0x20] sm:$0xff] %vm3764_vm10, %v12121_v34  ;;  %v3642_v8 = vsel %vm3641_vm8, %v3640_v38, %v3639_v39  ;;  %v3679_v48 = vsel %vm3632_vm5, %v3678_v15, %v3677_v32  ;;  %v3646_v53 = vrot.slane %v12122_v29, 7  ;;  %v3648_v20 = vrot.slane %v12123_v54, 6  ;;  %v12125_v38 = vld [vmem:[#allocation56_spill] sm:$0xff]  ;;  %v12126_v12 = vld [vmem:[#allocation25_spill] sm:$0xff]  ;;  %v10710_v9 = vpop.permute.xlu1 %4361  ;;  %v12129_v39 = vld [vmem:[#allocation86_spill] sm:$0xff] }
 0x4ed   :  { %v3645_v61 = vsel %vm3644_vm9, %v3643_v62, %v3642_v8  ;;  %v3681_v13 = vsel %vm3635_vm6, %v3680_v42, %v3679_v48  ;;  %v3686_v31 = vrot.slane %v12110_v25, 1  ;;  %v3650_v2 = vrot.slane %v12124_v11, 5  ;;  %v12128_v62 = vld [vmem:[#allocation60_spill] sm:$0xff]  ;;  %v12131_v34 = vld [vmem:[#allocation33_spill] sm:$0xff]  ;;  %v12132_v8 = vld [vmem:[#allocation26_spill] sm:$0xff] }
 0x4ee   :  { %3692 = vst.msk [vmem:[#allocation3] sm:$0xff] %vm3064_vm2, %v3645_v61  ;;  %v3683_v43 = vsel %vm3638_vm7, %v3682_v21, %v3681_v13  ;;  %v3647_v15 = vsel %vm3626_vm3, %v3646_v53, %v12125_v38  ;;  %v3652_v35 = vrot.slane %v12126_v12, 4  ;;  %v3654_v6 = vrot.slane %v12127_v37, 3  ;;  %v12133_v48 = vld [vmem:[#allocation16_spill] sm:$0xff]  ;;  %v12136_v13 = vld [vmem:[#allocation54_spill] sm:$0xff] }
 0x4ef   :  { %3765 = vst.msk [vmem:[#allocation3] sm:$0xff] %vm3764_vm10, %v12128_v62  ;;  %v3685_v25 = vsel %vm3641_vm8, %v3684_v58, %v3683_v43  ;;  %v3649_v42 = vsel %vm3629_vm4, %v3648_v20, %v3647_v15  ;;  %v3656_v32 = vrot.slane %v12129_v39, 2  ;;  %v4253_v29 = vrot.slane %v9638_v7, 7  ;;  %v12134_v53 = vld [vmem:[#allocation92_spill] sm:$0xff]  ;;  %v12135_v20 = vld [vmem:[#allocation87_spill] sm:$0xff]  ;;  %v12140_v12 = vld [vmem:[#allocation50_spill] sm:$0xff] }
 0x4f0   :  { %v3687_v46 = vsel %vm3644_vm9, %v3686_v31, %v3685_v25  ;;  %v3651_v21 = vsel %vm3632_vm5, %v3650_v2, %v3649_v42  ;;  %3838 = vst.msk [vmem:[#allocation3] sm:$0xff] %vm3837_vm11, %v12130_v17  ;;  %3840 = vst.msk [vmem:[#allocation3 + $0x20] sm:$0xff] %vm3837_vm11, %v12131_v34  ;;  %v3658_v61 = vrot.slane %v12135_v20, 1  ;;  %v12137_v31 = vld [vmem:[#allocation24_spill] sm:$0xff]  ;;  %v10739_v2 = vpop.permute.xlu0 %4359  ;;  %v4239_v62 = vrot.slane %v9605_v19, 7  ;;  %v12145_v34 = vld [vmem:[#allocation63_spill] sm:$0xff] }
 0x4f1   :  { %3695 = vst.msk [vmem:[#allocation3 + $0x30] sm:$0xff] %vm3064_vm2, %v3687_v46  ;;  %v3653_v58 = vsel %vm3635_vm6, %v3652_v35, %v3651_v21  ;;  %v4255_v11 = vrot.slane %v12137_v31, 6  ;;  %v12138_v7 = vld [vmem:[#allocation32_spill] sm:$0xff]  ;;  %v4259_v35 = vrot.slane %v12140_v12, 4  ;;  %v4263_v39 = vrot.slane %v9671_v3, 2  ;;  %v12144_v3 = vld [vmem:[#allocation62_spill] sm:$0xff] }
 0x4f2   :  { %3911 = vst.msk [vmem:[#allocation3] sm:$0xff] %vm3910_vm12, %v12132_v8  ;;  %3913 = vst.msk [vmem:[#allocation3 + $0x20] sm:$0xff] %vm3910_vm12, %v12133_v48  ;;  %v3655_v54 = vsel %vm3638_vm7, %v3654_v6, %v3653_v58  ;;  %v12139_v38 = vld [vmem:[#allocation80_spill] sm:$0xff]  ;;  %v12141_v6 = vld [vmem:[#allocation9_spill] sm:$0xff]  ;;  %v4243_v46 = vrot.slane %v9612_v14, 5  ;;  %v4245_v21 = vrot.slane %v9615_v50, 4 }
 0x4f3   :  { %3768 = vst.msk [vmem:[#allocation3 + $0x30] sm:$0xff] %vm3764_vm10, %v12134_v53  ;;  %v3657_v43 = vsel %vm3641_vm8, %v3656_v32, %v3655_v54  ;;  %v4254_v15 = vsel %vm3626_vm3, %v4253_v29, %v12139_v38  ;;  %v10761_v25 = vpop.permute.xlu1 %4365  ;;  %v12143_v32 = vld [vmem:[#allocation93_spill] sm:$0xff]  ;;  %v4281_v17 = vrot.slane %v12066_v16, 7  ;;  %v4249_v14 = vrot.slane %v12062_v56, 2  ;;  %v12146_v8 = vld [vmem:[#allocation51_spill] sm:$0xff]  ;;  %v12147_v16 = vld [vmem:[#allocation44_spill] sm:$0xff] }
 0x4f4   :  { %3984 = vst.msk [vmem:[#allocation3] sm:$0xff] %vm3983_vm13, %v12136_v13  ;;  %3986 = vst.msk [vmem:[#allocation3 + $0x20] sm:$0xff] %vm3983_vm13, %v10572_v47  ;;  %v4257_v47 = vrot.slane %v9652_v22, 5  ;;  %v3659_v37 = vsel %vm3644_vm9, %v3658_v61, %v3657_v43  ;;  %v12142_v22 = vld [vmem:[#allocation27_spill] sm:$0xff]  ;;  %v4283_v58 = vrot.slane %v12065_v57, 6  ;;  %v4285_v53 = vrot.slane %v12067_v18, 5 }
 0x4f5   :  { %3841 = vst.msk [vmem:[#allocation3 + $0x30] sm:$0xff] %vm3837_vm11, %v12138_v7  ;;  %v4282_v29 = vsel %vm3626_vm3, %v4281_v17, %v12147_v16  ;;  %v12148_v54 = vld [vmem:[#allocation30_spill] sm:$0xff]  ;;  %v4251_v57 = vrot.slane %v12064_v40, 1  ;;  %v12149_v61 = vld [vmem:[#allocation91_spill] sm:$0xff]  ;;  %v4289_v43 = vrot.slane %v12069_v5, 3  ;;  %v4267_v7 = vrot.slane %v12076_v55, 7 }
 0x4f6   :  { %4057 = vst.msk [vmem:[#allocation3] sm:$0xff] %vm4056_vm14, %v10603_v23  ;;  %4059 = vst.msk [vmem:[#allocation3 + $0x20] sm:$0xff] %vm4056_vm14, %v10635_v44  ;;  %v4256_v23 = vsel %vm3629_vm4, %v4255_v11, %v4254_v15  ;;  %v4261_v44 = vrot.slane %v9665_v60, 3  ;;  %v4240_v60 = vsel %vm3626_vm3, %v4239_v62, %v9600_v52  ;;  %v4284_v20 = vsel %vm3629_vm4, %v4283_v58, %v4282_v29 }
 0x4f7   :  { %3914 = vst.msk [vmem:[#allocation3 + $0x30] sm:$0xff] %vm3910_vm12, %v12141_v6  ;;  %v4258_v42 = vsel %vm3632_vm5, %v4257_v47, %v4256_v23  ;;  %v4287_v13 = vrot.slane %v12149_v61, 4  ;;  %v4286_v11 = vsel %vm3632_vm5, %v4285_v53, %v4284_v20  ;;  %v4291_v15 = vrot.slane %v12070_v10, 2 }
 0x4f8   :  { %4130 = vst.msk [vmem:[#allocation3] sm:$0xff] %vm4129_vm15, %v10666_v1  ;;  %4132 = vst.msk [vmem:[#allocation3 + $0x20] sm:$0xff] %vm4129_vm15, %v4122_v30  ;;  %v4265_v1 = vrot.slane %v9676_v51, 1  ;;  %v4241_v30 = vrot.slane %v9608_v4, 6  ;;  %v4260_v19 = vsel %vm3635_vm6, %v4259_v35, %v4258_v42  ;;  %v4269_v47 = vrot.slane %v12072_v49, 6 }
 0x4f9   :  { %3693 = vst.msk [vmem:[#allocation3 + $0x10] sm:$0xff] %vm3064_vm2, %v3659_v37  ;;  %v4262_v4 = vsel %vm3638_vm7, %v4261_v44, %v4260_v19  ;;  %v4288_v38 = vsel %vm3635_vm6, %v4287_v13, %v4286_v11  ;;  %v4268_v5 = vsel %vm3626_vm3, %v4267_v7, %v12071_v26  ;;  %v4271_v55 = vrot.slane %v12074_v63, 5 }
 0x4fa   :  { %3987 = vst.msk [vmem:[#allocation3 + $0x30] sm:$0xff] %vm3983_vm13, %v12142_v22  ;;  %v4242_v51 = vsel %vm3629_vm4, %v4241_v30, %v4240_v60  ;;  %v4264_v52 = vsel %vm3641_vm8, %v4263_v39, %v4262_v4  ;;  %v4270_v49 = vsel %vm3629_vm4, %v4269_v47, %v4268_v5  ;;  %v4273_v12 = vrot.slane %v12075_v27, 4 }
 0x4fb   :  { %3766 = vst.msk [vmem:[#allocation3 + $0x10] sm:$0xff] %vm3764_vm10, %v12143_v32  ;;  %v4244_v50 = vsel %vm3632_vm5, %v4243_v46, %v4242_v51  ;;  %v4266_v48 = vsel %vm3644_vm9, %v4265_v1, %v4264_v52  ;;  %v4434_v31 = vpop.permute.xlu1 %4433  ;;  %v4272_v6 = vsel %vm3632_vm5, %v4271_v55, %v4270_v49  ;;  %v4277_v63 = vrot.slane %v12078_v36, 2 }
 0x4fc   :  { %4060 = vst.msk [vmem:[#allocation3 + $0x30] sm:$0xff] %vm4056_vm14, %v10615_v0  ;;  %v4247_v0 = vrot.slane %v9618_v24, 3  ;;  %v4246_v24 = vsel %vm3635_vm6, %v4245_v21, %v4244_v50  ;;  %v4274_v26 = vsel %vm3635_vm6, %v4273_v12, %v4272_v6 }
 0x4fd   :  { %3839 = vst.msk [vmem:[#allocation3 + $0x10] sm:$0xff] %vm3837_vm11, %v12144_v3 }
 0x4fe   :  { %4133 = vst.msk [vmem:[#allocation3 + $0x30] sm:$0xff] %vm4129_vm15, %v10678_v41  ;;  %v4364_v41 = vpop.permute.xlu0 %4363  ;;  %v4248_v56 = vsel %vm3638_vm7, %v4247_v0, %v4246_v24 }
 0x4ff   :  { %3912 = vst.msk [vmem:[#allocation3 + $0x10] sm:$0xff] %vm3910_vm12, %v12145_v34  ;;  %v4250_v18 = vsel %vm3641_vm8, %v4249_v14, %v4248_v56 }
 0x500   :  { %3985 = vst.msk [vmem:[#allocation3 + $0x10] sm:$0xff] %vm3983_vm13, %v12146_v8  ;;  %v4252_v40 = vsel %vm3644_vm9, %v4251_v57, %v4250_v18 }
 0x501   :  { %4058 = vst.msk [vmem:[#allocation3 + $0x10] sm:$0xff] %vm4056_vm14, %v12148_v54  ;;  %v4438_v23 = vpop.permute.xlu1 %4437 }
 0x502   :  { %4300 = vst.msk [vmem:[#allocation3 + $0x18] sm:$0xff] %vm3064_vm2, %v4266_v48  ;;  %4299 = vst.msk [vmem:[#allocation3 + $0x8] sm:$0xff] %vm3064_vm2, %v4252_v40  ;;  %v4432_v35 = vpop.permute.xlu0 %4431 }
 0x503   :  { %4131 = vst.msk [vmem:[#allocation3 + $0x10] sm:$0xff] %vm4129_vm15, %v10646_v59  ;;  %v4290_v59 = vsel %vm3638_vm7, %v4289_v43, %v4288_v38 }
 0x504   :  { %4372 = vst.msk [vmem:[#allocation3 + $0x18] sm:$0xff] %vm3764_vm10, %v10710_v9  ;;  %v4293_v9 = vrot.slane %v12073_v45, 1  ;;  %4371 = vst.msk [vmem:[#allocation3 + $0x8] sm:$0xff] %vm3764_vm10, %v10739_v2  ;;  %v4292_v10 = vsel %vm3641_vm8, %v4291_v15, %v4290_v59  ;;  %v4275_v45 = vrot.slane %v12077_v28, 3  ;;  %v4279_v2 = vrot.slane %v12079_v33, 1 }
 0x505   :  { %4444 = vst.msk [vmem:[#allocation3 + $0x18] sm:$0xff] %vm3837_vm11, %v4434_v31  ;;  %4443 = vst.msk [vmem:[#allocation3 + $0x8] sm:$0xff] %vm3837_vm11, %v4432_v35 }
 0x506   :  { %v4294_v37 = vsel %vm3644_vm9, %v4293_v9, %v4292_v10  ;;  %v4276_v27 = vsel %vm3638_vm7, %v4275_v45, %v4274_v26  ;;  %v4436_v62 = vpop.permute.xlu0 %4435 }
 0x507   :  { %4302 = vst.msk [vmem:[#allocation3 + $0x38] sm:$0xff] %vm3064_vm2, %v4294_v37  ;;  %v4278_v44 = vsel %vm3641_vm8, %v4277_v63, %v4276_v27 }
 0x508   :  { %4374 = vst.msk [vmem:[#allocation3 + $0x38] sm:$0xff] %vm3764_vm10, %v10761_v25  ;;  %v4280_v28 = vsel %vm3644_vm9, %v4279_v2, %v4278_v44  ;;  %v4506_v36 = vpop.permute.xlu1 %4505 }
 0x509   :  { %4446 = vst.msk [vmem:[#allocation3 + $0x38] sm:$0xff] %vm3837_vm11, %v4438_v23 }
 0x50a   :  { %4301 = vst.msk [vmem:[#allocation3 + $0x28] sm:$0xff] %vm3064_vm2, %v4280_v28 }
 0x50b   :  { %4373 = vst.msk [vmem:[#allocation3 + $0x28] sm:$0xff] %vm3764_vm10, %v4364_v41 }
 0x50c   :  { %4445 = vst.msk [vmem:[#allocation3 + $0x28] sm:$0xff] %vm3837_vm11, %v4436_v62  ;;  %v4504_v25 = vpop.permute.xlu0 %4503 }
 0x50d   :  { %4516 = vst.msk [vmem:[#allocation3 + $0x18] sm:$0xff] %vm3910_vm12, %v4506_v36  ;;  %4515 = vst.msk [vmem:[#allocation3 + $0x8] sm:$0xff] %vm3910_vm12, %v4504_v25 }
 0x510   :  { %v4510_v33 = vpop.permute.xlu1 %4509 }
 0x511   :  { %4518 = vst.msk [vmem:[#allocation3 + $0x38] sm:$0xff] %vm3910_vm12, %v4510_v33 }
 0x513   :  { %v4508_v22 = vpop.permute.xlu0 %4507 }
 0x514   :  { %4517 = vst.msk [vmem:[#allocation3 + $0x28] sm:$0xff] %vm3910_vm12, %v4508_v22 }
 0x516   :  { %v4578_v42 = vpop.permute.xlu1 %4577 }
 0x517   :  { %4588 = vst.msk [vmem:[#allocation3 + $0x18] sm:$0xff] %vm3983_vm13, %v4578_v42 }
 0x51a   :  { %v4576_v39 = vpop.permute.xlu0 %4575 }
 0x51b   :  { %4587 = vst.msk [vmem:[#allocation3 + $0x8] sm:$0xff] %vm3983_vm13, %v4576_v39 }
 0x51e   :  { %v4582_v1 = vpop.permute.xlu1 %4581 }
 0x51f   :  { %4590 = vst.msk [vmem:[#allocation3 + $0x38] sm:$0xff] %vm3983_vm13, %v4582_v1 }
 0x521   :  { %v4580_v30 = vpop.permute.xlu0 %4579 }
 0x522   :  { %4589 = vst.msk [vmem:[#allocation3 + $0x28] sm:$0xff] %vm3983_vm13, %v4580_v30 }
 0x524   :  { %v4650_v32 = vpop.permute.xlu1 %4649 }
 0x525   :  { %4660 = vst.msk [vmem:[#allocation3 + $0x18] sm:$0xff] %vm4056_vm14, %v4650_v32 }
 0x528   :  { %v4648_v19 = vpop.permute.xlu0 %4647 }
 0x529   :  { %4659 = vst.msk [vmem:[#allocation3 + $0x8] sm:$0xff] %vm4056_vm14, %v4648_v19 }
 0x52c   :  { %v4654_v60 = vpop.permute.xlu1 %4653 }
 0x52d   :  { %4662 = vst.msk [vmem:[#allocation3 + $0x38] sm:$0xff] %vm4056_vm14, %v4654_v60 }
 0x52f   :  { %v4652_v46 = vpop.permute.xlu0 %4651 }
 0x530   :  { %4661 = vst.msk [vmem:[#allocation3 + $0x28] sm:$0xff] %vm4056_vm14, %v4652_v46 }
 0x532   :  { %v4722_v21 = vpop.permute.xlu1 %4721 }
 0x533   :  { %4732 = vst.msk [vmem:[#allocation3 + $0x18] sm:$0xff] %vm4129_vm15, %v4722_v21 }
 0x536   :  { %v4720_v3 = vpop.permute.xlu0 %4719 }
 0x537   :  { %4731 = vst.msk [vmem:[#allocation3 + $0x8] sm:$0xff] %vm4129_vm15, %v4720_v3 }
 0x53a   :  { %v4726_v4 = vpop.permute.xlu1 %4725 }
 0x53b   :  { %4734 = vst.msk [vmem:[#allocation3 + $0x38] sm:$0xff] %vm4129_vm15, %v4726_v4 }
 0x53d   :  { %v4724_v51 = vpop.permute.xlu0 %4723 }
 0x53e   :  { %4733 = vst.msk [vmem:[#allocation3 + $0x28] sm:$0xff] %vm4129_vm15, %v4724_v51 }
 0x540   :  { %v4193_v0 = vpop.permute.xlu1 %4192 }
 0x541   :  { %4204 = vst.msk [vmem:[#allocation3 + $0x10] sm:$0xff] %vm4202_vm0, %v4193_v0 }
 0x544   :  { %v4191_v17 = vpop.permute.xlu0 %4190 }
 0x545   :  { %4203 = vst.msk [vmem:[#allocation3] sm:$0xff] %vm4202_vm0, %v4191_v17 }
 0x548   :  { %v4197_v34 = vpop.permute.xlu1 %4196 }
 0x549   :  { %4206 = vst.msk [vmem:[#allocation3 + $0x30] sm:$0xff] %vm4202_vm0, %v4197_v34 }
 0x54b   :  { %v4195_v52 = vpop.permute.xlu0 %4194 }
 0x54c   :  { %4205 = vst.msk [vmem:[#allocation3 + $0x20] sm:$0xff] %vm4202_vm0, %v4195_v52 }
 0x54e   :  { %v4794_v50 = vpop.permute.xlu1 %4793 }
 0x54f   :  { %4804 = vst.msk [vmem:[#allocation3 + $0x18] sm:$0xff] %vm4202_vm0, %v4794_v50 }
 0x552   :  { %v4792_v14 = vpop.permute.xlu0 %4791 }
 0x553   :  { %4803 = vst.msk [vmem:[#allocation3 + $0x8] sm:$0xff] %vm4202_vm0, %v4792_v14 }
 0x556   :  { %v4798_v58 = vpop.permute.xlu1 %4797 }
 0x557   :  { %4806 = vst.msk [vmem:[#allocation3 + $0x38] sm:$0xff] %vm4202_vm0, %v4798_v58 }
 0x559   :  { %v4796_v41 = vpop.permute.xlu0 %4795 }
 0x55a   :  { %4805 = vst.msk [vmem:[#allocation3 + $0x28] sm:$0xff] %vm4202_vm0, %v4796_v41 }
 0x55b   :  { %5077 = shalt.err (!%p5074_p4)
}
 0x55c   :  { %s5097_s16 = smov 256  }
 0x55d   :  { %4818 = dma.vmem_to_hbm [thread:$0]  %s4813_s14, 1024, %s10879_s3, [#allocation4], %s5097_s16, %s5097_s16, %s5089_s1  }
 0x55e   :  { %5086 = dma.done.wait [#allocation4], 1024  }
 0x55f   :  { %5087 = vsyncadd [#allocation4], 4294966272 }
 0x560   :  { %4822 = vsyncpa [#allocation4], 1 }

</bundles_post_ra>
